<compile_context>
chip_gen: v7x
topology: tpu7x:2x2x1
jax: 0.10.0
libtpu: 0.0.40
codegen_flags: <defaults>
</compile_context>

<pallas_src>
import jax
import jax.numpy as jnp
from jax import lax
from jax.experimental import pallas as pl
from jax.experimental.pallas import tpu as pltpu

LN_EPS = 1e-5                 # torch.nn.LayerNorm default eps
MXU_DTYPE = jnp.bfloat16      # matmul-operand dtype (accumulation stays f32)


def _mlp_tail_layernorm(h, w2, b2, w3, b3, gamma, beta):
    """ReLU -> Linear -> ReLU -> Linear -> LayerNorm (affine).

    Elementwise / LN math in f32; matmul operands bf16 with f32 accumulation.
    """
    h = jnp.maximum(h, 0.0)
    h = jnp.dot(h.astype(MXU_DTYPE), w2, preferred_element_type=jnp.float32) + b2
    h = jnp.maximum(h, 0.0)
    h = jnp.dot(h.astype(MXU_DTYPE), w3, preferred_element_type=jnp.float32) + b3
    mu = jnp.mean(h, axis=-1, keepdims=True)
    var = jnp.mean((h - mu) ** 2, axis=-1, keepdims=True)
    h = (h - mu) * lax.rsqrt(var + LN_EPS)
    return h * gamma + beta


# ------------------------------ fused kernel -------------------------------- #

def fused_processor_kernel(
        # graph connectivity (tiny int32 inputs, resident in VMEM)
        src_e1_ref, dst_e1_ref, dst_1e_ref,
        # features
        nfeat_in_ref, efeat_in_ref,
        # edge-block params for the current layer
        ew1e_ref, ew1sd_ref, eb1_ref, ew2_ref, eb2_ref, ew3_ref, eb3_ref,
        egamma_ref, ebeta_ref,
        # node-block params for the current layer ([w1a; w1n] fused along K=2D)
        nw1_ref, nb1_ref, nw2_ref, nb2_ref, nw3_ref, nb3_ref,
        ngamma_ref, nbeta_ref,
        # output (constant index_map -> resident across layers; doubles as node state)
        nfeat_out_ref,
        # VMEM scratch (persists across the layer grid)
        efeat_s, gmask_src, gmask_dst, smask_dst):
    layer = pl.program_id(0)
    E, N = gmask_src.shape
    H = eb1_ref.shape[-1]

    # ---- one-time init: copy features in, build one-hot gather/scatter masks ----
    @pl.when(layer == 0)
    def _init():
        nfeat_out_ref[...] = nfeat_in_ref[...]
        efeat_s[...] = efeat_in_ref[...]
        cols = lax.broadcasted_iota(jnp.int32, (E, N), 1)
        gmask_src[...] = jnp.where(cols == src_e1_ref[...], 1.0, 0.0)   # (E, N)
        gmask_dst[...] = jnp.where(cols == dst_e1_ref[...], 1.0, 0.0)   # (E, N)
        rows = lax.broadcasted_iota(jnp.int32, (N, E), 0)
        smask_dst[...] = jnp.where(rows == dst_1e_ref[...], 1.0, 0.0)   # (N, E)

    nfeat = nfeat_out_ref[...]
    efeat = efeat_s[...]

    # ----------------------------- MeshEdgeBlock ----------------------------- #
    # Fused src/dst projection: one 256-wide MXU pass over the node features,
    # then exact (f32) one-hot gathers on the MXU instead of a serial loop.
    proj = jnp.dot(nfeat.astype(MXU_DTYPE), ew1sd_ref[...],
                   preferred_element_type=jnp.float32)                  # (N, 2H)
    gath = (jnp.dot(gmask_src[...], proj[:, :H], preferred_element_type=jnp.float32)
            + jnp.dot(gmask_dst[...], proj[:, H:], preferred_element_type=jnp.float32))
    h = (jnp.dot(efeat.astype(MXU_DTYPE), ew1e_ref[...],
                 preferred_element_type=jnp.float32)
         + gath + eb1_ref[...])
    h = _mlp_tail_layernorm(h, ew2_ref[...], eb2_ref[...], ew3_ref[...],
                            eb3_ref[...], egamma_ref[...], ebeta_ref[...])
    new_efeat = h + efeat                      # residual -> new edge features
    efeat_s[...] = new_efeat

    # ----------------------------- MeshNodeBlock ----------------------------- #
    # Sum-aggregation as an MXU one-hot scatter: (N,E) @ (E,De) — no RMW chain.
    agg = jnp.dot(smask_dst[...], new_efeat, preferred_element_type=jnp.float32)
    # cat([agg, nfeat]) @ [w1a; w1n]  ->  single K=2D matmul (fills 256-deep MXU)
    cat_n = jnp.concatenate([agg, nfeat], axis=-1).astype(MXU_DTYPE)
    h = jnp.dot(cat_n, nw1_ref[...], preferred_element_type=jnp.float32) + nb1_ref[...]
    h = _mlp_tail_layernorm(h, nw2_ref[...], nb2_ref[...], nw3_ref[...],
                            nb3_ref[...], ngamma_ref[...], nbeta_ref[...])
    nfeat_out_ref[...] = h + nfeat             # residual -> new node features


# --------------------------------- wrapper ---------------------------------- #

_EDGE_KEYS = ("w1e", "w1sd", "b1", "w2", "b2", "w3", "b3", "gamma", "beta")
_NODE_KEYS = ("w1", "b1", "w2", "b2", "w3", "b3", "gamma", "beta")


def _vmem_limit_bytes():
    """Per-generation scoped-VMEM budget (v7x has 64 MiB/TC vs 128 MiB on v5e/v6e)."""
    try:
        phys = int(pltpu.get_tpu_info().vmem_capacity_bytes)
    except Exception:
        phys = 64 << 20
    return (96 << 20) if phys >= (100 << 20) else (56 << 20)


@jax.jit
def processor_forward(node_features, edge_features, src_idx, dst_idx,
                      edge_params, node_params):
    N, D = node_features.shape
    E, De = edge_features.shape
    L = edge_params["w1e"].shape[0]

    src_e1 = src_idx.astype(jnp.int32).reshape(E, 1)
    dst_e1 = dst_idx.astype(jnp.int32).reshape(E, 1)
    dst_1e = dst_idx.astype(jnp.int32).reshape(1, E)

    def const_map(l):            # features / indices / output: same block every layer
        return (0, 0)

    def layer_map(l):            # weights: pick layer l (leading dim squeezed)
        return (l, 0, 0)

    in_specs = [
        pl.BlockSpec((E, 1), const_map),     # src indices (column layout)
        pl.BlockSpec((E, 1), const_map),     # dst indices (column layout)
        pl.BlockSpec((1, E), const_map),     # dst indices (row layout, for scatter mask)
        pl.BlockSpec((N, D), const_map),     # node features (resident)
        pl.BlockSpec((E, De), const_map),    # edge features (resident)
    ]
    weight_args = []
    for k in _EDGE_KEYS:
        w = edge_params[k]
        in_specs.append(pl.BlockSpec((None,) + w.shape[1:], layer_map))
        weight_args.append(w)
    for k in _NODE_KEYS:
        w = node_params[k]
        in_specs.append(pl.BlockSpec((None,) + w.shape[1:], layer_map))
        weight_args.append(w)

    grid_spec = pltpu.PrefetchScalarGridSpec(
        num_scalar_prefetch=0,
        grid=(L,),                           # one grid step per processor layer
        in_specs=in_specs,
        out_specs=pl.BlockSpec((N, D), const_map),
        scratch_shapes=[
            pltpu.VMEM((E, De), jnp.float32),   # edge-feature state
            pltpu.VMEM((E, N), jnp.float32),    # one-hot gather mask (src)
            pltpu.VMEM((E, N), jnp.float32),    # one-hot gather mask (dst)
            pltpu.VMEM((N, E), jnp.float32),    # one-hot scatter mask (dst^T)
        ],
    )

    return pl.pallas_call(
        fused_processor_kernel,
        grid_spec=grid_spec,
        out_shape=jax.ShapeDtypeStruct((N, D), node_features.dtype),
        compiler_params=pltpu.CompilerParams(
            dimension_semantics=("arbitrary",),      # layers are sequential
            vmem_limit_bytes=_vmem_limit_bytes(),
        ),
    )(src_e1, dst_e1, dst_1e, node_features, edge_features, *weight_args)


# ----------------------------- parameter creation --------------------------- #

def init_params(key, D, H, L):
    """'PyTorch-like' f32 parameters (separate w1e/w1s/w1d, node w1 already K-fused)."""
    scale = 0.1

    def rnd(k, shape, s=scale):
        return jax.random.normal(k, shape, jnp.float32) * s

    keys = jax.random.split(key, 12)
    edge = dict(
        w1e=rnd(keys[0], (L, D, H)),
        w1s=rnd(keys[1], (L, D, H)),
        w1d=rnd(keys[2], (L, D, H)),
        b1=rnd(keys[3], (L, 1, H), 0.01),
        w2=rnd(keys[4], (L, H, H)),
        b2=rnd(keys[5], (L, 1, H), 0.01),
        w3=rnd(keys[6], (L, H, D)),
        b3=jnp.zeros((L, 1, D), jnp.float32),
        gamma=jnp.ones((L, 1, D), jnp.float32),
        beta=jnp.zeros((L, 1, D), jnp.float32),
    )
    node = dict(
        w1=rnd(keys[7], (L, 2 * D, H)),        # fused [w1a; w1n] along K
        b1=rnd(keys[8], (L, 1, H), 0.01),
        w2=rnd(keys[9], (L, H, H)),
        b2=rnd(keys[10], (L, 1, H), 0.01),
        w3=rnd(keys[11], (L, H, D)),
        b3=jnp.zeros((L, 1, D), jnp.float32),
        gamma=jnp.ones((L, 1, D), jnp.float32),
        beta=jnp.zeros((L, 1, D), jnp.float32),
    )
    return edge, node


def prepare_kernel_params(edge, node):
    """Fuse src/dst projections into one (D, 2H) weight; cast MXU weights to bf16."""
    edge_k = dict(
        w1e=edge["w1e"].astype(MXU_DTYPE),
        w1sd=jnp.concatenate([edge["w1s"], edge["w1d"]], axis=-1).astype(MXU_DTYPE),
        b1=edge["b1"],
        w2=edge["w2"].astype(MXU_DTYPE), b2=edge["b2"],
        w3=edge["w3"].astype(MXU_DTYPE), b3=edge["b3"],
        gamma=edge["gamma"], beta=edge["beta"],
    )
    node_k = dict(
        w1=node["w1"].astype(MXU_DTYPE), b1=node["b1"],
        w2=node["w2"].astype(MXU_DTYPE), b2=node["b2"],
        w3=node["w3"].astype(MXU_DTYPE), b3=node["b3"],
        gamma=node["gamma"], beta=node["beta"],
    )
    return edge_k, node_k


# ------------------------------ pure-JAX reference --------------------------- #

def ref_forward(nfeat, efeat, src_idx, dst_idx, edge, node, num_nodes,
                mxu_dtype=jnp.float32):
    """Original gather -> concat -> MLP -> scatter structure.
    mxu_dtype=float32 reproduces the PyTorch module; bfloat16 mirrors the
    reduced-precision MXU operands used by the kernel (f32 accumulation either way)."""
    def dot(a, b):
        return jnp.dot(a.astype(mxu_dtype), b.astype(mxu_dtype),
                       preferred_element_type=jnp.float32)

    def mlp_ln(x, w1, b1, w2, b2, w3, b3, g, be):
        h = jnp.maximum(dot(x, w1) + b1, 0.0)
        h = jnp.maximum(dot(h, w2) + b2, 0.0)
        h = dot(h, w3) + b3
        mu = h.mean(-1, keepdims=True)
        var = ((h - mu) ** 2).mean(-1, keepdims=True)
        return ((h - mu) * lax.rsqrt(var + LN_EPS)) * g + be

    L = edge["w1e"].shape[0]
    for l in range(L):
        cat_e = jnp.concatenate([efeat, nfeat[src_idx], nfeat[dst_idx]], axis=-1)
        w1 = jnp.concatenate([edge["w1e"][l], edge["w1s"][l], edge["w1d"][l]], axis=0)
        efeat = mlp_ln(cat_e, w1, edge["b1"][l], edge["w2"][l], edge["b2"][l],
                       edge["w3"][l], edge["b3"][l],
                       edge["gamma"][l], edge["beta"][l]) + efeat
        agg = jax.ops.segment_sum(efeat, dst_idx, num_segments=num_nodes)
        cat_n = jnp.concatenate([agg, nfeat], axis=-1)
        nfeat = mlp_ln(cat_n, node["w1"][l], node["b1"][l], node["w2"][l],
                       node["b2"][l], node["w3"][l], node["b3"][l],
                       node["gamma"][l], node["beta"][l]) + nfeat
    return nfeat


# ----------------------------------- main ------------------------------------ #

if __name__ == "__main__":
    PROCESSOR_SIZE = 3      # module default is 15; kept small for the demo
    N, E = 128, 512         # nodes / edges in the synthetic mesh graph
    D = 128                 # input_dim_node == input_dim_edge
    H = 128                 # hidden dim

    key = jax.random.PRNGKey(0)
    key, kn, ke, ks, kd, kp = jax.random.split(key, 6)
    node_features = jax.random.normal(kn, (N, D), jnp.float32)
    edge_features = jax.random.normal(ke, (E, D), jnp.float32)
    src_idx = jax.random.randint(ks, (E,), 0, N, dtype=jnp.int32)
    dst_idx = jax.random.randint(kd, (E,), 0, N, dtype=jnp.int32)

    edge_params, node_params = init_params(kp, D, H, PROCESSOR_SIZE)
    edge_k, node_k = prepare_kernel_params(edge_params, node_params)

    out = processor_forward(node_features, edge_features, src_idx, dst_idx,
                            edge_k, node_k)
    out = jax.block_until_ready(out)
    assert out.shape == (N, D) and out.dtype == jnp.float32

    # Reference matching the kernel's precision config (bf16 MXU operands, f32 accum).
    ref_bf16 = ref_forward(node_features, edge_features, src_idx, dst_idx,
                           edge_params, node_params, N, mxu_dtype=jnp.bfloat16)
    # Full-f32 reference = exact PyTorch-module semantics.
    ref_f32 = ref_forward(node_features, edge_features, src_idx, dst_idx,
                          edge_params, node_params, N, mxu_dtype=jnp.float32)

    err_bf16 = float(jnp.max(jnp.abs(out - ref_bf16)))
    err_f32 = float(jnp.max(jnp.abs(out - ref_f32)))
    print(f"max abs err vs bf16-MXU ref: {err_bf16:.3e}; vs f32 ref: {err_f32:.3e}")

    # Tight check against the same-precision reference ...
    assert jnp.allclose(out, ref_bf16, rtol=1e-2, atol=1e-2), \
        f"bf16-ref max abs err {err_bf16}"
    # ... and a sanity check against the full-f32 module semantics
    # (difference is only bf16-on-MXU rounding noise, per the perf review).
    assert err_f32 < 0.25, f"f32-ref max abs err {err_f32}"

    print("KERNEL_OK")
</pallas_src>

<mosaic_0001>
module attributes {stable_mosaic.version = 11 : i64} {
  func.func @fused_processor_kernel(%arg0: i32, %arg1: memref<512x1xi32, #tpu.memory_space<vmem>>, %arg2: memref<512x1xi32, #tpu.memory_space<vmem>>, %arg3: memref<1x512xi32, #tpu.memory_space<vmem>>, %arg4: memref<128x128xf32, #tpu.memory_space<vmem>>, %arg5: memref<512x128xf32, #tpu.memory_space<vmem>>, %arg6: memref<1x128x128xbf16, #tpu.memory_space<vmem>>, %arg7: memref<1x128x256xbf16, #tpu.memory_space<vmem>>, %arg8: memref<1x1x128xf32, #tpu.memory_space<vmem>>, %arg9: memref<1x128x128xbf16, #tpu.memory_space<vmem>>, %arg10: memref<1x1x128xf32, #tpu.memory_space<vmem>>, %arg11: memref<1x128x128xbf16, #tpu.memory_space<vmem>>, %arg12: memref<1x1x128xf32, #tpu.memory_space<vmem>>, %arg13: memref<1x1x128xf32, #tpu.memory_space<vmem>>, %arg14: memref<1x1x128xf32, #tpu.memory_space<vmem>>, %arg15: memref<1x256x128xbf16, #tpu.memory_space<vmem>>, %arg16: memref<1x1x128xf32, #tpu.memory_space<vmem>>, %arg17: memref<1x128x128xbf16, #tpu.memory_space<vmem>>, %arg18: memref<1x1x128xf32, #tpu.memory_space<vmem>>, %arg19: memref<1x128x128xbf16, #tpu.memory_space<vmem>>, %arg20: memref<1x1x128xf32, #tpu.memory_space<vmem>>, %arg21: memref<1x1x128xf32, #tpu.memory_space<vmem>>, %arg22: memref<1x1x128xf32, #tpu.memory_space<vmem>>, %arg23: memref<128x128xf32, #tpu.memory_space<vmem>>, %arg24: memref<512x128xf32, #tpu.memory_space<vmem>>, %arg25: memref<512x128xf32, #tpu.memory_space<vmem>>, %arg26: memref<512x128xf32, #tpu.memory_space<vmem>>, %arg27: memref<128x512xf32, #tpu.memory_space<vmem>>) attributes {dimension_semantics = [#tpu.dimension_semantics<arbitrary>], iteration_bounds = array<i64: 3>, scalar_prefetch = 0 : i64, scratch_operands = 4 : i64, tpu.core_type = #tpu.core_type<tc>, window_params = [{pipeline_mode = #tpu.pipeline_mode<synchronous>, transform_indices = @transform_0, window_bounds = array<i64: 512, 1>}, {pipeline_mode = #tpu.pipeline_mode<synchronous>, transform_indices = @transform_1, window_bounds = array<i64: 512, 1>}, {pipeline_mode = #tpu.pipeline_mode<synchronous>, transform_indices = @transform_2, window_bounds = array<i64: 1, 512>}, {pipeline_mode = #tpu.pipeline_mode<synchronous>, transform_indices = @transform_3, window_bounds = array<i64: 128, 128>}, {pipeline_mode = #tpu.pipeline_mode<synchronous>, transform_indices = @transform_4, window_bounds = array<i64: 512, 128>}, {transform_indices = @transform_5, window_bounds = array<i64: 1, 128, 128>}, {transform_indices = @transform_6, window_bounds = array<i64: 1, 128, 256>}, {transform_indices = @transform_7, window_bounds = array<i64: 1, 1, 128>}, {transform_indices = @transform_8, window_bounds = array<i64: 1, 128, 128>}, {transform_indices = @transform_9, window_bounds = array<i64: 1, 1, 128>}, {transform_indices = @transform_10, window_bounds = array<i64: 1, 128, 128>}, {transform_indices = @transform_11, window_bounds = array<i64: 1, 1, 128>}, {transform_indices = @transform_12, window_bounds = array<i64: 1, 1, 128>}, {transform_indices = @transform_13, window_bounds = array<i64: 1, 1, 128>}, {transform_indices = @transform_14, window_bounds = array<i64: 1, 256, 128>}, {transform_indices = @transform_15, window_bounds = array<i64: 1, 1, 128>}, {transform_indices = @transform_16, window_bounds = array<i64: 1, 128, 128>}, {transform_indices = @transform_17, window_bounds = array<i64: 1, 1, 128>}, {transform_indices = @transform_18, window_bounds = array<i64: 1, 128, 128>}, {transform_indices = @transform_19, window_bounds = array<i64: 1, 1, 128>}, {transform_indices = @transform_20, window_bounds = array<i64: 1, 1, 128>}, {transform_indices = @transform_21, window_bounds = array<i64: 1, 1, 128>}, {pipeline_mode = #tpu.pipeline_mode<synchronous>, transform_indices = @transform_22, window_bounds = array<i64: 128, 128>}]} {
    %c0_i32 = arith.constant 0 : i32
    %0 = arith.cmpi eq, %arg0, %c0_i32 : i32
    %1 = arith.extui %0 : i1 to i32
    %c0_i32_0 = arith.constant 0 : i32
    %2 = arith.cmpi ne, %1, %c0_i32_0 : i32
    scf.if %2 {
      %c0_88 = arith.constant 0 : index
      %c0_89 = arith.constant 0 : index
      %132 = vector.load %arg4[%c0_88, %c0_89] : memref<128x128xf32, #tpu.memory_space<vmem>>, vector<128x128xf32>
      %c0_90 = arith.constant 0 : index
      %c0_91 = arith.constant 0 : index
      %133 = vector.load %arg23[%c0_90, %c0_91] : memref<128x128xf32, #tpu.memory_space<vmem>>, vector<128x128xf32>
      tpu.vector_store %arg23[%c0_90, %c0_91], %132 {strides = array<i32>} : memref<128x128xf32, #tpu.memory_space<vmem>>, vector<128x128xf32>,
      %c0_92 = arith.constant 0 : index
      %c0_93 = arith.constant 0 : index
      %134 = vector.load %arg5[%c0_92, %c0_93] : memref<512x128xf32, #tpu.memory_space<vmem>>, vector<512x128xf32>
      %c0_94 = arith.constant 0 : index
      %c0_95 = arith.constant 0 : index
      %135 = vector.load %arg24[%c0_94, %c0_95] : memref<512x128xf32, #tpu.memory_space<vmem>>, vector<512x128xf32>
      tpu.vector_store %arg24[%c0_94, %c0_95], %134 {strides = array<i32>} : memref<512x128xf32, #tpu.memory_space<vmem>>, vector<512x128xf32>,
      %136 = tpu.iota {dimensions = array<i32: 1>} : vector<512x128xi32>
      %c0_96 = arith.constant 0 : index
      %c0_97 = arith.constant 0 : index
      %137 = vector.load %arg1[%c0_96, %c0_97] : memref<512x1xi32, #tpu.memory_space<vmem>>, vector<512x1xi32>
      %138 = vector.broadcast %137 : vector<512x1xi32> to vector<512x128xi32>
      %139 = arith.cmpi eq, %136, %138 : vector<512x128xi32>
      %cst_98 = arith.constant 1.000000e+00 : f32
      %cst_99 = arith.constant 0.000000e+00 : f32
      %140 = vector.broadcast %cst_98 : f32 to vector<512x128xf32>
      %141 = vector.broadcast %cst_99 : f32 to vector<512x128xf32>
      %142 = arith.select %139, %140, %141 : vector<512x128xi1>, vector<512x128xf32>
      %c0_100 = arith.constant 0 : index
      %c0_101 = arith.constant 0 : index
      %143 = vector.load %arg25[%c0_100, %c0_101] : memref<512x128xf32, #tpu.memory_space<vmem>>, vector<512x128xf32>
      tpu.vector_store %arg25[%c0_100, %c0_101], %142 {strides = array<i32>} : memref<512x128xf32, #tpu.memory_space<vmem>>, vector<512x128xf32>,
      %c0_102 = arith.constant 0 : index
      %c0_103 = arith.constant 0 : index
      %144 = vector.load %arg2[%c0_102, %c0_103] : memref<512x1xi32, #tpu.memory_space<vmem>>, vector<512x1xi32>
      %145 = vector.broadcast %144 : vector<512x1xi32> to vector<512x128xi32>
      %146 = arith.cmpi eq, %136, %145 : vector<512x128xi32>
      %cst_104 = arith.constant 1.000000e+00 : f32
      %cst_105 = arith.constant 0.000000e+00 : f32
      %147 = vector.broadcast %cst_104 : f32 to vector<512x128xf32>
      %148 = vector.broadcast %cst_105 : f32 to vector<512x128xf32>
      %149 = arith.select %146, %147, %148 : vector<512x128xi1>, vector<512x128xf32>
      %c0_106 = arith.constant 0 : index
      %c0_107 = arith.constant 0 : index
      %150 = vector.load %arg26[%c0_106, %c0_107] : memref<512x128xf32, #tpu.memory_space<vmem>>, vector<512x128xf32>
      tpu.vector_store %arg26[%c0_106, %c0_107], %149 {strides = array<i32>} : memref<512x128xf32, #tpu.memory_space<vmem>>, vector<512x128xf32>,
      %151 = tpu.iota {dimensions = array<i32: 0>} : vector<128x512xi32>
      %c0_108 = arith.constant 0 : index
      %c0_109 = arith.constant 0 : index
      %152 = vector.load %arg3[%c0_108, %c0_109] : memref<1x512xi32, #tpu.memory_space<vmem>>, vector<1x512xi32>
      %153 = vector.broadcast %152 : vector<1x512xi32> to vector<128x512xi32>
      %154 = arith.cmpi eq, %151, %153 : vector<128x512xi32>
      %cst_110 = arith.constant 1.000000e+00 : f32
      %cst_111 = arith.constant 0.000000e+00 : f32
      %155 = vector.broadcast %cst_110 : f32 to vector<128x512xf32>
      %156 = vector.broadcast %cst_111 : f32 to vector<128x512xf32>
      %157 = arith.select %154, %155, %156 : vector<128x512xi1>, vector<128x512xf32>
      %c0_112 = arith.constant 0 : index
      %c0_113 = arith.constant 0 : index
      %158 = vector.load %arg27[%c0_112, %c0_113] : memref<128x512xf32, #tpu.memory_space<vmem>>, vector<128x512xf32>
      tpu.vector_store %arg27[%c0_112, %c0_113], %157 {strides = array<i32>} : memref<128x512xf32, #tpu.memory_space<vmem>>, vector<128x512xf32>,
    } else {
    }
    %c0 = arith.constant 0 : index
    %c0_1 = arith.constant 0 : index
    %3 = vector.load %arg23[%c0, %c0_1] : memref<128x128xf32, #tpu.memory_space<vmem>>, vector<128x128xf32>
    %c0_2 = arith.constant 0 : index
    %c0_3 = arith.constant 0 : index
    %4 = vector.load %arg24[%c0_2, %c0_3] : memref<512x128xf32, #tpu.memory_space<vmem>>, vector<512x128xf32>
    %5 = arith.truncf %3 : vector<128x128xf32> to vector<128x128xbf16>
    %c0_4 = arith.constant 0 : index
    %c0_5 = arith.constant 0 : index
    %c0_6 = arith.constant 0 : index
    %6 = vector.load %arg7[%c0_4, %c0_5, %c0_6] : memref<1x128x256xbf16, #tpu.memory_space<vmem>>, vector<1x128x256xbf16>
    %7 = vector.shape_cast %6 : vector<1x128x256xbf16> to vector<128x256xbf16>
    %cst = arith.constant dense<0.000000e+00> : vector<128x256xf32>
    %8 = tpu.matmul %5, %7, %cst {dimension_numbers = #tpu.dot_dimension_numbers<[1], [0], [0], [1], [0, 0, 1, 1], [], []>} : vector<128x128xbf16>, vector<128x256xbf16>, vector<128x256xf32> -> vector<128x256xf32>
    %c0_7 = arith.constant 0 : index
    %c0_8 = arith.constant 0 : index
    %9 = vector.load %arg25[%c0_7, %c0_8] : memref<512x128xf32, #tpu.memory_space<vmem>>, vector<512x128xf32>
    %10 = vector.extract_strided_slice %8 {offsets = [0, 0], sizes = [128, 128], strides = [1, 1]} : vector<128x256xf32> to vector<128x128xf32>
    %cst_9 = arith.constant dense<0.000000e+00> : vector<512x128xf32>
    %11 = tpu.matmul %9, %10, %cst_9 {dimension_numbers = #tpu.dot_dimension_numbers<[1], [0], [0], [1], [0, 0, 1, 1], [], []>} : vector<512x128xf32>, vector<128x128xf32>, vector<512x128xf32> -> vector<512x128xf32>
    %c0_10 = arith.constant 0 : index
    %c0_11 = arith.constant 0 : index
    %12 = vector.load %arg26[%c0_10, %c0_11] : memref<512x128xf32, #tpu.memory_space<vmem>>, vector<512x128xf32>
    %13 = vector.extract_strided_slice %8 {offsets = [0, 128], sizes = [128, 128], strides = [1, 1]} : vector<128x256xf32> to vector<128x128xf32>
    %cst_12 = arith.constant dense<0.000000e+00> : vector<512x128xf32>
    %14 = tpu.matmul %12, %13, %cst_12 {dimension_numbers = #tpu.dot_dimension_numbers<[1], [0], [0], [1], [0, 0, 1, 1], [], []>} : vector<512x128xf32>, vector<128x128xf32>, vector<512x128xf32> -> vector<512x128xf32>
    %15 = arith.addf %11, %14 : vector<512x128xf32>
    %16 = arith.truncf %4 : vector<512x128xf32> to vector<512x128xbf16>
    %c0_13 = arith.constant 0 : index
    %c0_14 = arith.constant 0 : index
    %c0_15 = arith.constant 0 : index
    %17 = vector.load %arg6[%c0_13, %c0_14, %c0_15] : memref<1x128x128xbf16, #tpu.memory_space<vmem>>, vector<1x128x128xbf16>
    %18 = vector.shape_cast %17 : vector<1x128x128xbf16> to vector<128x128xbf16>
    %cst_16 = arith.constant dense<0.000000e+00> : vector<512x128xf32>
    %19 = tpu.matmul %16, %18, %cst_16 {dimension_numbers = #tpu.dot_dimension_numbers<[1], [0], [0], [1], [0, 0, 1, 1], [], []>} : vector<512x128xbf16>, vector<128x128xbf16>, vector<512x128xf32> -> vector<512x128xf32>
    %20 = arith.addf %19, %15 : vector<512x128xf32>
    %c0_17 = arith.constant 0 : index
    %c0_18 = arith.constant 0 : index
    %c0_19 = arith.constant 0 : index
    %21 = vector.load %arg8[%c0_17, %c0_18, %c0_19] : memref<1x1x128xf32, #tpu.memory_space<vmem>>, vector<1x1x128xf32>
    %22 = vector.shape_cast %21 : vector<1x1x128xf32> to vector<1x128xf32>
    %23 = vector.broadcast %22 : vector<1x128xf32> to vector<512x128xf32>
    %24 = arith.addf %20, %23 : vector<512x128xf32>
    %c0_20 = arith.constant 0 : index
    %c0_21 = arith.constant 0 : index
    %c0_22 = arith.constant 0 : index
    %25 = vector.load %arg9[%c0_20, %c0_21, %c0_22] : memref<1x128x128xbf16, #tpu.memory_space<vmem>>, vector<1x128x128xbf16>
    %26 = vector.shape_cast %25 : vector<1x128x128xbf16> to vector<128x128xbf16>
    %c0_23 = arith.constant 0 : index
    %c0_24 = arith.constant 0 : index
    %c0_25 = arith.constant 0 : index
    %27 = vector.load %arg10[%c0_23, %c0_24, %c0_25] : memref<1x1x128xf32, #tpu.memory_space<vmem>>, vector<1x1x128xf32>
    %28 = vector.shape_cast %27 : vector<1x1x128xf32> to vector<1x128xf32>
    %c0_26 = arith.constant 0 : index
    %c0_27 = arith.constant 0 : index
    %c0_28 = arith.constant 0 : index
    %29 = vector.load %arg11[%c0_26, %c0_27, %c0_28] : memref<1x128x128xbf16, #tpu.memory_space<vmem>>, vector<1x128x128xbf16>
    %30 = vector.shape_cast %29 : vector<1x128x128xbf16> to vector<128x128xbf16>
    %c0_29 = arith.constant 0 : index
    %c0_30 = arith.constant 0 : index
    %c0_31 = arith.constant 0 : index
    %31 = vector.load %arg12[%c0_29, %c0_30, %c0_31] : memref<1x1x128xf32, #tpu.memory_space<vmem>>, vector<1x1x128xf32>
    %32 = vector.shape_cast %31 : vector<1x1x128xf32> to vector<1x128xf32>
    %c0_32 = arith.constant 0 : index
    %c0_33 = arith.constant 0 : index
    %c0_34 = arith.constant 0 : index
    %33 = vector.load %arg13[%c0_32, %c0_33, %c0_34] : memref<1x1x128xf32, #tpu.memory_space<vmem>>, vector<1x1x128xf32>
    %34 = vector.shape_cast %33 : vector<1x1x128xf32> to vector<1x128xf32>
    %c0_35 = arith.constant 0 : index
    %c0_36 = arith.constant 0 : index
    %c0_37 = arith.constant 0 : index
    %35 = vector.load %arg14[%c0_35, %c0_36, %c0_37] : memref<1x1x128xf32, #tpu.memory_space<vmem>>, vector<1x1x128xf32>
    %36 = vector.shape_cast %35 : vector<1x1x128xf32> to vector<1x128xf32>
    %cst_38 = arith.constant 0.000000e+00 : f32
    %37 = vector.broadcast %cst_38 : f32 to vector<512x128xf32>
    %38 = arith.maximumf %24, %37 : vector<512x128xf32>
    %39 = arith.truncf %38 : vector<512x128xf32> to vector<512x128xbf16>
    %cst_39 = arith.constant dense<0.000000e+00> : vector<512x128xf32>
    %40 = tpu.matmul %39, %26, %cst_39 {dimension_numbers = #tpu.dot_dimension_numbers<[1], [0], [0], [1], [0, 0, 1, 1], [], []>} : vector<512x128xbf16>, vector<128x128xbf16>, vector<512x128xf32> -> vector<512x128xf32>
    %41 = vector.broadcast %28 : vector<1x128xf32> to vector<512x128xf32>
    %42 = arith.addf %40, %41 : vector<512x128xf32>
    %cst_40 = arith.constant 0.000000e+00 : f32
    %43 = vector.broadcast %cst_40 : f32 to vector<512x128xf32>
    %44 = arith.maximumf %42, %43 : vector<512x128xf32>
    %45 = arith.truncf %44 : vector<512x128xf32> to vector<512x128xbf16>
    %cst_41 = arith.constant dense<0.000000e+00> : vector<512x128xf32>
    %46 = tpu.matmul %45, %30, %cst_41 {dimension_numbers = #tpu.dot_dimension_numbers<[1], [0], [0], [1], [0, 0, 1, 1], [], []>} : vector<512x128xbf16>, vector<128x128xbf16>, vector<512x128xf32> -> vector<512x128xf32>
    %47 = vector.broadcast %32 : vector<1x128xf32> to vector<512x128xf32>
    %48 = arith.addf %46, %47 : vector<512x128xf32>
    %cst_42 = arith.constant dense<0.000000e+00> : vector<512xf32>
    %49 = vector.multi_reduction <add>, %48, %cst_42 [1] : vector<512x128xf32> to vector<512xf32>
    %50 = vector.shape_cast %49 : vector<512xf32> to vector<512x1xf32>
    %cst_43 = arith.constant 1.280000e+02 : f32
    %51 = vector.broadcast %cst_43 : f32 to vector<512x1xf32>
    %52 = arith.divf %50, %51 : vector<512x1xf32>
    %53 = vector.broadcast %52 : vector<512x1xf32> to vector<512x128xf32>
    %54 = arith.subf %48, %53 : vector<512x128xf32>
    %55 = arith.mulf %54, %54 : vector<512x128xf32>
    %cst_44 = arith.constant dense<0.000000e+00> : vector<512xf32>
    %56 = vector.multi_reduction <add>, %55, %cst_44 [1] : vector<512x128xf32> to vector<512xf32>
    %57 = vector.shape_cast %56 : vector<512xf32> to vector<512x1xf32>
    %cst_45 = arith.constant 1.280000e+02 : f32
    %58 = vector.broadcast %cst_45 : f32 to vector<512x1xf32>
    %59 = arith.divf %57, %58 : vector<512x1xf32>
    %60 = vector.broadcast %52 : vector<512x1xf32> to vector<512x128xf32>
    %61 = arith.subf %48, %60 : vector<512x128xf32>
    %cst_46 = arith.constant 9.99999974E-6 : f32
    %62 = vector.broadcast %cst_46 : f32 to vector<512x1xf32>
    %63 = arith.addf %59, %62 : vector<512x1xf32>
    %64 = math.rsqrt %63 : vector<512x1xf32>
    %65 = vector.broadcast %64 : vector<512x1xf32> to vector<512x128xf32>
    %66 = arith.mulf %61, %65 : vector<512x128xf32>
    %67 = vector.broadcast %34 : vector<1x128xf32> to vector<512x128xf32>
    %68 = arith.mulf %66, %67 : vector<512x128xf32>
    %69 = vector.broadcast %36 : vector<1x128xf32> to vector<512x128xf32>
    %70 = arith.addf %68, %69 : vector<512x128xf32>
    %71 = arith.addf %70, %4 : vector<512x128xf32>
    %c0_47 = arith.constant 0 : index
    %c0_48 = arith.constant 0 : index
    %72 = vector.load %arg24[%c0_47, %c0_48] : memref<512x128xf32, #tpu.memory_space<vmem>>, vector<512x128xf32>
    tpu.vector_store %arg24[%c0_47, %c0_48], %71 {strides = array<i32>} : memref<512x128xf32, #tpu.memory_space<vmem>>, vector<512x128xf32>,
    %c0_49 = arith.constant 0 : index
    %c0_50 = arith.constant 0 : index
    %73 = vector.load %arg27[%c0_49, %c0_50] : memref<128x512xf32, #tpu.memory_space<vmem>>, vector<128x512xf32>
    %cst_51 = arith.constant dense<0.000000e+00> : vector<128x128xf32>
    %74 = tpu.matmul %73, %71, %cst_51 {dimension_numbers = #tpu.dot_dimension_numbers<[1], [0], [0], [1], [0, 0, 1, 1], [], []>} : vector<128x512xf32>, vector<512x128xf32>, vector<128x128xf32> -> vector<128x128xf32>
    %75 = tpu.concatenate %74, %3 in 1 : vector<128x128xf32>, vector<128x128xf32> -> vector<128x256xf32>
    %76 = arith.truncf %75 : vector<128x256xf32> to vector<128x256xbf16>
    %c0_52 = arith.constant 0 : index
    %c0_53 = arith.constant 0 : index
    %c0_54 = arith.constant 0 : index
    %77 = vector.load %arg15[%c0_52, %c0_53, %c0_54] : memref<1x256x128xbf16, #tpu.memory_space<vmem>>, vector<1x256x128xbf16>
    %78 = vector.shape_cast %77 : vector<1x256x128xbf16> to vector<256x128xbf16>
    %cst_55 = arith.constant dense<0.000000e+00> : vector<128x128xf32>
    %79 = tpu.matmul %76, %78, %cst_55 {dimension_numbers = #tpu.dot_dimension_numbers<[1], [0], [0], [1], [0, 0, 1, 1], [], []>} : vector<128x256xbf16>, vector<256x128xbf16>, vector<128x128xf32> -> vector<128x128xf32>
    %c0_56 = arith.constant 0 : index
    %c0_57 = arith.constant 0 : index
    %c0_58 = arith.constant 0 : index
    %80 = vector.load %arg16[%c0_56, %c0_57, %c0_58] : memref<1x1x128xf32, #tpu.memory_space<vmem>>, vector<1x1x128xf32>
    %81 = vector.shape_cast %80 : vector<1x1x128xf32> to vector<1x128xf32>
    %82 = vector.broadcast %81 : vector<1x128xf32> to vector<128x128xf32>
    %83 = arith.addf %79, %82 : vector<128x128xf32>
    %c0_59 = arith.constant 0 : index
    %c0_60 = arith.constant 0 : index
    %c0_61 = arith.constant 0 : index
    %84 = vector.load %arg17[%c0_59, %c0_60, %c0_61] : memref<1x128x128xbf16, #tpu.memory_space<vmem>>, vector<1x128x128xbf16>
    %85 = vector.shape_cast %84 : vector<1x128x128xbf16> to vector<128x128xbf16>
    %c0_62 = arith.constant 0 : index
    %c0_63 = arith.constant 0 : index
    %c0_64 = arith.constant 0 : index
    %86 = vector.load %arg18[%c0_62, %c0_63, %c0_64] : memref<1x1x128xf32, #tpu.memory_space<vmem>>, vector<1x1x128xf32>
    %87 = vector.shape_cast %86 : vector<1x1x128xf32> to vector<1x128xf32>
    %c0_65 = arith.constant 0 : index
    %c0_66 = arith.constant 0 : index
    %c0_67 = arith.constant 0 : index
    %88 = vector.load %arg19[%c0_65, %c0_66, %c0_67] : memref<1x128x128xbf16, #tpu.memory_space<vmem>>, vector<1x128x128xbf16>
    %89 = vector.shape_cast %88 : vector<1x128x128xbf16> to vector<128x128xbf16>
    %c0_68 = arith.constant 0 : index
    %c0_69 = arith.constant 0 : index
    %c0_70 = arith.constant 0 : index
    %90 = vector.load %arg20[%c0_68, %c0_69, %c0_70] : memref<1x1x128xf32, #tpu.memory_space<vmem>>, vector<1x1x128xf32>
    %91 = vector.shape_cast %90 : vector<1x1x128xf32> to vector<1x128xf32>
    %c0_71 = arith.constant 0 : index
    %c0_72 = arith.constant 0 : index
    %c0_73 = arith.constant 0 : index
    %92 = vector.load %arg21[%c0_71, %c0_72, %c0_73] : memref<1x1x128xf32, #tpu.memory_space<vmem>>, vector<1x1x128xf32>
    %93 = vector.shape_cast %92 : vector<1x1x128xf32> to vector<1x128xf32>
    %c0_74 = arith.constant 0 : index
    %c0_75 = arith.constant 0 : index
    %c0_76 = arith.constant 0 : index
    %94 = vector.load %arg22[%c0_74, %c0_75, %c0_76] : memref<1x1x128xf32, #tpu.memory_space<vmem>>, vector<1x1x128xf32>
    %95 = vector.shape_cast %94 : vector<1x1x128xf32> to vector<1x128xf32>
    %cst_77 = arith.constant 0.000000e+00 : f32
    %96 = vector.broadcast %cst_77 : f32 to vector<128x128xf32>
    %97 = arith.maximumf %83, %96 : vector<128x128xf32>
    %98 = arith.truncf %97 : vector<128x128xf32> to vector<128x128xbf16>
    %cst_78 = arith.constant dense<0.000000e+00> : vector<128x128xf32>
    %99 = tpu.matmul %98, %85, %cst_78 {dimension_numbers = #tpu.dot_dimension_numbers<[1], [0], [0], [1], [0, 0, 1, 1], [], []>} : vector<128x128xbf16>, vector<128x128xbf16>, vector<128x128xf32> -> vector<128x128xf32>
    %100 = vector.broadcast %87 : vector<1x128xf32> to vector<128x128xf32>
    %101 = arith.addf %99, %100 : vector<128x128xf32>
    %cst_79 = arith.constant 0.000000e+00 : f32
    %102 = vector.broadcast %cst_79 : f32 to vector<128x128xf32>
    %103 = arith.maximumf %101, %102 : vector<128x128xf32>
    %104 = arith.truncf %103 : vector<128x128xf32> to vector<128x128xbf16>
    %cst_80 = arith.constant dense<0.000000e+00> : vector<128x128xf32>
    %105 = tpu.matmul %104, %89, %cst_80 {dimension_numbers = #tpu.dot_dimension_numbers<[1], [0], [0], [1], [0, 0, 1, 1], [], []>} : vector<128x128xbf16>, vector<128x128xbf16>, vector<128x128xf32> -> vector<128x128xf32>
    %106 = vector.broadcast %91 : vector<1x128xf32> to vector<128x128xf32>
    %107 = arith.addf %105, %106 : vector<128x128xf32>
    %cst_81 = arith.constant dense<0.000000e+00> : vector<128xf32>
    %108 = vector.multi_reduction <add>, %107, %cst_81 [1] : vector<128x128xf32> to vector<128xf32>
    %109 = vector.shape_cast %108 : vector<128xf32> to vector<128x1xf32>
    %cst_82 = arith.constant 1.280000e+02 : f32
    %110 = vector.broadcast %cst_82 : f32 to vector<128x1xf32>
    %111 = arith.divf %109, %110 : vector<128x1xf32>
    %112 = vector.broadcast %111 : vector<128x1xf32> to vector<128x128xf32>
    %113 = arith.subf %107, %112 : vector<128x128xf32>
    %114 = arith.mulf %113, %113 : vector<128x128xf32>
    %cst_83 = arith.constant dense<0.000000e+00> : vector<128xf32>
    %115 = vector.multi_reduction <add>, %114, %cst_83 [1] : vector<128x128xf32> to vector<128xf32>
    %116 = vector.shape_cast %115 : vector<128xf32> to vector<128x1xf32>
    %cst_84 = arith.constant 1.280000e+02 : f32
    %117 = vector.broadcast %cst_84 : f32 to vector<128x1xf32>
    %118 = arith.divf %116, %117 : vector<128x1xf32>
    %119 = vector.broadcast %111 : vector<128x1xf32> to vector<128x128xf32>
    %120 = arith.subf %107, %119 : vector<128x128xf32>
    %cst_85 = arith.constant 9.99999974E-6 : f32
    %121 = vector.broadcast %cst_85 : f32 to vector<128x1xf32>
    %122 = arith.addf %118, %121 : vector<128x1xf32>
    %123 = math.rsqrt %122 : vector<128x1xf32>
    %124 = vector.broadcast %123 : vector<128x1xf32> to vector<128x128xf32>
    %125 = arith.mulf %120, %124 : vector<128x128xf32>
    %126 = vector.broadcast %93 : vector<1x128xf32> to vector<128x128xf32>
    %127 = arith.mulf %125, %126 : vector<128x128xf32>
    %128 = vector.broadcast %95 : vector<1x128xf32> to vector<128x128xf32>
    %129 = arith.addf %127, %128 : vector<128x128xf32>
    %130 = arith.addf %129, %3 : vector<128x128xf32>
    %c0_86 = arith.constant 0 : index
    %c0_87 = arith.constant 0 : index
    %131 = vector.load %arg23[%c0_86, %c0_87] : memref<128x128xf32, #tpu.memory_space<vmem>>, vector<128x128xf32>
    tpu.vector_store %arg23[%c0_86, %c0_87], %130 {strides = array<i32>} : memref<128x128xf32, #tpu.memory_space<vmem>>, vector<128x128xf32>,
    return
  }
  func.func @transform_0(%arg0: i32) -> (i32, i32) {
    %c0_i32 = arith.constant 0 : i32
    %c0_i32_0 = arith.constant 0 : i32
    %c0_i32_1 = arith.constant 0 : i32
    return %c0_i32, %c0_i32_0 : i32, i32
  }
  func.func @transform_1(%arg0: i32) -> (i32, i32) {
    %c0_i32 = arith.constant 0 : i32
    %c0_i32_0 = arith.constant 0 : i32
    %c0_i32_1 = arith.constant 0 : i32
    return %c0_i32, %c0_i32_0 : i32, i32
  }
  func.func @transform_2(%arg0: i32) -> (i32, i32) {
    %c0_i32 = arith.constant 0 : i32
    %c0_i32_0 = arith.constant 0 : i32
    %c0_i32_1 = arith.constant 0 : i32
    return %c0_i32, %c0_i32_0 : i32, i32
  }
  func.func @transform_3(%arg0: i32) -> (i32, i32) {
    %c0_i32 = arith.constant 0 : i32
    %c0_i32_0 = arith.constant 0 : i32
    %c0_i32_1 = arith.constant 0 : i32
    return %c0_i32, %c0_i32_0 : i32, i32
  }
  func.func @transform_4(%arg0: i32) -> (i32, i32) {
    %c0_i32 = arith.constant 0 : i32
    %c0_i32_0 = arith.constant 0 : i32
    %c0_i32_1 = arith.constant 0 : i32
    return %c0_i32, %c0_i32_0 : i32, i32
  }
  func.func @transform_5(%arg0: i32) -> (i32, i32, i32) {
    %c0_i32 = arith.constant 0 : i32
    %c0_i32_0 = arith.constant 0 : i32
    %c0_i32_1 = arith.constant 0 : i32
    return %arg0, %c0_i32, %c0_i32_0 : i32, i32, i32
  }
  func.func @transform_6(%arg0: i32) -> (i32, i32, i32) {
    %c0_i32 = arith.constant 0 : i32
    %c0_i32_0 = arith.constant 0 : i32
    %c0_i32_1 = arith.constant 0 : i32
    return %arg0, %c0_i32, %c0_i32_0 : i32, i32, i32
  }
  func.func @transform_7(%arg0: i32) -> (i32, i32, i32) {
    %c0_i32 = arith.constant 0 : i32
    %c0_i32_0 = arith.constant 0 : i32
    %c0_i32_1 = arith.constant 0 : i32
    return %arg0, %c0_i32, %c0_i32_0 : i32, i32, i32
  }
  func.func @transform_8(%arg0: i32) -> (i32, i32, i32) {
    %c0_i32 = arith.constant 0 : i32
    %c0_i32_0 = arith.constant 0 : i32
    %c0_i32_1 = arith.constant 0 : i32
    return %arg0, %c0_i32, %c0_i32_0 : i32, i32, i32
  }
  func.func @transform_9(%arg0: i32) -> (i32, i32, i32) {
    %c0_i32 = arith.constant 0 : i32
    %c0_i32_0 = arith.constant 0 : i32
    %c0_i32_1 = arith.constant 0 : i32
    return %arg0, %c0_i32, %c0_i32_0 : i32, i32, i32
  }
  func.func @transform_10(%arg0: i32) -> (i32, i32, i32) {
    %c0_i32 = arith.constant 0 : i32
    %c0_i32_0 = arith.constant 0 : i32
    %c0_i32_1 = arith.constant 0 : i32
    return %arg0, %c0_i32, %c0_i32_0 : i32, i32, i32
  }
  func.func @transform_11(%arg0: i32) -> (i32, i32, i32) {
    %c0_i32 = arith.constant 0 : i32
    %c0_i32_0 = arith.constant 0 : i32
    %c0_i32_1 = arith.constant 0 : i32
    return %arg0, %c0_i32, %c0_i32_0 : i32, i32, i32
  }
  func.func @transform_12(%arg0: i32) -> (i32, i32, i32) {
    %c0_i32 = arith.constant 0 : i32
    %c0_i32_0 = arith.constant 0 : i32
    %c0_i32_1 = arith.constant 0 : i32
    return %arg0, %c0_i32, %c0_i32_0 : i32, i32, i32
  }
  func.func @transform_13(%arg0: i32) -> (i32, i32, i32) {
    %c0_i32 = arith.constant 0 : i32
    %c0_i32_0 = arith.constant 0 : i32
    %c0_i32_1 = arith.constant 0 : i32
    return %arg0, %c0_i32, %c0_i32_0 : i32, i32, i32
  }
  func.func @transform_14(%arg0: i32) -> (i32, i32, i32) {
    %c0_i32 = arith.constant 0 : i32
    %c0_i32_0 = arith.constant 0 : i32
    %c0_i32_1 = arith.constant 0 : i32
    return %arg0, %c0_i32, %c0_i32_0 : i32, i32, i32
  }
  func.func @transform_15(%arg0: i32) -> (i32, i32, i32) {
    %c0_i32 = arith.constant 0 : i32
    %c0_i32_0 = arith.constant 0 : i32
    %c0_i32_1 = arith.constant 0 : i32
    return %arg0, %c0_i32, %c0_i32_0 : i32, i32, i32
  }
  func.func @transform_16(%arg0: i32) -> (i32, i32, i32) {
    %c0_i32 = arith.constant 0 : i32
    %c0_i32_0 = arith.constant 0 : i32
    %c0_i32_1 = arith.constant 0 : i32
    return %arg0, %c0_i32, %c0_i32_0 : i32, i32, i32
  }
  func.func @transform_17(%arg0: i32) -> (i32, i32, i32) {
    %c0_i32 = arith.constant 0 : i32
    %c0_i32_0 = arith.constant 0 : i32
    %c0_i32_1 = arith.constant 0 : i32
    return %arg0, %c0_i32, %c0_i32_0 : i32, i32, i32
  }
  func.func @transform_18(%arg0: i32) -> (i32, i32, i32) {
    %c0_i32 = arith.constant 0 : i32
    %c0_i32_0 = arith.constant 0 : i32
    %c0_i32_1 = arith.constant 0 : i32
    return %arg0, %c0_i32, %c0_i32_0 : i32, i32, i32
  }
  func.func @transform_19(%arg0: i32) -> (i32, i32, i32) {
    %c0_i32 = arith.constant 0 : i32
    %c0_i32_0 = arith.constant 0 : i32
    %c0_i32_1 = arith.constant 0 : i32
    return %arg0, %c0_i32, %c0_i32_0 : i32, i32, i32
  }
  func.func @transform_20(%arg0: i32) -> (i32, i32, i32) {
    %c0_i32 = arith.constant 0 : i32
    %c0_i32_0 = arith.constant 0 : i32
    %c0_i32_1 = arith.constant 0 : i32
    return %arg0, %c0_i32, %c0_i32_0 : i32, i32, i32
  }
  func.func @transform_21(%arg0: i32) -> (i32, i32, i32) {
    %c0_i32 = arith.constant 0 : i32
    %c0_i32_0 = arith.constant 0 : i32
    %c0_i32_1 = arith.constant 0 : i32
    return %arg0, %c0_i32, %c0_i32_0 : i32, i32, i32
  }
  func.func @transform_22(%arg0: i32) -> (i32, i32) {
    %c0_i32 = arith.constant 0 : i32
    %c0_i32_0 = arith.constant 0 : i32
    %c0_i32_1 = arith.constant 0 : i32
    return %c0_i32, %c0_i32_0 : i32, i32
  }
}

</mosaic_0001>

<bundles_post_ra>
// kernel: processor_forward.1
= control target key start
LH: loop header
LB: loop body
LE: loop exit
PB: predicated region body
PF: predicated region fallthrough
CT: control target
= control target key end

     0   :  { %s13631_s0 = inlined_call_operand.vmem [shape: s32[512,1], index: 0, kind: input, shape index: {}]   ;;  %s13632_s1 = inlined_call_operand.vmem [shape: s32[512,1], index: 1, kind: input, shape index: {}]   ;;  %s13633_s2 = inlined_call_operand.vmem [shape: s32[1,512], index: 2, kind: input, shape index: {}]   ;;  %s13634_s3 = inlined_call_operand.hbm [shape: f32[128,128], index: 3, kind: input, shape index: {}]   ;;  %s13635_s4 = inlined_call_operand.vmem [shape: f32[512,128], index: 4, kind: input, shape index: {}]   ;;  %s13636_s5 = inlined_call_operand.hbm [shape: bf16[3,128,128], index: 5, kind: input, shape index: {}]   ;;  %s13637_s6 = inlined_call_operand.vmem [shape: bf16[3,128,256], index: 6, kind: input, shape index: {}]   ;;  %s13638_s7 = inlined_call_operand.hbm [shape: f32[3,1,128], index: 7, kind: input, shape index: {}]   ;;  %s13639_s8 = inlined_call_operand.hbm [shape: bf16[3,128,128], index: 8, kind: input, shape index: {}]   ;;  %s13640_s9 = inlined_call_operand.hbm [shape: f32[3,1,128], index: 9, kind: input, shape index: {}]   ;;  %s13641_s10 = inlined_call_operand.hbm [shape: bf16[3,128,128], index: 10, kind: input, shape index: {}]   ;;  %s13642_s11 = inlined_call_operand.hbm [shape: f32[3,1,128], index: 11, kind: input, shape index: {}]   ;;  %s13643_s12 = inlined_call_operand.hbm [shape: f32[3,1,128], index: 12, kind: input, shape index: {}]   ;;  %s13644_s13 = inlined_call_operand.hbm [shape: f32[3,1,128], index: 13, kind: input, shape index: {}]   ;;  %s13645_s14 = inlined_call_operand.hbm [shape: bf16[3,256,128], index: 14, kind: input, shape index: {}]   ;;  %s13646_s15 = inlined_call_operand.hbm [shape: f32[3,1,128], index: 15, kind: input, shape index: {}]   ;;  %s13647_s16 = inlined_call_operand.vmem [shape: bf16[3,128,128], index: 16, kind: input, shape index: {}]   ;;  %s13648_s17 = inlined_call_operand.hbm [shape: f32[3,1,128], index: 17, kind: input, shape index: {}]   ;;  %s13649_s18 = inlined_call_operand.hbm [shape: bf16[3,128,128], index: 18, kind: input, shape index: {}]   ;;  %s13650_s19 = inlined_call_operand.hbm [shape: f32[3,1,128], index: 19, kind: input, shape index: {}]   ;;  %s13651_s20 = inlined_call_operand.vmem [shape: f32[3,1,128], index: 20, kind: input, shape index: {}]   ;;  %s13652_s21 = inlined_call_operand.vmem [shape: f32[3,1,128], index: 21, kind: input, shape index: {}]   ;;  %s13653_s22 = inlined_call_operand.hbm [shape: f32[128,128], index: 22, kind: output, shape index: {}]  }
   0x1   :  { %13733 = sst [smem:[#allocation78_spill]] %s13631_s0 }
   0x2   :  { %13734 = sst [smem:[#allocation79_spill]] %s13632_s1 }
   0x3   :  { %13735 = sst [smem:[#allocation80_spill]] %s13633_s2 }
   0x4   :  { %13736 = sst [smem:[#allocation81_spill]] %s13634_s3 }
   0x5   :  { %13737 = sst [smem:[#allocation82_spill]] %s13635_s4 }
   0x6   :  { %13738 = sst [smem:[#allocation83_spill]] %s13636_s5 }
   0x7   :  { %13739 = sst [smem:[#allocation84_spill]] %s13637_s6 }
   0x8   :  { %13740 = sst [smem:[#allocation85_spill]] %s13638_s7 }
   0x9   :  { %13741 = sst [smem:[#allocation86_spill]] %s13639_s8 }
   0xa   :  { %13742 = sst [smem:[#allocation87_spill]] %s13640_s9 }
   0xb   :  { %13743 = sst [smem:[#allocation88_spill]] %s13641_s10 }
   0xc   :  { %13744 = sst [smem:[#allocation89_spill]] %s13642_s11 }
   0xd   :  { %13745 = sst [smem:[#allocation90_spill]] %s13643_s12 }
   0xe   :  { %13746 = sst [smem:[#allocation91_spill]] %s13645_s14 }
   0xf   :  { %13747 = sst [smem:[#allocation92_spill]] %s13647_s16 }
  0x10   :  { %13748 = sst [smem:[#allocation93_spill]] %s13648_s17 }
  0x11   :  { %13749 = sst [smem:[#allocation94_spill]] %s13649_s18 }
  0x12   :  { %13750 = sst [smem:[#allocation95_spill]] %s13650_s19 }
  0x13   :  { %13751 = sst [smem:[#allocation96_spill]] %s13651_s20 }
  0x14   :  { %13752 = sst [smem:[#allocation97_spill]] %s13652_s21 }
  0x15   :  { %13753 = sst [smem:[#allocation98_spill]] %s13653_s22 }
  0x16   :  { %27 = vsyncpa [#allocation7], 0 }
  0x17   :  { %28 = vsyncpa [#allocation10], 0 }
  0x18   :  { %30 = vsyncpa [#allocation10 + $0x1], 0 }
  0x19   :  { %31 = vsyncpa [#allocation13], 0 }
  0x1a   :  { %33 = vsyncpa [#allocation13 + $0x1], 0 }
  0x1b   :  { %34 = vsyncpa [#allocation16], 0 }
  0x1c   :  { %36 = vsyncpa [#allocation16 + $0x1], 0 }
  0x1d   :  { %37 = vsyncpa [#allocation19], 0 }
  0x1e   :  { %39 = vsyncpa [#allocation19 + $0x1], 0 }
  0x1f   :  { %40 = vsyncpa [#allocation22], 0 }
  0x20   :  { %42 = vsyncpa [#allocation22 + $0x1], 0 }
  0x21   :  { %43 = vsyncpa [#allocation25], 0 }
  0x22   :  { %45 = vsyncpa [#allocation25 + $0x1], 0 }
  0x23   :  { %46 = vsyncpa [#allocation28], 0 }
  0x24   :  { %48 = vsyncpa [#allocation28 + $0x1], 0 }
  0x25   :  { %49 = vsyncpa [#allocation8], 0  ;;  %s10114_s3 = smov 0   ;;  %s10116_s28 = smov 0  }
  0x26   :  { %s10118_s29 = smov 0   ;;  %s10120_s30 = smov 0  }
  0x27 LB: > { %13754 = sst [smem:[#allocation39_spill]] %s9965_s28  ;;  %s10135_s4 = sadd.s32 1, %s9973_s30   ;;  %s9973_s30 = sphi %s10120_s30, %s13985_s30   ;;  %s9969_s29 = sphi %s10118_s29, %s13988_s29   ;;  %s9965_s28 = sphi %s10116_s28, %s13987_s28   ;;  %s9961_s3 = sphi %s10114_s3, %s13986_s3  }
  0x28   : > { %13755 = sst [smem:[#allocation40_spill]] %s9969_s29  ;;  %s167_s0 = sadd.s32 1, %s9969_s29 }
  0x29   : > { %13756 = sst [smem:[#allocation41_spill]] %s10135_s4  ;;  %s164_s23 = ssub.s32 %s9973_s30, %s10135_s4 }
  0x2a   : > { %p174_p0 = scmp.ne.s32.totalorder %s9969_s29, %s9965_s28  ;;  %p165_p1 = scmp.eq.s32.totalorder %s164_s23, 0 }
  0x2b   : > { %p175_p2 = scmp.eq.s32.totalorder %s9973_s30, 0  ;;  %p9092_p3 = scmp.lt.s32.totalorder %s9973_s30, 3 }
  0x2c   : > { %s10145_s1 = scalar_select %p165_p1, %s9969_s29, %s167_s0  }
  0x2d   : > { %p176_p4 = por %p175_p2, %p174_p0  ;;  %s10148_s5 = sand.u32 1, %s9973_s30  }
  0x2e   : > { %13757 = sst [smem:[#allocation42_spill]] %s10145_s1  ;;  %s10151_s24 = sand.u32 1, %s9969_s29  }
  0x2f   : > { %s10154_s6 = sshll.u32 %s10151_s24, 6  ;;  %s10157_s25 = sshll.u32 %s9973_s30, 10 }
  0x30   : > { %s13758_s27 = sld [smem:[#allocation83_spill]]  ;;  %s670_s0 = scalar_lea.vmem [#allocation9], %s10154_s6 }
  0x31   : > { %s677_s1 = sshll.u32 %s670_s0, 4  ;;  %p10166_p5 = pnand %p9092_p3, %p176_p4  ;;  %s10170_s1 = int_to_ptr.vmem [resolvable:$true] %s677_s1 }
  0x33   : > { %s13759_s29 = scalar_select %p10166_p5, 1, 0 }
  0x34   : > { %p10177_p7 = pneg %p10166_p5 }
  0x36   : > { %s10163_s23 = scalar_lea.hbm %s13758_s27, %s10157_s25  ;;  %s9468_s21 = scalar_lea.hbm %s13758_s27, 3072 }
  0x37   : > { %s9463_s22 = scalar_lea.hbm %s10163_s23, 1024  ;;  %p9469_p10 = scmp.lt.u32.totalorder %s10163_s23, %s13758_s27 }
  0x38   : > { %p9464_p6 = scmp.ne.s32.totalorder %s10163_s23, %s9463_s22  ;;  %p9470_p11 = scmp.lt.u32.totalorder %s9468_s21, %s9463_s22 }
  0x39   : > { %s13760_s26 = scalar_select %p10177_p7, 1, 0 }
  0x3a   : > { %p9466_p8 = pnand %p10177_p7, %p9464_p6  ;;  %p9471_p12 = por %p9470_p11, %p9469_p10 }
  0x3b   : > { %p9472_p13 = scmp.lt.u32.totalorder %s9463_s22, %s10163_s23 }
  0x3c   : > { %p9467_p9 = pneg %p9466_p8 }
  0x3d   : > { %p9473_p0 = por %p9472_p13, %p9471_p12 }
  0x3f   : > { %p9474_p1 = pnand %p9473_p0, %p9467_p9 }
  0x41   : > { %9477 = shalt.err (!%p9474_p1)
}
  0x42   : > { %s9478_s4 = scalar_lea.vmem %s10170_s1, 1024  ;;  %s9975_s2 = smov [#allocation9]  }
  0x43   : > { %p9479_p2 = scmp.ne.s32.totalorder %s10170_s1, %s9478_s4  ;;  %s9483_s0 = sshll.u32 %s9975_s2, 4  ;;  %s9484_s0 = int_to_ptr.vmem [resolvable:$false] %s9483_s0 }
  0x44   : > { %s9485_s16 = scalar_lea.vmem %s9484_s0, 2048  ;;  %p9486_p6 = scmp.lt.s32.totalorder %s10170_s1, %s9484_s0 }
  0x45   : > { %p9481_p3 = pnand %p9479_p2, %p10177_p7  ;;  %p9487_p8 = scmp.lt.s32.totalorder %s9485_s16, %s9478_s4 }
  0x47   : > { %p9482_p4 = pneg %p9481_p3  ;;  %p9488_p10 = por %p9487_p8, %p9486_p6 }
  0x49   : > { %p9489_p11 = pnand %p9488_p10, %p9482_p4 }
  0x4b   : > { %9492 = shalt.err (!%p9489_p11)
}
  0x4c   : > { %s13668_s20 = smov 64   ;;  %s13671_s21 = smov 4  }
  0x4d   : > { %s13761_s22 = scalar_lea.sflag [#allocation10], %s10148_s5  ;;  %s13762_s8 = sld [smem:[#allocation86_spill]] }
  0x4e   : > { %9054 = dma.hbm_to_vmem [thread:$0]  (!%p10166_p5), %s10163_s23, 1024, %s10170_s1, %s13761_s22, %s13668_s20, %s13668_s20, %s13671_s21  }
  0x4f   : > { %s716_s16 = scalar_lea.vmem [#allocation12], %s10154_s6  ;;  %s13666_s19 = scalar_lea.sflag [#allocation13], %s10148_s5 }
  0x50   : > { %s723_s27 = sshll.u32 %s716_s16, 4  ;;  %s10212_s27 = int_to_ptr.vmem [resolvable:$true] %s723_s27 }
  0x53   : > { %s10209_s0 = scalar_lea.hbm %s13762_s8, %s10157_s25  ;;  %s9498_s22 = scalar_lea.hbm %s13762_s8, 3072 }
  0x54   : > { %s9493_s18 = scalar_lea.hbm %s10209_s0, 1024  ;;  %p9499_p0 = scmp.lt.u32.totalorder %s10209_s0, %s13762_s8 }
  0x55   : > { %p9494_p9 = scmp.ne.s32.totalorder %s10209_s0, %s9493_s18  ;;  %p9500_p1 = scmp.lt.u32.totalorder %s9498_s22, %s9493_s18 }
  0x56   : > { %p9502_p3 = scmp.lt.u32.totalorder %s9493_s18, %s10209_s0 }
  0x57   : > { %p9496_p12 = pnand %p9494_p9, %p10177_p7  ;;  %p9501_p2 = por %p9500_p1, %p9499_p0 }
  0x59   : > { %p9497_p13 = pneg %p9496_p12  ;;  %p9503_p4 = por %p9502_p3, %p9501_p2 }
  0x5b   : > { %p9504_p6 = pnand %p9503_p4, %p9497_p13 }
  0x5d   : > { %9507 = shalt.err (!%p9504_p6)
}
  0x5e   : > { %s9508_s16 = scalar_lea.vmem %s10212_s27, 1024  ;;  %s9978_s1 = smov [#allocation12]  }
  0x5f   : > { %p9509_p8 = scmp.ne.s32.totalorder %s10212_s27, %s9508_s16  ;;  %s9513_s23 = sshll.u32 %s9978_s1, 4  ;;  %s9514_s23 = int_to_ptr.vmem [resolvable:$false] %s9513_s23 }
  0x60   : > { %s9515_s4 = scalar_lea.vmem %s9514_s23, 2048  ;;  %p9516_p9 = scmp.lt.s32.totalorder %s10212_s27, %s9514_s23 }
  0x61   : > { %p9511_p10 = pnand %p9509_p8, %p10177_p7  ;;  %p9517_p12 = scmp.lt.s32.totalorder %s9515_s4, %s9508_s16 }
  0x63   : > { %p9512_p11 = pneg %p9511_p10  ;;  %p9518_p0 = por %p9517_p12, %p9516_p9 }
  0x65   : > { %p9519_p1 = pnand %p9518_p0, %p9512_p11 }
  0x67   : > { %9522 = shalt.err (!%p9519_p1)
}
  0x68   : > { %9060 = dma.hbm_to_vmem [thread:$0]  (!%p10166_p5), %s10209_s0, 1024, %s10212_s27, %s13666_s19, %s13668_s20, %s13668_s20, %s13671_s21  }
  0x69   : > { %s13763_s10 = sld [smem:[#allocation88_spill]]  ;;  %s754_s16 = scalar_lea.vmem [#allocation15], %s10154_s6 }
  0x6a   : > { %s761_s1 = sshll.u32 %s754_s16, 4  ;;  %s10249_s23 = sshll.u32 %s9973_s30, 4  ;;  %s10251_s1 = int_to_ptr.vmem [resolvable:$true] %s761_s1 }
  0x6b   : > { %s13667_s4 = scalar_lea.sflag [#allocation16], %s10148_s5 }
  0x6f   : > { %s10245_s2 = scalar_lea.hbm %s13763_s10, %s10157_s25  ;;  %s9528_s18 = scalar_lea.hbm %s13763_s10, 3072 }
  0x70   : > { %s9523_s8 = scalar_lea.hbm %s10245_s2, 1024  ;;  %p9529_p4 = scmp.lt.u32.totalorder %s10245_s2, %s13763_s10 }
  0x71   : > { %p9524_p13 = scmp.ne.s32.totalorder %s10245_s2, %s9523_s8  ;;  %p9530_p6 = scmp.lt.u32.totalorder %s9528_s18, %s9523_s8 }
  0x72   : > { %p9532_p10 = scmp.lt.u32.totalorder %s9523_s8, %s10245_s2 }
  0x73   : > { %p9526_p2 = pnand %p9524_p13, %p10177_p7  ;;  %p9531_p8 = por %p9530_p6, %p9529_p4 }
  0x75   : > { %p9527_p3 = pneg %p9526_p2  ;;  %p9533_p11 = por %p9532_p10, %p9531_p8 }
  0x77   : > { %p9534_p9 = pnand %p9533_p11, %p9527_p3 }
  0x79   : > { %9537 = shalt.err (!%p9534_p9)
}
  0x7a   : > { %s9538_s16 = scalar_lea.vmem %s10251_s1, 1024  ;;  %s9979_s27 = smov [#allocation15]  }
  0x7b   : > { %p9539_p12 = scmp.ne.s32.totalorder %s10251_s1, %s9538_s16  ;;  %s9543_s0 = sshll.u32 %s9979_s27, 4  ;;  %s9544_s0 = int_to_ptr.vmem [resolvable:$false] %s9543_s0 }
  0x7c   : > { %s9545_s19 = scalar_lea.vmem %s9544_s0, 2048  ;;  %p9546_p13 = scmp.lt.s32.totalorder %s10251_s1, %s9544_s0 }
  0x7d   : > { %p9541_p0 = pnand %p9539_p12, %p10177_p7  ;;  %p9547_p2 = scmp.lt.s32.totalorder %s9545_s19, %s9538_s16 }
  0x7f   : > { %p9542_p1 = pneg %p9541_p0  ;;  %p9548_p4 = por %p9547_p2, %p9546_p13 }
  0x81   : > { %p9549_p6 = pnand %p9548_p4, %p9542_p1 }
  0x83   : > { %9552 = shalt.err (!%p9549_p6)
}
  0x84   : > { %9066 = dma.hbm_to_vmem [thread:$0]  (!%p10166_p5), %s10245_s2, 1024, %s10251_s1, %s13667_s4, %s13668_s20, %s13668_s20, %s13671_s21  }
  0x85   : > { %s13764_s12 = sld [smem:[#allocation90_spill]]  ;;  %s791_s16 = scalar_lea.vmem [#allocation18], %s10151_s24 }
  0x86   : > { %s798_s27 = sshll.u32 %s791_s16, 4  ;;  %s7611_s0 = sshll.u32 %s10151_s24, 7  ;;  %s10287_s27 = int_to_ptr.vmem [resolvable:$true] %s798_s27 }
  0x87   : > { %s13670_s19 = scalar_lea.sflag [#allocation19], %s10148_s5 }
  0x8b   : > { %s10284_s22 = scalar_lea.hbm %s13764_s12, %s10249_s23  ;;  %s9558_s8 = scalar_lea.hbm %s13764_s12, 48 }
  0x8c   : > { %s9553_s10 = scalar_lea.hbm %s10284_s22, 16  ;;  %p9559_p11 = scmp.lt.u32.totalorder %s10284_s22, %s13764_s12 }
  0x8d   : > { %p9554_p3 = scmp.ne.s32.totalorder %s10284_s22, %s9553_s10  ;;  %p9560_p9 = scmp.lt.u32.totalorder %s9558_s8, %s9553_s10 }
  0x8e   : > { %p9562_p0 = scmp.lt.u32.totalorder %s9553_s10, %s10284_s22 }
  0x8f   : > { %p9556_p8 = pnand %p9554_p3, %p10177_p7  ;;  %p9561_p12 = por %p9560_p9, %p9559_p11 }
  0x91   : > { %p9557_p10 = pneg %p9556_p8  ;;  %p9563_p1 = por %p9562_p0, %p9561_p12 }
  0x93   : > { %p9564_p13 = pnand %p9563_p1, %p9557_p10 }
  0x95   : > { %9567 = shalt.err (!%p9564_p13)
}
  0x96   : > { %s9568_s16 = scalar_lea.vmem %s10287_s27, 16  ;;  %s9980_s2 = smov [#allocation18]  }
  0x97   : > { %p9569_p2 = scmp.ne.s32.totalorder %s10287_s27, %s9568_s16  ;;  %s9573_s1 = sshll.u32 %s9980_s2, 4  ;;  %s9574_s1 = int_to_ptr.vmem [resolvable:$false] %s9573_s1 }
  0x98   : > { %s9575_s4 = scalar_lea.vmem %s9574_s1, 32  ;;  %p9576_p3 = scmp.lt.s32.totalorder %s10287_s27, %s9574_s1 }
  0x99   : > { %p9571_p4 = pnand %p9569_p2, %p10177_p7  ;;  %p9577_p8 = scmp.lt.s32.totalorder %s9575_s4, %s9568_s16 }
  0x9b   : > { %p9572_p6 = pneg %p9571_p4  ;;  %p9578_p11 = por %p9577_p8, %p9576_p3 }
  0x9d   : > { %p9579_p9 = pnand %p9578_p11, %p9572_p6 }
  0x9f   : > { %9582 = shalt.err (!%p9579_p9)
}
  0xa0   : > { %9072 = dma.hbm_to_vmem [thread:$0]  (!%p10166_p5), %s10284_s22, 16, %s10287_s27, %s13670_s19  }
  0xa1   : > { %s7721_s10 = sshll.u32 %s9973_s30, 11  ;;  %s13765_s14 = sld [smem:[#allocation91_spill]] }
  0xa2   : > { %s826_s16 = scalar_lea.vmem [#allocation21], %s7611_s0  ;;  %s13672_s4 = scalar_lea.sflag [#allocation22], %s10148_s5 }
  0xa3   : > { %s833_s1 = sshll.u32 %s826_s16, 4  ;;  %s10322_s1 = int_to_ptr.vmem [resolvable:$true] %s833_s1 }
  0xa7   : > { %s10318_s2 = scalar_lea.hbm %s13765_s14, %s7721_s10  ;;  %s9588_s10 = scalar_lea.hbm %s13765_s14, 6144 }
  0xa8   : > { %s9583_s20 = scalar_lea.hbm %s10318_s2, 2048  ;;  %p9589_p1 = scmp.lt.u32.totalorder %s10318_s2, %s13765_s14 }
  0xa9   : > { %p9584_p10 = scmp.ne.s32.totalorder %s10318_s2, %s9583_s20  ;;  %p9590_p13 = scmp.lt.u32.totalorder %s9588_s10, %s9583_s20 }
  0xaa   : > { %p9592_p4 = scmp.lt.u32.totalorder %s9583_s20, %s10318_s2 }
  0xab   : > { %p9586_p12 = pnand %p9584_p10, %p10177_p7  ;;  %p9591_p2 = por %p9590_p13, %p9589_p1 }
  0xad   : > { %p9587_p0 = pneg %p9586_p12  ;;  %p9593_p6 = por %p9592_p4, %p9591_p2 }
  0xaf   : > { %p9594_p3 = pnand %p9593_p6, %p9587_p0 }
  0xb1   : > { %9597 = shalt.err (!%p9594_p3)
}
  0xb2   : > { %s9598_s0 = scalar_lea.vmem %s10322_s1, 2048  ;;  %s9981_s16 = smov [#allocation21]  }
  0xb3   : > { %p9599_p8 = scmp.ne.s32.totalorder %s10322_s1, %s9598_s0  ;;  %s9603_s22 = sshll.u32 %s9981_s16, 4  ;;  %s9604_s22 = int_to_ptr.vmem [resolvable:$false] %s9603_s22 }
  0xb4   : > { %s9605_s27 = scalar_lea.vmem %s9604_s22, 4096  ;;  %p9606_p10 = scmp.lt.s32.totalorder %s10322_s1, %s9604_s22 }
  0xb5   : > { %p9601_p11 = pnand %p9599_p8, %p10177_p7  ;;  %p9607_p12 = scmp.lt.s32.totalorder %s9605_s27, %s9598_s0 }
  0xb7   : > { %p9602_p9 = pneg %p9601_p11  ;;  %p9608_p1 = por %p9607_p12, %p9606_p10 }
  0xb9   : > { %p9609_p13 = pnand %p9608_p1, %p9602_p9 }
  0xbb   : > { %9612 = shalt.err (!%p9609_p13)
}
  0xbc   : > { %s13766_s20 = smov 64   ;;  %s13767_s17 = sld [smem:[#allocation93_spill]] }
  0xbd   : > { %9078 = dma.hbm_to_vmem [thread:$0]  (!%p10166_p5), %s10318_s2, 2048, %s10322_s1, %s13672_s4, %s13766_s20, %s13766_s20, %s13671_s21  }
  0xbe   : > { %s871_s0 = scalar_lea.vmem [#allocation24], %s10151_s24  ;;  %s13675_s22 = scalar_lea.sflag [#allocation25], %s10148_s5 }
  0xbf   : > { %s878_s16 = sshll.u32 %s871_s0, 4  ;;  %s879_s16 = int_to_ptr.vmem [resolvable:$true] %s878_s16 }
  0xc2   : > { %s10355_s18 = scalar_lea.hbm %s13767_s17, %s10249_s23  ;;  %s9618_s1 = scalar_lea.hbm %s13767_s17, 48 }
  0xc3   : > { %s9613_s27 = scalar_lea.hbm %s10355_s18, 16  ;;  %p9619_p6 = scmp.lt.u32.totalorder %s10355_s18, %s13767_s17 }
  0xc4   : > { %p9614_p0 = scmp.ne.s32.totalorder %s10355_s18, %s9613_s27  ;;  %p9620_p3 = scmp.lt.u32.totalorder %s9618_s1, %s9613_s27 }
  0xc5   : > { %p9622_p11 = scmp.lt.u32.totalorder %s9613_s27, %s10355_s18 }
  0xc6   : > { %p9616_p2 = pnand %p9614_p0, %p10177_p7  ;;  %p9621_p8 = por %p9620_p3, %p9619_p6 }
  0xc8   : > { %p9617_p4 = pneg %p9616_p2  ;;  %p9623_p9 = por %p9622_p11, %p9621_p8 }
  0xca   : > { %p9624_p10 = pnand %p9623_p9, %p9617_p4 }
  0xcc   : > { %9627 = shalt.err (!%p9624_p10)
}
  0xcd   : > { %s9628_s0 = scalar_lea.vmem %s879_s16, 16  ;;  %s9982_s21 = smov [#allocation24]  }
  0xce   : > { %p9629_p12 = scmp.ne.s32.totalorder %s879_s16, %s9628_s0  ;;  %s9633_s4 = sshll.u32 %s9982_s21, 4  ;;  %s9634_s4 = int_to_ptr.vmem [resolvable:$false] %s9633_s4 }
  0xcf   : > { %s9635_s19 = scalar_lea.vmem %s9634_s4, 32  ;;  %p9636_p0 = scmp.lt.s32.totalorder %s879_s16, %s9634_s4 }
  0xd0   : > { %p9631_p1 = pnand %p9629_p12, %p10177_p7  ;;  %p9637_p2 = scmp.lt.s32.totalorder %s9635_s19, %s9628_s0 }
  0xd2   : > { %p9632_p13 = pneg %p9631_p1  ;;  %p9638_p5 = por %p9637_p2, %p9636_p0 }
  0xd4   : > { %p9639_p3 = pnand %p9638_p5, %p9632_p13 }
  0xd6   : > { %9642 = shalt.err (!%p9639_p3)
}
  0xd7   : > { %p13768_p6 = scmp.ne.s32.totalorder %s13759_s29, 0  ;;  %s10379_s21 = sadd.s32 4294967295, %s9973_s30  }
  0xd8   : > { %p180_p5 = scmp.ne.s32.totalorder %s9965_s28, %s9961_s3  ;;  %p13679_p4 = scmp.eq.s32.totalorder %s10379_s21, 0 }
  0xd9   : > { %9084 = dma.hbm_to_vmem [thread:$0]  (!%p13768_p6), %s10355_s18, 16, %s879_s16, %s13675_s22  }
  0xda   : > { %p7594_p8 = scmp.ge.s32.totalorder %s9973_s30, 1  ;;  %p628_p11 = scmp.lt.s32.totalorder %s9973_s30, 4 }
  0xdb   : > { %p10389_p10 = por %p13679_p4, %p180_p5  ;;  %s9983_s18 = smov [#allocation6]  }
  0xdc   : > { %p10393_p12 = pnand %p7594_p8, %p628_p11  ;;  %s649_s16 = sshll.u32 %s9983_s18, 4  ;;  %s10397_s16 = int_to_ptr.vmem [resolvable:$true] %s649_s16 }
  0xdd   : > { %s13769_s4 = scalar_select %p10389_p10, 1, 0 }
  0xde   : > { %s13771_s27 = scalar_select %p10393_p12, 1, 0 }
  0xdf   : > { %13770 = sst [smem:[#allocation43_spill]] %s13769_s4  ;;  %p9047_p1 = pneg %p10393_p12 }
  0xe0   : > { %s13772_s7 = sld [smem:[#allocation85_spill]]  ;;  %s698_s10 = scalar_lea.vmem [#allocation11], %s10151_s24 }
  0xe1   : > { %p10409_p13 = pnand %p9047_p1, %p13679_p4  ;;  %s705_s8 = sshll.u32 %s698_s10, 4  ;;  %s10414_s8 = int_to_ptr.vmem [resolvable:$true] %s705_s8 }
  0xe2   : > { %s13774_s9 = sld [smem:[#allocation87_spill]]  ;;  %s13775_s3 = sld [smem:[#allocation81_spill]] }
  0xe3   : > { %p9645_p2 = pneg %p10409_p13 }
  0xe6   : > { %s10405_s30 = scalar_lea.hbm %s13772_s7, %s10249_s23 }
  0xe8   : > { %s10420_s18 = scalar_lea.hbm %s13774_s9, %s10249_s23  ;;  %s13776_s2 = smov %s13775_s3 }
  0xe9   : > { %s9643_s14 = scalar_lea.hbm %s13775_s3, 2048 }
  0xea   : > { %p9644_p0 = scmp.ne.s32.totalorder %s13776_s2, %s9643_s14  ;;  %p9650_p8 = scmp.lt.u32.totalorder %s9643_s14, %s13776_s2 }
  0xec   : > { %p9646_p3 = pnand %p9645_p2, %p9644_p0 }
  0xee   : > { %p9647_p5 = pneg %p9646_p3 }
  0xf0   : > { %p9652_p11 = pnand %p9650_p8, %p9647_p5 }
  0xf2   : > { %9655 = shalt.err (!%p9652_p11)
}
  0xf3   : > { %s9656_s0 = scalar_lea.vmem %s10397_s16, 2048  ;;  %p9664_p10 = scmp.lt.s32.totalorder %s10397_s16, %s10397_s16 }
  0xf4   : > { %p9657_p1 = scmp.ne.s32.totalorder %s10397_s16, %s9656_s0  ;;  %p9665_p12 = scmp.lt.s32.totalorder %s9656_s0, %s9656_s0 }
  0xf6   : > { %p9659_p9 = pnand %p9657_p1, %p9645_p2  ;;  %p9666_p6 = por %p9665_p12, %p9664_p10 }
  0xf8   : > { %p9660_p4 = pneg %p9659_p9 }
  0xfa   : > { %p9667_p7 = pnand %p9666_p6, %p9660_p4 }
  0xfc   : > { %9670 = shalt.err (!%p9667_p7)
}
  0xfd   : > { %s9984_s12 = smov 128   ;;  %s9985_s14 = smov 8  }
  0xfe   : > { %9050 = dma.hbm_to_vmem [thread:$0]  (!%p10409_p13), %s13776_s2, 2048, %s10397_s16, [#allocation7], %s9984_s12, %s9984_s12, %s9985_s14  }
  0xff   : > { %s9671_s22 = scalar_lea.hbm %s10405_s30, 16  ;;  %p13777_p0 = scmp.ne.s32.totalorder %s13760_s26, 0 }
 0x100   : > { %p9672_p9 = scmp.ne.s32.totalorder %s10405_s30, %s9671_s22  ;;  %s9676_s3 = scalar_lea.hbm %s13772_s7, 48 }
 0x101   : > { %p9677_p7 = scmp.lt.u32.totalorder %s10405_s30, %s13772_s7  ;;  %p9678_p4 = scmp.lt.u32.totalorder %s9676_s3, %s9671_s22 }
 0x102   : > { %p9674_p10 = pnand %p9672_p9, %p13777_p0  ;;  %p9680_p2 = scmp.lt.u32.totalorder %s9671_s22, %s10405_s30 }
 0x103   : > { %p9679_p12 = por %p9678_p4, %p9677_p7 }
 0x104   : > { %p9675_p6 = pneg %p9674_p10 }
 0x105   : > { %p9681_p3 = por %p9680_p2, %p9679_p12 }
 0x107   : > { %p9682_p5 = pnand %p9681_p3, %p9675_p6 }
 0x109   : > { %9685 = shalt.err (!%p9682_p5)
}
 0x10a   : > { %s9686_s16 = scalar_lea.vmem %s10414_s8, 16  ;;  %s9986_s1 = smov [#allocation11]  }
 0x10b   : > { %p9687_p13 = scmp.ne.s32.totalorder %s10414_s8, %s9686_s16  ;;  %s9691_s12 = sshll.u32 %s9986_s1, 4  ;;  %s9692_s12 = int_to_ptr.vmem [resolvable:$false] %s9691_s12 }
 0x10c   : > { %s9693_s14 = scalar_lea.vmem %s9692_s12, 32  ;;  %p9694_p1 = scmp.lt.s32.totalorder %s10414_s8, %s9692_s12 }
 0x10d   : > { %p9689_p8 = pnand %p9687_p13, %p13777_p0  ;;  %p9695_p9 = scmp.lt.s32.totalorder %s9693_s14, %s9686_s16 }
 0x10f   : > { %p9690_p11 = pneg %p9689_p8  ;;  %p9696_p10 = por %p9695_p9, %p9694_p1 }
 0x111   : > { %p9697_p7 = pnand %p9696_p10, %p9690_p11 }
 0x113   : > { %9700 = shalt.err (!%p9697_p7)
}
 0x114   : > { %p13778_p6 = scmp.ne.s32.totalorder %s13759_s29, 0  ;;  %s13779_s17 = scalar_lea.sflag [#allocation10], %s10148_s5 }
 0x115   : > { %s736_s28 = scalar_lea.vmem [#allocation14], %s10151_s24  ;;  %s13780_s11 = sld [smem:[#allocation89_spill]] }
 0x116   : > { %9057 = dma.hbm_to_vmem [thread:$0]  (!%p13778_p6), %s10405_s30, 16, %s10414_s8, %s13779_s17  }
 0x117   : > { %s743_s22 = sshll.u32 %s736_s28, 4  ;;  %s9701_s10 = scalar_lea.hbm %s10420_s18, 16  ;;  %s744_s22 = int_to_ptr.vmem [resolvable:$true] %s743_s22 }
 0x118   : > { %p9702_p4 = scmp.ne.s32.totalorder %s10420_s18, %s9701_s10  ;;  %s9706_s1 = scalar_lea.hbm %s13774_s9, 48 }
 0x119   : > { %p9707_p3 = scmp.lt.u32.totalorder %s10420_s18, %s13774_s9  ;;  %p9708_p5 = scmp.lt.u32.totalorder %s9706_s1, %s9701_s10 }
 0x11a   : > { %p9704_p12 = pnand %p9702_p4, %p13777_p0  ;;  %p9710_p8 = scmp.lt.u32.totalorder %s9701_s10, %s10420_s18 }
 0x11b   : > { %s10471_s3 = scalar_lea.hbm %s13780_s11, %s10249_s23  ;;  %p9709_p13 = por %p9708_p5, %p9707_p3 }
 0x11c   : > { %p9705_p2 = pneg %p9704_p12 }
 0x11d   : > { %p9711_p11 = por %p9710_p8, %p9709_p13 }
 0x11f   : > { %p9712_p1 = pnand %p9711_p11, %p9705_p2 }
 0x121   : > { %9715 = shalt.err (!%p9712_p1)
}
 0x122   : > { %s9716_s30 = scalar_lea.vmem %s744_s22, 16  ;;  %s9987_s8 = smov [#allocation14]  }
 0x123   : > { %p9717_p9 = scmp.ne.s32.totalorder %s744_s22, %s9716_s30  ;;  %s9721_s17 = sshll.u32 %s9987_s8, 4  ;;  %s9722_s17 = int_to_ptr.vmem [resolvable:$false] %s9721_s17 }
 0x124   : > { %s9723_s28 = scalar_lea.vmem %s9722_s17, 32  ;;  %p9724_p4 = scmp.lt.s32.totalorder %s744_s22, %s9722_s17 }
 0x125   : > { %p9719_p10 = pnand %p9717_p9, %p13777_p0  ;;  %p9725_p12 = scmp.lt.s32.totalorder %s9723_s28, %s9716_s30 }
 0x127   : > { %p9720_p7 = pneg %p9719_p10  ;;  %p9726_p6 = por %p9725_p12, %p9724_p4 }
 0x129   : > { %p9727_p3 = pnand %p9726_p6, %p9720_p7 }
 0x12b   : > { %9730 = shalt.err (!%p9727_p3)
}
 0x12c   : > { %p13781_p5 = scmp.ne.s32.totalorder %s13759_s29, 0  ;;  %s13782_s4 = scalar_lea.sflag [#allocation13], %s10148_s5 }
 0x12d   : > { %s774_s19 = scalar_lea.vmem [#allocation17], %s10151_s24  ;;  %s10497_s1 = scalar_lea.hbm %s13644_s13, %s10249_s23 }
 0x12e   : > { %9063 = dma.hbm_to_vmem [thread:$0]  (!%p13781_p5), %s10420_s18, 16, %s744_s22, %s13782_s4  }
 0x12f   : > { %s781_s10 = sshll.u32 %s774_s19, 4  ;;  %s9731_s12 = scalar_lea.hbm %s10471_s3, 16  ;;  %s782_s10 = int_to_ptr.vmem [resolvable:$true] %s781_s10 }
 0x130   : > { %p9732_p6 = scmp.ne.s32.totalorder %s10471_s3, %s9731_s12  ;;  %s9736_s8 = scalar_lea.hbm %s13780_s11, 48 }
 0x131   : > { %p9737_p8 = scmp.lt.u32.totalorder %s10471_s3, %s13780_s11  ;;  %p9738_p11 = scmp.lt.u32.totalorder %s9736_s8, %s9731_s12 }
 0x132   : > { %p9734_p2 = pnand %p9732_p6, %p13777_p0  ;;  %p9740_p9 = scmp.lt.u32.totalorder %s9731_s12, %s10471_s3 }
 0x133   : > { %p9739_p1 = por %p9738_p11, %p9737_p8 }
 0x134   : > { %p9735_p13 = pneg %p9734_p2 }
 0x135   : > { %p9741_p10 = por %p9740_p9, %p9739_p1 }
 0x137   : > { %p9742_p7 = pnand %p9741_p10, %p9735_p13 }
 0x139   : > { %9745 = shalt.err (!%p9742_p7)
}
 0x13a   : > { %s9746_s18 = scalar_lea.vmem %s782_s10, 16  ;;  %s9988_s22 = smov [#allocation17]  }
 0x13b   : > { %p9747_p4 = scmp.ne.s32.totalorder %s782_s10, %s9746_s18  ;;  %s9751_s4 = sshll.u32 %s9988_s22, 4  ;;  %s9752_s4 = int_to_ptr.vmem [resolvable:$false] %s9751_s4 }
 0x13c   : > { %s9753_s19 = scalar_lea.vmem %s9752_s4, 32  ;;  %p9754_p6 = scmp.lt.s32.totalorder %s782_s10, %s9752_s4 }
 0x13d   : > { %p9749_p12 = pnand %p9747_p4, %p13777_p0  ;;  %p9755_p2 = scmp.lt.s32.totalorder %s9753_s19, %s9746_s18 }
 0x13f   : > { %p9750_p3 = pneg %p9749_p12  ;;  %p9756_p5 = por %p9755_p2, %p9754_p6 }
 0x141   : > { %p9757_p8 = pnand %p9756_p5, %p9750_p3 }
 0x143   : > { %9760 = shalt.err (!%p9757_p8)
}
 0x144   : > { %p13783_p11 = scmp.ne.s32.totalorder %s13759_s29, 0  ;;  %s13784_s0 = scalar_lea.sflag [#allocation16], %s10148_s5 }
 0x145   : > { %s808_s16 = scalar_lea.vmem [#allocation20], %s10151_s24  ;;  %s10523_s8 = scalar_lea.hbm %s13646_s15, %s10249_s23 }
 0x146   : > { %9069 = dma.hbm_to_vmem [thread:$0]  (!%p13783_p11), %s10471_s3, 16, %s782_s10, %s13784_s0  }
 0x147   : > { %s815_s12 = sshll.u32 %s808_s16, 4  ;;  %s9761_s17 = scalar_lea.hbm %s10497_s1, 16  ;;  %s816_s12 = int_to_ptr.vmem [resolvable:$true] %s815_s12 }
 0x148   : > { %p9762_p5 = scmp.ne.s32.totalorder %s10497_s1, %s9761_s17  ;;  %s9766_s22 = scalar_lea.hbm %s13644_s13, 48 }
 0x149   : > { %p9767_p9 = scmp.lt.u32.totalorder %s10497_s1, %s13644_s13  ;;  %p9768_p10 = scmp.lt.u32.totalorder %s9766_s22, %s9761_s17 }
 0x14a   : > { %p9764_p13 = pnand %p9762_p5, %p13777_p0  ;;  %p9770_p4 = scmp.lt.u32.totalorder %s9761_s17, %s10497_s1 }
 0x14b   : > { %p9769_p7 = por %p9768_p10, %p9767_p9 }
 0x14c   : > { %p9765_p1 = pneg %p9764_p13 }
 0x14d   : > { %p9771_p12 = por %p9770_p4, %p9769_p7 }
 0x14f   : > { %p9772_p3 = pnand %p9771_p12, %p9765_p1 }
 0x151   : > { %9775 = shalt.err (!%p9772_p3)
}
 0x152   : > { %s9776_s3 = scalar_lea.vmem %s816_s12, 16  ;;  %s9989_s10 = smov [#allocation20]  }
 0x153   : > { %p9777_p6 = scmp.ne.s32.totalorder %s816_s12, %s9776_s3  ;;  %s9781_s0 = sshll.u32 %s9989_s10, 4  ;;  %s9782_s0 = int_to_ptr.vmem [resolvable:$false] %s9781_s0 }
 0x154   : > { %s9783_s16 = scalar_lea.vmem %s9782_s0, 32  ;;  %p9784_p5 = scmp.lt.s32.totalorder %s816_s12, %s9782_s0 }
 0x155   : > { %p9779_p2 = pnand %p9777_p6, %p13777_p0  ;;  %p9785_p13 = scmp.lt.s32.totalorder %s9783_s16, %s9776_s3 }
 0x157   : > { %p9780_p8 = pneg %p9779_p2  ;;  %p9786_p11 = por %p9785_p13, %p9784_p5 }
 0x159   : > { %p9787_p9 = pnand %p9786_p11, %p9780_p8 }
 0x15b   : > { %9790 = shalt.err (!%p9787_p9)
}
 0x15c   : > { %p13785_p10 = scmp.ne.s32.totalorder %s13759_s29, 0  ;;  %s13786_s14 = scalar_lea.sflag [#allocation19], %s10148_s5 }
 0x15d   : > { %s846_s30 = scalar_lea.vmem [#allocation23], %s10151_s24  ;;  %s13787_s22 = sld [smem:[#allocation94_spill]] }
 0x15e   : > { %9075 = dma.hbm_to_vmem [thread:$0]  (!%p13785_p10), %s10497_s1, 16, %s816_s12, %s13786_s14  }
 0x15f   : > { %s853_s17 = sshll.u32 %s846_s30, 4  ;;  %s9791_s19 = scalar_lea.hbm %s10523_s8, 16  ;;  %s854_s17 = int_to_ptr.vmem [resolvable:$true] %s853_s17 }
 0x160   : > { %p9792_p11 = scmp.ne.s32.totalorder %s10523_s8, %s9791_s19  ;;  %s9796_s0 = scalar_lea.hbm %s13646_s15, 48 }
 0x161   : > { %p9797_p4 = scmp.lt.u32.totalorder %s10523_s8, %s13646_s15  ;;  %p9798_p12 = scmp.lt.u32.totalorder %s9796_s0, %s9791_s19 }
 0x162   : > { %p9794_p1 = pnand %p9792_p11, %p13777_p0  ;;  %p9800_p6 = scmp.lt.u32.totalorder %s9791_s19, %s10523_s8 }
 0x163   : > { %s10549_s4 = scalar_lea.hbm %s13787_s22, %s10157_s25  ;;  %p9799_p3 = por %p9798_p12, %p9797_p4 }
 0x164   : > { %p9795_p7 = pneg %p9794_p1 }
 0x165   : > { %p9801_p2 = por %p9800_p6, %p9799_p3 }
 0x167   : > { %p9802_p8 = pnand %p9801_p2, %p9795_p7 }
 0x169   : > { %9805 = shalt.err (!%p9802_p8)
}
 0x16a   : > { %s9806_s25 = scalar_lea.vmem %s854_s17, 16  ;;  %s9990_s1 = smov [#allocation23]  }
 0x16b   : > { %p9807_p5 = scmp.ne.s32.totalorder %s854_s17, %s9806_s25  ;;  %s9811_s12 = sshll.u32 %s9990_s1, 4  ;;  %s9812_s12 = int_to_ptr.vmem [resolvable:$false] %s9811_s12 }
 0x16c   : > { %s9813_s14 = scalar_lea.vmem %s9812_s12, 32  ;;  %p9814_p11 = scmp.lt.s32.totalorder %s854_s17, %s9812_s12 }
 0x16d   : > { %p9809_p13 = pnand %p9807_p5, %p13777_p0  ;;  %p9815_p1 = scmp.lt.s32.totalorder %s9813_s14, %s9806_s25 }
 0x16f   : > { %p9810_p9 = pneg %p9809_p13  ;;  %p9816_p10 = por %p9815_p1, %p9814_p11 }
 0x171   : > { %p9817_p4 = pnand %p9816_p10, %p9810_p9 }
 0x173   : > { %9820 = shalt.err (!%p9817_p4)
}
 0x174   : > { %p13788_p12 = scmp.ne.s32.totalorder %s13759_s29, 0  ;;  %s13789_s2 = scalar_lea.sflag [#allocation22], %s10148_s5 }
 0x175   : > { %s889_s30 = scalar_lea.vmem [#allocation26], %s10154_s6  ;;  %s9821_s18 = scalar_lea.hbm %s10549_s4, 1024 }
 0x176   : > { %9081 = dma.hbm_to_vmem [thread:$0]  (!%p13788_p12), %s10523_s8, 16, %s854_s17, %s13789_s2  }
 0x177   : > { %s896_s28 = sshll.u32 %s889_s30, 4  ;;  %p9822_p7 = scmp.ne.s32.totalorder %s10549_s4, %s9821_s18  ;;  %s10571_s28 = int_to_ptr.vmem [resolvable:$true] %s896_s28 }
 0x178   : > { %s9826_s10 = scalar_lea.hbm %s13787_s22, 3072  ;;  %p9827_p6 = scmp.lt.u32.totalorder %s10549_s4, %s13787_s22 }
 0x179   : > { %p9824_p10 = pnand %p9822_p7, %p13777_p0  ;;  %p9828_p2 = scmp.lt.u32.totalorder %s9826_s10, %s9821_s18 }
 0x17a   : > { %p9830_p5 = scmp.lt.u32.totalorder %s9821_s18, %s10549_s4 }
 0x17b   : > { %p9825_p3 = pneg %p9824_p10  ;;  %p9829_p8 = por %p9828_p2, %p9827_p6 }
 0x17d   : > { %p9831_p13 = por %p9830_p5, %p9829_p8 }
 0x17f   : > { %p9832_p9 = pnand %p9831_p13, %p9825_p3 }
 0x181   : > { %9835 = shalt.err (!%p9832_p9)
}
 0x182   : > { %s9836_s6 = scalar_lea.vmem %s10571_s28, 1024  ;;  %s9991_s8 = smov [#allocation26]  }
 0x183   : > { %p9837_p11 = scmp.ne.s32.totalorder %s10571_s28, %s9836_s6  ;;  %s9841_s17 = sshll.u32 %s9991_s8, 4  ;;  %s9842_s17 = int_to_ptr.vmem [resolvable:$false] %s9841_s17 }
 0x184   : > { %s9843_s25 = scalar_lea.vmem %s9842_s17, 2048  ;;  %p9844_p7 = scmp.lt.s32.totalorder %s10571_s28, %s9842_s17 }
 0x185   : > { %p9839_p1 = pnand %p9837_p11, %p13777_p0  ;;  %p9845_p10 = scmp.lt.s32.totalorder %s9843_s25, %s9836_s6 }
 0x187   : > { %p9840_p4 = pneg %p9839_p1  ;;  %p9846_p6 = por %p9845_p10, %p9844_p7 }
 0x189   : > { %p9847_p2 = pnand %p9846_p6, %p9840_p4 }
 0x18b   : > { %9850 = shalt.err (!%p9847_p2)
}
 0x18c   : > { %s13790_s1 = smov 4   ;;  %s13791_s12 = scalar_lea.sflag [#allocation25], %s10148_s5 }
 0x18d   : > { %9087 = dma.hbm_to_vmem [thread:$0]  (!%p13788_p12), %s10549_s4, 1024, %s10571_s28, %s13791_s12, %s13766_s20, %s13766_s20, %s13790_s1  }
 0x18e   : > { %s13792_s30 = sld [smem:[#allocation95_spill]]  ;;  %s909_s3 = scalar_lea.vmem [#allocation27], %s10151_s24 }
 0x18f   : > { %s916_s10 = sshll.u32 %s909_s3, 4  ;;  %s907_s5 = scalar_lea.sflag [#allocation28], %s10151_s24  ;;  %s917_s10 = int_to_ptr.vmem [resolvable:$true] %s916_s10 }
 0x194   : > { %s13793_s18 = smov %s13792_s30  ;;  %s10603_s19 = scalar_lea.hbm %s13792_s30, %s10249_s23 }
 0x195   : > { %s9851_s0 = scalar_lea.hbm %s10603_s19, 16  ;;  %s9856_s4 = scalar_lea.hbm %s13793_s18, 48 }
 0x196   : > { %p9852_p3 = scmp.ne.s32.totalorder %s10603_s19, %s9851_s0  ;;  %p9857_p13 = scmp.lt.u32.totalorder %s10603_s19, %s13793_s18 }
 0x197   : > { %p9858_p9 = scmp.lt.u32.totalorder %s9856_s4, %s9851_s0  ;;  %p9860_p1 = scmp.lt.u32.totalorder %s9851_s0, %s10603_s19 }
 0x198   : > { %p9854_p8 = pnand %p9852_p3, %p13777_p0 }
 0x199   : > { %p9859_p11 = por %p9858_p9, %p9857_p13 }
 0x19a   : > { %p9855_p5 = pneg %p9854_p8 }
 0x19b   : > { %p9861_p4 = por %p9860_p1, %p9859_p11 }
 0x19d   : > { %p9862_p7 = pnand %p9861_p4, %p9855_p5 }
 0x19f   : > { %9865 = shalt.err (!%p9862_p7)
}
 0x1a0   : > { %s9866_s24 = scalar_lea.vmem %s917_s10, 16  ;;  %s9992_s6 = smov [#allocation27]  }
 0x1a1   : > { %p9867_p10 = scmp.ne.s32.totalorder %s917_s10, %s9866_s24  ;;  %s9871_s8 = sshll.u32 %s9992_s6, 4  ;;  %s9872_s8 = int_to_ptr.vmem [resolvable:$false] %s9871_s8 }
 0x1a2   : > { %s9873_s17 = scalar_lea.vmem %s9872_s8, 32  ;;  %p9874_p3 = scmp.lt.s32.totalorder %s917_s10, %s9872_s8 }
 0x1a3   : > { %p9869_p6 = pnand %p9867_p10, %p13777_p0  ;;  %p9875_p8 = scmp.lt.s32.totalorder %s9873_s17, %s9866_s24 }
 0x1a5   : > { %p9870_p2 = pneg %p9869_p6  ;;  %p9876_p12 = por %p9875_p8, %p9874_p3 }
 0x1a7   : > { %p9877_p9 = pnand %p9876_p12, %p9870_p2 }
 0x1a9   : > { %9880 = shalt.err (!%p9877_p9)
}
 0x1aa   : > { %p13794_p13 = scmp.ne.s32.totalorder %s13759_s29, 0  ;;  %p13795_p5 = scmp.ne.s32.totalorder %s13771_s27, 0 }
 0x1ac   : > { %9090 = dma.hbm_to_vmem [thread:$0]  (!%p13794_p13), %s10603_s19, 16, %s917_s10, %s907_s5  }
 0x1ad   : > { %937 = sbr.rel (%p13795_p5) target bundleno = 3694 (0xe6e), region = 108 }
 0x1b4   : > { %p13796_p11 = scmp.eq.s32.totalorder %s10379_s21, 0 }
 0x1b6   : > { %9924 = dma.done.wait (%p13796_p11), [#allocation7], 2048   ;;  %p13797_p0 = pmov %p13796_p11 }
 0x1b7   : > { %s13798_s26 = sld [smem:[#allocation39_spill]]  ;;  %s13799_s25 = sld [smem:[#allocation43_spill]] }
 0x1b8   : > { %9926 = vsyncadd (%p13797_p0), [#allocation7], 4294965248  ;;  %s10631_s1 = sand.u32 1, %s10379_s21  }
 0x1b9   : > { %s944_s27 = scalar_lea.sflag [#allocation10], %s10631_s1 }
 0x1bd   : > { %s10634_s12 = sand.u32 1, %s13798_s26   ;;  %p13800_p12 = scmp.ne.s32.totalorder %s13799_s25, 0 }
 0x1be   : > { %s10637_s29 = sshll.u32 %s10634_s12, 6 }
 0x1bf   : > { %s10641_s14 = scalar_lea.vmem [#allocation9], %s10637_s29 }
 0x1c0   : > { %9928 = dma.done.wait (%p13800_p12), %s944_s27, 1040  }
 0x1c1   : > { %9930 = vsyncadd (%p13800_p12), %s944_s27, 4294966256  ;;  %s961_s30 = scalar_lea.sflag [#allocation13], %s10631_s1  ;;  %s10650_s19 = scalar_lea.vmem [#allocation12], %s10637_s29 }
 0x1c2   : > { %9932 = dma.done.wait (%p13800_p12), %s961_s30, 1040  }
 0x1c3   : > { %9934 = vsyncadd (%p13800_p12), %s961_s30, 4294966256  ;;  %s978_s10 = scalar_lea.sflag [#allocation16], %s10631_s1  ;;  %s10659_s5 = scalar_lea.vmem [#allocation15], %s10637_s29 }
 0x1c4   : > { %9936 = dma.done.wait (%p13800_p12), %s978_s10, 1040  }
 0x1c5   : > { %9938 = vsyncadd (%p13800_p12), %s978_s10, 4294966256  ;;  %s995_s16 = scalar_lea.sflag [#allocation19], %s10631_s1 }
 0x1c6   : > { %9940 = dma.done.wait (%p13800_p12), %s995_s16, 32  }
 0x1c7   : > { %9942 = vsyncadd (%p13800_p12), %s995_s16, 4294967264  ;;  %s7625_s4 = sshll.u32 %s10634_s12, 7  ;;  %s1011_s23 = scalar_lea.sflag [#allocation22], %s10631_s1 }
 0x1c8   : > { %s10675_s24 = scalar_lea.vmem [#allocation21], %s7625_s4 }
 0x1c9   : > { %9944 = dma.done.wait (%p13800_p12), %s1011_s23, 2064  }
 0x1ca   : > { %9946 = vsyncadd (%p13800_p12), %s1011_s23, 4294965232  ;;  %s1028_s8 = scalar_lea.sflag [#allocation25], %s10631_s1 }
 0x1cb   : > { %9948 = dma.done.wait (%p13800_p12), %s1028_s8, 1040  }
 0x1cc   : > { %9950 = vsyncadd (%p13800_p12), %s1028_s8, 4294966256  ;;  %s10689_s26 = scalar_lea.vmem [#allocation26], %s10637_s29  ;;  %s1045_s27 = scalar_lea.sflag [#allocation28], %s10634_s12 }
 0x1cd   : > { %9952 = dma.done.wait (%p13800_p12), %s1045_s27, 16  }
 0x1ce   : > { %9954 = vsyncadd (%p13800_p12), %s1045_s27, 4294967280  ;;  %p1171_p1 = scmp.lt.s32.totalorder %s10379_s21, 2  ;;  %s13801_s23 = sld [smem:[#allocation84_spill]] }
 0x1cf   : > { %s13802_s25 = sld [smem:[#allocation92_spill]]  ;;  %s13803_s20 = sld [smem:[#allocation96_spill]] }
 0x1d0   : > { %s10699_s1 = scalar_select %p1171_p1, %s10379_s21, 2 }
 0x1d1   : > { %s13804_s7 = sld [smem:[#allocation97_spill]]  ;;  %p13805_p4 = scmp.ne.s32.totalorder %s10379_s21, 0 }
 0x1d2   : > { %s7723_s10 = sshll.u32 %s10699_s1, 7  ;;  %s7724_s16 = sshll.u32 %s10699_s1, 6  ;;  %v9993_v2 = vmov (!%p13805_p4), 0   ;;  %v1352_v63 = vlaneseq (!%p13805_p4) }
 0x1d3   : > { %1191 = sbr.rel (%p13805_p4) target bundleno = 859 (0x35b), region = 168  ;;  %9140 = vset.pattern.permute.xlu1 (!%p13805_p4), %v9993_v2  ;;  %9139 = vset.pattern.permute.xlu0 (!%p13805_p4), %v9993_v2  ;;  %s13808_s4 = sld [smem:[#allocation80_spill]] (!%p13805_p4) }
 0x1d4   : > { %s10706_s8 = scalar_lea.vmem %s13801_s23, %s7723_s10  ;;  %s13806_s10 = sld [smem:[#allocation78_spill]] (!%p13805_p4)  ;;  %v10916_v2 = vand.u32 (!%p13805_p4), 127, %v1352_v63 }
 0x1d5   : > { %s10711_s27 = scalar_lea.vmem %s13802_s25, %s7724_s16  ;;  %s1183_s0 = scalar_lea.vmem %s13803_s20, %s10699_s1 }
 0x1d6   : > { %s13807_s20 = sld [smem:[#allocation79_spill]] (!%p13805_p4) }
 0x1d7   : > { %s1186_s9 = scalar_lea.vmem %s13804_s7, %s10699_s1  ;;  %s13847_s7 = sld [smem:[#allocation82_spill]] (!%p13805_p4) }
 0x1da   : > { %v1356_v0 = vld [vmem:[%s13806_s10 + $0x10] sm:$0xff]  ;;  %v1354_v1 = vld [vmem:[%s13806_s10] sm:$0xff]  ;;  %v1357_v3 = vld [vmem:[%s13806_s10 + $0x18] sm:$0xff] }
 0x1db   : > { %1425 = vperm.xlu1 %9140, %v1356_v0   ;;  %1419 = vperm.xlu0 %9139, %v1354_v1   ;;  %v1355_v4 = vld [vmem:[%s13806_s10 + $0x8] sm:$0xff]  ;;  %v1358_v6 = vld [vmem:[%s13806_s10 + $0x20] sm:$0xff]  ;;  %v1361_v7 = vld [vmem:[%s13806_s10 + $0x38] sm:$0xff] }
 0x1dc   : > { %v1359_v5 = vld [vmem:[%s13806_s10 + $0x28] sm:$0xff]  ;;  %v1360_v8 = vld [vmem:[%s13806_s10 + $0x30] sm:$0xff]  ;;  %v1362_v10 = vld [vmem:[%s13806_s10 + $0x40] sm:$0xff] }
 0x1dd   : > { %v1363_v9 = vld [vmem:[%s13806_s10 + $0x48] sm:$0xff]  ;;  %v1365_v11 = vld [vmem:[%s13806_s10 + $0x58] sm:$0xff]  ;;  %v1364_v12 = vld [vmem:[%s13806_s10 + $0x50] sm:$0xff] }
 0x1de   : > { %v1367_v13 = vld [vmem:[%s13806_s10 + $0x68] sm:$0xff]  ;;  %v1366_v14 = vld [vmem:[%s13806_s10 + $0x60] sm:$0xff]  ;;  %v1369_v15 = vld [vmem:[%s13806_s10 + $0x78] sm:$0xff] }
 0x1df   : > { %1428 = vperm.xlu1 %9140, %v1357_v3   ;;  %1422 = vperm.xlu0 %9139, %v1355_v4   ;;  %v1368_v16 = vld [vmem:[%s13806_s10 + $0x70] sm:$0xff]  ;;  %v1371_v17 = vld [vmem:[%s13806_s10 + $0x88] sm:$0xff]  ;;  %v1370_v18 = vld [vmem:[%s13806_s10 + $0x80] sm:$0xff] }
 0x1e0   : > { %v1373_v19 = vld [vmem:[%s13806_s10 + $0x98] sm:$0xff]  ;;  %v1372_v20 = vld [vmem:[%s13806_s10 + $0x90] sm:$0xff]  ;;  %v1375_v21 = vld [vmem:[%s13806_s10 + $0xa8] sm:$0xff] }
 0x1e1   : > { %v1374_v22 = vld [vmem:[%s13806_s10 + $0xa0] sm:$0xff]  ;;  %v1377_v23 = vld [vmem:[%s13806_s10 + $0xb8] sm:$0xff]  ;;  %v1376_v24 = vld [vmem:[%s13806_s10 + $0xb0] sm:$0xff] }
 0x1e2   : > { %v1379_v25 = vld [vmem:[%s13806_s10 + $0xc8] sm:$0xff]  ;;  %v1378_v26 = vld [vmem:[%s13806_s10 + $0xc0] sm:$0xff]  ;;  %v1381_v27 = vld [vmem:[%s13806_s10 + $0xd8] sm:$0xff] }
 0x1e3   : > { %1434 = vperm.xlu1 %9140, %v1359_v5   ;;  %1431 = vperm.xlu0 %9139, %v1358_v6   ;;  %v1380_v28 = vld [vmem:[%s13806_s10 + $0xd0] sm:$0xff]  ;;  %v1383_v29 = vld [vmem:[%s13806_s10 + $0xe8] sm:$0xff]  ;;  %v1382_v30 = vld [vmem:[%s13806_s10 + $0xe0] sm:$0xff] }
 0x1e4   : > { %v1385_v31 = vld [vmem:[%s13806_s10 + $0xf8] sm:$0xff]  ;;  %v1384_v32 = vld [vmem:[%s13806_s10 + $0xf0] sm:$0xff]  ;;  %v1387_v33 = vld [vmem:[%s13806_s10 + $0x108] sm:$0xff] }
 0x1e5   : > { %v1386_v34 = vld [vmem:[%s13806_s10 + $0x100] sm:$0xff]  ;;  %v1389_v35 = vld [vmem:[%s13806_s10 + $0x118] sm:$0xff]  ;;  %v1388_v36 = vld [vmem:[%s13806_s10 + $0x110] sm:$0xff] }
 0x1e6   : > { %v1391_v37 = vld [vmem:[%s13806_s10 + $0x128] sm:$0xff]  ;;  %v1390_v38 = vld [vmem:[%s13806_s10 + $0x120] sm:$0xff]  ;;  %v1393_v39 = vld [vmem:[%s13806_s10 + $0x138] sm:$0xff] }
 0x1e7   : > { %1440 = vperm.xlu1 %9140, %v1361_v7   ;;  %1437 = vperm.xlu0 %9139, %v1360_v8   ;;  %v1392_v40 = vld [vmem:[%s13806_s10 + $0x130] sm:$0xff]  ;;  %v1395_v41 = vld [vmem:[%s13806_s10 + $0x148] sm:$0xff]  ;;  %v1394_v42 = vld [vmem:[%s13806_s10 + $0x140] sm:$0xff]  ;;  %v9994_v7 = vmov 0.0  }
 0x1e8   : > { %v1397_v43 = vld [vmem:[%s13806_s10 + $0x158] sm:$0xff]  ;;  %v1396_v44 = vld [vmem:[%s13806_s10 + $0x150] sm:$0xff]  ;;  %v1399_v45 = vld [vmem:[%s13806_s10 + $0x168] sm:$0xff] }
 0x1e9   : > { %v1398_v46 = vld [vmem:[%s13806_s10 + $0x160] sm:$0xff]  ;;  %v1401_v47 = vld [vmem:[%s13806_s10 + $0x178] sm:$0xff]  ;;  %v1400_v48 = vld [vmem:[%s13806_s10 + $0x170] sm:$0xff] }
 0x1ea   : > { %v1403_v49 = vld [vmem:[%s13806_s10 + $0x188] sm:$0xff]  ;;  %v1402_v50 = vld [vmem:[%s13806_s10 + $0x180] sm:$0xff]  ;;  %v1405_v51 = vld [vmem:[%s13806_s10 + $0x198] sm:$0xff] }
 0x1eb   : > { %1446 = vperm.xlu1 %9140, %v1363_v9   ;;  %1443 = vperm.xlu0 %9139, %v1362_v10   ;;  %v1404_v52 = vld [vmem:[%s13806_s10 + $0x190] sm:$0xff]  ;;  %v1407_v53 = vld [vmem:[%s13806_s10 + $0x1a8] sm:$0xff]  ;;  %v1406_v54 = vld [vmem:[%s13806_s10 + $0x1a0] sm:$0xff] }
 0x1ec   : > { %v1409_v55 = vld [vmem:[%s13806_s10 + $0x1b8] sm:$0xff]  ;;  %v1408_v56 = vld [vmem:[%s13806_s10 + $0x1b0] sm:$0xff]  ;;  %v1411_v57 = vld [vmem:[%s13806_s10 + $0x1c8] sm:$0xff] }
 0x1ed   : > { %v1410_v58 = vld [vmem:[%s13806_s10 + $0x1c0] sm:$0xff]  ;;  %v1413_v59 = vld [vmem:[%s13806_s10 + $0x1d8] sm:$0xff]  ;;  %v1412_v60 = vld [vmem:[%s13806_s10 + $0x1d0] sm:$0xff] }
 0x1ee   : > { %v1415_v61 = vld [vmem:[%s13806_s10 + $0x1e8] sm:$0xff]  ;;  %v1414_v62 = vld [vmem:[%s13806_s10 + $0x1e0] sm:$0xff]  ;;  %v1417_v0 = vld [vmem:[%s13806_s10 + $0x1f8] sm:$0xff] }
 0x1ef   : > { %1452 = vperm.xlu1 %9140, %v1365_v11   ;;  %1449 = vperm.xlu0 %9139, %v1364_v12   ;;  %v1416_v1 = vld [vmem:[%s13806_s10 + $0x1f0] sm:$0xff]  ;;  %v1803_v3 = vld [vmem:[%s13807_s20 + $0x8] sm:$0xff]  ;;  %v1802_v4 = vld [vmem:[%s13807_s20] sm:$0xff] }
 0x1f0   : > { %v1805_v10 = vld [vmem:[%s13807_s20 + $0x18] sm:$0xff]  ;;  %v1804_v11 = vld [vmem:[%s13807_s20 + $0x10] sm:$0xff] }
 0x1f3   : > { %1458 = vperm.xlu1 %9140, %v1367_v13   ;;  %1455 = vperm.xlu0 %9139, %v1366_v14  }
 0x1f7   : > { %1464 = vperm.xlu1 %9140, %v1369_v15   ;;  %1461 = vperm.xlu0 %9139, %v1368_v16   ;;  %v1807_v16 = vld [vmem:[%s13807_s20 + $0x28] sm:$0xff] }
 0x1fb   : > { %1470 = vperm.xlu1 %9140, %v1371_v17   ;;  %1467 = vperm.xlu0 %9139, %v1370_v18   ;;  %v1806_v17 = vld [vmem:[%s13807_s20 + $0x20] sm:$0xff] }
 0x1ff   : > { %1476 = vperm.xlu1 %9140, %v1373_v19   ;;  %1473 = vperm.xlu0 %9139, %v1372_v20  }
 0x203   : > { %1482 = vperm.xlu1 %9140, %v1375_v21   ;;  %1479 = vperm.xlu0 %9139, %v1374_v22   ;;  %v1809_v22 = vld [vmem:[%s13807_s20 + $0x38] sm:$0xff] }
 0x207   : > { %1488 = vperm.xlu1 %9140, %v1377_v23   ;;  %1485 = vperm.xlu0 %9139, %v1376_v24   ;;  %v1808_v23 = vld [vmem:[%s13807_s20 + $0x30] sm:$0xff] }
 0x20b   : > { %1494 = vperm.xlu1 %9140, %v1379_v25   ;;  %1491 = vperm.xlu0 %9139, %v1378_v26  }
 0x20f   : > { %1500 = vperm.xlu1 %9140, %v1381_v27   ;;  %1497 = vperm.xlu0 %9139, %v1380_v28   ;;  %v1811_v28 = vld [vmem:[%s13807_s20 + $0x48] sm:$0xff] }
 0x213   : > { %1506 = vperm.xlu1 %9140, %v1383_v29   ;;  %1503 = vperm.xlu0 %9139, %v1382_v30   ;;  %v1810_v29 = vld [vmem:[%s13807_s20 + $0x40] sm:$0xff] }
 0x217   : > { %1512 = vperm.xlu1 %9140, %v1385_v31   ;;  %1509 = vperm.xlu0 %9139, %v1384_v32  }
 0x21b   : > { %1518 = vperm.xlu1 %9140, %v1387_v33   ;;  %1515 = vperm.xlu0 %9139, %v1386_v34   ;;  %v1813_v34 = vld [vmem:[%s13807_s20 + $0x58] sm:$0xff] }
 0x21f   : > { %1524 = vperm.xlu1 %9140, %v1389_v35   ;;  %1521 = vperm.xlu0 %9139, %v1388_v36   ;;  %v1812_v35 = vld [vmem:[%s13807_s20 + $0x50] sm:$0xff] }
 0x223   : > { %1530 = vperm.xlu1 %9140, %v1391_v37   ;;  %1527 = vperm.xlu0 %9139, %v1390_v38  }
 0x227   : > { %1536 = vperm.xlu1 %9140, %v1393_v39   ;;  %1533 = vperm.xlu0 %9139, %v1392_v40   ;;  %v1815_v40 = vld [vmem:[%s13807_s20 + $0x68] sm:$0xff] }
 0x22b   : > { %1542 = vperm.xlu1 %9140, %v1395_v41   ;;  %1539 = vperm.xlu0 %9139, %v1394_v42   ;;  %v1814_v41 = vld [vmem:[%s13807_s20 + $0x60] sm:$0xff] }
 0x22f   : > { %1548 = vperm.xlu1 %9140, %v1397_v43   ;;  %1545 = vperm.xlu0 %9139, %v1396_v44  }
 0x233   : > { %1554 = vperm.xlu1 %9140, %v1399_v45   ;;  %1551 = vperm.xlu0 %9139, %v1398_v46   ;;  %v1817_v46 = vld [vmem:[%s13807_s20 + $0x78] sm:$0xff] }
 0x237   : > { %1560 = vperm.xlu1 %9140, %v1401_v47   ;;  %1557 = vperm.xlu0 %9139, %v1400_v48   ;;  %v1816_v47 = vld [vmem:[%s13807_s20 + $0x70] sm:$0xff] }
 0x23b   : > { %1566 = vperm.xlu1 %9140, %v1403_v49   ;;  %1563 = vperm.xlu0 %9139, %v1402_v50  }
 0x23f   : > { %1572 = vperm.xlu1 %9140, %v1405_v51   ;;  %1569 = vperm.xlu0 %9139, %v1404_v52   ;;  %v1819_v52 = vld [vmem:[%s13807_s20 + $0x88] sm:$0xff] }
 0x243   : > { %1578 = vperm.xlu1 %9140, %v1407_v53   ;;  %1575 = vperm.xlu0 %9139, %v1406_v54   ;;  %v1818_v53 = vld [vmem:[%s13807_s20 + $0x80] sm:$0xff] }
 0x247   : > { %1584 = vperm.xlu1 %9140, %v1409_v55   ;;  %1581 = vperm.xlu0 %9139, %v1408_v56  }
 0x24b   : > { %1590 = vperm.xlu1 %9140, %v1411_v57   ;;  %1587 = vperm.xlu0 %9139, %v1410_v58   ;;  %v1821_v58 = vld [vmem:[%s13807_s20 + $0x98] sm:$0xff] }
 0x24f   : > { %1596 = vperm.xlu1 %9140, %v1413_v59   ;;  %1593 = vperm.xlu0 %9139, %v1412_v60   ;;  %v1820_v59 = vld [vmem:[%s13807_s20 + $0x90] sm:$0xff] }
 0x253   : > { %1602 = vperm.xlu1 %9140, %v1415_v61   ;;  %1599 = vperm.xlu0 %9139, %v1414_v62  }
 0x257   : > { %1608 = vperm.xlu1 %9140, %v1417_v0   ;;  %1605 = vperm.xlu0 %9139, %v1416_v1   ;;  %v1823_v1 = vld [vmem:[%s13807_s20 + $0xa8] sm:$0xff] }
 0x25a   : > { %v1426_v5 = vpop.permute.xlu1 %1425  ;;  %v1420_v6 = vpop.permute.xlu0 %1419 }
 0x25b   : > { %vm1612_vm0 = vcmp.eq.s32.totalorder %v10916_v2, %v1426_v5  ;;  %vm1610_vm1 = vcmp.eq.s32.totalorder %v10916_v2, %v1420_v6  ;;  %1870 = vperm.xlu1 %9140, %v1803_v3   ;;  %1867 = vperm.xlu0 %9139, %v1802_v4   ;;  %v1822_v3 = vld [vmem:[%s13807_s20 + $0xa0] sm:$0xff] }
 0x25c   : > { %v1676_v8 = vsel %vm1612_vm0, 1.0, %v9994_v7  ;;  %v1674_v9 = vsel %vm1610_vm1, 1.0, %v9994_v7 }
 0x25d   : > { %1740 = vst [vmem:[#allocation3 + $0x10] sm:$0xff] %v1676_v8  ;;  %1738 = vst [vmem:[#allocation3] sm:$0xff] %v1674_v9  ;;  %v1825_v9 = vld [vmem:[%s13807_s20 + $0xb8] sm:$0xff] }
 0x25e   : > { %v1429_v12 = vpop.permute.xlu1 %1428  ;;  %v1423_v13 = vpop.permute.xlu0 %1422 }
 0x25f   : > { %vm1613_vm2 = vcmp.eq.s32.totalorder %v10916_v2, %v1429_v12  ;;  %vm1611_vm3 = vcmp.eq.s32.totalorder %v10916_v2, %v1423_v13  ;;  %1876 = vperm.xlu1 %9140, %v1805_v10   ;;  %1873 = vperm.xlu0 %9139, %v1804_v11   ;;  %v1824_v10 = vld [vmem:[%s13807_s20 + $0xb0] sm:$0xff] }
 0x260   : > { %v1677_v14 = vsel %vm1613_vm2, 1.0, %v9994_v7  ;;  %v1675_v15 = vsel %vm1611_vm3, 1.0, %v9994_v7 }
 0x261   : > { %1741 = vst [vmem:[#allocation3 + $0x18] sm:$0xff] %v1677_v14  ;;  %1739 = vst [vmem:[#allocation3 + $0x8] sm:$0xff] %v1675_v15  ;;  %v1827_v15 = vld [vmem:[%s13807_s20 + $0xc8] sm:$0xff] }
 0x262   : > { %v1435_v18 = vpop.permute.xlu1 %1434  ;;  %v1432_v19 = vpop.permute.xlu0 %1431 }
 0x263   : > { %vm1615_vm4 = vcmp.eq.s32.totalorder %v10916_v2, %v1435_v18  ;;  %vm1614_vm5 = vcmp.eq.s32.totalorder %v10916_v2, %v1432_v19  ;;  %1882 = vperm.xlu1 %9140, %v1807_v16   ;;  %1879 = vperm.xlu0 %9139, %v1806_v17   ;;  %v1826_v16 = vld [vmem:[%s13807_s20 + $0xc0] sm:$0xff] }
 0x264   : > { %v1679_v20 = vsel %vm1615_vm4, 1.0, %v9994_v7  ;;  %v1678_v21 = vsel %vm1614_vm5, 1.0, %v9994_v7 }
 0x265   : > { %1743 = vst [vmem:[#allocation3 + $0x28] sm:$0xff] %v1679_v20  ;;  %1742 = vst [vmem:[#allocation3 + $0x20] sm:$0xff] %v1678_v21  ;;  %v1829_v21 = vld [vmem:[%s13807_s20 + $0xd8] sm:$0xff] }
 0x266   : > { %v1441_v24 = vpop.permute.xlu1 %1440  ;;  %v1438_v25 = vpop.permute.xlu0 %1437 }
 0x267   : > { %vm1617_vm6 = vcmp.eq.s32.totalorder %v10916_v2, %v1441_v24  ;;  %vm1616_vm7 = vcmp.eq.s32.totalorder %v10916_v2, %v1438_v25  ;;  %1888 = vperm.xlu1 %9140, %v1809_v22   ;;  %1885 = vperm.xlu0 %9139, %v1808_v23   ;;  %v1828_v22 = vld [vmem:[%s13807_s20 + $0xd0] sm:$0xff] }
 0x268   : > { %v1681_v26 = vsel %vm1617_vm6, 1.0, %v9994_v7  ;;  %v1680_v27 = vsel %vm1616_vm7, 1.0, %v9994_v7 }
 0x269   : > { %1745 = vst [vmem:[#allocation3 + $0x38] sm:$0xff] %v1681_v26  ;;  %1744 = vst [vmem:[#allocation3 + $0x30] sm:$0xff] %v1680_v27  ;;  %v1831_v27 = vld [vmem:[%s13807_s20 + $0xe8] sm:$0xff] }
 0x26a   : > { %v1447_v30 = vpop.permute.xlu1 %1446  ;;  %v1444_v31 = vpop.permute.xlu0 %1443 }
 0x26b   : > { %vm1619_vm8 = vcmp.eq.s32.totalorder %v10916_v2, %v1447_v30  ;;  %vm1618_vm9 = vcmp.eq.s32.totalorder %v10916_v2, %v1444_v31  ;;  %1894 = vperm.xlu1 %9140, %v1811_v28   ;;  %1891 = vperm.xlu0 %9139, %v1810_v29   ;;  %v1830_v28 = vld [vmem:[%s13807_s20 + $0xe0] sm:$0xff] }
 0x26c   : > { %v1683_v32 = vsel %vm1619_vm8, 1.0, %v9994_v7  ;;  %v1682_v33 = vsel %vm1618_vm9, 1.0, %v9994_v7 }
 0x26d   : > { %1747 = vst [vmem:[#allocation3 + $0x48] sm:$0xff] %v1683_v32  ;;  %1746 = vst [vmem:[#allocation3 + $0x40] sm:$0xff] %v1682_v33  ;;  %v1833_v33 = vld [vmem:[%s13807_s20 + $0xf8] sm:$0xff] }
 0x26e   : > { %v1453_v36 = vpop.permute.xlu1 %1452  ;;  %v1450_v37 = vpop.permute.xlu0 %1449 }
 0x26f   : > { %vm1621_vm10 = vcmp.eq.s32.totalorder %v10916_v2, %v1453_v36  ;;  %vm1620_vm11 = vcmp.eq.s32.totalorder %v10916_v2, %v1450_v37  ;;  %1900 = vperm.xlu1 %9140, %v1813_v34   ;;  %1897 = vperm.xlu0 %9139, %v1812_v35   ;;  %v1832_v34 = vld [vmem:[%s13807_s20 + $0xf0] sm:$0xff] }
 0x270   : > { %v1685_v38 = vsel %vm1621_vm10, 1.0, %v9994_v7  ;;  %v1684_v39 = vsel %vm1620_vm11, 1.0, %v9994_v7 }
 0x271   : > { %1749 = vst [vmem:[#allocation3 + $0x58] sm:$0xff] %v1685_v38  ;;  %1748 = vst [vmem:[#allocation3 + $0x50] sm:$0xff] %v1684_v39  ;;  %v1835_v39 = vld [vmem:[%s13807_s20 + $0x108] sm:$0xff] }
 0x272   : > { %v1459_v42 = vpop.permute.xlu1 %1458  ;;  %v1456_v43 = vpop.permute.xlu0 %1455 }
 0x273   : > { %vm1623_vm12 = vcmp.eq.s32.totalorder %v10916_v2, %v1459_v42  ;;  %vm1622_vm13 = vcmp.eq.s32.totalorder %v10916_v2, %v1456_v43  ;;  %1906 = vperm.xlu1 %9140, %v1815_v40   ;;  %1903 = vperm.xlu0 %9139, %v1814_v41   ;;  %v1834_v40 = vld [vmem:[%s13807_s20 + $0x100] sm:$0xff] }
 0x274   : > { %v1687_v44 = vsel %vm1623_vm12, 1.0, %v9994_v7  ;;  %v1686_v45 = vsel %vm1622_vm13, 1.0, %v9994_v7 }
 0x275   : > { %1751 = vst [vmem:[#allocation3 + $0x68] sm:$0xff] %v1687_v44  ;;  %1750 = vst [vmem:[#allocation3 + $0x60] sm:$0xff] %v1686_v45  ;;  %v1837_v45 = vld [vmem:[%s13807_s20 + $0x118] sm:$0xff] }
 0x276   : > { %v1465_v48 = vpop.permute.xlu1 %1464  ;;  %v1462_v49 = vpop.permute.xlu0 %1461 }
 0x277   : > { %vm1625_vm14 = vcmp.eq.s32.totalorder %v10916_v2, %v1465_v48  ;;  %vm1624_vm15 = vcmp.eq.s32.totalorder %v10916_v2, %v1462_v49  ;;  %1912 = vperm.xlu1 %9140, %v1817_v46   ;;  %1909 = vperm.xlu0 %9139, %v1816_v47   ;;  %v1836_v46 = vld [vmem:[%s13807_s20 + $0x110] sm:$0xff] }
 0x278   : > { %v1689_v50 = vsel %vm1625_vm14, 1.0, %v9994_v7  ;;  %v1688_v51 = vsel %vm1624_vm15, 1.0, %v9994_v7 }
 0x279   : > { %1753 = vst [vmem:[#allocation3 + $0x78] sm:$0xff] %v1689_v50  ;;  %1752 = vst [vmem:[#allocation3 + $0x70] sm:$0xff] %v1688_v51  ;;  %v1839_v51 = vld [vmem:[%s13807_s20 + $0x128] sm:$0xff] }
 0x27a   : > { %v1471_v54 = vpop.permute.xlu1 %1470  ;;  %v1468_v55 = vpop.permute.xlu0 %1467 }
 0x27b   : > { %vm1627_vm0 = vcmp.eq.s32.totalorder %v10916_v2, %v1471_v54  ;;  %vm1626_vm1 = vcmp.eq.s32.totalorder %v10916_v2, %v1468_v55  ;;  %1918 = vperm.xlu1 %9140, %v1819_v52   ;;  %1915 = vperm.xlu0 %9139, %v1818_v53   ;;  %v1838_v52 = vld [vmem:[%s13807_s20 + $0x120] sm:$0xff]  ;;  %v11105_v53 = vshrl.u32 %v1352_v63, 7  ;;  %v1841_v63 = vld [vmem:[%s13807_s20 + $0x138] sm:$0xff] }
 0x27c   : > { %v1691_v56 = vsel %vm1627_vm0, 1.0, %v9994_v7  ;;  %v1690_v57 = vsel %vm1626_vm1, 1.0, %v9994_v7 }
 0x27d   : > { %1755 = vst [vmem:[#allocation3 + $0x88] sm:$0xff] %v1691_v56  ;;  %1754 = vst [vmem:[#allocation3 + $0x80] sm:$0xff] %v1690_v57  ;;  %v2267_v56 = vld [vmem:[%s13808_s4] sm:$0xf] }
 0x27e   : > { %v1477_v60 = vpop.permute.xlu1 %1476  ;;  %v1474_v61 = vpop.permute.xlu0 %1473 }
 0x27f   : > { %vm1629_vm2 = vcmp.eq.s32.totalorder %v10916_v2, %v1477_v60  ;;  %vm1628_vm3 = vcmp.eq.s32.totalorder %v10916_v2, %v1474_v61  ;;  %1924 = vperm.xlu1 %9140, %v1821_v58   ;;  %1921 = vperm.xlu0 %9139, %v1820_v59   ;;  %v1840_v59 = vld [vmem:[%s13807_s20 + $0x130] sm:$0xff]  ;;  %v2270_v60 = vsub.s32 0, %v11105_v53  ;;  %v2274_v61 = vsub.s32 1, %v11105_v53 }
 0x280   : > { %v1693_v62 = vsel %vm1629_vm2, 1.0, %v9994_v7  ;;  %v1692_v0 = vsel %vm1628_vm3, 1.0, %v9994_v7 }
 0x281   : > { %1757 = vst [vmem:[#allocation3 + $0x98] sm:$0xff] %v1693_v62  ;;  %1756 = vst [vmem:[#allocation3 + $0x90] sm:$0xff] %v1692_v0 }
 0x282   : > { %v1483_v4 = vpop.permute.xlu1 %1482  ;;  %v1480_v5 = vpop.permute.xlu0 %1479 }
 0x283   : > { %vm1631_vm4 = vcmp.eq.s32.totalorder %v10916_v2, %v1483_v4  ;;  %vm1630_vm5 = vcmp.eq.s32.totalorder %v10916_v2, %v1480_v5  ;;  %1930 = vperm.xlu1 %9140, %v1823_v1   ;;  %1927 = vperm.xlu0 %9139, %v1822_v3   ;;  %v11122_v1 = vrot.slane %v2267_v56, %v2270_v60  ;;  %v1843_v5 = vld [vmem:[%s13807_s20 + $0x148] sm:$0xff]  ;;  %v1853_v60 = vld [vmem:[%s13807_s20 + $0x198] sm:$0xff] }
 0x284   : > { %v1695_v6 = vsel %vm1631_vm4, 1.0, %v9994_v7  ;;  %v1694_v8 = vsel %vm1630_vm5, 1.0, %v9994_v7 }
 0x285   : > { %1759 = vst [vmem:[#allocation3 + $0xa8] sm:$0xff] %v1695_v6  ;;  %1758 = vst [vmem:[#allocation3 + $0xa0] sm:$0xff] %v1694_v8  ;;  %v1842_v6 = vld [vmem:[%s13807_s20 + $0x140] sm:$0xff]  ;;  %v11134_v8 = vrot.slane %v2267_v56, %v2274_v61  ;;  %v1852_v61 = vld [vmem:[%s13807_s20 + $0x190] sm:$0xff] }
 0x286   : > { %v1489_v11 = vpop.permute.xlu1 %1488  ;;  %v1486_v12 = vpop.permute.xlu0 %1485 }
 0x287   : > { %vm1633_vm6 = vcmp.eq.s32.totalorder %v10916_v2, %v1489_v11  ;;  %vm1632_vm7 = vcmp.eq.s32.totalorder %v10916_v2, %v1486_v12  ;;  %1936 = vperm.xlu1 %9140, %v1825_v9   ;;  %1933 = vperm.xlu0 %9139, %v1824_v10   ;;  %v2278_v9 = vsub.s32 2, %v11105_v53  ;;  %v2282_v12 = vsub.s32 3, %v11105_v53 }
 0x288   : > { %v1697_v13 = vsel %vm1633_vm6, 1.0, %v9994_v7  ;;  %v1696_v14 = vsel %vm1632_vm7, 1.0, %v9994_v7 }
 0x289   : > { %1761 = vst [vmem:[#allocation3 + $0xb8] sm:$0xff] %v1697_v13  ;;  %1760 = vst [vmem:[#allocation3 + $0xb0] sm:$0xff] %v1696_v14 }
 0x28a   : > { %v1495_v17 = vpop.permute.xlu1 %1494  ;;  %v1492_v18 = vpop.permute.xlu0 %1491 }
 0x28b   : > { %vm1635_vm8 = vcmp.eq.s32.totalorder %v10916_v2, %v1495_v17  ;;  %vm1634_vm9 = vcmp.eq.s32.totalorder %v10916_v2, %v1492_v18  ;;  %1942 = vperm.xlu1 %9140, %v1827_v15   ;;  %1939 = vperm.xlu0 %9139, %v1826_v16   ;;  %v1845_v16 = vld [vmem:[%s13807_s20 + $0x158] sm:$0xff]  ;;  %v1844_v17 = vld [vmem:[%s13807_s20 + $0x150] sm:$0xff]  ;;  %v11151_v18 = vrot.slane %v2267_v56, %v2278_v9  ;;  %v1854_v9 = vld [vmem:[%s13807_s20 + $0x1a0] sm:$0xff] }
 0x28c   : > { %v1699_v19 = vsel %vm1635_vm8, 1.0, %v9994_v7  ;;  %v1698_v20 = vsel %vm1634_vm9, 1.0, %v9994_v7  ;;  %vm2284_vm8 = vcmp.eq.s32.totalorder %v11105_v53, %v11122_v1 }
 0x28d   : > { %1763 = vst [vmem:[#allocation3 + $0xc8] sm:$0xff] %v1699_v19  ;;  %1762 = vst [vmem:[#allocation3 + $0xc0] sm:$0xff] %v1698_v20  ;;  %v2348_v13 = vsel %vm2284_vm8, 1.0, %v9994_v7 }
 0x28e   : > { %v1501_v23 = vpop.permute.xlu1 %1500  ;;  %v1498_v24 = vpop.permute.xlu0 %1497  ;;  %2412 = vst [vmem:[#allocation5] sm:$0xff] %v2348_v13 }
 0x28f   : > { %vm1637_vm10 = vcmp.eq.s32.totalorder %v10916_v2, %v1501_v23  ;;  %vm1636_vm11 = vcmp.eq.s32.totalorder %v10916_v2, %v1498_v24  ;;  %1948 = vperm.xlu1 %9140, %v1829_v21   ;;  %1945 = vperm.xlu0 %9139, %v1828_v22   ;;  %v11156_v21 = vadd.s32 8, %v11105_v53  ;;  %v11159_v22 = vadd.s32 16, %v11105_v53 }
 0x290   : > { %v1701_v25 = vsel %vm1637_vm10, 1.0, %v9994_v7  ;;  %v1700_v26 = vsel %vm1636_vm11, 1.0, %v9994_v7  ;;  %vm2285_vm11 = vcmp.eq.s32.totalorder %v11105_v53, %v11134_v8  ;;  %v11162_v23 = vadd.s32 24, %v11105_v53 }
 0x291   : > { %1765 = vst [vmem:[#allocation3 + $0xd8] sm:$0xff] %v1701_v25  ;;  %1764 = vst [vmem:[#allocation3 + $0xd0] sm:$0xff] %v1700_v26  ;;  %v11165_v24 = vadd.s32 32, %v11105_v53  ;;  %v11170_v25 = vadd.s32 40, %v11105_v53  ;;  %v2349_v26 = vsel %vm2285_vm11, 1.0, %v9994_v7  ;;  %vm2294_vm8 = vcmp.eq.s32.totalorder %v11159_v22, %v11151_v18 }
 0x292   : > { %v1507_v29 = vpop.permute.xlu1 %1506  ;;  %v1504_v30 = vpop.permute.xlu0 %1503  ;;  %2413 = vst [vmem:[#allocation5 + $0x8] sm:$0xff] %v2349_v26 }
 0x293   : > { %vm1639_vm12 = vcmp.eq.s32.totalorder %v10916_v2, %v1507_v29  ;;  %vm1638_vm13 = vcmp.eq.s32.totalorder %v10916_v2, %v1504_v30  ;;  %1954 = vperm.xlu1 %9140, %v1831_v27   ;;  %1951 = vperm.xlu0 %9139, %v1830_v28   ;;  %v1847_v29 = vld [vmem:[%s13807_s20 + $0x168] sm:$0xff]  ;;  %v1846_v30 = vld [vmem:[%s13807_s20 + $0x160] sm:$0xff] }
 0x294   : > { %v1703_v31 = vsel %vm1639_vm12, 1.0, %v9994_v7  ;;  %v1702_v32 = vsel %vm1638_vm13, 1.0, %v9994_v7 }
 0x295   : > { %1767 = vst [vmem:[#allocation3 + $0xe8] sm:$0xff] %v1703_v31  ;;  %1766 = vst [vmem:[#allocation3 + $0xe0] sm:$0xff] %v1702_v32  ;;  %v11181_v31 = vrot.slane %v2267_v56, %v2282_v12  ;;  %v11186_v32 = vadd.s32 48, %v11105_v53  ;;  %v1850_v56 = vld [vmem:[%s13807_s20 + $0x180] sm:$0xff] }
 0x296   : > { %v1513_v35 = vpop.permute.xlu1 %1512  ;;  %v1510_v36 = vpop.permute.xlu0 %1509 }
 0x297   : > { %vm1641_vm14 = vcmp.eq.s32.totalorder %v10916_v2, %v1513_v35  ;;  %vm1640_vm15 = vcmp.eq.s32.totalorder %v10916_v2, %v1510_v36  ;;  %1960 = vperm.xlu1 %9140, %v1833_v33   ;;  %1957 = vperm.xlu0 %9139, %v1832_v34   ;;  %v11189_v33 = vadd.s32 56, %v11105_v53  ;;  %v11192_v34 = vadd.s32 64, %v11105_v53 }
 0x298   : > { %v1705_v37 = vsel %vm1641_vm14, 1.0, %v9994_v7  ;;  %v1704_v38 = vsel %vm1640_vm15, 1.0, %v9994_v7  ;;  %vm2286_vm14 = vcmp.eq.s32.totalorder %v11105_v53, %v11151_v18  ;;  %v11195_v35 = vadd.s32 72, %v11105_v53 }
 0x299   : > { %1769 = vst [vmem:[#allocation3 + $0xf8] sm:$0xff] %v1705_v37  ;;  %1768 = vst [vmem:[#allocation3 + $0xf0] sm:$0xff] %v1704_v38  ;;  %v11198_v38 = vadd.s32 80, %v11105_v53 }
 0x29a   : > { %v1519_v41 = vpop.permute.xlu1 %1518  ;;  %v1516_v42 = vpop.permute.xlu0 %1515 }
 0x29b   : > { %vm1643_vm0 = vcmp.eq.s32.totalorder %v10916_v2, %v1519_v41  ;;  %vm1642_vm1 = vcmp.eq.s32.totalorder %v10916_v2, %v1516_v42  ;;  %1966 = vperm.xlu1 %9140, %v1835_v39   ;;  %1963 = vperm.xlu0 %9139, %v1834_v40   ;;  %v11201_v39 = vadd.s32 88, %v11105_v53  ;;  %v11204_v40 = vadd.s32 96, %v11105_v53 }
 0x29c   : > { %v1707_v43 = vsel %vm1643_vm0, 1.0, %v9994_v7  ;;  %v1706_v44 = vsel %vm1642_vm1, 1.0, %v9994_v7  ;;  %v11207_v41 = vadd.s32 104, %v11105_v53  ;;  %v11212_v42 = vadd.s32 112, %v11105_v53 }
 0x29d   : > { %1771 = vst [vmem:[#allocation3 + $0x108] sm:$0xff] %v1707_v43  ;;  %1770 = vst [vmem:[#allocation3 + $0x100] sm:$0xff] %v1706_v44  ;;  %v2350_v43 = vsel %vm2286_vm14, 1.0, %v9994_v7  ;;  %vm2287_vm1 = vcmp.eq.s32.totalorder %v11105_v53, %v11181_v31  ;;  %vm2305_vm14 = vcmp.eq.s32.totalorder %v11170_v25, %v11134_v8 }
 0x29e   : > { %v1525_v47 = vpop.permute.xlu1 %1524  ;;  %v1522_v48 = vpop.permute.xlu0 %1521  ;;  %2414 = vst [vmem:[#allocation5 + $0x10] sm:$0xff] %v2350_v43 }
 0x29f   : > { %vm1645_vm2 = vcmp.eq.s32.totalorder %v10916_v2, %v1525_v47  ;;  %vm1644_vm3 = vcmp.eq.s32.totalorder %v10916_v2, %v1522_v48  ;;  %1972 = vperm.xlu1 %9140, %v1837_v45   ;;  %1969 = vperm.xlu0 %9139, %v1836_v46   ;;  %v1849_v46 = vld [vmem:[%s13807_s20 + $0x178] sm:$0xff]  ;;  %v1848_v47 = vld [vmem:[%s13807_s20 + $0x170] sm:$0xff]  ;;  %v11227_v48 = vadd.s32 120, %v11105_v53 }
 0x2a0   : > { %v1709_v49 = vsel %vm1645_vm2, 1.0, %v9994_v7  ;;  %v1708_v50 = vsel %vm1644_vm3, 1.0, %v9994_v7  ;;  %vm2288_vm2 = vcmp.eq.s32.totalorder %v11156_v21, %v11122_v1  ;;  %vm2289_vm3 = vcmp.eq.s32.totalorder %v11156_v21, %v11134_v8 }
 0x2a1   : > { %1773 = vst [vmem:[#allocation3 + $0x118] sm:$0xff] %v1709_v49  ;;  %1772 = vst [vmem:[#allocation3 + $0x110] sm:$0xff] %v1708_v50 }
 0x2a2   : > { %v1531_v54 = vpop.permute.xlu1 %1530  ;;  %v1528_v55 = vpop.permute.xlu0 %1527 }
 0x2a3   : > { %vm1647_vm4 = vcmp.eq.s32.totalorder %v10916_v2, %v1531_v54  ;;  %vm1646_vm5 = vcmp.eq.s32.totalorder %v10916_v2, %v1528_v55  ;;  %1978 = vperm.xlu1 %9140, %v1839_v51   ;;  %1975 = vperm.xlu0 %9139, %v1838_v52   ;;  %v2351_v51 = vsel %vm2287_vm1, 1.0, %v9994_v7  ;;  %v1851_v55 = vld [vmem:[%s13807_s20 + $0x188] sm:$0xff]  ;;  %vm2320_vm1 = vcmp.eq.s32.totalorder %v11195_v35, %v11122_v1 }
 0x2a4   : > { %v1711_v57 = vsel %vm1647_vm4, 1.0, %v9994_v7  ;;  %v1710_v58 = vsel %vm1646_vm5, 1.0, %v9994_v7  ;;  %vm2290_vm4 = vcmp.eq.s32.totalorder %v11156_v21, %v11151_v18  ;;  %vm2291_vm5 = vcmp.eq.s32.totalorder %v11156_v21, %v11181_v31  ;;  %2415 = vst [vmem:[#allocation5 + $0x18] sm:$0xff] %v2351_v51 }
 0x2a5   : > { %1775 = vst [vmem:[#allocation3 + $0x128] sm:$0xff] %v1711_v57  ;;  %1774 = vst [vmem:[#allocation3 + $0x120] sm:$0xff] %v1710_v58  ;;  %v2352_v58 = vsel %vm2288_vm2, 1.0, %v9994_v7  ;;  %vm2324_vm2 = vcmp.eq.s32.totalorder %v11198_v38, %v11122_v1 }
 0x2a6   : > { %v1537_v62 = vpop.permute.xlu1 %1536  ;;  %v1534_v0 = vpop.permute.xlu0 %1533  ;;  %2416 = vst [vmem:[#allocation5 + $0x20] sm:$0xff] %v2352_v58 }
 0x2a7   : > { %vm1649_vm6 = vcmp.eq.s32.totalorder %v10916_v2, %v1537_v62  ;;  %vm1648_vm7 = vcmp.eq.s32.totalorder %v10916_v2, %v1534_v0  ;;  %1984 = vperm.xlu1 %9140, %v1841_v63   ;;  %1981 = vperm.xlu0 %9139, %v1840_v59  }
 0x2a8   : > { %v1713_v3 = vsel %vm1649_vm6, 1.0, %v9994_v7  ;;  %v1712_v4 = vsel %vm1648_vm7, 1.0, %v9994_v7  ;;  %vm2292_vm6 = vcmp.eq.s32.totalorder %v11159_v22, %v11122_v1  ;;  %vm2293_vm7 = vcmp.eq.s32.totalorder %v11159_v22, %v11134_v8 }
 0x2a9   : > { %1777 = vst [vmem:[#allocation3 + $0x138] sm:$0xff] %v1713_v3  ;;  %1776 = vst [vmem:[#allocation3 + $0x130] sm:$0xff] %v1712_v4  ;;  %v2353_v3 = vsel %vm2289_vm3, 1.0, %v9994_v7  ;;  %vm2326_vm3 = vcmp.eq.s32.totalorder %v11198_v38, %v11151_v18  ;;  %v2356_v12 = vsel %vm2292_vm6, 1.0, %v9994_v7  ;;  %v2357_v13 = vsel %vm2293_vm7, 1.0, %v9994_v7 }
 0x2aa   : > { %v1543_v10 = vpop.permute.xlu1 %1542  ;;  %v1540_v11 = vpop.permute.xlu0 %1539  ;;  %2417 = vst [vmem:[#allocation5 + $0x28] sm:$0xff] %v2353_v3  ;;  %2420 = vst [vmem:[#allocation5 + $0x40] sm:$0xff] %v2356_v12  ;;  %vm13823_vm6 = vcmp.eq.s32.totalorder %v11189_v33, %v11122_v1  ;;  %v2390_v12 = vsel %vm2326_vm3, 1.0, %v9994_v7  ;;  %vm13835_vm3 = vcmp.eq.s32.totalorder %v11201_v39, %v11181_v31 }
 0x2ab   : > { %vm1651_vm9 = vcmp.eq.s32.totalorder %v10916_v2, %v1543_v10  ;;  %vm1650_vm10 = vcmp.eq.s32.totalorder %v10916_v2, %v1540_v11  ;;  %1990 = vperm.xlu1 %9140, %v1843_v5   ;;  %1987 = vperm.xlu0 %9139, %v1842_v6   ;;  %v1855_v6 = vld [vmem:[%s13807_s20 + $0x1a8] sm:$0xff]  ;;  %v2354_v10 = vsel %vm2290_vm4, 1.0, %v9994_v7  ;;  %v2355_v11 = vsel %vm2291_vm5, 1.0, %v9994_v7  ;;  %2421 = vst [vmem:[#allocation5 + $0x48] sm:$0xff] %v2357_v13 }
 0x2ac   : > { %v1715_v14 = vsel %vm1651_vm9, 1.0, %v9994_v7  ;;  %v1714_v15 = vsel %vm1650_vm10, 1.0, %v9994_v7  ;;  %vm2295_vm9 = vcmp.eq.s32.totalorder %v11159_v22, %v11181_v31  ;;  %2418 = vst [vmem:[#allocation5 + $0x30] sm:$0xff] %v2354_v10  ;;  %2419 = vst [vmem:[#allocation5 + $0x38] sm:$0xff] %v2355_v11  ;;  %vm13812_vm5 = vcmp.eq.s32.totalorder %v11165_v24, %v11122_v1  ;;  %v1861_v10 = vld [vmem:[%s13807_s20 + $0x1d8] sm:$0xff]  ;;  %v1860_v11 = vld [vmem:[%s13807_s20 + $0x1d0] sm:$0xff] }
 0x2ad   : > { %1779 = vst [vmem:[#allocation3 + $0x148] sm:$0xff] %v1715_v14  ;;  %1778 = vst [vmem:[#allocation3 + $0x140] sm:$0xff] %v1714_v15  ;;  %v2358_v14 = vsel %vm2294_vm8, 1.0, %v9994_v7  ;;  %v2359_v15 = vsel %vm2295_vm9, 1.0, %v9994_v7  ;;  %vm13809_vm8 = vcmp.eq.s32.totalorder %v11162_v23, %v11134_v8  ;;  %vm13810_vm9 = vcmp.eq.s32.totalorder %v11162_v23, %v11151_v18 }
 0x2ae   : > { %v1549_v19 = vpop.permute.xlu1 %1548  ;;  %v1546_v20 = vpop.permute.xlu0 %1545  ;;  %v2362_v21 = vsel %vm13810_vm9, 1.0, %v9994_v7  ;;  %2422 = vst [vmem:[#allocation5 + $0x50] sm:$0xff] %v2358_v14  ;;  %2423 = vst [vmem:[#allocation5 + $0x58] sm:$0xff] %v2359_v15  ;;  %vm13813_vm4 = vcmp.eq.s32.totalorder %v11165_v24, %v11134_v8  ;;  %vm13824_vm9 = vcmp.eq.s32.totalorder %v11189_v33, %v11134_v8 }
 0x2af   : > { %vm1653_vm12 = vcmp.eq.s32.totalorder %v10916_v2, %v1549_v19  ;;  %vm1652_vm13 = vcmp.eq.s32.totalorder %v10916_v2, %v1546_v20  ;;  %1996 = vperm.xlu1 %9140, %v1845_v16   ;;  %1993 = vperm.xlu0 %9139, %v1844_v17   ;;  %v2361_v20 = vsel %vm13809_vm8, 1.0, %v9994_v7  ;;  %vm2332_vm8 = vcmp.eq.s32.totalorder %v11204_v40, %v11122_v1 }
 0x2b0   : > { %v1717_v27 = vsel %vm1653_vm12, 1.0, %v9994_v7  ;;  %v1716_v28 = vsel %vm1652_vm13, 1.0, %v9994_v7  ;;  %vm2296_vm12 = vcmp.eq.s32.totalorder %v11162_v23, %v11122_v1  ;;  %v2365_v26 = vsel %vm13813_vm4, 1.0, %v9994_v7  ;;  %2425 = vst [vmem:[#allocation5 + $0x68] sm:$0xff] %v2361_v20  ;;  %2426 = vst [vmem:[#allocation5 + $0x70] sm:$0xff] %v2362_v21 }
 0x2b1   : > { %1781 = vst [vmem:[#allocation3 + $0x158] sm:$0xff] %v1717_v27  ;;  %1780 = vst [vmem:[#allocation3 + $0x150] sm:$0xff] %v1716_v28  ;;  %v2360_v19 = vsel %vm2296_vm12, 1.0, %v9994_v7  ;;  %vm13822_vm4 = vcmp.eq.s32.totalorder %v11186_v32, %v11181_v31  ;;  %v2396_v20 = vsel %vm2332_vm8, 1.0, %v9994_v7 }
 0x2b2   : > { %v1555_v36 = vpop.permute.xlu1 %1554  ;;  %v1552_v37 = vpop.permute.xlu0 %1551  ;;  %2424 = vst [vmem:[#allocation5 + $0x60] sm:$0xff] %v2360_v19  ;;  %2429 = vst [vmem:[#allocation5 + $0x88] sm:$0xff] %v2365_v26  ;;  %v2375_v51 = vsel %vm13822_vm4, 1.0, %v9994_v7  ;;  %vm2347_vm4 = vcmp.eq.s32.totalorder %v11227_v48, %v11181_v31 }
 0x2b3   : > { %vm1655_vm15 = vcmp.eq.s32.totalorder %v10916_v2, %v1555_v36  ;;  %vm1654_vm0 = vcmp.eq.s32.totalorder %v10916_v2, %v1552_v37  ;;  %2002 = vperm.xlu1 %9140, %v1847_v29   ;;  %1999 = vperm.xlu0 %9139, %v1846_v30   ;;  %v1857_v29 = vld [vmem:[%s13807_s20 + $0x1b8] sm:$0xff]  ;;  %v1856_v30 = vld [vmem:[%s13807_s20 + $0x1b0] sm:$0xff]  ;;  %2439 = vst [vmem:[#allocation5 + $0xd8] sm:$0xff] %v2375_v51  ;;  %2454 = vst [vmem:[#allocation5 + $0x150] sm:$0xff] %v2390_v12 }
 0x2b4   : > { %v1719_v44 = vsel %vm1655_vm15, 1.0, %v9994_v7  ;;  %v1718_v45 = vsel %vm1654_vm0, 1.0, %v9994_v7  ;;  %vm2325_vm15 = vcmp.eq.s32.totalorder %v11198_v38, %v11134_v8  ;;  %2460 = vst [vmem:[#allocation5 + $0x180] sm:$0xff] %v2396_v20  ;;  %v1226_v12 = vld [vmem:[%s13847_s7 + $0x10] sm:$0xff]  ;;  %v1232_v20 = vld [vmem:[%s13847_s7 + $0x40] sm:$0xff] }
 0x2b5   : > { %1783 = vst [vmem:[#allocation3 + $0x168] sm:$0xff] %v1719_v44  ;;  %1782 = vst [vmem:[#allocation3 + $0x160] sm:$0xff] %v1718_v45 }
 0x2b6   : > { %v1561_v49 = vpop.permute.xlu1 %1560  ;;  %v1558_v50 = vpop.permute.xlu0 %1557  ;;  %1290 = vst [vmem:[#allocation2 + $0x10] sm:$0xff] %v1226_v12  ;;  %1296 = vst [vmem:[#allocation2 + $0x40] sm:$0xff] %v1232_v20 }
 0x2b7   : > { %vm1657_vm10 = vcmp.eq.s32.totalorder %v10916_v2, %v1561_v49  ;;  %vm1656_vm11 = vcmp.eq.s32.totalorder %v10916_v2, %v1558_v50  ;;  %2008 = vperm.xlu1 %9140, %v1849_v46   ;;  %2005 = vperm.xlu0 %9139, %v1848_v47  }
 0x2b8   : > { %v1721_v52 = vsel %vm1657_vm10, 1.0, %v9994_v7  ;;  %v1720_v54 = vsel %vm1656_vm11, 1.0, %v9994_v7  ;;  %vm2321_vm11 = vcmp.eq.s32.totalorder %v11195_v35, %v11134_v8 }
 0x2b9   : > { %1785 = vst [vmem:[#allocation3 + $0x178] sm:$0xff] %v1721_v52  ;;  %1784 = vst [vmem:[#allocation3 + $0x170] sm:$0xff] %v1720_v54  ;;  %v2377_v52 = vsel %vm13824_vm9, 1.0, %v9994_v7  ;;  %vm13826_vm9 = vcmp.eq.s32.totalorder %v11189_v33, %v11181_v31  ;;  %v2385_v3 = vsel %vm2321_vm11, 1.0, %v9994_v7  ;;  %vm13833_vm11 = vcmp.eq.s32.totalorder %v11201_v39, %v11134_v8 }
 0x2ba   : > { %v1567_v53 = vpop.permute.xlu1 %1566  ;;  %v1564_v57 = vpop.permute.xlu0 %1563  ;;  %v2379_v58 = vsel %vm13826_vm9, 1.0, %v9994_v7  ;;  %2441 = vst [vmem:[#allocation5 + $0xe8] sm:$0xff] %v2377_v52  ;;  %vm13830_vm9 = vcmp.eq.s32.totalorder %v11195_v35, %v11151_v18  ;;  %2449 = vst [vmem:[#allocation5 + $0x128] sm:$0xff] %v2385_v3  ;;  %v2393_v15 = vsel %vm13833_vm11, 1.0, %v9994_v7  ;;  %vm13843_vm11 = vcmp.eq.s32.totalorder %v11212_v42, %v11122_v1  ;;  %v1193_v52 = vld [vmem:[#allocation6 + $0x8] sm:$0xff] }
 0x2bb   : > { %vm1659_vm13 = vcmp.eq.s32.totalorder %v10916_v2, %v1567_v53  ;;  %vm1658_vm10 = vcmp.eq.s32.totalorder %v10916_v2, %v1564_v57  ;;  %2014 = vperm.xlu1 %9140, %v1851_v55   ;;  %2011 = vperm.xlu0 %9139, %v1850_v56   ;;  %v1859_v56 = vld [vmem:[%s13807_s20 + $0x1c8] sm:$0xff]  ;;  %v1858_v53 = vld [vmem:[%s13807_s20 + $0x1c0] sm:$0xff]  ;;  %2443 = vst [vmem:[#allocation5 + $0xf8] sm:$0xff] %v2379_v58  ;;  %2457 = vst [vmem:[#allocation5 + $0x168] sm:$0xff] %v2393_v15 }
 0x2bc   : > { %v1723_v63 = vsel %vm1659_vm13, 1.0, %v9994_v7  ;;  %v1722_v59 = vsel %vm1658_vm10, 1.0, %v9994_v7  ;;  %vm2319_vm13 = vcmp.eq.s32.totalorder %v11192_v34, %v11181_v31  ;;  %1209 = vst [vmem:[#allocation29 + $0x8] sm:$0xff] %v1193_v52  ;;  %v1229_v15 = vld [vmem:[%s13847_s7 + $0x28] sm:$0xff] }
 0x2bd   : > { %1787 = vst [vmem:[#allocation3 + $0x188] sm:$0xff] %v1723_v63  ;;  %1786 = vst [vmem:[#allocation3 + $0x180] sm:$0xff] %v1722_v59 }
 0x2be   : > { %v1573_v62 = vpop.permute.xlu1 %1572  ;;  %v1570_v0 = vpop.permute.xlu0 %1569  ;;  %1293 = vst [vmem:[#allocation2 + $0x28] sm:$0xff] %v1229_v15  ;;  %v1275_v15 = vld [vmem:[%s13847_s7 + $0x198] sm:$0xff] }
 0x2bf   : > { %vm1661_vm0 = vcmp.eq.s32.totalorder %v10916_v2, %v1573_v62  ;;  %vm1660_vm10 = vcmp.eq.s32.totalorder %v10916_v2, %v1570_v0  ;;  %2020 = vperm.xlu1 %9140, %v1853_v60   ;;  %2017 = vperm.xlu0 %9139, %v1852_v61   ;;  %v2383_v60 = vsel %vm2319_vm13, 1.0, %v9994_v7  ;;  %v2384_v0 = vsel %vm2320_vm1, 1.0, %v9994_v7  ;;  %1339 = vst [vmem:[#allocation2 + $0x198] sm:$0xff] %v1275_v15 }
 0x2c0   : > { %v1725_v4 = vsel %vm1661_vm0, 1.0, %v9994_v7  ;;  %v1724_v5 = vsel %vm1660_vm10, 1.0, %v9994_v7  ;;  %vm2327_vm0 = vcmp.eq.s32.totalorder %v11198_v38, %v11181_v31  ;;  %vm13811_vm10 = vcmp.eq.s32.totalorder %v11162_v23, %v11181_v31  ;;  %2447 = vst [vmem:[#allocation5 + $0x118] sm:$0xff] %v2383_v60  ;;  %2448 = vst [vmem:[#allocation5 + $0x120] sm:$0xff] %v2384_v0  ;;  %v1201_v60 = vld [vmem:[#allocation6 + $0x48] sm:$0xff] }
 0x2c1   : > { %1789 = vst [vmem:[#allocation3 + $0x198] sm:$0xff] %v1725_v4  ;;  %1788 = vst [vmem:[#allocation3 + $0x190] sm:$0xff] %v1724_v5  ;;  %v2363_v22 = vsel %vm13811_vm10, 1.0, %v9994_v7  ;;  %v2364_v23 = vsel %vm13812_vm5, 1.0, %v9994_v7  ;;  %vm13816_vm10 = vcmp.eq.s32.totalorder %v11170_v25, %v11122_v1  ;;  %vm13820_vm5 = vcmp.eq.s32.totalorder %v11186_v32, %v11134_v8 }
 0x2c2   : > { %v1579_v16 = vpop.permute.xlu1 %1578  ;;  %v1576_v17 = vpop.permute.xlu0 %1575  ;;  %2427 = vst [vmem:[#allocation5 + $0x78] sm:$0xff] %v2363_v22  ;;  %2428 = vst [vmem:[#allocation5 + $0x80] sm:$0xff] %v2364_v23  ;;  %v2368_v43 = vsel %vm13816_vm10, 1.0, %v9994_v7  ;;  %v2373_v49 = vsel %vm13820_vm5, 1.0, %v9994_v7  ;;  %vm2344_vm5 = vcmp.eq.s32.totalorder %v11227_v48, %v11122_v1  ;;  %vm2346_vm10 = vcmp.eq.s32.totalorder %v11227_v48, %v11151_v18 }
 0x2c3   : > { %vm1663_vm12 = vcmp.eq.s32.totalorder %v10916_v2, %v1579_v16  ;;  %vm1662_vm7 = vcmp.eq.s32.totalorder %v10916_v2, %v1576_v17  ;;  %2026 = vperm.xlu1 %9140, %v1855_v6   ;;  %2023 = vperm.xlu0 %9139, %v1854_v9   ;;  %2432 = vst [vmem:[#allocation5 + $0xa0] sm:$0xff] %v2368_v43  ;;  %2437 = vst [vmem:[#allocation5 + $0xc8] sm:$0xff] %v2373_v49  ;;  %v2388_v5 = vsel %vm2324_vm2, 1.0, %v9994_v7 }
 0x2c4   : > { %v1727_v27 = vsel %vm1663_vm12, 1.0, %v9994_v7  ;;  %v1726_v28 = vsel %vm1662_vm7, 1.0, %v9994_v7  ;;  %vm13814_vm12 = vcmp.eq.s32.totalorder %v11165_v24, %v11151_v18  ;;  %vm13815_vm7 = vcmp.eq.s32.totalorder %v11165_v24, %v11181_v31  ;;  %2452 = vst [vmem:[#allocation5 + $0x140] sm:$0xff] %v2388_v5  ;;  %v1206_v5 = vld [vmem:[#allocation6 + $0x70] sm:$0xff]  ;;  %1217 = vst [vmem:[#allocation29 + $0x48] sm:$0xff] %v1201_v60  ;;  %v1263_v60 = vld [vmem:[%s13847_s7 + $0x138] sm:$0xff] }
 0x2c5   : > { %v2366_v36 = vsel %vm13814_vm12, 1.0, %v9994_v7  ;;  %v2367_v37 = vsel %vm13815_vm7, 1.0, %v9994_v7  ;;  %1791 = vst [vmem:[#allocation3 + $0x1a8] sm:$0xff] %v1727_v27  ;;  %1790 = vst [vmem:[#allocation3 + $0x1a0] sm:$0xff] %v1726_v28  ;;  %v2369_v24 = vsel %vm2305_vm14, 1.0, %v9994_v7  ;;  %vm13817_vm12 = vcmp.eq.s32.totalorder %v11170_v25, %v11151_v18  ;;  %v1863_v28 = vld [vmem:[%s13807_s20 + $0x1e8] sm:$0xff] }
 0x2c6   : > { %v2370_v44 = vsel %vm13817_vm12, 1.0, %v9994_v7  ;;  %vm13818_vm7 = vcmp.eq.s32.totalorder %v11170_v25, %v11181_v31  ;;  %2430 = vst [vmem:[#allocation5 + $0x90] sm:$0xff] %v2366_v36  ;;  %2431 = vst [vmem:[#allocation5 + $0x98] sm:$0xff] %v2367_v37  ;;  %v1585_v46 = vpop.permute.xlu1 %1584  ;;  %v1582_v47 = vpop.permute.xlu0 %1581  ;;  %vm13821_vm14 = vcmp.eq.s32.totalorder %v11186_v32, %v11151_v18  ;;  %vm13831_vm13 = vcmp.eq.s32.totalorder %v11195_v35, %v11181_v31 }
 0x2c7   : > { %v2371_v45 = vsel %vm13818_vm7, 1.0, %v9994_v7  ;;  %vm13819_vm7 = vcmp.eq.s32.totalorder %v11186_v32, %v11122_v1  ;;  %v2374_v50 = vsel %vm13821_vm14, 1.0, %v9994_v7  ;;  %2433 = vst [vmem:[#allocation5 + $0xa8] sm:$0xff] %v2369_v24  ;;  %2434 = vst [vmem:[#allocation5 + $0xb0] sm:$0xff] %v2370_v44  ;;  %vm1664_vm12 = vcmp.eq.s32.totalorder %v10916_v2, %v1582_v47  ;;  %2032 = vperm.xlu1 %9140, %v1857_v29   ;;  %v1862_v29 = vld [vmem:[%s13807_s20 + $0x1e0] sm:$0xff] }
 0x2c8   : > { %v2372_v25 = vsel %vm13819_vm7, 1.0, %v9994_v7  ;;  %2435 = vst [vmem:[#allocation5 + $0xb8] sm:$0xff] %v2371_v45  ;;  %vm1665_vm7 = vcmp.eq.s32.totalorder %v10916_v2, %v1585_v46  ;;  %2029 = vperm.xlu0 %9139, %v1856_v30   ;;  %vm2345_vm14 = vcmp.eq.s32.totalorder %v11227_v48, %v11134_v8  ;;  %v2376_v32 = vsel %vm13823_vm6, 1.0, %v9994_v7  ;;  %2438 = vst [vmem:[#allocation5 + $0xd0] sm:$0xff] %v2374_v50 }
 0x2c9   : > { %2436 = vst [vmem:[#allocation5 + $0xc0] sm:$0xff] %v2372_v25  ;;  %v1729_v54 = vsel %vm1665_vm7, 1.0, %v9994_v7  ;;  %v1728_v55 = vsel %vm1664_vm12, 1.0, %v9994_v7  ;;  %vm13825_vm6 = vcmp.eq.s32.totalorder %v11189_v33, %v11151_v18  ;;  %2440 = vst [vmem:[#allocation5 + $0xe0] sm:$0xff] %v2376_v32  ;;  %vm13827_vm12 = vcmp.eq.s32.totalorder %v11192_v34, %v11122_v1  ;;  %v1192_v32 = vld [vmem:[#allocation6] sm:$0xff] }
 0x2ca   : > { %v2378_v57 = vsel %vm13825_vm6, 1.0, %v9994_v7  ;;  %1793 = vst [vmem:[#allocation3 + $0x1b8] sm:$0xff] %v1729_v54  ;;  %1792 = vst [vmem:[#allocation3 + $0x1b0] sm:$0xff] %v1728_v55  ;;  %v2380_v63 = vsel %vm13827_vm12, 1.0, %v9994_v7  ;;  %vm13828_vm7 = vcmp.eq.s32.totalorder %v11192_v34, %v11134_v8  ;;  %vm13829_vm6 = vcmp.eq.s32.totalorder %v11192_v34, %v11151_v18  ;;  %v1591_v61 = vpop.permute.xlu1 %1590  ;;  %v1588_v62 = vpop.permute.xlu0 %1587  ;;  %v1194_v54 = vld [vmem:[#allocation6 + $0x10] sm:$0xff]  ;;  %v1195_v55 = vld [vmem:[#allocation6 + $0x18] sm:$0xff] }
 0x2cb   : > { %v2381_v59 = vsel %vm13828_vm7, 1.0, %v9994_v7  ;;  %v2382_v33 = vsel %vm13829_vm6, 1.0, %v9994_v7  ;;  %2442 = vst [vmem:[#allocation5 + $0xf0] sm:$0xff] %v2378_v57  ;;  %v2386_v34 = vsel %vm13830_vm9, 1.0, %v9994_v7  ;;  %v2387_v4 = vsel %vm13831_vm13, 1.0, %v9994_v7  ;;  %2444 = vst [vmem:[#allocation5 + $0x100] sm:$0xff] %v2380_v63  ;;  %2038 = vperm.xlu1 %9140, %v1859_v56  }
 0x2cc   : > { %2445 = vst [vmem:[#allocation5 + $0x108] sm:$0xff] %v2381_v59  ;;  %2446 = vst [vmem:[#allocation5 + $0x110] sm:$0xff] %v2382_v33  ;;  %vm1667_vm1 = vcmp.eq.s32.totalorder %v10916_v2, %v1591_v61  ;;  %vm1666_vm12 = vcmp.eq.s32.totalorder %v10916_v2, %v1588_v62  ;;  %2035 = vperm.xlu0 %9139, %v1858_v53   ;;  %v2389_v35 = vsel %vm2325_vm15, 1.0, %v9994_v7  ;;  %v2391_v13 = vsel %vm2327_vm0, 1.0, %v9994_v7  ;;  %v1196_v56 = vld [vmem:[#allocation6 + $0x20] sm:$0xff]  ;;  %v1197_v53 = vld [vmem:[#allocation6 + $0x28] sm:$0xff] }
 0x2cd   : > { %2450 = vst [vmem:[#allocation5 + $0x130] sm:$0xff] %v2386_v34  ;;  %2451 = vst [vmem:[#allocation5 + $0x138] sm:$0xff] %v2387_v4  ;;  %v1731_v6 = vsel %vm1667_vm1, 1.0, %v9994_v7  ;;  %v1730_v9 = vsel %vm1666_vm12, 1.0, %v9994_v7  ;;  %vm13832_vm15 = vcmp.eq.s32.totalorder %v11201_v39, %v11122_v1  ;;  %vm13834_vm2 = vcmp.eq.s32.totalorder %v11201_v39, %v11151_v18  ;;  %v1198_v63 = vld [vmem:[#allocation6 + $0x30] sm:$0xff]  ;;  %v1199_v59 = vld [vmem:[#allocation6 + $0x38] sm:$0xff] }
 0x2ce   : > { %2453 = vst [vmem:[#allocation5 + $0x148] sm:$0xff] %v2389_v35  ;;  %1795 = vst [vmem:[#allocation3 + $0x1c8] sm:$0xff] %v1731_v6  ;;  %v2392_v14 = vsel %vm13832_vm15, 1.0, %v9994_v7  ;;  %v2394_v38 = vsel %vm13834_vm2, 1.0, %v9994_v7  ;;  %v2395_v16 = vsel %vm13835_vm3, 1.0, %v9994_v7  ;;  %v1597_v17 = vpop.permute.xlu1 %1596  ;;  %v1594_v19 = vpop.permute.xlu0 %1593  ;;  %vm13836_vm0 = vcmp.eq.s32.totalorder %v11204_v40, %v11134_v8  ;;  %v1200_v33 = vld [vmem:[#allocation6 + $0x40] sm:$0xff] }
 0x2cf   : > { %1794 = vst [vmem:[#allocation3 + $0x1c0] sm:$0xff] %v1730_v9  ;;  %2455 = vst [vmem:[#allocation5 + $0x158] sm:$0xff] %v2391_v13  ;;  %v2397_v21 = vsel %vm13836_vm0, 1.0, %v9994_v7  ;;  %vm13837_vm7 = vcmp.eq.s32.totalorder %v11204_v40, %v11151_v18  ;;  %vm13838_vm6 = vcmp.eq.s32.totalorder %v11204_v40, %v11181_v31  ;;  %vm1669_vm8 = vcmp.eq.s32.totalorder %v10916_v2, %v1597_v17  ;;  %v1202_v61 = vld [vmem:[#allocation6 + $0x50] sm:$0xff]  ;;  %v1203_v62 = vld [vmem:[#allocation6 + $0x58] sm:$0xff] }
 0x2d0   : > { %v2398_v39 = vsel %vm13837_vm7, 1.0, %v9994_v7  ;;  %v2399_v22 = vsel %vm13838_vm6, 1.0, %v9994_v7  ;;  %2456 = vst [vmem:[#allocation5 + $0x160] sm:$0xff] %v2392_v14  ;;  %2458 = vst [vmem:[#allocation5 + $0x170] sm:$0xff] %v2394_v38  ;;  %vm1668_vm9 = vcmp.eq.s32.totalorder %v10916_v2, %v1594_v19  ;;  %2044 = vperm.xlu1 %9140, %v1861_v10   ;;  %2041 = vperm.xlu0 %9139, %v1860_v11   ;;  %v1733_v26 = vsel %vm1669_vm8, 1.0, %v9994_v7  ;;  %v1204_v34 = vld [vmem:[#allocation6 + $0x60] sm:$0xff] }
 0x2d1   : > { %2459 = vst [vmem:[#allocation5 + $0x178] sm:$0xff] %v2395_v16  ;;  %vm13839_vm13 = vcmp.eq.s32.totalorder %v11207_v41, %v11122_v1  ;;  %vm13840_vm1 = vcmp.eq.s32.totalorder %v11207_v41, %v11134_v8  ;;  %2461 = vst [vmem:[#allocation5 + $0x188] sm:$0xff] %v2397_v21  ;;  %v1732_v27 = vsel %vm1668_vm9, 1.0, %v9994_v7  ;;  %vm13841_vm12 = vcmp.eq.s32.totalorder %v11207_v41, %v11151_v18  ;;  %v1205_v4 = vld [vmem:[#allocation6 + $0x68] sm:$0xff]  ;;  %v1207_v35 = vld [vmem:[#allocation6 + $0x78] sm:$0xff] }
 0x2d2   : > { %v2400_v23 = vsel %vm13839_vm13, 1.0, %v9994_v7  ;;  %v2401_v40 = vsel %vm13840_vm1, 1.0, %v9994_v7  ;;  %2462 = vst [vmem:[#allocation5 + $0x190] sm:$0xff] %v2398_v39  ;;  %2463 = vst [vmem:[#allocation5 + $0x198] sm:$0xff] %v2399_v22  ;;  %v2402_v30 = vsel %vm13841_vm12, 1.0, %v9994_v7  ;;  %vm13842_vm15 = vcmp.eq.s32.totalorder %v11207_v41, %v11181_v31  ;;  %v1603_v44 = vpop.permute.xlu1 %1602  ;;  %v1600_v45 = vpop.permute.xlu0 %1599  ;;  %v1224_v6 = vld [vmem:[%s13847_s7] sm:$0xff] }
 0x2d3   : > { %v2403_v36 = vsel %vm13842_vm15, 1.0, %v9994_v7  ;;  %2464 = vst [vmem:[#allocation5 + $0x1a0] sm:$0xff] %v2400_v23  ;;  %2465 = vst [vmem:[#allocation5 + $0x1a8] sm:$0xff] %v2401_v40  ;;  %v2404_v37 = vsel %vm13843_vm11, 1.0, %v9994_v7  ;;  %vm13844_vm2 = vcmp.eq.s32.totalorder %v11212_v42, %v11134_v8  ;;  %vm13845_vm3 = vcmp.eq.s32.totalorder %v11212_v42, %v11151_v18  ;;  %v1865_v18 = vld [vmem:[%s13807_s20 + $0x1f8] sm:$0xff]  ;;  %v1225_v9 = vld [vmem:[%s13847_s7 + $0x8] sm:$0xff] }
 0x2d4   : > { %1797 = vst [vmem:[#allocation3 + $0x1d8] sm:$0xff] %v1733_v26  ;;  %1796 = vst [vmem:[#allocation3 + $0x1d0] sm:$0xff] %v1732_v27  ;;  %v2405_v43 = vsel %vm13844_vm2, 1.0, %v9994_v7  ;;  %v2406_v41 = vsel %vm13845_vm3, 1.0, %v9994_v7  ;;  %vm13846_vm0 = vcmp.eq.s32.totalorder %v11212_v42, %v11181_v31  ;;  %v2408_v46 = vsel %vm2344_vm5, 1.0, %v9994_v7  ;;  %2050 = vperm.xlu1 %9140, %v1863_v28   ;;  %2047 = vperm.xlu0 %9139, %v1862_v29   ;;  %v1864_v31 = vld [vmem:[%s13807_s20 + $0x1f0] sm:$0xff] }
 0x2d5   : > { %v2407_v24 = vsel %vm13846_vm0, 1.0, %v9994_v7  ;;  %2466 = vst [vmem:[#allocation5 + $0x1b0] sm:$0xff] %v2402_v30  ;;  %2467 = vst [vmem:[#allocation5 + $0x1b8] sm:$0xff] %v2403_v36  ;;  %v2409_v47 = vsel %vm2345_vm14, 1.0, %v9994_v7  ;;  %v2410_v42 = vsel %vm2346_vm10, 1.0, %v9994_v7  ;;  %v2411_v25 = vsel %vm2347_vm4, 1.0, %v9994_v7 }
 0x2d6   : > { %2468 = vst [vmem:[#allocation5 + $0x1c0] sm:$0xff] %v2404_v37  ;;  %2469 = vst [vmem:[#allocation5 + $0x1c8] sm:$0xff] %v2405_v43  ;;  %vm1671_vm5 = vcmp.eq.s32.totalorder %v10916_v2, %v1603_v44  ;;  %vm1670_vm7 = vcmp.eq.s32.totalorder %v10916_v2, %v1600_v45  ;;  %v1609_v48 = vpop.permute.xlu1 %1608  ;;  %v1606_v49 = vpop.permute.xlu0 %1605  ;;  %v1227_v13 = vld [vmem:[%s13847_s7 + $0x18] sm:$0xff]  ;;  %v1228_v14 = vld [vmem:[%s13847_s7 + $0x20] sm:$0xff] }
 0x2d7   : > { %2470 = vst [vmem:[#allocation5 + $0x1d0] sm:$0xff] %v2406_v41  ;;  %2471 = vst [vmem:[#allocation5 + $0x1d8] sm:$0xff] %v2407_v24  ;;  %v1735_v1 = vsel %vm1671_vm5, 1.0, %v9994_v7  ;;  %v1734_v8 = vsel %vm1670_vm7, 1.0, %v9994_v7  ;;  %vm1673_vm10 = vcmp.eq.s32.totalorder %v10916_v2, %v1609_v48  ;;  %vm1672_vm14 = vcmp.eq.s32.totalorder %v10916_v2, %v1606_v49  ;;  %v1230_v38 = vld [vmem:[%s13847_s7 + $0x30] sm:$0xff]  ;;  %v1231_v16 = vld [vmem:[%s13847_s7 + $0x38] sm:$0xff] }
 0x2d8   : > { %2472 = vst [vmem:[#allocation5 + $0x1e0] sm:$0xff] %v2408_v46  ;;  %2473 = vst [vmem:[#allocation5 + $0x1e8] sm:$0xff] %v2409_v47  ;;  %2056 = vperm.xlu1 %9140, %v1865_v18   ;;  %2053 = vperm.xlu0 %9139, %v1864_v31   ;;  %v1737_v50 = vsel %vm1673_vm10, 1.0, %v9994_v7  ;;  %v1736_v51 = vsel %vm1672_vm14, 1.0, %v9994_v7  ;;  %v1233_v21 = vld [vmem:[%s13847_s7 + $0x48] sm:$0xff]  ;;  %v1234_v39 = vld [vmem:[%s13847_s7 + $0x50] sm:$0xff] }
 0x2d9   : > { %2474 = vst [vmem:[#allocation5 + $0x1f0] sm:$0xff] %v2410_v42  ;;  %2475 = vst [vmem:[#allocation5 + $0x1f8] sm:$0xff] %v2411_v25  ;;  %v1235_v22 = vld [vmem:[%s13847_s7 + $0x58] sm:$0xff]  ;;  %v1236_v23 = vld [vmem:[%s13847_s7 + $0x60] sm:$0xff] }
 0x2da   : > { %1799 = vst [vmem:[#allocation3 + $0x1e8] sm:$0xff] %v1735_v1  ;;  %1798 = vst [vmem:[#allocation3 + $0x1e0] sm:$0xff] %v1734_v8  ;;  %v1871_v57 = vpop.permute.xlu1 %1870  ;;  %v1868_v58 = vpop.permute.xlu0 %1867  ;;  %v1237_v40 = vld [vmem:[%s13847_s7 + $0x68] sm:$0xff]  ;;  %v1238_v28 = vld [vmem:[%s13847_s7 + $0x70] sm:$0xff] }
 0x2db   : > { %1801 = vst [vmem:[#allocation3 + $0x1f8] sm:$0xff] %v1737_v50  ;;  %1800 = vst [vmem:[#allocation3 + $0x1f0] sm:$0xff] %v1736_v51  ;;  %vm2059_vm4 = vcmp.eq.s32.totalorder %v10916_v2, %v1871_v57  ;;  %vm2058_vm6 = vcmp.eq.s32.totalorder %v10916_v2, %v1868_v58  ;;  %v1239_v29 = vld [vmem:[%s13847_s7 + $0x78] sm:$0xff]  ;;  %v1240_v30 = vld [vmem:[%s13847_s7 + $0x80] sm:$0xff] }
 0x2dc   : > { %1208 = vst [vmem:[#allocation29] sm:$0xff] %v1192_v32  ;;  %1210 = vst [vmem:[#allocation29 + $0x10] sm:$0xff] %v1194_v54  ;;  %v2123_v0 = vsel %vm2059_vm4, 1.0, %v9994_v7  ;;  %v2122_v3 = vsel %vm2058_vm6, 1.0, %v9994_v7  ;;  %v1241_v36 = vld [vmem:[%s13847_s7 + $0x88] sm:$0xff]  ;;  %v1242_v37 = vld [vmem:[%s13847_s7 + $0x90] sm:$0xff] }
 0x2dd   : > { %1211 = vst [vmem:[#allocation29 + $0x18] sm:$0xff] %v1195_v55  ;;  %1212 = vst [vmem:[#allocation29 + $0x20] sm:$0xff] %v1196_v56  ;;  %v1243_v43 = vld [vmem:[%s13847_s7 + $0x98] sm:$0xff]  ;;  %v1244_v44 = vld [vmem:[%s13847_s7 + $0xa0] sm:$0xff] }
 0x2de   : > { %1213 = vst [vmem:[#allocation29 + $0x28] sm:$0xff] %v1197_v53  ;;  %1214 = vst [vmem:[#allocation29 + $0x30] sm:$0xff] %v1198_v63  ;;  %v1877_v10 = vpop.permute.xlu1 %1876  ;;  %v1874_v11 = vpop.permute.xlu0 %1873  ;;  %v1245_v45 = vld [vmem:[%s13847_s7 + $0xa8] sm:$0xff]  ;;  %v1246_v46 = vld [vmem:[%s13847_s7 + $0xb0] sm:$0xff] }
 0x2df   : > { %1215 = vst [vmem:[#allocation29 + $0x38] sm:$0xff] %v1199_v59  ;;  %1216 = vst [vmem:[#allocation29 + $0x40] sm:$0xff] %v1200_v33  ;;  %vm2061_vm8 = vcmp.eq.s32.totalorder %v10916_v2, %v1877_v10  ;;  %vm2060_vm9 = vcmp.eq.s32.totalorder %v10916_v2, %v1874_v11  ;;  %v1247_v47 = vld [vmem:[%s13847_s7 + $0xb8] sm:$0xff]  ;;  %v1248_v42 = vld [vmem:[%s13847_s7 + $0xc0] sm:$0xff] }
 0x2e0   : > { %1218 = vst [vmem:[#allocation29 + $0x50] sm:$0xff] %v1202_v61  ;;  %1219 = vst [vmem:[#allocation29 + $0x58] sm:$0xff] %v1203_v62  ;;  %v2125_v17 = vsel %vm2061_vm8, 1.0, %v9994_v7  ;;  %v2124_v19 = vsel %vm2060_vm9, 1.0, %v9994_v7  ;;  %v1249_v25 = vld [vmem:[%s13847_s7 + $0xc8] sm:$0xff]  ;;  %v1250_v18 = vld [vmem:[%s13847_s7 + $0xd0] sm:$0xff] }
 0x2e1   : > { %2187 = vst [vmem:[#allocation4 + $0x8] sm:$0xff] %v2123_v0  ;;  %2186 = vst [vmem:[#allocation4] sm:$0xff] %v2122_v3  ;;  %v1251_v31 = vld [vmem:[%s13847_s7 + $0xd8] sm:$0xff]  ;;  %v1252_v48 = vld [vmem:[%s13847_s7 + $0xe0] sm:$0xff] }
 0x2e2   : > { %1220 = vst [vmem:[#allocation29 + $0x60] sm:$0xff] %v1204_v34  ;;  %1221 = vst [vmem:[#allocation29 + $0x68] sm:$0xff] %v1205_v4  ;;  %v1883_v26 = vpop.permute.xlu1 %1882  ;;  %v1880_v27 = vpop.permute.xlu0 %1879  ;;  %v1253_v49 = vld [vmem:[%s13847_s7 + $0xe8] sm:$0xff]  ;;  %v1254_v50 = vld [vmem:[%s13847_s7 + $0xf0] sm:$0xff] }
 0x2e3   : > { %1222 = vst [vmem:[#allocation29 + $0x70] sm:$0xff] %v1206_v5  ;;  %1223 = vst [vmem:[#allocation29 + $0x78] sm:$0xff] %v1207_v35  ;;  %vm2063_vm13 = vcmp.eq.s32.totalorder %v10916_v2, %v1883_v26  ;;  %vm2062_vm1 = vcmp.eq.s32.totalorder %v10916_v2, %v1880_v27  ;;  %v1255_v51 = vld [vmem:[%s13847_s7 + $0xf8] sm:$0xff]  ;;  %v1256_v54 = vld [vmem:[%s13847_s7 + $0x100] sm:$0xff] }
 0x2e4   : > { %1288 = vst [vmem:[#allocation2] sm:$0xff] %v1224_v6  ;;  %1289 = vst [vmem:[#allocation2 + $0x8] sm:$0xff] %v1225_v9  ;;  %v2127_v41 = vsel %vm2063_vm13, 1.0, %v9994_v7  ;;  %v2126_v24 = vsel %vm2062_vm1, 1.0, %v9994_v7  ;;  %v1257_v55 = vld [vmem:[%s13847_s7 + $0x108] sm:$0xff]  ;;  %v1258_v56 = vld [vmem:[%s13847_s7 + $0x110] sm:$0xff] }
 0x2e5   : > { %1291 = vst [vmem:[#allocation2 + $0x18] sm:$0xff] %v1227_v13  ;;  %1292 = vst [vmem:[#allocation2 + $0x20] sm:$0xff] %v1228_v14  ;;  %v1259_v53 = vld [vmem:[%s13847_s7 + $0x118] sm:$0xff]  ;;  %v1260_v57 = vld [vmem:[%s13847_s7 + $0x120] sm:$0xff] }
 0x2e6   : > { %1294 = vst [vmem:[#allocation2 + $0x30] sm:$0xff] %v1230_v38  ;;  %1295 = vst [vmem:[#allocation2 + $0x38] sm:$0xff] %v1231_v16  ;;  %v1889_v1 = vpop.permute.xlu1 %1888  ;;  %v1886_v8 = vpop.permute.xlu0 %1885  ;;  %v1261_v58 = vld [vmem:[%s13847_s7 + $0x128] sm:$0xff]  ;;  %v1262_v33 = vld [vmem:[%s13847_s7 + $0x130] sm:$0xff] }
 0x2e7   : > { %2189 = vst [vmem:[#allocation4 + $0x18] sm:$0xff] %v2125_v17  ;;  %2188 = vst [vmem:[#allocation4 + $0x10] sm:$0xff] %v2124_v19  ;;  %vm2065_vm12 = vcmp.eq.s32.totalorder %v10916_v2, %v1889_v1  ;;  %vm2064_vm15 = vcmp.eq.s32.totalorder %v10916_v2, %v1886_v8  ;;  %v1264_v61 = vld [vmem:[%s13847_s7 + $0x140] sm:$0xff]  ;;  %v1265_v62 = vld [vmem:[%s13847_s7 + $0x148] sm:$0xff] }
 0x2e8   : > { %1297 = vst [vmem:[#allocation2 + $0x48] sm:$0xff] %v1233_v21  ;;  %1298 = vst [vmem:[#allocation2 + $0x50] sm:$0xff] %v1234_v39  ;;  %v2129_v32 = vsel %vm2065_vm12, 1.0, %v9994_v7  ;;  %v2128_v52 = vsel %vm2064_vm15, 1.0, %v9994_v7  ;;  %v1266_v0 = vld [vmem:[%s13847_s7 + $0x150] sm:$0xff]  ;;  %v1267_v3 = vld [vmem:[%s13847_s7 + $0x158] sm:$0xff] }
 0x2e9   : > { %1299 = vst [vmem:[#allocation2 + $0x58] sm:$0xff] %v1235_v22  ;;  %1300 = vst [vmem:[#allocation2 + $0x60] sm:$0xff] %v1236_v23  ;;  %v1268_v5 = vld [vmem:[%s13847_s7 + $0x160] sm:$0xff]  ;;  %v1269_v35 = vld [vmem:[%s13847_s7 + $0x168] sm:$0xff] }
 0x2ea   : > { %1301 = vst [vmem:[#allocation2 + $0x68] sm:$0xff] %v1237_v40  ;;  %1302 = vst [vmem:[#allocation2 + $0x70] sm:$0xff] %v1238_v28  ;;  %v1895_v63 = vpop.permute.xlu1 %1894  ;;  %v1892_v59 = vpop.permute.xlu0 %1891  ;;  %v1270_v6 = vld [vmem:[%s13847_s7 + $0x170] sm:$0xff]  ;;  %v1271_v9 = vld [vmem:[%s13847_s7 + $0x178] sm:$0xff] }
 0x2eb   : > { %1303 = vst [vmem:[#allocation2 + $0x78] sm:$0xff] %v1239_v29  ;;  %1304 = vst [vmem:[#allocation2 + $0x80] sm:$0xff] %v1240_v30  ;;  %vm2067_vm11 = vcmp.eq.s32.totalorder %v10916_v2, %v1895_v63  ;;  %vm2066_vm2 = vcmp.eq.s32.totalorder %v10916_v2, %v1892_v59  ;;  %v1272_v10 = vld [vmem:[%s13847_s7 + $0x180] sm:$0xff]  ;;  %v1273_v11 = vld [vmem:[%s13847_s7 + $0x188] sm:$0xff] }
 0x2ec   : > { %1305 = vst [vmem:[#allocation2 + $0x88] sm:$0xff] %v1241_v36  ;;  %1306 = vst [vmem:[#allocation2 + $0x90] sm:$0xff] %v1242_v37  ;;  %v2131_v34 = vsel %vm2067_vm11, 1.0, %v9994_v7  ;;  %v2130_v4 = vsel %vm2066_vm2, 1.0, %v9994_v7  ;;  %v1274_v14 = vld [vmem:[%s13847_s7 + $0x190] sm:$0xff]  ;;  %v1276_v38 = vld [vmem:[%s13847_s7 + $0x1a0] sm:$0xff] }
 0x2ed   : > { %1307 = vst [vmem:[#allocation2 + $0x98] sm:$0xff] %v1243_v43  ;;  %2191 = vst [vmem:[#allocation4 + $0x28] sm:$0xff] %v2127_v41  ;;  %v1277_v16 = vld [vmem:[%s13847_s7 + $0x1a8] sm:$0xff]  ;;  %v1278_v17 = vld [vmem:[%s13847_s7 + $0x1b0] sm:$0xff] }
 0x2ee   : > { %2190 = vst [vmem:[#allocation4 + $0x20] sm:$0xff] %v2126_v24  ;;  %1308 = vst [vmem:[#allocation2 + $0xa0] sm:$0xff] %v1244_v44  ;;  %v1901_v12 = vpop.permute.xlu1 %1900  ;;  %v1898_v13 = vpop.permute.xlu0 %1897  ;;  %v1279_v19 = vld [vmem:[%s13847_s7 + $0x1b8] sm:$0xff]  ;;  %v1280_v39 = vld [vmem:[%s13847_s7 + $0x1c0] sm:$0xff] }
 0x2ef   : > { %1309 = vst [vmem:[#allocation2 + $0xa8] sm:$0xff] %v1245_v45  ;;  %1310 = vst [vmem:[#allocation2 + $0xb0] sm:$0xff] %v1246_v46  ;;  %vm2069_vm3 = vcmp.eq.s32.totalorder %v10916_v2, %v1901_v12  ;;  %vm2068_vm0 = vcmp.eq.s32.totalorder %v10916_v2, %v1898_v13  ;;  %v1281_v22 = vld [vmem:[%s13847_s7 + $0x1c8] sm:$0xff]  ;;  %v1282_v23 = vld [vmem:[%s13847_s7 + $0x1d0] sm:$0xff] }
 0x2f0   : > { %1311 = vst [vmem:[#allocation2 + $0xb8] sm:$0xff] %v1247_v47  ;;  %1312 = vst [vmem:[#allocation2 + $0xc0] sm:$0xff] %v1248_v42  ;;  %v2133_v20 = vsel %vm2069_vm3, 1.0, %v9994_v7  ;;  %v2132_v21 = vsel %vm2068_vm0, 1.0, %v9994_v7  ;;  %v1283_v40 = vld [vmem:[%s13847_s7 + $0x1d8] sm:$0xff]  ;;  %v1284_v26 = vld [vmem:[%s13847_s7 + $0x1e0] sm:$0xff] }
 0x2f1   : > { %1313 = vst [vmem:[#allocation2 + $0xc8] sm:$0xff] %v1249_v25  ;;  %1314 = vst [vmem:[#allocation2 + $0xd0] sm:$0xff] %v1250_v18  ;;  %v1285_v27 = vld [vmem:[%s13847_s7 + $0x1e8] sm:$0xff]  ;;  %v1286_v30 = vld [vmem:[%s13847_s7 + $0x1f0] sm:$0xff] }
 0x2f2   : > { %1315 = vst [vmem:[#allocation2 + $0xd8] sm:$0xff] %v1251_v31  ;;  %1316 = vst [vmem:[#allocation2 + $0xe0] sm:$0xff] %v1252_v48  ;;  %v1907_v28 = vpop.permute.xlu1 %1906  ;;  %v1904_v29 = vpop.permute.xlu0 %1903  ;;  %v1287_v36 = vld [vmem:[%s13847_s7 + $0x1f8] sm:$0xff] }
 0x2f3   : > { %1317 = vst [vmem:[#allocation2 + $0xe8] sm:$0xff] %v1253_v49  ;;  %1318 = vst [vmem:[#allocation2 + $0xf0] sm:$0xff] %v1254_v50  ;;  %vm2071_vm5 = vcmp.eq.s32.totalorder %v10916_v2, %v1907_v28  ;;  %vm2070_vm7 = vcmp.eq.s32.totalorder %v10916_v2, %v1904_v29 }
 0x2f4   : > { %1319 = vst [vmem:[#allocation2 + $0xf8] sm:$0xff] %v1255_v51  ;;  %2193 = vst [vmem:[#allocation4 + $0x38] sm:$0xff] %v2129_v32  ;;  %v2135_v37 = vsel %vm2071_vm5, 1.0, %v9994_v7  ;;  %v2134_v43 = vsel %vm2070_vm7, 1.0, %v9994_v7 }
 0x2f5   : > { %2192 = vst [vmem:[#allocation4 + $0x30] sm:$0xff] %v2128_v52  ;;  %1320 = vst [vmem:[#allocation2 + $0x100] sm:$0xff] %v1256_v54 }
 0x2f6   : > { %1321 = vst [vmem:[#allocation2 + $0x108] sm:$0xff] %v1257_v55  ;;  %1322 = vst [vmem:[#allocation2 + $0x110] sm:$0xff] %v1258_v56  ;;  %v1913_v41 = vpop.permute.xlu1 %1912  ;;  %v1910_v24 = vpop.permute.xlu0 %1909 }
 0x2f7   : > { %1323 = vst [vmem:[#allocation2 + $0x118] sm:$0xff] %v1259_v53  ;;  %1324 = vst [vmem:[#allocation2 + $0x120] sm:$0xff] %v1260_v57  ;;  %vm2073_vm10 = vcmp.eq.s32.totalorder %v10916_v2, %v1913_v41  ;;  %vm2072_vm14 = vcmp.eq.s32.totalorder %v10916_v2, %v1910_v24 }
 0x2f8   : > { %1325 = vst [vmem:[#allocation2 + $0x128] sm:$0xff] %v1261_v58  ;;  %1326 = vst [vmem:[#allocation2 + $0x130] sm:$0xff] %v1262_v33  ;;  %v2137_v44 = vsel %vm2073_vm10, 1.0, %v9994_v7  ;;  %v2136_v45 = vsel %vm2072_vm14, 1.0, %v9994_v7 }
 0x2f9   : > { %1327 = vst [vmem:[#allocation2 + $0x138] sm:$0xff] %v1263_v60  ;;  %1328 = vst [vmem:[#allocation2 + $0x140] sm:$0xff] %v1264_v61 }
 0x2fa   : > { %1329 = vst [vmem:[#allocation2 + $0x148] sm:$0xff] %v1265_v62  ;;  %1330 = vst [vmem:[#allocation2 + $0x150] sm:$0xff] %v1266_v0  ;;  %v1919_v46 = vpop.permute.xlu1 %1918  ;;  %v1916_v47 = vpop.permute.xlu0 %1915 }
 0x2fb   : > { %1331 = vst [vmem:[#allocation2 + $0x158] sm:$0xff] %v1267_v3  ;;  %2195 = vst [vmem:[#allocation4 + $0x48] sm:$0xff] %v2131_v34  ;;  %vm2075_vm4 = vcmp.eq.s32.totalorder %v10916_v2, %v1919_v46  ;;  %vm2074_vm6 = vcmp.eq.s32.totalorder %v10916_v2, %v1916_v47 }
 0x2fc   : > { %2194 = vst [vmem:[#allocation4 + $0x40] sm:$0xff] %v2130_v4  ;;  %1332 = vst [vmem:[#allocation2 + $0x160] sm:$0xff] %v1268_v5  ;;  %v2139_v42 = vsel %vm2075_vm4, 1.0, %v9994_v7  ;;  %v2138_v25 = vsel %vm2074_vm6, 1.0, %v9994_v7 }
 0x2fd   : > { %1333 = vst [vmem:[#allocation2 + $0x168] sm:$0xff] %v1269_v35  ;;  %1334 = vst [vmem:[#allocation2 + $0x170] sm:$0xff] %v1270_v6 }
 0x2fe   : > { %1335 = vst [vmem:[#allocation2 + $0x178] sm:$0xff] %v1271_v9  ;;  %1336 = vst [vmem:[#allocation2 + $0x180] sm:$0xff] %v1272_v10  ;;  %v1925_v1 = vpop.permute.xlu1 %1924  ;;  %v1922_v8 = vpop.permute.xlu0 %1921 }
 0x2ff   : > { %1337 = vst [vmem:[#allocation2 + $0x188] sm:$0xff] %v1273_v11  ;;  %1338 = vst [vmem:[#allocation2 + $0x190] sm:$0xff] %v1274_v14  ;;  %vm2077_vm8 = vcmp.eq.s32.totalorder %v10916_v2, %v1925_v1  ;;  %vm2076_vm9 = vcmp.eq.s32.totalorder %v10916_v2, %v1922_v8 }
 0x300   : > { %1340 = vst [vmem:[#allocation2 + $0x1a0] sm:$0xff] %v1276_v38  ;;  %1341 = vst [vmem:[#allocation2 + $0x1a8] sm:$0xff] %v1277_v16  ;;  %v2141_v18 = vsel %vm2077_vm8, 1.0, %v9994_v7  ;;  %v2140_v31 = vsel %vm2076_vm9, 1.0, %v9994_v7 }
 0x301   : > { %1342 = vst [vmem:[#allocation2 + $0x1b0] sm:$0xff] %v1278_v17  ;;  %1343 = vst [vmem:[#allocation2 + $0x1b8] sm:$0xff] %v1279_v19 }
 0x302   : > { %2197 = vst [vmem:[#allocation4 + $0x58] sm:$0xff] %v2133_v20  ;;  %2196 = vst [vmem:[#allocation4 + $0x50] sm:$0xff] %v2132_v21  ;;  %v1931_v48 = vpop.permute.xlu1 %1930  ;;  %v1928_v49 = vpop.permute.xlu0 %1927 }
 0x303   : > { %1344 = vst [vmem:[#allocation2 + $0x1c0] sm:$0xff] %v1280_v39  ;;  %1345 = vst [vmem:[#allocation2 + $0x1c8] sm:$0xff] %v1281_v22  ;;  %vm2079_vm13 = vcmp.eq.s32.totalorder %v10916_v2, %v1931_v48  ;;  %vm2078_vm1 = vcmp.eq.s32.totalorder %v10916_v2, %v1928_v49 }
 0x304   : > { %1346 = vst [vmem:[#allocation2 + $0x1d0] sm:$0xff] %v1282_v23  ;;  %1347 = vst [vmem:[#allocation2 + $0x1d8] sm:$0xff] %v1283_v40  ;;  %v2143_v50 = vsel %vm2079_vm13, 1.0, %v9994_v7  ;;  %v2142_v51 = vsel %vm2078_vm1, 1.0, %v9994_v7 }
 0x305   : > { %1348 = vst [vmem:[#allocation2 + $0x1e0] sm:$0xff] %v1284_v26  ;;  %1349 = vst [vmem:[#allocation2 + $0x1e8] sm:$0xff] %v1285_v27 }
 0x306   : > { %1350 = vst [vmem:[#allocation2 + $0x1f0] sm:$0xff] %v1286_v30  ;;  %1351 = vst [vmem:[#allocation2 + $0x1f8] sm:$0xff] %v1287_v36  ;;  %v1937_v32 = vpop.permute.xlu1 %1936  ;;  %v1934_v52 = vpop.permute.xlu0 %1933 }
 0x307   : > { %2199 = vst [vmem:[#allocation4 + $0x68] sm:$0xff] %v2135_v37  ;;  %2198 = vst [vmem:[#allocation4 + $0x60] sm:$0xff] %v2134_v43  ;;  %vm2081_vm12 = vcmp.eq.s32.totalorder %v10916_v2, %v1937_v32  ;;  %vm2080_vm15 = vcmp.eq.s32.totalorder %v10916_v2, %v1934_v52 }
 0x308   : > { %2201 = vst [vmem:[#allocation4 + $0x78] sm:$0xff] %v2137_v44  ;;  %2200 = vst [vmem:[#allocation4 + $0x70] sm:$0xff] %v2136_v45  ;;  %v2145_v54 = vsel %vm2081_vm12, 1.0, %v9994_v7  ;;  %v2144_v55 = vsel %vm2080_vm15, 1.0, %v9994_v7 }
 0x309   : > { %2203 = vst [vmem:[#allocation4 + $0x88] sm:$0xff] %v2139_v42  ;;  %2202 = vst [vmem:[#allocation4 + $0x80] sm:$0xff] %v2138_v25 }
 0x30a   : > { %2205 = vst [vmem:[#allocation4 + $0x98] sm:$0xff] %v2141_v18  ;;  %2204 = vst [vmem:[#allocation4 + $0x90] sm:$0xff] %v2140_v31  ;;  %v1943_v56 = vpop.permute.xlu1 %1942  ;;  %v1940_v53 = vpop.permute.xlu0 %1939 }
 0x30b   : > { %2207 = vst [vmem:[#allocation4 + $0xa8] sm:$0xff] %v2143_v50  ;;  %2206 = vst [vmem:[#allocation4 + $0xa0] sm:$0xff] %v2142_v51  ;;  %vm2083_vm11 = vcmp.eq.s32.totalorder %v10916_v2, %v1943_v56  ;;  %vm2082_vm2 = vcmp.eq.s32.totalorder %v10916_v2, %v1940_v53 }
 0x30c   : > { %2209 = vst [vmem:[#allocation4 + $0xb8] sm:$0xff] %v2145_v54  ;;  %2208 = vst [vmem:[#allocation4 + $0xb0] sm:$0xff] %v2144_v55  ;;  %v2147_v57 = vsel %vm2083_vm11, 1.0, %v9994_v7  ;;  %v2146_v58 = vsel %vm2082_vm2, 1.0, %v9994_v7 }
 0x30d   : > { %2211 = vst [vmem:[#allocation4 + $0xc8] sm:$0xff] %v2147_v57  ;;  %2210 = vst [vmem:[#allocation4 + $0xc0] sm:$0xff] %v2146_v58 }
 0x30e   : > { %v1949_v63 = vpop.permute.xlu1 %1948  ;;  %v1946_v59 = vpop.permute.xlu0 %1945 }
 0x30f   : > { %vm2085_vm3 = vcmp.eq.s32.totalorder %v10916_v2, %v1949_v63  ;;  %vm2084_vm0 = vcmp.eq.s32.totalorder %v10916_v2, %v1946_v59 }
 0x310   : > { %v2149_v33 = vsel %vm2085_vm3, 1.0, %v9994_v7  ;;  %v2148_v60 = vsel %vm2084_vm0, 1.0, %v9994_v7 }
 0x311   : > { %2213 = vst [vmem:[#allocation4 + $0xd8] sm:$0xff] %v2149_v33  ;;  %2212 = vst [vmem:[#allocation4 + $0xd0] sm:$0xff] %v2148_v60 }
 0x312   : > { %v1955_v61 = vpop.permute.xlu1 %1954  ;;  %v1952_v62 = vpop.permute.xlu0 %1951 }
 0x313   : > { %vm2087_vm5 = vcmp.eq.s32.totalorder %v10916_v2, %v1955_v61  ;;  %vm2086_vm7 = vcmp.eq.s32.totalorder %v10916_v2, %v1952_v62 }
 0x314   : > { %v2151_v0 = vsel %vm2087_vm5, 1.0, %v9994_v7  ;;  %v2150_v3 = vsel %vm2086_vm7, 1.0, %v9994_v7 }
 0x315   : > { %2215 = vst [vmem:[#allocation4 + $0xe8] sm:$0xff] %v2151_v0  ;;  %2214 = vst [vmem:[#allocation4 + $0xe0] sm:$0xff] %v2150_v3 }
 0x316   : > { %v1961_v34 = vpop.permute.xlu1 %1960  ;;  %v1958_v4 = vpop.permute.xlu0 %1957 }
 0x317   : > { %vm2089_vm10 = vcmp.eq.s32.totalorder %v10916_v2, %v1961_v34  ;;  %vm2088_vm14 = vcmp.eq.s32.totalorder %v10916_v2, %v1958_v4 }
 0x318   : > { %v2153_v5 = vsel %vm2089_vm10, 1.0, %v9994_v7  ;;  %v2152_v35 = vsel %vm2088_vm14, 1.0, %v9994_v7 }
 0x319   : > { %2217 = vst [vmem:[#allocation4 + $0xf8] sm:$0xff] %v2153_v5  ;;  %2216 = vst [vmem:[#allocation4 + $0xf0] sm:$0xff] %v2152_v35 }
 0x31a   : > { %v1967_v6 = vpop.permute.xlu1 %1966  ;;  %v1964_v9 = vpop.permute.xlu0 %1963 }
 0x31b   : > { %vm2091_vm4 = vcmp.eq.s32.totalorder %v10916_v2, %v1967_v6  ;;  %vm2090_vm6 = vcmp.eq.s32.totalorder %v10916_v2, %v1964_v9 }
 0x31c   : > { %v2155_v10 = vsel %vm2091_vm4, 1.0, %v9994_v7  ;;  %v2154_v11 = vsel %vm2090_vm6, 1.0, %v9994_v7 }
 0x31d   : > { %2219 = vst [vmem:[#allocation4 + $0x108] sm:$0xff] %v2155_v10  ;;  %2218 = vst [vmem:[#allocation4 + $0x100] sm:$0xff] %v2154_v11 }
 0x31e   : > { %v1973_v12 = vpop.permute.xlu1 %1972  ;;  %v1970_v13 = vpop.permute.xlu0 %1969 }
 0x31f   : > { %vm2093_vm8 = vcmp.eq.s32.totalorder %v10916_v2, %v1973_v12  ;;  %vm2092_vm9 = vcmp.eq.s32.totalorder %v10916_v2, %v1970_v13 }
 0x320   : > { %v2157_v14 = vsel %vm2093_vm8, 1.0, %v9994_v7  ;;  %v2156_v15 = vsel %vm2092_vm9, 1.0, %v9994_v7 }
 0x321   : > { %2221 = vst [vmem:[#allocation4 + $0x118] sm:$0xff] %v2157_v14  ;;  %2220 = vst [vmem:[#allocation4 + $0x110] sm:$0xff] %v2156_v15 }
 0x322   : > { %v1979_v38 = vpop.permute.xlu1 %1978  ;;  %v1976_v16 = vpop.permute.xlu0 %1975 }
 0x323   : > { %vm2095_vm13 = vcmp.eq.s32.totalorder %v10916_v2, %v1979_v38  ;;  %vm2094_vm1 = vcmp.eq.s32.totalorder %v10916_v2, %v1976_v16 }
 0x324   : > { %v2159_v17 = vsel %vm2095_vm13, 1.0, %v9994_v7  ;;  %v2158_v19 = vsel %vm2094_vm1, 1.0, %v9994_v7 }
 0x325   : > { %2223 = vst [vmem:[#allocation4 + $0x128] sm:$0xff] %v2159_v17  ;;  %2222 = vst [vmem:[#allocation4 + $0x120] sm:$0xff] %v2158_v19 }
 0x326   : > { %v1985_v20 = vpop.permute.xlu1 %1984  ;;  %v1982_v21 = vpop.permute.xlu0 %1981 }
 0x327   : > { %vm2097_vm12 = vcmp.eq.s32.totalorder %v10916_v2, %v1985_v20  ;;  %vm2096_vm15 = vcmp.eq.s32.totalorder %v10916_v2, %v1982_v21 }
 0x328   : > { %v2161_v39 = vsel %vm2097_vm12, 1.0, %v9994_v7  ;;  %v2160_v22 = vsel %vm2096_vm15, 1.0, %v9994_v7 }
 0x329   : > { %2225 = vst [vmem:[#allocation4 + $0x138] sm:$0xff] %v2161_v39  ;;  %2224 = vst [vmem:[#allocation4 + $0x130] sm:$0xff] %v2160_v22 }
 0x32a   : > { %v1991_v23 = vpop.permute.xlu1 %1990  ;;  %v1988_v40 = vpop.permute.xlu0 %1987 }
 0x32b   : > { %vm2099_vm11 = vcmp.eq.s32.totalorder %v10916_v2, %v1991_v23  ;;  %vm2098_vm2 = vcmp.eq.s32.totalorder %v10916_v2, %v1988_v40 }
 0x32c   : > { %v2163_v26 = vsel %vm2099_vm11, 1.0, %v9994_v7  ;;  %v2162_v27 = vsel %vm2098_vm2, 1.0, %v9994_v7 }
 0x32d   : > { %2227 = vst [vmem:[#allocation4 + $0x148] sm:$0xff] %v2163_v26  ;;  %2226 = vst [vmem:[#allocation4 + $0x140] sm:$0xff] %v2162_v27 }
 0x32e   : > { %v1997_v28 = vpop.permute.xlu1 %1996  ;;  %v1994_v29 = vpop.permute.xlu0 %1993 }
 0x32f   : > { %vm2101_vm3 = vcmp.eq.s32.totalorder %v10916_v2, %v1997_v28  ;;  %vm2100_vm0 = vcmp.eq.s32.totalorder %v10916_v2, %v1994_v29 }
 0x330   : > { %v2165_v30 = vsel %vm2101_vm3, 1.0, %v9994_v7  ;;  %v2164_v36 = vsel %vm2100_vm0, 1.0, %v9994_v7 }
 0x331   : > { %2229 = vst [vmem:[#allocation4 + $0x158] sm:$0xff] %v2165_v30  ;;  %2228 = vst [vmem:[#allocation4 + $0x150] sm:$0xff] %v2164_v36 }
 0x332   : > { %v2003_v37 = vpop.permute.xlu1 %2002  ;;  %v2000_v43 = vpop.permute.xlu0 %1999 }
 0x333   : > { %vm2103_vm5 = vcmp.eq.s32.totalorder %v10916_v2, %v2003_v37  ;;  %vm2102_vm7 = vcmp.eq.s32.totalorder %v10916_v2, %v2000_v43 }
 0x334   : > { %v2167_v41 = vsel %vm2103_vm5, 1.0, %v9994_v7  ;;  %v2166_v24 = vsel %vm2102_vm7, 1.0, %v9994_v7 }
 0x335   : > { %2231 = vst [vmem:[#allocation4 + $0x168] sm:$0xff] %v2167_v41  ;;  %2230 = vst [vmem:[#allocation4 + $0x160] sm:$0xff] %v2166_v24 }
 0x336   : > { %v2009_v44 = vpop.permute.xlu1 %2008  ;;  %v2006_v45 = vpop.permute.xlu0 %2005 }
 0x337   : > { %vm2105_vm10 = vcmp.eq.s32.totalorder %v10916_v2, %v2009_v44  ;;  %vm2104_vm14 = vcmp.eq.s32.totalorder %v10916_v2, %v2006_v45 }
 0x338   : > { %v2169_v46 = vsel %vm2105_vm10, 1.0, %v9994_v7  ;;  %v2168_v47 = vsel %vm2104_vm14, 1.0, %v9994_v7 }
 0x339   : > { %2233 = vst [vmem:[#allocation4 + $0x178] sm:$0xff] %v2169_v46  ;;  %2232 = vst [vmem:[#allocation4 + $0x170] sm:$0xff] %v2168_v47 }
 0x33a   : > { %v2015_v42 = vpop.permute.xlu1 %2014  ;;  %v2012_v25 = vpop.permute.xlu0 %2011 }
 0x33b   : > { %vm2107_vm4 = vcmp.eq.s32.totalorder %v10916_v2, %v2015_v42  ;;  %vm2106_vm6 = vcmp.eq.s32.totalorder %v10916_v2, %v2012_v25 }
 0x33c   : > { %v2171_v1 = vsel %vm2107_vm4, 1.0, %v9994_v7  ;;  %v2170_v8 = vsel %vm2106_vm6, 1.0, %v9994_v7 }
 0x33d   : > { %2235 = vst [vmem:[#allocation4 + $0x188] sm:$0xff] %v2171_v1  ;;  %2234 = vst [vmem:[#allocation4 + $0x180] sm:$0xff] %v2170_v8 }
 0x33e   : > { %v2021_v18 = vpop.permute.xlu1 %2020  ;;  %v2018_v31 = vpop.permute.xlu0 %2017 }
 0x33f   : > { %vm2109_vm8 = vcmp.eq.s32.totalorder %v10916_v2, %v2021_v18  ;;  %vm2108_vm9 = vcmp.eq.s32.totalorder %v10916_v2, %v2018_v31 }
 0x340   : > { %v2173_v48 = vsel %vm2109_vm8, 1.0, %v9994_v7  ;;  %v2172_v49 = vsel %vm2108_vm9, 1.0, %v9994_v7 }
 0x341   : > { %2237 = vst [vmem:[#allocation4 + $0x198] sm:$0xff] %v2173_v48  ;;  %2236 = vst [vmem:[#allocation4 + $0x190] sm:$0xff] %v2172_v49 }
 0x342   : > { %v2027_v50 = vpop.permute.xlu1 %2026  ;;  %v2024_v51 = vpop.permute.xlu0 %2023 }
 0x343   : > { %vm2111_vm13 = vcmp.eq.s32.totalorder %v10916_v2, %v2027_v50  ;;  %vm2110_vm1 = vcmp.eq.s32.totalorder %v10916_v2, %v2024_v51 }
 0x344   : > { %v2175_v32 = vsel %vm2111_vm13, 1.0, %v9994_v7  ;;  %v2174_v52 = vsel %vm2110_vm1, 1.0, %v9994_v7 }
 0x345   : > { %2239 = vst [vmem:[#allocation4 + $0x1a8] sm:$0xff] %v2175_v32  ;;  %2238 = vst [vmem:[#allocation4 + $0x1a0] sm:$0xff] %v2174_v52 }
 0x346   : > { %v2033_v54 = vpop.permute.xlu1 %2032 }
 0x347   : > { %v2030_v55 = vpop.permute.xlu0 %2029  ;;  %vm2113_vm12 = vcmp.eq.s32.totalorder %v10916_v2, %v2033_v54 }
 0x348   : > { %vm2112_vm15 = vcmp.eq.s32.totalorder %v10916_v2, %v2030_v55  ;;  %v2177_v56 = vsel %vm2113_vm12, 1.0, %v9994_v7 }
 0x349   : > { %v2176_v53 = vsel %vm2112_vm15, 1.0, %v9994_v7  ;;  %2241 = vst [vmem:[#allocation4 + $0x1b8] sm:$0xff] %v2177_v56 }
 0x34a   : > { %2240 = vst [vmem:[#allocation4 + $0x1b0] sm:$0xff] %v2176_v53  ;;  %v2039_v57 = vpop.permute.xlu1 %2038 }
 0x34b   : > { %v2036_v58 = vpop.permute.xlu0 %2035  ;;  %vm2115_vm11 = vcmp.eq.s32.totalorder %v10916_v2, %v2039_v57 }
 0x34c   : > { %vm2114_vm2 = vcmp.eq.s32.totalorder %v10916_v2, %v2036_v58  ;;  %v2179_v63 = vsel %vm2115_vm11, 1.0, %v9994_v7 }
 0x34d   : > { %v2178_v59 = vsel %vm2114_vm2, 1.0, %v9994_v7  ;;  %2243 = vst [vmem:[#allocation4 + $0x1c8] sm:$0xff] %v2179_v63 }
 0x34e   : > { %2242 = vst [vmem:[#allocation4 + $0x1c0] sm:$0xff] %v2178_v59 }
 0x34f   : > { %v2045_v33 = vpop.permute.xlu1 %2044  ;;  %v2042_v60 = vpop.permute.xlu0 %2041 }
 0x350   : > { %vm2117_vm3 = vcmp.eq.s32.totalorder %v10916_v2, %v2045_v33  ;;  %vm2116_vm0 = vcmp.eq.s32.totalorder %v10916_v2, %v2042_v60 }
 0x351   : > { %v2181_v61 = vsel %vm2117_vm3, 1.0, %v9994_v7  ;;  %v2180_v62 = vsel %vm2116_vm0, 1.0, %v9994_v7 }
 0x352   : > { %2245 = vst [vmem:[#allocation4 + $0x1d8] sm:$0xff] %v2181_v61  ;;  %2244 = vst [vmem:[#allocation4 + $0x1d0] sm:$0xff] %v2180_v62 }
 0x353   : > { %v2051_v0 = vpop.permute.xlu1 %2050  ;;  %v2048_v3 = vpop.permute.xlu0 %2047 }
 0x354   : > { %vm2119_vm5 = vcmp.eq.s32.totalorder %v10916_v2, %v2051_v0  ;;  %vm2118_vm7 = vcmp.eq.s32.totalorder %v10916_v2, %v2048_v3 }
 0x355   : > { %v2183_v34 = vsel %vm2119_vm5, 1.0, %v9994_v7  ;;  %v2182_v4 = vsel %vm2118_vm7, 1.0, %v9994_v7 }
 0x356   : > { %2247 = vst [vmem:[#allocation4 + $0x1e8] sm:$0xff] %v2183_v34  ;;  %2246 = vst [vmem:[#allocation4 + $0x1e0] sm:$0xff] %v2182_v4 }
 0x357   : > { %v2057_v5 = vpop.permute.xlu1 %2056  ;;  %v2054_v35 = vpop.permute.xlu0 %2053 }
 0x358   : > { %vm2121_vm10 = vcmp.eq.s32.totalorder %v10916_v2, %v2057_v5  ;;  %vm2120_vm14 = vcmp.eq.s32.totalorder %v10916_v2, %v2054_v35 }
 0x359   : > { %v2185_v6 = vsel %vm2121_vm10, 1.0, %v9994_v7  ;;  %v2184_v9 = vsel %vm2120_vm14, 1.0, %v9994_v7 }
 0x35a   : > { %2249 = vst [vmem:[#allocation4 + $0x1f8] sm:$0xff] %v2185_v6  ;;  %2248 = vst [vmem:[#allocation4 + $0x1f0] sm:$0xff] %v2184_v9 }
 0x35b PF: > { %v9141_v10 = vld [vmem:[%s10706_s8 + $0x4] ss:$8 sps:$4 sm:$0xff]   ;;  %v9143_v11 = vld [vmem:[%s10706_s8] ss:$8 sps:$4 sm:$0xff]   ;;  %v9995_v12 = vmov 0   ;;  %v2476_v40 = vld [vmem:[#allocation29] sm:$0xff] }
 0x35c   : > { %2692 = vmatprep.mubr.bf16.mxu0 %v9995_v12  ;;  %2660 = vmatprep.subr.bf16.mxu0 %v9141_v10  ;;  %v9144_v2 = vld [vmem:[%s10706_s8 + $0x14] ss:$8 sps:$4 sm:$0xff]   ;;  %v9146_v7 = vld [vmem:[%s10706_s8 + $0x10] ss:$8 sps:$4 sm:$0xff]   ;;  %v9147_v13 = vld [vmem:[%s10706_s8 + $0x24] ss:$8 sps:$4 sm:$0xff]  }
 0x35d   : > { %2661 = vmatpush1.bf16.msra.mxu0 %v9143_v11  ;;  %v9149_v14 = vld [vmem:[%s10706_s8 + $0x20] ss:$8 sps:$4 sm:$0xff]   ;;  %v9150_v15 = vld [vmem:[%s10706_s8 + $0x34] ss:$8 sps:$4 sm:$0xff]   ;;  %v9152_v38 = vld [vmem:[%s10706_s8 + $0x30] ss:$8 sps:$4 sm:$0xff]  }
 0x35e   : > { %2662 = vmatprep.subr.bf16.mxu0 %v9144_v2  ;;  %v9153_v16 = vld [vmem:[%s10706_s8 + $0x44] ss:$8 sps:$4 sm:$0xff]   ;;  %v9155_v17 = vld [vmem:[%s10706_s8 + $0x40] ss:$8 sps:$4 sm:$0xff]   ;;  %v9156_v19 = vld [vmem:[%s10706_s8 + $0x54] ss:$8 sps:$4 sm:$0xff]  }
 0x35f   : > { %v9158_v20 = vld [vmem:[%s10706_s8 + $0x50] ss:$8 sps:$4 sm:$0xff]   ;;  %v9159_v21 = vld [vmem:[%s10706_s8 + $0x64] ss:$8 sps:$4 sm:$0xff]   ;;  %v9161_v39 = vld [vmem:[%s10706_s8 + $0x60] ss:$8 sps:$4 sm:$0xff]  }
 0x360   : > { %v9162_v22 = vld [vmem:[%s10706_s8 + $0x74] ss:$8 sps:$4 sm:$0xff]   ;;  %v9164_v23 = vld [vmem:[%s10706_s8 + $0x70] ss:$8 sps:$4 sm:$0xff]   ;;  %v2478_v28 = vld [vmem:[#allocation29 + $0x10] sm:$0xff]  ;;  %s13941_s8 = scalar_lea.vmem [#allocation18], %s10634_s12 }
 0x361   : > { %2663 = vmatpush1.bf16.msra.mxu0 %v9146_v7  ;;  %v2477_v26 = vld [vmem:[#allocation29 + $0x8] sm:$0xff]  ;;  %v2479_v29 = vld [vmem:[#allocation29 + $0x18] sm:$0xff]  ;;  %v2480_v36 = vld [vmem:[#allocation29 + $0x20] sm:$0xff]  ;;  %s13943_s16 = scalar_lea.vmem [#allocation20], %s10634_s12  ;;  %s13955_s29 = smov %s13941_s8 }
 0x362   : > { %2664 = vmatprep.subr.bf16.mxu0 %v9147_v13  ;;  %v12016_v27 = vpack.c.bf16 %v2477_v26, %v2476_v40  ;;  %v12020_v30 = vpack.c.bf16 %v2479_v29, %v2478_v28  ;;  %v2481_v37 = vld [vmem:[#allocation29 + $0x28] sm:$0xff]  ;;  %v2482_v41 = vld [vmem:[#allocation29 + $0x30] sm:$0xff]  ;;  %v2483_v24 = vld [vmem:[#allocation29 + $0x38] sm:$0xff]  ;;  %s13954_s25 = smov %s13943_s16  ;;  %p9094_p7 = scmp.eq.s32.totalorder %s10379_s21, 2 }
 0x363   : > { %v12024_v43 = vpack.c.bf16 %v2481_v37, %v2480_v36  ;;  %v12028_v44 = vpack.c.bf16 %v2483_v24, %v2482_v41  ;;  %v2484_v45 = vld [vmem:[#allocation29 + $0x40] sm:$0xff]  ;;  %v2485_v46 = vld [vmem:[#allocation29 + $0x48] sm:$0xff]  ;;  %v2486_v42 = vld [vmem:[#allocation29 + $0x50] sm:$0xff] }
 0x364   : > { %13848 = vst [vmem:[#allocation44_spill] sm:$0xff] %v12016_v27  ;;  %13849 = vst [vmem:[#allocation45_spill] sm:$0xff] %v12020_v30  ;;  %v12032_v47 = vpack.c.bf16 %v2485_v46, %v2484_v45  ;;  %v2487_v25 = vld [vmem:[#allocation29 + $0x58] sm:$0xff]  ;;  %v2488_v8 = vld [vmem:[#allocation29 + $0x60] sm:$0xff] }
 0x365   : > { %2665 = vmatpush1.bf16.msra.mxu0 %v9149_v14  ;;  %13850 = vst [vmem:[#allocation46_spill] sm:$0xff] %v12024_v43  ;;  %13851 = vst [vmem:[#allocation47_spill] sm:$0xff] %v12028_v44  ;;  %v12036_v1 = vpack.c.bf16 %v2487_v25, %v2486_v42  ;;  %v2489_v18 = vld [vmem:[#allocation29 + $0x68] sm:$0xff]  ;;  %v2490_v48 = vld [vmem:[#allocation29 + $0x70] sm:$0xff] }
 0x366   : > { %2666 = vmatprep.subr.bf16.mxu0 %v9150_v15  ;;  %13852 = vst [vmem:[#allocation48_spill] sm:$0xff] %v12032_v47  ;;  %v12040_v31 = vpack.c.bf16 %v2489_v18, %v2488_v8  ;;  %v2491_v49 = vld [vmem:[#allocation29 + $0x78] sm:$0xff]  ;;  %v2837_v51 = vld [vmem:[#allocation4] sm:$0xff]  ;;  %v9171_v46 = vld [vmem:[%s10641_s14 + $0x30] sm:$0xff]  }
 0x367   : > { %13853 = vst [vmem:[#allocation49_spill] sm:$0xff] %v12036_v1  ;;  %v12044_v50 = vpack.c.bf16 %v2491_v49, %v2490_v48  ;;  %8293 = vmatprep.mubr.f32.mxu1 %v2837_v51  ;;  %v9166_v13 = vld [vmem:[%s10641_s14 + $0x8] sm:$0xff]   ;;  %v9169_v26 = vld [vmem:[%s10641_s14 + $0x20] sm:$0xff]   ;;  %v9172_v8 = vld [vmem:[%s10641_s14 + $0x38] sm:$0xff]  }
 0x368   : > { %13854 = vst [vmem:[#allocation50_spill] sm:$0xff] %v12040_v31  ;;  %v9170_v36 = vld [vmem:[%s10641_s14 + $0x28] sm:$0xff]   ;;  %v2492_v51 = vld [vmem:[#allocation2] sm:$0xff] }
 0x369   : > { %2667 = vmatpush1.bf16.msra.mxu0 %v9152_v38  ;;  %13855 = vst [vmem:[#allocation51_spill] sm:$0xff] %v12044_v50 }
 0x36a   : > { %2668 = vmatprep.subr.bf16.mxu0 %v9153_v16 }
 0x36d   : > { %2669 = vmatpush1.bf16.msra.mxu0 %v9155_v17  ;;  %v9167_v17 = vld [vmem:[%s10641_s14 + $0x10] sm:$0xff]  }
 0x36e   : > { %2670 = vmatprep.subr.bf16.mxu0 %v9156_v19 }
 0x371   : > { %2671 = vmatpush1.bf16.msra.mxu0 %v9158_v20 }
 0x372   : > { %2672 = vmatprep.subr.bf16.mxu0 %v9159_v21  ;;  %v9168_v21 = vld [vmem:[%s10641_s14 + $0x18] sm:$0xff]  }
 0x375   : > { %2673 = vmatpush1.bf16.msra.mxu0 %v9161_v39 }
 0x376   : > { %2674 = vmatprep.subr.bf16.mxu0 %v9162_v22 }
 0x379   : > { %2675 = vmatpush1.bf16.msra.mxu0 %v9164_v23 }
 0x37c   : > { %2693 = vmatmul.mubr.bf16.vlgmr.msra.gmra.mrb[0].mxu0 %v12016_v27 }
 0x37d   : > { %2702 = vmatprep.mubr.bf16.mxu0 %v9995_v12 }
 0x384   : > { %2703 = vmatmul.mubr.bf16.gmra.mrb[4].mxu0 %v12020_v30 }
 0x385   : > { %2712 = vmatprep.mubr.bf16.mxu0 %v9995_v12 }
 0x38c   : > { %2713 = vmatmul.mubr.bf16.gmra.mrb[8].mxu0 %v12024_v43 }
 0x38d   : > { %2722 = vmatprep.mubr.bf16.mxu0 %v9995_v12 }
 0x394   : > { %2723 = vmatmul.mubr.bf16.gmra.mrb[12].mxu0 %v12028_v44 }
 0x395   : > { %2732 = vmatprep.mubr.bf16.mxu0 %v9995_v12 }
 0x39c   : > { %2733 = vmatmul.mubr.bf16.gmra.mrb[16].mxu0 %v12032_v47 }
 0x39d   : > { %2742 = vmatprep.mubr.bf16.mxu0 %v9995_v12 }
 0x3a4   : > { %2743 = vmatmul.mubr.bf16.gmra.mrb[20].mxu0 %v12036_v1 }
 0x3a5   : > { %2752 = vmatprep.mubr.bf16.mxu0 %v9995_v12 }
 0x3ac   : > { %2753 = vmatmul.mubr.bf16.gmra.mrb[24].mxu0 %v12040_v31 }
 0x3ad   : > { %2762 = vmatprep.mubr.bf16.mxu0 %v9995_v12  ;;  %v9165_v12 = vld [vmem:[%s10641_s14] sm:$0xff]   ;;  %s13871_s14 = scalar_lea.vmem [#allocation11], %s10634_s12 }
 0x3ae   : > { %8517 = vmatprep.subr.bf16.mxu0 %v9165_v12 }
 0x3af   : > { %8518 = vmatpush3.bf16.msra.mxu0 %v9165_v12  ;;  %v2845_v12 = vld [vmem:[#allocation4 + $0x40] sm:$0xff] }
 0x3b0   : > { %8519 = vmatprep.subr.bf16.mxu0 %v9166_v13 }
 0x3b3   : > { %8520 = vmatpush3.bf16.msra.mxu0 %v9166_v13  ;;  %v2503_v13 = vld [vmem:[#allocation2 + $0x58] sm:$0xff] }
 0x3b4   : > { %2763 = vmatmul.mubr.bf16.gmra.mrb[28].mxu0 %v12044_v50  ;;  %8521 = vmatprep.subr.bf16.mxu0 %v9167_v17 }
 0x3b7   : > { %8522 = vmatpush3.bf16.msra.mxu0 %v9167_v17  ;;  %v2505_v17 = vld [vmem:[#allocation2 + $0x68] sm:$0xff] }
 0x3b8   : > { %8523 = vmatprep.subr.bf16.mxu0 %v9168_v21 }
 0x3bb   : > { %8524 = vmatpush3.bf16.msra.mxu0 %v9168_v21  ;;  %v2506_v21 = vld [vmem:[#allocation2 + $0x70] sm:$0xff] }
 0x3bc   : > { %8525 = vmatprep.subr.bf16.mxu0 %v9169_v26 }
 0x3bf   : > { %8526 = vmatpush3.bf16.msra.mxu0 %v9169_v26  ;;  %v2508_v26 = vld [vmem:[#allocation2 + $0x80] sm:$0xff] }
 0x3c0   : > { %8527 = vmatprep.subr.bf16.mxu0 %v9170_v36 }
 0x3c3   : > { %8528 = vmatpush3.bf16.msra.mxu0 %v9170_v36 }
 0x3c4   : > { %8529 = vmatprep.subr.bf16.mxu0 %v9171_v46 }
 0x3c7   : > { %8530 = vmatpush3.bf16.msra.mxu0 %v9171_v46  ;;  %v2855_v46 = vld [vmem:[#allocation4 + $0x90] sm:$0xff] }
 0x3c8   : > { %8531 = vmatprep.subr.bf16.mxu0 %v9172_v8 }
 0x3cb   : > { %8532 = vmatpush3.bf16.msra.mxu0 %v9172_v8  ;;  %v2857_v8 = vld [vmem:[#allocation4 + $0xa0] sm:$0xff] }
 0x44f   : > { %v2694_v32 = vpop.f32.mrb[0].mxu0 }
 0x450   : > { %v2696_v52 = vpop.f32.mrb[1].mxu0 }
 0x451   : > { %v2698_v54 = vpop.f32.mrb[2].mxu0 }
 0x452   : > { %v12047_v55 = vpack.c.bf16 %v2698_v54, %v2694_v32  ;;  %v2700_v56 = vpop.f32.mrb[3].mxu0  ;;  %v2493_v32 = vld [vmem:[#allocation2 + $0x8] sm:$0xff] }
 0x453   : > { %v8821_v53 = vpack.c.bf16 %v2700_v56, %v2696_v52  ;;  %v3671_v54 = vpack.c.bf16 %v2493_v32, %v2492_v51  ;;  %v2494_v56 = vld [vmem:[#allocation2 + $0x10] sm:$0xff]  ;;  %v2515_v51 = vld [vmem:[#allocation2 + $0xb8] sm:$0xff] }
 0x455   : > { %8822 = vmatprep.subr.bf16.mxu1 %v8821_v53  ;;  %8533 = vmatprep.mubr.bf16.mxu0 %v3671_v54  ;;  %v2859_v54 = vld [vmem:[#allocation4 + $0xb0] sm:$0xff] }
 0x456   : > { %8824 = vmatpush3.bf16.msra.mxu1 %v8821_v53  ;;  %v2495_v53 = vld [vmem:[#allocation2 + $0x18] sm:$0xff] }
 0x457   : > { %v2704_v57 = vpop.f32.mrb[4].mxu0 }
 0x458   : > { %v2706_v58 = vpop.f32.mrb[5].mxu0 }
 0x459   : > { %v2708_v63 = vpop.f32.mrb[6].mxu0 }
 0x45a   : > { %v12049_v59 = vpack.c.bf16 %v2708_v63, %v2704_v57  ;;  %v2710_v33 = vpop.f32.mrb[7].mxu0  ;;  %v3672_v57 = vpack.c.bf16 %v2495_v53, %v2494_v56  ;;  %v2839_v63 = vld [vmem:[#allocation4 + $0x10] sm:$0xff]  ;;  %v2516_v56 = vld [vmem:[#allocation2 + $0xc0] sm:$0xff]  ;;  %v2517_v53 = vld [vmem:[#allocation2 + $0xc8] sm:$0xff] }
 0x45b   : > { %v8825_v60 = vpack.c.bf16 %v2710_v33, %v2706_v58  ;;  %v2838_v58 = vld [vmem:[#allocation4 + $0x8] sm:$0xff]  ;;  %v2840_v33 = vld [vmem:[#allocation4 + $0x18] sm:$0xff] }
 0x45c   : > { %8534 = vmatmul.mubr.bf16.vlgmr.msra.gmra.mrb[32].mxu0 %v3672_v57  ;;  %v2861_v57 = vld [vmem:[#allocation4 + $0xc0] sm:$0xff] }
 0x45d   : > { %8826 = vmatprep.subr.bf16.mxu1 %v8825_v60 }
 0x45e   : > { %8828 = vmatpush3.bf16.msra.mxu1 %v8825_v60  ;;  %v2496_v60 = vld [vmem:[#allocation2 + $0x20] sm:$0xff] }
 0x45f   : > { %v2714_v61 = vpop.f32.mrb[8].mxu0 }
 0x460   : > { %v2716_v62 = vpop.f32.mrb[9].mxu0 }
 0x461   : > { %v2718_v0 = vpop.f32.mrb[10].mxu0 }
 0x462   : > { %v12051_v3 = vpack.c.bf16 %v2718_v0, %v2714_v61  ;;  %v2720_v34 = vpop.f32.mrb[11].mxu0  ;;  %v2497_v61 = vld [vmem:[#allocation2 + $0x28] sm:$0xff] }
 0x463   : > { %v8829_v4 = vpack.c.bf16 %v2720_v34, %v2716_v62  ;;  %v2841_v62 = vld [vmem:[#allocation4 + $0x20] sm:$0xff]  ;;  %v3673_v0 = vpack.c.bf16 %v2497_v61, %v2496_v60  ;;  %v2498_v34 = vld [vmem:[#allocation2 + $0x30] sm:$0xff]  ;;  %v2862_v61 = vld [vmem:[#allocation4 + $0xc8] sm:$0xff] }
 0x465   : > { %8830 = vmatprep.subr.bf16.mxu1 %v8829_v4  ;;  %8537 = vmatprep.mubr.bf16.mxu0 %v3673_v0  ;;  %v2864_v0 = vld [vmem:[#allocation4 + $0xd8] sm:$0xff] }
 0x466   : > { %8832 = vmatpush3.bf16.msra.mxu1 %v8829_v4  ;;  %v2499_v4 = vld [vmem:[#allocation2 + $0x38] sm:$0xff] }
 0x467   : > { %v2724_v5 = vpop.f32.mrb[12].mxu0 }
 0x468   : > { %v2726_v35 = vpop.f32.mrb[13].mxu0 }
 0x469   : > { %v2728_v6 = vpop.f32.mrb[14].mxu0 }
 0x46a   : > { %v12053_v9 = vpack.c.bf16 %v2728_v6, %v2724_v5  ;;  %v2730_v10 = vpop.f32.mrb[15].mxu0  ;;  %v3674_v5 = vpack.c.bf16 %v2499_v4, %v2498_v34  ;;  %v2844_v6 = vld [vmem:[#allocation4 + $0x38] sm:$0xff]  ;;  %v2520_v34 = vld [vmem:[#allocation2 + $0xe0] sm:$0xff]  ;;  %v2521_v4 = vld [vmem:[#allocation2 + $0xe8] sm:$0xff] }
 0x46b   : > { %v8833_v11 = vpack.c.bf16 %v2730_v10, %v2726_v35  ;;  %v2842_v35 = vld [vmem:[#allocation4 + $0x28] sm:$0xff]  ;;  %v2500_v10 = vld [vmem:[#allocation2 + $0x40] sm:$0xff] }
 0x46c   : > { %8538 = vmatmul.mubr.bf16.gmra.mrb[36].mxu0 %v3674_v5  ;;  %v2865_v5 = vld [vmem:[#allocation4 + $0xe0] sm:$0xff] }
 0x46d   : > { %8834 = vmatprep.subr.bf16.mxu1 %v8833_v11 }
 0x46e   : > { %8836 = vmatpush3.bf16.msra.mxu1 %v8833_v11  ;;  %v2501_v11 = vld [vmem:[#allocation2 + $0x48] sm:$0xff] }
 0x46f   : > { %v2734_v2 = vpop.f32.mrb[16].mxu0 }
 0x470   : > { %v2736_v7 = vpop.f32.mrb[17].mxu0 }
 0x471   : > { %v2738_v14 = vpop.f32.mrb[18].mxu0 }
 0x472   : > { %v12057_v15 = vpack.c.bf16 %v2738_v14, %v2734_v2  ;;  %v2740_v38 = vpop.f32.mrb[19].mxu0  ;;  %v3675_v2 = vpack.c.bf16 %v2501_v11, %v2500_v10  ;;  %v2846_v14 = vld [vmem:[#allocation4 + $0x48] sm:$0xff] }
 0x473   : > { %v8837_v16 = vpack.c.bf16 %v2740_v38, %v2736_v7  ;;  %v2502_v7 = vld [vmem:[#allocation2 + $0x50] sm:$0xff]  ;;  %v2848_v38 = vld [vmem:[#allocation4 + $0x58] sm:$0xff]  ;;  %v2866_v11 = vld [vmem:[#allocation4 + $0xe8] sm:$0xff] }
 0x474   : > { %8541 = vmatprep.mubr.bf16.mxu0 %v3675_v2  ;;  %v2868_v2 = vld [vmem:[#allocation4 + $0xf8] sm:$0xff] }
 0x475   : > { %8838 = vmatprep.subr.bf16.mxu1 %v8837_v16 }
 0x476   : > { %8840 = vmatpush3.bf16.msra.mxu1 %v8837_v16  ;;  %v2504_v16 = vld [vmem:[#allocation2 + $0x60] sm:$0xff] }
 0x477   : > { %v2744_v19 = vpop.f32.mrb[20].mxu0 }
 0x478   : > { %v2746_v20 = vpop.f32.mrb[21].mxu0 }
 0x479   : > { %v2748_v39 = vpop.f32.mrb[22].mxu0 }
 0x47a   : > { %v12061_v22 = vpack.c.bf16 %v2748_v39, %v2744_v19  ;;  %v2750_v23 = vpop.f32.mrb[23].mxu0  ;;  %v2849_v19 = vld [vmem:[#allocation4 + $0x60] sm:$0xff]  ;;  %v2507_v39 = vld [vmem:[#allocation2 + $0x78] sm:$0xff] }
 0x47b   : > { %v8841_v40 = vpack.c.bf16 %v2750_v23, %v2746_v20  ;;  %v3677_v20 = vpack.c.bf16 %v2505_v17, %v2504_v16  ;;  %v2850_v23 = vld [vmem:[#allocation4 + $0x68] sm:$0xff] }
 0x47c   : > { %v2870_v17 = vld [vmem:[#allocation4 + $0x108] sm:$0xff] }
 0x47d   : > { %8842 = vmatprep.subr.bf16.mxu1 %v8841_v40 }
 0x47e   : > { %8844 = vmatpush3.bf16.msra.mxu1 %v8841_v40  ;;  %v2852_v40 = vld [vmem:[#allocation4 + $0x78] sm:$0xff] }
 0x47f   : > { %v2754_v28 = vpop.f32.mrb[24].mxu0 }
 0x480   : > { %v2756_v29 = vpop.f32.mrb[25].mxu0 }
 0x481   : > { %v2758_v37 = vpop.f32.mrb[26].mxu0 }
 0x482   : > { %v12065_v41 = vpack.c.bf16 %v2758_v37, %v2754_v28  ;;  %v2760_v24 = vpop.f32.mrb[27].mxu0  ;;  %v2509_v28 = vld [vmem:[#allocation2 + $0x88] sm:$0xff]  ;;  %v2510_v37 = vld [vmem:[#allocation2 + $0x90] sm:$0xff] }
 0x483   : > { %v8845_v45 = vpack.c.bf16 %v2760_v24, %v2756_v29  ;;  %v2853_v29 = vld [vmem:[#allocation4 + $0x80] sm:$0xff]  ;;  %v3679_v36 = vpack.c.bf16 %v2509_v28, %v2508_v26  ;;  %v2511_v24 = vld [vmem:[#allocation2 + $0x98] sm:$0xff]  ;;  %v2874_v28 = vld [vmem:[#allocation4 + $0x128] sm:$0xff] }
 0x485   : > { %8846 = vmatprep.subr.bf16.mxu1 %v8845_v45 }
 0x486   : > { %8848 = vmatpush3.bf16.msra.mxu1 %v8845_v45  ;;  %v2854_v45 = vld [vmem:[#allocation4 + $0x88] sm:$0xff] }
 0x487   : > { %v2764_v42 = vpop.f32.mrb[28].mxu0 }
 0x488   : > { %v2766_v25 = vpop.f32.mrb[29].mxu0 }
 0x489   : > { %v2768_v18 = vpop.f32.mrb[30].mxu0 }
 0x48a   : > { %v12069_v48 = vpack.c.bf16 %v2768_v18, %v2764_v42  ;;  %v2770_v49 = vpop.f32.mrb[31].mxu0  ;;  %v2512_v42 = vld [vmem:[#allocation2 + $0xa0] sm:$0xff] }
 0x48b   : > { %v8849_v52 = vpack.c.bf16 %v2770_v49, %v2766_v25  ;;  %v2513_v25 = vld [vmem:[#allocation2 + $0xa8] sm:$0xff]  ;;  %v2514_v49 = vld [vmem:[#allocation2 + $0xb0] sm:$0xff] }
 0x48c   : > { %v3681_v18 = vpack.c.bf16 %v2513_v25, %v2512_v42  ;;  %v3682_v32 = vpack.c.bf16 %v2515_v51, %v2514_v49  ;;  %v2878_v25 = vld [vmem:[#allocation4 + $0x148] sm:$0xff]  ;;  %v2536_v49 = vld [vmem:[#allocation2 + $0x160] sm:$0xff] }
 0x48d   : > { %8850 = vmatprep.subr.bf16.mxu1 %v8849_v52  ;;  %v2537_v51 = vld [vmem:[#allocation2 + $0x168] sm:$0xff] }
 0x48e   : > { %8852 = vmatpush3.bf16.msra.mxu1 %v8849_v52  ;;  %v2858_v52 = vld [vmem:[#allocation4 + $0xa8] sm:$0xff] }
 0x48f   : > { %8854 = vmatprep.subr.bf16.mxu1 %v12047_v55 }
 0x491   : > { %8294 = vmatmul.mubr.f32.vlgmr.msra.gmra.mrb[0].mxu1 %v2838_v58  ;;  %v3683_v58 = vpack.c.bf16 %v2517_v53, %v2516_v56  ;;  %v2882_v53 = vld [vmem:[#allocation4 + $0x168] sm:$0xff] }
 0x492   : > { %8856 = vmatpush3.bf16.msra.mxu1 %v12047_v55  ;;  %8296 = vmatprep.mubr.f32.mxu1 %v2839_v63  ;;  %v2843_v55 = vld [vmem:[#allocation4 + $0x30] sm:$0xff] }
 0x493   : > { %8858 = vmatprep.subr.bf16.mxu1 %v12049_v59  ;;  %v2518_v63 = vld [vmem:[#allocation2 + $0xd0] sm:$0xff] }
 0x495   : > { %8297 = vmatmul.mubr.f32.gmra.mrb[2].mxu1 %v2840_v33  ;;  %v2519_v33 = vld [vmem:[#allocation2 + $0xd8] sm:$0xff] }
 0x496   : > { %8860 = vmatpush3.bf16.msra.mxu1 %v12049_v59  ;;  %8299 = vmatprep.mubr.f32.mxu1 %v2841_v62  ;;  %v3676_v59 = vpack.c.bf16 %v2503_v13, %v2502_v7  ;;  %v3684_v60 = vpack.c.bf16 %v2519_v33, %v2518_v63  ;;  %v2863_v62 = vld [vmem:[#allocation4 + $0xd0] sm:$0xff]  ;;  %v2524_v7 = vld [vmem:[#allocation2 + $0x100] sm:$0xff]  ;;  %v2525_v13 = vld [vmem:[#allocation2 + $0x108] sm:$0xff] }
 0x497   : > { %8862 = vmatprep.subr.bf16.mxu1 %v12051_v3  ;;  %v2540_v63 = vld [vmem:[#allocation2 + $0x180] sm:$0xff]  ;;  %v2541_v33 = vld [vmem:[#allocation2 + $0x188] sm:$0xff] }
 0x498   : > { %8542 = vmatmul.mubr.bf16.gmra.mrb[40].mxu0 %v3676_v59  ;;  %v2869_v59 = vld [vmem:[#allocation4 + $0x100] sm:$0xff] }
 0x499   : > { %8300 = vmatmul.mubr.f32.gmra.mrb[4].mxu1 %v2842_v35  ;;  %8545 = vmatprep.mubr.bf16.mxu0 %v3677_v20  ;;  %v3685_v35 = vpack.c.bf16 %v2521_v4, %v2520_v34  ;;  %v2872_v20 = vld [vmem:[#allocation4 + $0x118] sm:$0xff]  ;;  %v2886_v4 = vld [vmem:[#allocation4 + $0x188] sm:$0xff] }
 0x49a   : > { %8864 = vmatpush3.bf16.msra.mxu1 %v12051_v3  ;;  %8302 = vmatprep.mubr.f32.mxu1 %v2843_v55  ;;  %v2847_v3 = vld [vmem:[#allocation4 + $0x50] sm:$0xff] }
 0x49b   : > { %8866 = vmatprep.subr.bf16.mxu1 %v12053_v9  ;;  %v2522_v55 = vld [vmem:[#allocation2 + $0xf0] sm:$0xff] }
 0x49d   : > { %8303 = vmatmul.mubr.f32.gmra.mrb[6].mxu1 %v2844_v6  ;;  %v2523_v6 = vld [vmem:[#allocation2 + $0xf8] sm:$0xff] }
 0x49e   : > { %8868 = vmatpush3.bf16.msra.mxu1 %v12053_v9  ;;  %8305 = vmatprep.mubr.f32.mxu1 %v2845_v12  ;;  %v3678_v9 = vpack.c.bf16 %v2507_v39, %v2506_v21  ;;  %v3686_v10 = vpack.c.bf16 %v2523_v6, %v2522_v55  ;;  %v2867_v12 = vld [vmem:[#allocation4 + $0xf0] sm:$0xff]  ;;  %v2528_v21 = vld [vmem:[#allocation2 + $0x120] sm:$0xff]  ;;  %v2529_v39 = vld [vmem:[#allocation2 + $0x128] sm:$0xff] }
 0x49f   : > { %8870 = vmatprep.subr.bf16.mxu1 %v12057_v15  ;;  %v2544_v55 = vld [vmem:[#allocation2 + $0x1a0] sm:$0xff]  ;;  %v2545_v6 = vld [vmem:[#allocation2 + $0x1a8] sm:$0xff] }
 0x4a0   : > { %8546 = vmatmul.mubr.bf16.gmra.mrb[44].mxu0 %v3678_v9  ;;  %v2873_v9 = vld [vmem:[#allocation4 + $0x120] sm:$0xff] }
 0x4a1   : > { %8306 = vmatmul.mubr.f32.gmra.mrb[8].mxu1 %v2846_v14  ;;  %8549 = vmatprep.mubr.bf16.mxu0 %v3679_v36  ;;  %v3687_v14 = vpack.c.bf16 %v2525_v13, %v2524_v7  ;;  %v2876_v36 = vld [vmem:[#allocation4 + $0x138] sm:$0xff]  ;;  %v2890_v13 = vld [vmem:[#allocation4 + $0x1a8] sm:$0xff] }
 0x4a2   : > { %8872 = vmatpush3.bf16.msra.mxu1 %v12057_v15  ;;  %8308 = vmatprep.mubr.f32.mxu1 %v2847_v3  ;;  %v2851_v15 = vld [vmem:[#allocation4 + $0x70] sm:$0xff] }
 0x4a3   : > { %8874 = vmatprep.subr.bf16.mxu1 %v12061_v22  ;;  %v2526_v3 = vld [vmem:[#allocation2 + $0x110] sm:$0xff] }
 0x4a5   : > { %8309 = vmatmul.mubr.f32.gmra.mrb[10].mxu1 %v2848_v38  ;;  %v2527_v38 = vld [vmem:[#allocation2 + $0x118] sm:$0xff] }
 0x4a6   : > { %8876 = vmatpush3.bf16.msra.mxu1 %v12061_v22  ;;  %8311 = vmatprep.mubr.f32.mxu1 %v2849_v19  ;;  %v3680_v22 = vpack.c.bf16 %v2511_v24, %v2510_v37  ;;  %v3688_v16 = vpack.c.bf16 %v2527_v38, %v2526_v3  ;;  %v2871_v19 = vld [vmem:[#allocation4 + $0x110] sm:$0xff]  ;;  %v2532_v37 = vld [vmem:[#allocation2 + $0x140] sm:$0xff]  ;;  %v2533_v24 = vld [vmem:[#allocation2 + $0x148] sm:$0xff] }
 0x4a7   : > { %8878 = vmatprep.subr.bf16.mxu1 %v12065_v41  ;;  %v2548_v3 = vld [vmem:[#allocation2 + $0x1c0] sm:$0xff]  ;;  %v2549_v38 = vld [vmem:[#allocation2 + $0x1c8] sm:$0xff] }
 0x4a8   : > { %8550 = vmatmul.mubr.bf16.gmra.mrb[48].mxu0 %v3680_v22  ;;  %v2877_v22 = vld [vmem:[#allocation4 + $0x140] sm:$0xff] }
 0x4a9   : > { %8312 = vmatmul.mubr.f32.gmra.mrb[12].mxu1 %v2850_v23  ;;  %8553 = vmatprep.mubr.bf16.mxu0 %v3681_v18  ;;  %v3689_v23 = vpack.c.bf16 %v2529_v39, %v2528_v21  ;;  %v2880_v18 = vld [vmem:[#allocation4 + $0x158] sm:$0xff]  ;;  %v2894_v39 = vld [vmem:[#allocation4 + $0x1c8] sm:$0xff] }
 0x4aa   : > { %8880 = vmatpush3.bf16.msra.mxu1 %v12065_v41  ;;  %8314 = vmatprep.mubr.f32.mxu1 %v2851_v15  ;;  %v2856_v41 = vld [vmem:[#allocation4 + $0x98] sm:$0xff]  ;;  %v2530_v15 = vld [vmem:[#allocation2 + $0x130] sm:$0xff] }
 0x4ab   : > { %8882 = vmatprep.subr.bf16.mxu1 %v12069_v48 }
 0x4ad   : > { %8315 = vmatmul.mubr.f32.gmra.mrb[14].mxu1 %v2852_v40  ;;  %v2531_v40 = vld [vmem:[#allocation2 + $0x138] sm:$0xff] }
 0x4ae   : > { %8884 = vmatpush3.bf16.msra.mxu1 %v12069_v48  ;;  %8317 = vmatprep.mubr.f32.mxu1 %v2853_v29  ;;  %v2860_v48 = vld [vmem:[#allocation4 + $0xb8] sm:$0xff]  ;;  %v3690_v26 = vpack.c.bf16 %v2531_v40, %v2530_v15  ;;  %v2875_v29 = vld [vmem:[#allocation4 + $0x130] sm:$0xff]  ;;  %v2552_v15 = vld [vmem:[#allocation2 + $0x1e0] sm:$0xff] }
 0x4af   : > { %v2553_v40 = vld [vmem:[#allocation2 + $0x1e8] sm:$0xff] }
 0x4b0   : > { %8554 = vmatmul.mubr.bf16.gmra.mrb[52].mxu0 %v3682_v32  ;;  %v2881_v32 = vld [vmem:[#allocation4 + $0x160] sm:$0xff] }
 0x4b1   : > { %8318 = vmatmul.mubr.f32.gmra.mrb[16].mxu1 %v2854_v45  ;;  %8557 = vmatprep.mubr.bf16.mxu0 %v3683_v58  ;;  %v3691_v45 = vpack.c.bf16 %v2533_v24, %v2532_v37  ;;  %v2884_v58 = vld [vmem:[#allocation4 + $0x178] sm:$0xff]  ;;  %v2898_v24 = vld [vmem:[#allocation4 + $0x1e8] sm:$0xff] }
 0x4b2   : > { %8320 = vmatprep.mubr.f32.mxu1 %v2855_v46  ;;  %v2534_v46 = vld [vmem:[#allocation2 + $0x150] sm:$0xff] }
 0x4b5   : > { %8321 = vmatmul.mubr.f32.gmra.mrb[18].mxu1 %v2856_v41  ;;  %v2535_v41 = vld [vmem:[#allocation2 + $0x158] sm:$0xff] }
 0x4b6   : > { %8323 = vmatprep.mubr.f32.mxu1 %v2857_v8  ;;  %v3692_v42 = vpack.c.bf16 %v2535_v41, %v2534_v46  ;;  %v2879_v8 = vld [vmem:[#allocation4 + $0x150] sm:$0xff]  ;;  %v2773_v46 = vld [vmem:[#allocation3] sm:$0xff] }
 0x4b7   : > { %v9173_v41 = vld [vmem:[%s10650_s19] sm:$0xff]  }
 0x4b8   : > { %8558 = vmatmul.mubr.bf16.gmra.mrb[56].mxu0 %v3684_v60  ;;  %v2885_v60 = vld [vmem:[#allocation4 + $0x180] sm:$0xff]  ;;  %8597 = vmatprep.subr.bf16.mxu0 %v9173_v41 }
 0x4b9   : > { %8324 = vmatmul.mubr.f32.gmra.mrb[20].mxu1 %v2858_v52  ;;  %8561 = vmatprep.mubr.bf16.mxu0 %v3685_v35  ;;  %v3693_v52 = vpack.c.bf16 %v2537_v51, %v2536_v49  ;;  %v2888_v35 = vld [vmem:[#allocation4 + $0x198] sm:$0xff]  ;;  %v2777_v51 = vld [vmem:[#allocation3 + $0x20] sm:$0xff] }
 0x4ba   : > { %8326 = vmatprep.mubr.f32.mxu1 %v2859_v54  ;;  %v2538_v54 = vld [vmem:[#allocation2 + $0x170] sm:$0xff]  ;;  %8598 = vmatpush3.bf16.msra.mxu0 %v9173_v41  ;;  %v2776_v49 = vld [vmem:[#allocation3 + $0x18] sm:$0xff] }
 0x4bb   : > { %v9179_v41 = vld [vmem:[%s10650_s19 + $0x30] sm:$0xff]  }
 0x4bd   : > { %8327 = vmatmul.mubr.f32.gmra.mrb[22].mxu1 %v2860_v48  ;;  %v2539_v48 = vld [vmem:[#allocation2 + $0x178] sm:$0xff] }
 0x4be   : > { %8329 = vmatprep.mubr.f32.mxu1 %v2861_v57  ;;  %v3694_v56 = vpack.c.bf16 %v2539_v48, %v2538_v54  ;;  %v2883_v57 = vld [vmem:[#allocation4 + $0x170] sm:$0xff]  ;;  %v9177_v48 = vld [vmem:[%s10650_s19 + $0x20] sm:$0xff]  }
 0x4bf   : > { %v2779_v54 = vld [vmem:[#allocation3 + $0x30] sm:$0xff] }
 0x4c0   : > { %8562 = vmatmul.mubr.bf16.gmra.mrb[60].mxu0 %v3686_v10  ;;  %v2889_v10 = vld [vmem:[#allocation4 + $0x1a0] sm:$0xff] }
 0x4c1   : > { %8330 = vmatmul.mubr.f32.gmra.mrb[24].mxu1 %v2862_v61  ;;  %8565 = vmatprep.mubr.bf16.mxu0 %v3687_v14  ;;  %v3695_v61 = vpack.c.bf16 %v2541_v33, %v2540_v63  ;;  %v2892_v14 = vld [vmem:[#allocation4 + $0x1b8] sm:$0xff]  ;;  %v2785_v33 = vld [vmem:[#allocation3 + $0x60] sm:$0xff] }
 0x4c2   : > { %8332 = vmatprep.mubr.f32.mxu1 %v2863_v62  ;;  %v2542_v62 = vld [vmem:[#allocation2 + $0x190] sm:$0xff]  ;;  %v2784_v63 = vld [vmem:[#allocation3 + $0x58] sm:$0xff] }
 0x4c5   : > { %8333 = vmatmul.mubr.f32.gmra.mrb[26].mxu1 %v2864_v0  ;;  %v2543_v0 = vld [vmem:[#allocation2 + $0x198] sm:$0xff] }
 0x4c6   : > { %8335 = vmatprep.mubr.f32.mxu1 %v2865_v5  ;;  %v3696_v34 = vpack.c.bf16 %v2543_v0, %v2542_v62  ;;  %v2887_v5 = vld [vmem:[#allocation4 + $0x190] sm:$0xff]  ;;  %v2788_v62 = vld [vmem:[#allocation3 + $0x78] sm:$0xff]  ;;  %v2789_v0 = vld [vmem:[#allocation3 + $0x80] sm:$0xff] }
 0x4c8   : > { %8566 = vmatmul.mubr.bf16.gmra.mrb[64].mxu0 %v3688_v16  ;;  %v2893_v16 = vld [vmem:[#allocation4 + $0x1c0] sm:$0xff] }
 0x4c9   : > { %8336 = vmatmul.mubr.f32.gmra.mrb[28].mxu1 %v2866_v11  ;;  %8569 = vmatprep.mubr.bf16.mxu0 %v3689_v23  ;;  %v3697_v11 = vpack.c.bf16 %v2545_v6, %v2544_v55  ;;  %v2896_v23 = vld [vmem:[#allocation4 + $0x1d8] sm:$0xff]  ;;  %v2794_v55 = vld [vmem:[#allocation3 + $0xa8] sm:$0xff]  ;;  %v2795_v6 = vld [vmem:[#allocation3 + $0xb0] sm:$0xff] }
 0x4ca   : > { %8338 = vmatprep.mubr.f32.mxu1 %v2867_v12  ;;  %v2546_v12 = vld [vmem:[#allocation2 + $0x1b0] sm:$0xff] }
 0x4cd   : > { %8339 = vmatmul.mubr.f32.gmra.mrb[30].mxu1 %v2868_v2  ;;  %v2547_v2 = vld [vmem:[#allocation2 + $0x1b8] sm:$0xff] }
 0x4ce   : > { %8341 = vmatprep.mubr.f32.mxu1 %v2869_v59  ;;  %v3698_v7 = vpack.c.bf16 %v2547_v2, %v2546_v12  ;;  %v2891_v59 = vld [vmem:[#allocation4 + $0x1b0] sm:$0xff]  ;;  %v2798_v12 = vld [vmem:[#allocation3 + $0xc8] sm:$0xff] }
 0x4cf   : > { %v2799_v2 = vld [vmem:[#allocation3 + $0xd0] sm:$0xff] }
 0x4d0   : > { %8570 = vmatmul.mubr.bf16.gmra.mrb[68].mxu0 %v3690_v26  ;;  %v2897_v26 = vld [vmem:[#allocation4 + $0x1e0] sm:$0xff] }
 0x4d1   : > { %8342 = vmatmul.mubr.f32.gmra.mrb[32].mxu1 %v2870_v17  ;;  %8573 = vmatprep.mubr.bf16.mxu0 %v3691_v45  ;;  %v3699_v17 = vpack.c.bf16 %v2549_v38, %v2548_v3  ;;  %v2900_v45 = vld [vmem:[#allocation4 + $0x1f8] sm:$0xff]  ;;  %v2805_v38 = vld [vmem:[#allocation3 + $0x100] sm:$0xff] }
 0x4d2   : > { %8344 = vmatprep.mubr.f32.mxu1 %v2871_v19  ;;  %v2550_v19 = vld [vmem:[#allocation2 + $0x1d0] sm:$0xff]  ;;  %v2804_v3 = vld [vmem:[#allocation3 + $0xf8] sm:$0xff] }
 0x4d5   : > { %8345 = vmatmul.mubr.f32.gmra.mrb[34].mxu1 %v2872_v20  ;;  %v2551_v20 = vld [vmem:[#allocation2 + $0x1d8] sm:$0xff] }
 0x4d6   : > { %8347 = vmatprep.mubr.f32.mxu1 %v2873_v9  ;;  %v3700_v21 = vpack.c.bf16 %v2551_v20, %v2550_v19  ;;  %v2895_v9 = vld [vmem:[#allocation4 + $0x1d0] sm:$0xff]  ;;  %v2808_v19 = vld [vmem:[#allocation3 + $0x118] sm:$0xff]  ;;  %v2809_v20 = vld [vmem:[#allocation3 + $0x120] sm:$0xff] }
 0x4d8   : > { %8574 = vmatmul.mubr.bf16.gmra.mrb[72].mxu0 %v3692_v42  ;;  %v9174_v42 = vld [vmem:[%s10650_s19 + $0x8] sm:$0xff]  }
 0x4d9   : > { %8348 = vmatmul.mubr.f32.gmra.mrb[36].mxu1 %v2874_v28  ;;  %8577 = vmatprep.mubr.bf16.mxu0 %v3693_v52  ;;  %v3701_v28 = vpack.c.bf16 %v2553_v40, %v2552_v15  ;;  %v2778_v52 = vld [vmem:[#allocation3 + $0x28] sm:$0xff]  ;;  %v2815_v40 = vld [vmem:[#allocation3 + $0x150] sm:$0xff] }
 0x4da   : > { %8350 = vmatprep.mubr.f32.mxu1 %v2875_v29  ;;  %v2554_v29 = vld [vmem:[#allocation2 + $0x1f0] sm:$0xff]  ;;  %8599 = vmatprep.subr.bf16.mxu0 %v9174_v42  ;;  %v2814_v15 = vld [vmem:[#allocation3 + $0x148] sm:$0xff] }
 0x4db   : > { %8600 = vmatpush3.bf16.msra.mxu0 %v9174_v42  ;;  %v2820_v42 = vld [vmem:[#allocation3 + $0x178] sm:$0xff] }
 0x4dd   : > { %8351 = vmatmul.mubr.f32.gmra.mrb[38].mxu1 %v2876_v36  ;;  %v2555_v36 = vld [vmem:[#allocation2 + $0x1f8] sm:$0xff] }
 0x4de   : > { %8353 = vmatprep.mubr.f32.mxu1 %v2877_v22  ;;  %v3702_v37 = vpack.c.bf16 %v2555_v36, %v2554_v29  ;;  %v2899_v22 = vld [vmem:[#allocation4 + $0x1f0] sm:$0xff]  ;;  %v2817_v36 = vld [vmem:[#allocation3 + $0x160] sm:$0xff] }
 0x4e0   : > { %8578 = vmatmul.mubr.bf16.gmra.mrb[76].mxu0 %v3694_v56  ;;  %v2780_v56 = vld [vmem:[#allocation3 + $0x38] sm:$0xff] }
 0x4e1   : > { %8354 = vmatmul.mubr.f32.gmra.mrb[40].mxu1 %v2878_v25  ;;  %8581 = vmatprep.mubr.bf16.mxu0 %v3695_v61  ;;  %v2774_v25 = vld [vmem:[#allocation3 + $0x8] sm:$0xff]  ;;  %v2787_v61 = vld [vmem:[#allocation3 + $0x70] sm:$0xff] }
 0x4e2   : > { %8356 = vmatprep.mubr.f32.mxu1 %v2879_v8  ;;  %v2775_v8 = vld [vmem:[#allocation3 + $0x10] sm:$0xff] }
 0x4e5   : > { %8357 = vmatmul.mubr.f32.gmra.mrb[42].mxu1 %v2880_v18  ;;  %v9175_v18 = vld [vmem:[%s10650_s19 + $0x10] sm:$0xff]  }
 0x4e6   : > { %8359 = vmatprep.mubr.f32.mxu1 %v2881_v32  ;;  %8601 = vmatprep.subr.bf16.mxu0 %v9175_v18  ;;  %v9176_v32 = vld [vmem:[%s10650_s19 + $0x18] sm:$0xff]  }
 0x4e7   : > { %8602 = vmatpush3.bf16.msra.mxu0 %v9175_v18 }
 0x4e8   : > { %8582 = vmatmul.mubr.bf16.gmra.mrb[80].mxu0 %v3696_v34  ;;  %8603 = vmatprep.subr.bf16.mxu0 %v9176_v32  ;;  %v2790_v34 = vld [vmem:[#allocation3 + $0x88] sm:$0xff] }
 0x4e9   : > { %8360 = vmatmul.mubr.f32.gmra.mrb[44].mxu1 %v2882_v53  ;;  %8585 = vmatprep.mubr.bf16.mxu0 %v3697_v11  ;;  %v2781_v53 = vld [vmem:[#allocation3 + $0x40] sm:$0xff] }
 0x4ea   : > { %8362 = vmatprep.mubr.f32.mxu1 %v2883_v57  ;;  %v2782_v57 = vld [vmem:[#allocation3 + $0x48] sm:$0xff]  ;;  %v2797_v11 = vld [vmem:[#allocation3 + $0xc0] sm:$0xff] }
 0x4eb   : > { %8604 = vmatpush3.bf16.msra.mxu0 %v9176_v32 }
 0x4ec   : > { %8605 = vmatprep.subr.bf16.mxu0 %v9177_v48 }
 0x4ed   : > { %8363 = vmatmul.mubr.f32.gmra.mrb[46].mxu1 %v2884_v58  ;;  %v2783_v58 = vld [vmem:[#allocation3 + $0x50] sm:$0xff] }
 0x4ee   : > { %8365 = vmatprep.mubr.f32.mxu1 %v2885_v60  ;;  %v2786_v60 = vld [vmem:[#allocation3 + $0x68] sm:$0xff] }
 0x4ef   : > { %8606 = vmatpush3.bf16.msra.mxu0 %v9177_v48  ;;  %v2824_v48 = vld [vmem:[#allocation3 + $0x198] sm:$0xff] }
 0x4f0   : > { %8586 = vmatmul.mubr.bf16.gmra.mrb[84].mxu0 %v3698_v7  ;;  %v2800_v7 = vld [vmem:[#allocation3 + $0xd8] sm:$0xff] }
 0x4f1   : > { %8366 = vmatmul.mubr.f32.gmra.mrb[48].mxu1 %v2886_v4  ;;  %8589 = vmatprep.mubr.bf16.mxu0 %v3699_v17  ;;  %v2791_v4 = vld [vmem:[#allocation3 + $0x90] sm:$0xff] }
 0x4f2   : > { %8368 = vmatprep.mubr.f32.mxu1 %v2887_v5  ;;  %v2792_v5 = vld [vmem:[#allocation3 + $0x98] sm:$0xff]  ;;  %v2807_v17 = vld [vmem:[#allocation3 + $0x110] sm:$0xff] }
 0x4f5   : > { %8369 = vmatmul.mubr.f32.gmra.mrb[50].mxu1 %v2888_v35  ;;  %v2793_v35 = vld [vmem:[#allocation3 + $0xa0] sm:$0xff] }
 0x4f6   : > { %8371 = vmatprep.mubr.f32.mxu1 %v2889_v10  ;;  %v2796_v10 = vld [vmem:[#allocation3 + $0xb8] sm:$0xff] }
 0x4f8   : > { %8590 = vmatmul.mubr.bf16.gmra.mrb[88].mxu0 %v3700_v21  ;;  %v2810_v21 = vld [vmem:[#allocation3 + $0x128] sm:$0xff] }
 0x4f9   : > { %8372 = vmatmul.mubr.f32.gmra.mrb[52].mxu1 %v2890_v13  ;;  %8593 = vmatprep.mubr.bf16.mxu0 %v3701_v28  ;;  %v2801_v13 = vld [vmem:[#allocation3 + $0xe0] sm:$0xff]  ;;  %v2816_v28 = vld [vmem:[#allocation3 + $0x158] sm:$0xff] }
 0x4fa   : > { %8374 = vmatprep.mubr.f32.mxu1 %v2891_v59  ;;  %v2802_v59 = vld [vmem:[#allocation3 + $0xe8] sm:$0xff] }
 0x4fd   : > { %8375 = vmatmul.mubr.f32.gmra.mrb[54].mxu1 %v2892_v14  ;;  %v2803_v14 = vld [vmem:[#allocation3 + $0xf0] sm:$0xff] }
 0x4fe   : > { %8377 = vmatprep.mubr.f32.mxu1 %v2893_v16  ;;  %v2806_v16 = vld [vmem:[#allocation3 + $0x108] sm:$0xff] }
 0x500   : > { %8594 = vmatmul.mubr.bf16.gmra.mrb[92].mxu0 %v3702_v37 }
 0x501   : > { %8378 = vmatmul.mubr.f32.gmra.mrb[56].mxu1 %v2894_v39  ;;  %v2811_v39 = vld [vmem:[#allocation3 + $0x130] sm:$0xff] }
 0x502   : > { %8380 = vmatprep.mubr.f32.mxu1 %v2895_v9  ;;  %v2812_v9 = vld [vmem:[#allocation3 + $0x138] sm:$0xff] }
 0x505   : > { %8381 = vmatmul.mubr.f32.gmra.mrb[58].mxu1 %v2896_v23  ;;  %v2813_v23 = vld [vmem:[#allocation3 + $0x140] sm:$0xff] }
 0x506   : > { %8383 = vmatprep.mubr.f32.mxu1 %v2897_v26 }
 0x509   : > { %8384 = vmatmul.mubr.f32.gmra.mrb[60].mxu1 %v2898_v24 }
 0x50a   : > { %8386 = vmatprep.mubr.f32.mxu1 %v2899_v22  ;;  %v9178_v22 = vld [vmem:[%s10650_s19 + $0x28] sm:$0xff]  }
 0x50b   : > { %8607 = vmatprep.subr.bf16.mxu0 %v9178_v22 }
 0x50c   : > { %8608 = vmatpush3.bf16.msra.mxu0 %v9178_v22 }
 0x50d   : > { %8387 = vmatmul.mubr.f32.gmra.mrb[62].mxu1 %v2900_v45  ;;  %v2818_v45 = vld [vmem:[#allocation3 + $0x168] sm:$0xff]  ;;  %8609 = vmatprep.subr.bf16.mxu0 %v9179_v41 }
 0x50e   : > { %8421 = vmatprep.mubr.f32.mxu1 %v2773_v46  ;;  %v2819_v46 = vld [vmem:[#allocation3 + $0x170] sm:$0xff] }
 0x510   : > { %8610 = vmatpush3.bf16.msra.mxu0 %v9179_v41 }
 0x511   : > { %8422 = vmatmul.mubr.f32.vlgmr.msra.gmra.mrb[0].mxu1 %v2774_v25 }
 0x512   : > { %8424 = vmatprep.mubr.f32.mxu1 %v2775_v8  ;;  %v2821_v8 = vld [vmem:[#allocation3 + $0x180] sm:$0xff] }
 0x515   : > { %8425 = vmatmul.mubr.f32.gmra.mrb[2].mxu1 %v2776_v49 }
 0x516   : > { %8427 = vmatprep.mubr.f32.mxu1 %v2777_v51  ;;  %v9180_v51 = vld [vmem:[%s10650_s19 + $0x38] sm:$0xff]   ;;  %s13887_s19 = scalar_lea.vmem [#allocation14], %s10634_s12 }
 0x517   : > { %8611 = vmatprep.subr.bf16.mxu0 %v9180_v51 }
 0x518   : > { %8612 = vmatpush3.bf16.msra.mxu0 %v9180_v51 }
 0x519   : > { %8428 = vmatmul.mubr.f32.gmra.mrb[4].mxu1 %v2778_v52  ;;  %v2822_v52 = vld [vmem:[#allocation3 + $0x188] sm:$0xff] }
 0x51a   : > { %8430 = vmatprep.mubr.f32.mxu1 %v2779_v54  ;;  %v2823_v54 = vld [vmem:[#allocation3 + $0x190] sm:$0xff] }
 0x51d   : > { %8431 = vmatmul.mubr.f32.gmra.mrb[6].mxu1 %v2780_v56 }
 0x51e   : > { %8433 = vmatprep.mubr.f32.mxu1 %v2781_v53  ;;  %v2825_v53 = vld [vmem:[#allocation3 + $0x1a0] sm:$0xff] }
 0x521   : > { %8434 = vmatmul.mubr.f32.gmra.mrb[8].mxu1 %v2782_v57 }
 0x522   : > { %8436 = vmatprep.mubr.f32.mxu1 %v2783_v58 }
 0x525   : > { %8437 = vmatmul.mubr.f32.gmra.mrb[10].mxu1 %v2784_v63 }
 0x526   : > { %8439 = vmatprep.mubr.f32.mxu1 %v2785_v33  ;;  %v2826_v33 = vld [vmem:[#allocation3 + $0x1a8] sm:$0xff] }
 0x529   : > { %8440 = vmatmul.mubr.f32.gmra.mrb[12].mxu1 %v2786_v60  ;;  %v2827_v60 = vld [vmem:[#allocation3 + $0x1b0] sm:$0xff] }
 0x52a   : > { %8442 = vmatprep.mubr.f32.mxu1 %v2787_v61  ;;  %v2828_v61 = vld [vmem:[#allocation3 + $0x1b8] sm:$0xff] }
 0x52d   : > { %8443 = vmatmul.mubr.f32.gmra.mrb[14].mxu1 %v2788_v62 }
 0x52e   : > { %8445 = vmatprep.mubr.f32.mxu1 %v2789_v0  ;;  %v2829_v0 = vld [vmem:[#allocation3 + $0x1c0] sm:$0xff] }
 0x52f   : > { %v12092_v26 = vpop.f32.mrb[32].mxu0 }
 0x530   : > { %v12094_v29 = vpop.f32.mrb[33].mxu0 }
 0x531   : > { %8446 = vmatmul.mubr.f32.gmra.mrb[16].mxu1 %v2790_v34  ;;  %v12096_v37 = vpop.f32.mrb[34].mxu0 }
 0x532   : > { %8448 = vmatprep.mubr.f32.mxu1 %v2791_v4  ;;  %v12098_v24 = vpop.f32.mrb[35].mxu0 }
 0x535   : > { %8449 = vmatmul.mubr.f32.gmra.mrb[18].mxu1 %v2792_v5 }
 0x536   : > { %8451 = vmatprep.mubr.f32.mxu1 %v2793_v35  ;;  %v2830_v35 = vld [vmem:[#allocation3 + $0x1c8] sm:$0xff] }
 0x539   : > { %8452 = vmatmul.mubr.f32.gmra.mrb[20].mxu1 %v2794_v55  ;;  %v2831_v55 = vld [vmem:[#allocation3 + $0x1d0] sm:$0xff] }
 0x53a   : > { %8454 = vmatprep.mubr.f32.mxu1 %v2795_v6  ;;  %v2832_v6 = vld [vmem:[#allocation3 + $0x1d8] sm:$0xff] }
 0x53d   : > { %8455 = vmatmul.mubr.f32.gmra.mrb[22].mxu1 %v2796_v10 }
 0x53e   : > { %8457 = vmatprep.mubr.f32.mxu1 %v2797_v11  ;;  %v2833_v11 = vld [vmem:[#allocation3 + $0x1e0] sm:$0xff] }
 0x53f   : > { %v12102_v25 = vpop.f32.mrb[36].mxu0 }
 0x540   : > { %v12104_v18 = vpop.f32.mrb[37].mxu0 }
 0x541   : > { %8458 = vmatmul.mubr.f32.gmra.mrb[24].mxu1 %v2798_v12  ;;  %v12106_v49 = vpop.f32.mrb[38].mxu0 }
 0x542   : > { %8460 = vmatprep.mubr.f32.mxu1 %v2799_v2  ;;  %v12109_v32 = vpop.f32.mrb[39].mxu0 }
 0x545   : > { %8461 = vmatmul.mubr.f32.gmra.mrb[26].mxu1 %v2800_v7 }
 0x546   : > { %8463 = vmatprep.mubr.f32.mxu1 %v2801_v13  ;;  %v2834_v13 = vld [vmem:[#allocation3 + $0x1e8] sm:$0xff] }
 0x549   : > { %8464 = vmatmul.mubr.f32.gmra.mrb[28].mxu1 %v2802_v59  ;;  %v2835_v59 = vld [vmem:[#allocation3 + $0x1f0] sm:$0xff] }
 0x54a   : > { %8466 = vmatprep.mubr.f32.mxu1 %v2803_v14  ;;  %v2836_v14 = vld [vmem:[#allocation3 + $0x1f8] sm:$0xff] }
 0x54d   : > { %8467 = vmatmul.mubr.f32.gmra.mrb[30].mxu1 %v2804_v3 }
 0x54e   : > { %8469 = vmatprep.mubr.f32.mxu1 %v2805_v38 }
 0x551   : > { %8470 = vmatmul.mubr.f32.gmra.mrb[32].mxu1 %v2806_v16 }
 0x552   : > { %8472 = vmatprep.mubr.f32.mxu1 %v2807_v17 }
 0x555   : > { %8473 = vmatmul.mubr.f32.gmra.mrb[34].mxu1 %v2808_v19 }
 0x556   : > { %8475 = vmatprep.mubr.f32.mxu1 %v2809_v20 }
 0x559   : > { %8476 = vmatmul.mubr.f32.gmra.mrb[36].mxu1 %v2810_v21 }
 0x55a   : > { %8478 = vmatprep.mubr.f32.mxu1 %v2811_v39 }
 0x55d   : > { %8479 = vmatmul.mubr.f32.gmra.mrb[38].mxu1 %v2812_v9 }
 0x55e   : > { %8481 = vmatprep.mubr.f32.mxu1 %v2813_v23 }
 0x561   : > { %8482 = vmatmul.mubr.f32.gmra.mrb[40].mxu1 %v2814_v15 }
 0x562   : > { %8484 = vmatprep.mubr.f32.mxu1 %v2815_v40 }
 0x565   : > { %8485 = vmatmul.mubr.f32.gmra.mrb[42].mxu1 %v2816_v28 }
 0x566   : > { %8487 = vmatprep.mubr.f32.mxu1 %v2817_v36 }
 0x569   : > { %8488 = vmatmul.mubr.f32.gmra.mrb[44].mxu1 %v2818_v45 }
 0x56a   : > { %8490 = vmatprep.mubr.f32.mxu1 %v2819_v46 }
 0x56b   : > { %v12111_v56 = vpop.f32.mrb[40].mxu0 }
 0x56c   : > { %v12113_v57 = vpop.f32.mrb[41].mxu0 }
 0x56d   : > { %8491 = vmatmul.mubr.f32.gmra.mrb[46].mxu1 %v2820_v42  ;;  %v12115_v58 = vpop.f32.mrb[42].mxu0 }
 0x56e   : > { %8493 = vmatprep.mubr.f32.mxu1 %v2821_v8  ;;  %v12117_v63 = vpop.f32.mrb[43].mxu0 }
 0x571   : > { %8494 = vmatmul.mubr.f32.gmra.mrb[48].mxu1 %v2822_v52 }
 0x572   : > { %8496 = vmatprep.mubr.f32.mxu1 %v2823_v54 }
 0x573   : > { %v12119_v62 = vpop.f32.mrb[44].mxu0 }
 0x574   : > { %v12121_v34 = vpop.f32.mrb[45].mxu0 }
 0x575   : > { %8497 = vmatmul.mubr.f32.gmra.mrb[50].mxu1 %v2824_v48  ;;  %v12123_v4 = vpop.f32.mrb[46].mxu0 }
 0x576   : > { %8499 = vmatprep.mubr.f32.mxu1 %v2825_v53  ;;  %v12125_v5 = vpop.f32.mrb[47].mxu0 }
 0x579   : > { %8500 = vmatmul.mubr.f32.gmra.mrb[52].mxu1 %v2826_v33 }
 0x57a   : > { %8502 = vmatprep.mubr.f32.mxu1 %v2827_v60 }
 0x57b   : > { %v12127_v10 = vpop.f32.mrb[48].mxu0 }
 0x57c   : > { %v12129_v12 = vpop.f32.mrb[49].mxu0 }
 0x57d   : > { %8503 = vmatmul.mubr.f32.gmra.mrb[54].mxu1 %v2828_v61  ;;  %v12131_v2 = vpop.f32.mrb[50].mxu0 }
 0x57e   : > { %8505 = vmatprep.mubr.f32.mxu1 %v2829_v0  ;;  %v12133_v7 = vpop.f32.mrb[51].mxu0 }
 0x581   : > { %8506 = vmatmul.mubr.f32.gmra.mrb[56].mxu1 %v2830_v35 }
 0x582   : > { %8508 = vmatprep.mubr.f32.mxu1 %v2831_v55 }
 0x583   : > { %v12135_v3 = vpop.f32.mrb[52].mxu0 }
 0x584   : > { %v12137_v38 = vpop.f32.mrb[53].mxu0 }
 0x585   : > { %8509 = vmatmul.mubr.f32.gmra.mrb[58].mxu1 %v2832_v6  ;;  %v12139_v16 = vpop.f32.mrb[54].mxu0 }
 0x586   : > { %8511 = vmatprep.mubr.f32.mxu1 %v2833_v11  ;;  %v12141_v17 = vpop.f32.mrb[55].mxu0 }
 0x589   : > { %8512 = vmatmul.mubr.f32.gmra.mrb[60].mxu1 %v2834_v13 }
 0x58a   : > { %8514 = vmatprep.mubr.f32.mxu1 %v2835_v59 }
 0x58b   : > { %v12143_v19 = vpop.f32.mrb[56].mxu0 }
 0x58c   : > { %v12145_v20 = vpop.f32.mrb[57].mxu0 }
 0x58d   : > { %8515 = vmatmul.mubr.f32.gmra.mrb[62].mxu1 %v2836_v14  ;;  %v12147_v21 = vpop.f32.mrb[58].mxu0 }
 0x58e   : > { %v12149_v39 = vpop.f32.mrb[59].mxu0 }
 0x593   : > { %v12151_v9 = vpop.f32.mrb[60].mxu0 }
 0x594   : > { %v12153_v23 = vpop.f32.mrb[61].mxu0 }
 0x595   : > { %v12155_v15 = vpop.f32.mrb[62].mxu0 }
 0x596   : > { %v12157_v40 = vpop.f32.mrb[63].mxu0 }
 0x59b   : > { %v12159_v28 = vpop.f32.mrb[64].mxu0 }
 0x59c   : > { %v12161_v36 = vpop.f32.mrb[65].mxu0 }
 0x59d   : > { %v12163_v22 = vpop.f32.mrb[66].mxu0 }
 0x59e   : > { %v12165_v45 = vpop.f32.mrb[67].mxu0 }
 0x5a3   : > { %v12167_v46 = vpop.f32.mrb[68].mxu0 }
 0x5a4   : > { %v12169_v41 = vpop.f32.mrb[69].mxu0 }
 0x5a5   : > { %v12171_v42 = vpop.f32.mrb[70].mxu0 }
 0x5a6   : > { %v12173_v8 = vpop.f32.mrb[71].mxu0 }
 0x5ab   : > { %v12175_v51 = vpop.f32.mrb[72].mxu0 }
 0x5ac   : > { %v12177_v52 = vpop.f32.mrb[73].mxu0 }
 0x5ad   : > { %v12179_v54 = vpop.f32.mrb[74].mxu0 }
 0x5ae   : > { %v12181_v48 = vpop.f32.mrb[75].mxu0 }
 0x5b3   : > { %v12183_v53 = vpop.f32.mrb[76].mxu0 }
 0x5b4   : > { %v12185_v33 = vpop.f32.mrb[77].mxu0 }
 0x5b5   : > { %v12187_v60 = vpop.f32.mrb[78].mxu0 }
 0x5b6   : > { %v12189_v61 = vpop.f32.mrb[79].mxu0 }
 0x5bb   : > { %v12191_v0 = vpop.f32.mrb[80].mxu0 }
 0x5bc   : > { %13856 = vst [vmem:[#allocation52_spill] sm:$0xff] %v12191_v0  ;;  %v12193_v35 = vpop.f32.mrb[81].mxu0 }
 0x5bd   : > { %13857 = vst [vmem:[#allocation53_spill] sm:$0xff] %v12193_v35  ;;  %v12195_v55 = vpop.f32.mrb[82].mxu0  ;;  %v9182_v35 = vld [vmem:[%s10659_s5 + $0x8] sm:$0xff]  }
 0x5be   : > { %13858 = vst [vmem:[#allocation54_spill] sm:$0xff] %v12195_v55  ;;  %v12197_v6 = vpop.f32.mrb[83].mxu0  ;;  %v9181_v55 = vld [vmem:[%s10659_s5] sm:$0xff]  }
 0x5bf   : > { %8677 = vmatprep.subr.bf16.mxu1 %v9181_v55 }
 0x5c0   : > { %8678 = vmatpush3.bf16.msra.mxu1 %v9181_v55 }
 0x5c1   : > { %8679 = vmatprep.subr.bf16.mxu1 %v9182_v35 }
 0x5c3   : > { %v12199_v11 = vpop.f32.mrb[84].mxu0 }
 0x5c4   : > { %13859 = vst [vmem:[#allocation55_spill] sm:$0xff] %v12199_v11  ;;  %v12201_v13 = vpop.f32.mrb[85].mxu0  ;;  %8680 = vmatpush3.bf16.msra.mxu1 %v9182_v35 }
 0x5c5   : > { %13860 = vst [vmem:[#allocation56_spill] sm:$0xff] %v12201_v13  ;;  %v12203_v59 = vpop.f32.mrb[86].mxu0 }
 0x5c6   : > { %13861 = vst [vmem:[#allocation57_spill] sm:$0xff] %v12203_v59  ;;  %v12205_v14 = vpop.f32.mrb[87].mxu0  ;;  %v12225_v59 = vld [vmem:[%s13871_s14] ss:$0 sm:$0xff] }
 0x5c7   : > { %13862 = vst [vmem:[#allocation58_spill] sm:$0xff] %v12205_v14 }
 0x5cb   : > { %v12207_v50 = vpop.f32.mrb[88].mxu0 }
 0x5cc   : > { %13863 = vst [vmem:[#allocation59_spill] sm:$0xff] %v12207_v50  ;;  %v12209_v31 = vpop.f32.mrb[89].mxu0 }
 0x5cd   : > { %13864 = vst [vmem:[#allocation60_spill] sm:$0xff] %v12209_v31  ;;  %v12211_v1 = vpop.f32.mrb[90].mxu0 }
 0x5ce   : > { %13865 = vst [vmem:[#allocation61_spill] sm:$0xff] %v12211_v1  ;;  %v12213_v47 = vpop.f32.mrb[91].mxu0 }
 0x5cf   : > { %13866 = vst [vmem:[#allocation62_spill] sm:$0xff] %v12213_v47 }
 0x5d3   : > { %v12215_v44 = vpop.f32.mrb[92].mxu0 }
 0x5d4   : > { %13867 = vst [vmem:[#allocation63_spill] sm:$0xff] %v12215_v44  ;;  %v12217_v43 = vpop.f32.mrb[93].mxu0 }
 0x5d5   : > { %13868 = vst [vmem:[#allocation64_spill] sm:$0xff] %v12217_v43  ;;  %v12219_v30 = vpop.f32.mrb[94].mxu0 }
 0x5d6   : > { %13869 = vst [vmem:[#allocation65_spill] sm:$0xff] %v12219_v30  ;;  %v12221_v27 = vpop.f32.mrb[95].mxu0 }
 0x5d7   : > { %13870 = vst [vmem:[#allocation66_spill] sm:$0xff] %v12221_v27 }
 0x5e4   : > { %v8423_v11 = vpop.f32.mrb[0].mxu1 }
 0x5e5   : > { %v3805_v50 = vadd.f32 %v8423_v11, %v12098_v24  ;;  %v3352_v31 = vpop.f32.mrb[1].mxu1 }
 0x5e6   : > { %v3802_v1 = vadd.f32 %v12094_v29, %v3352_v31 }
 0x5e7   : > { %v4064_v47 = vadd.f32 %v12225_v59, %v3805_v50 }
 0x5e8   : > { %v4063_v44 = vadd.f32 %v12225_v59, %v3802_v1  ;;  %v8426_v43 = vpop.f32.mrb[2].mxu1 }
 0x5e9   : > { %v4164_v13 = vmax.f32 %v4064_v47, 0.0  ;;  %v3813_v30 = vadd.f32 %v12096_v37, %v8426_v43  ;;  %v3362_v14 = vpop.f32.mrb[3].mxu1 }
 0x5ea   : > { %v4163_v0 = vmax.f32 %v4063_v44, 0.0  ;;  %v3810_v27 = vadd.f32 %v12092_v26, %v3362_v14  ;;  %v9183_v26 = vld [vmem:[%s10659_s5 + $0x10] sm:$0xff]  }
 0x5eb   : > { %v4066_v24 = vadd.f32 %v12225_v59, %v3813_v30  ;;  %8681 = vmatprep.subr.bf16.mxu1 %v9183_v26 }
 0x5ec   : > { %v4065_v11 = vadd.f32 %v12225_v59, %v3810_v27  ;;  %v8429_v31 = vpop.f32.mrb[4].mxu1  ;;  %v4227_v29 = vpack.c.bf16 %v4164_v13, %v4163_v0  ;;  %8682 = vmatpush3.bf16.msra.mxu1 %v9183_v26 }
 0x5ed   : > { %v4166_v50 = vmax.f32 %v4066_v24, 0.0  ;;  %v3821_v1 = vadd.f32 %v8429_v31, %v12109_v32  ;;  %v3372_v47 = vpop.f32.mrb[5].mxu1 }
 0x5ee   : > { %v4165_v43 = vmax.f32 %v4065_v11, 0.0  ;;  %v3818_v44 = vadd.f32 %v12104_v18, %v3372_v47  ;;  %8613 = vmatprep.mubr.bf16.mxu0 %v4227_v29  ;;  %v9184_v18 = vld [vmem:[%s10659_s5 + $0x18] sm:$0xff]  }
 0x5ef   : > { %v4068_v37 = vadd.f32 %v12225_v59, %v3821_v1  ;;  %8683 = vmatprep.subr.bf16.mxu1 %v9184_v18 }
 0x5f0   : > { %v4228_v30 = vpack.c.bf16 %v4166_v50, %v4165_v43  ;;  %v4067_v27 = vadd.f32 %v12225_v59, %v3818_v44  ;;  %v8432_v14 = vpop.f32.mrb[6].mxu1  ;;  %8684 = vmatpush3.bf16.msra.mxu1 %v9184_v18 }
 0x5f1   : > { %v4168_v0 = vmax.f32 %v4068_v37, 0.0  ;;  %v3829_v13 = vadd.f32 %v12106_v49, %v8432_v14  ;;  %v3382_v24 = vpop.f32.mrb[7].mxu1 }
 0x5f2   : > { %v4167_v32 = vmax.f32 %v4067_v27, 0.0  ;;  %v3826_v55 = vadd.f32 %v12102_v25, %v3382_v24  ;;  %8614 = vmatmul.mubr.bf16.vlgmr.msra.gmra.mrb[96].mxu0 %v4228_v30  ;;  %v9185_v25 = vld [vmem:[%s10659_s5 + $0x20] sm:$0xff]  }
 0x5f3   : > { %v4070_v11 = vadd.f32 %v12225_v59, %v3829_v13  ;;  %8685 = vmatprep.subr.bf16.mxu1 %v9185_v25 }
 0x5f4   : > { %v4069_v31 = vadd.f32 %v12225_v59, %v3826_v55  ;;  %v8435_v29 = vpop.f32.mrb[8].mxu1  ;;  %v4229_v50 = vpack.c.bf16 %v4168_v0, %v4167_v32  ;;  %8686 = vmatpush3.bf16.msra.mxu1 %v9185_v25 }
 0x5f5   : > { %v4170_v1 = vmax.f32 %v4070_v11, 0.0  ;;  %v3837_v47 = vadd.f32 %v8435_v29, %v12117_v63  ;;  %v3392_v43 = vpop.f32.mrb[9].mxu1 }
 0x5f6   : > { %v4169_v49 = vmax.f32 %v4069_v31, 0.0  ;;  %v3834_v35 = vadd.f32 %v12113_v57, %v3392_v43  ;;  %8617 = vmatprep.mubr.bf16.mxu0 %v4229_v50  ;;  %v9186_v57 = vld [vmem:[%s10659_s5 + $0x28] sm:$0xff]  }
 0x5f7   : > { %v4072_v44 = vadd.f32 %v12225_v59, %v3837_v47  ;;  %8687 = vmatprep.subr.bf16.mxu1 %v9186_v57 }
 0x5f8   : > { %v4071_v37 = vadd.f32 %v12225_v59, %v3834_v35  ;;  %v8438_v30 = vpop.f32.mrb[10].mxu1  ;;  %v4230_v27 = vpack.c.bf16 %v4170_v1, %v4169_v49  ;;  %8688 = vmatpush3.bf16.msra.mxu1 %v9186_v57 }
 0x5f9   : > { %v4172_v14 = vmax.f32 %v4072_v44, 0.0  ;;  %v3845_v0 = vadd.f32 %v12115_v58, %v8438_v30  ;;  %v3402_v13 = vpop.f32.mrb[11].mxu1 }
 0x5fa   : > { %v4171_v63 = vmax.f32 %v4071_v37, 0.0  ;;  %v3842_v26 = vadd.f32 %v12111_v56, %v3402_v13  ;;  %8618 = vmatmul.mubr.bf16.gmra.mrb[100].mxu0 %v4230_v27 }
 0x5fb   : > { %v4074_v24 = vadd.f32 %v12225_v59, %v3845_v0 }
 0x5fc   : > { %v4073_v32 = vadd.f32 %v12225_v59, %v3842_v26  ;;  %v8441_v55 = vpop.f32.mrb[12].mxu1  ;;  %v4231_v11 = vpack.c.bf16 %v4172_v14, %v4171_v63 }
 0x5fd   : > { %v4174_v31 = vmax.f32 %v4074_v24, 0.0  ;;  %v3853_v29 = vadd.f32 %v8441_v55, %v12125_v5  ;;  %v3412_v50 = vpop.f32.mrb[13].mxu1 }
 0x5fe   : > { %v4173_v58 = vmax.f32 %v4073_v32, 0.0  ;;  %v3850_v18 = vadd.f32 %v12121_v34, %v3412_v50  ;;  %8621 = vmatprep.mubr.bf16.mxu0 %v4231_v11 }
 0x5ff   : > { %v4076_v56 = vadd.f32 %v12225_v59, %v3853_v29 }
 0x600   : > { %v4075_v1 = vadd.f32 %v12225_v59, %v3850_v18  ;;  %v8444_v47 = vpop.f32.mrb[14].mxu1  ;;  %v4232_v43 = vpack.c.bf16 %v4174_v31, %v4173_v58 }
 0x601   : > { %v4176_v49 = vmax.f32 %v4076_v56, 0.0  ;;  %v3861_v35 = vadd.f32 %v12123_v4, %v8444_v47  ;;  %v3422_v44 = vpop.f32.mrb[15].mxu1 }
 0x602   : > { %v4175_v37 = vmax.f32 %v4075_v1, 0.0  ;;  %v3858_v5 = vadd.f32 %v12119_v62, %v3422_v44  ;;  %8622 = vmatmul.mubr.bf16.gmra.mrb[104].mxu0 %v4232_v43 }
 0x603   : > { %v4078_v25 = vadd.f32 %v12225_v59, %v3861_v35 }
 0x604   : > { %v4077_v34 = vadd.f32 %v12225_v59, %v3858_v5  ;;  %v8447_v30 = vpop.f32.mrb[16].mxu1  ;;  %v4233_v27 = vpack.c.bf16 %v4176_v49, %v4175_v37 }
 0x605   : > { %v4178_v14 = vmax.f32 %v4078_v25, 0.0  ;;  %v3869_v0 = vadd.f32 %v8447_v30, %v12133_v7  ;;  %v3432_v13 = vpop.f32.mrb[17].mxu1 }
 0x606   : > { %v4177_v63 = vmax.f32 %v4077_v34, 0.0  ;;  %v3866_v26 = vadd.f32 %v12129_v12, %v3432_v13  ;;  %8625 = vmatprep.mubr.bf16.mxu0 %v4233_v27 }
 0x607   : > { %v4080_v4 = vadd.f32 %v12225_v59, %v3869_v0 }
 0x608   : > { %v4079_v57 = vadd.f32 %v12225_v59, %v3866_v26  ;;  %v8450_v62 = vpop.f32.mrb[18].mxu1  ;;  %v4234_v24 = vpack.c.bf16 %v4178_v14, %v4177_v63 }
 0x609   : > { %v4180_v32 = vmax.f32 %v4080_v4, 0.0  ;;  %v3877_v55 = vadd.f32 %v12131_v2, %v8450_v62  ;;  %v3442_v11 = vpop.f32.mrb[19].mxu1 }
 0x60a   : > { %v4179_v31 = vmax.f32 %v4079_v57, 0.0  ;;  %v3874_v29 = vadd.f32 %v12127_v10, %v3442_v11  ;;  %8626 = vmatmul.mubr.bf16.gmra.mrb[108].mxu0 %v4234_v24 }
 0x60b   : > { %v4082_v7 = vadd.f32 %v12225_v59, %v3877_v55 }
 0x60c   : > { %v4081_v50 = vadd.f32 %v12225_v59, %v3874_v29  ;;  %v8453_v12 = vpop.f32.mrb[20].mxu1  ;;  %v4235_v58 = vpack.c.bf16 %v4180_v32, %v4179_v31 }
 0x60d   : > { %v4182_v18 = vmax.f32 %v4082_v7, 0.0  ;;  %v3885_v56 = vadd.f32 %v8453_v12, %v12141_v17  ;;  %v3452_v1 = vpop.f32.mrb[21].mxu1 }
 0x60e   : > { %v4181_v47 = vmax.f32 %v4081_v50, 0.0  ;;  %v3882_v43 = vadd.f32 %v12137_v38, %v3452_v1  ;;  %8629 = vmatprep.mubr.bf16.mxu0 %v4235_v58 }
 0x60f   : > { %v4084_v2 = vadd.f32 %v12225_v59, %v3885_v56 }
 0x610   : > { %v4083_v49 = vadd.f32 %v12225_v59, %v3882_v43  ;;  %v8456_v10 = vpop.f32.mrb[22].mxu1  ;;  %v4236_v35 = vpack.c.bf16 %v4182_v18, %v4181_v47 }
 0x611   : > { %v4184_v44 = vmax.f32 %v4084_v2, 0.0  ;;  %v3893_v37 = vadd.f32 %v12139_v16, %v8456_v10  ;;  %v3462_v5 = vpop.f32.mrb[23].mxu1 }
 0x612   : > { %v4183_v25 = vmax.f32 %v4083_v49, 0.0  ;;  %v3890_v34 = vadd.f32 %v12135_v3, %v3462_v5  ;;  %8630 = vmatmul.mubr.bf16.gmra.mrb[112].mxu0 %v4236_v35 }
 0x613   : > { %v4086_v17 = vadd.f32 %v12225_v59, %v3893_v37 }
 0x614   : > { %v4085_v30 = vadd.f32 %v12225_v59, %v3890_v34  ;;  %v8459_v38 = vpop.f32.mrb[24].mxu1  ;;  %v4237_v27 = vpack.c.bf16 %v4184_v44, %v4183_v25 }
 0x615   : > { %v4186_v14 = vmax.f32 %v4086_v17, 0.0  ;;  %v3901_v0 = vadd.f32 %v8459_v38, %v12149_v39  ;;  %v3472_v13 = vpop.f32.mrb[25].mxu1 }
 0x616   : > { %v4185_v63 = vmax.f32 %v4085_v30, 0.0  ;;  %v3898_v26 = vadd.f32 %v12145_v20, %v3472_v13  ;;  %8633 = vmatprep.mubr.bf16.mxu0 %v4237_v27 }
 0x617   : > { %v4088_v16 = vadd.f32 %v12225_v59, %v3901_v0 }
 0x618   : > { %v4087_v4 = vadd.f32 %v12225_v59, %v3898_v26  ;;  %v8462_v3 = vpop.f32.mrb[26].mxu1  ;;  %v4238_v57 = vpack.c.bf16 %v4186_v14, %v4185_v63 }
 0x619   : > { %v4188_v62 = vmax.f32 %v4088_v16, 0.0  ;;  %v3909_v24 = vadd.f32 %v12147_v21, %v8462_v3  ;;  %v3482_v32 = vpop.f32.mrb[27].mxu1 }
 0x61a   : > { %v4187_v55 = vmax.f32 %v4087_v4, 0.0  ;;  %v3906_v11 = vadd.f32 %v12143_v19, %v3482_v32  ;;  %8634 = vmatmul.mubr.bf16.gmra.mrb[116].mxu0 %v4238_v57 }
 0x61b   : > { %v4090_v39 = vadd.f32 %v12225_v59, %v3909_v24 }
 0x61c   : > { %v4089_v31 = vadd.f32 %v12225_v59, %v3906_v11  ;;  %v8465_v20 = vpop.f32.mrb[28].mxu1  ;;  %v4239_v29 = vpack.c.bf16 %v4188_v62, %v4187_v55 }
 0x61d   : > { %v4190_v7 = vmax.f32 %v4090_v39, 0.0  ;;  %v3917_v50 = vadd.f32 %v8465_v20, %v12157_v40  ;;  %v3492_v12 = vpop.f32.mrb[29].mxu1 }
 0x61e   : > { %v4189_v58 = vmax.f32 %v4089_v31, 0.0  ;;  %v3914_v18 = vadd.f32 %v12153_v23, %v3492_v12  ;;  %8637 = vmatprep.mubr.bf16.mxu0 %v4239_v29 }
 0x61f   : > { %v4092_v21 = vadd.f32 %v12225_v59, %v3917_v50 }
 0x620   : > { %v4091_v56 = vadd.f32 %v12225_v59, %v3914_v18  ;;  %v8468_v19 = vpop.f32.mrb[30].mxu1  ;;  %v4240_v1 = vpack.c.bf16 %v4190_v7, %v4189_v58 }
 0x621   : > { %v4192_v47 = vmax.f32 %v4092_v21, 0.0  ;;  %v3925_v43 = vadd.f32 %v12155_v15, %v8468_v19  ;;  %v3502_v2 = vpop.f32.mrb[31].mxu1 }
 0x622   : > { %v4191_v49 = vmax.f32 %v4091_v56, 0.0  ;;  %v3922_v10 = vadd.f32 %v12151_v9, %v3502_v2  ;;  %8638 = vmatmul.mubr.bf16.gmra.mrb[120].mxu0 %v4240_v1 }
 0x623   : > { %v4094_v40 = vadd.f32 %v12225_v59, %v3925_v43 }
 0x624   : > { %v4093_v35 = vadd.f32 %v12225_v59, %v3922_v10  ;;  %v8471_v23 = vpop.f32.mrb[32].mxu1  ;;  %v4241_v44 = vpack.c.bf16 %v4192_v47, %v4191_v49 }
 0x625   : > { %v4194_v37 = vmax.f32 %v4094_v40, 0.0  ;;  %v3933_v5 = vadd.f32 %v8471_v23, %v12165_v45  ;;  %v3512_v25 = vpop.f32.mrb[33].mxu1 }
 0x626   : > { %v4193_v34 = vmax.f32 %v4093_v35, 0.0  ;;  %v3930_v17 = vadd.f32 %v12161_v36, %v3512_v25  ;;  %8641 = vmatprep.mubr.bf16.mxu0 %v4241_v44 }
 0x627   : > { %v4096_v15 = vadd.f32 %v12225_v59, %v3933_v5 }
 0x628   : > { %v4095_v30 = vadd.f32 %v12225_v59, %v3930_v17  ;;  %v8474_v9 = vpop.f32.mrb[34].mxu1  ;;  %v4242_v38 = vpack.c.bf16 %v4194_v37, %v4193_v34 }
 0x629   : > { %v4196_v27 = vmax.f32 %v4096_v15, 0.0  ;;  %v3941_v14 = vadd.f32 %v12163_v22, %v8474_v9  ;;  %v3522_v0 = vpop.f32.mrb[35].mxu1 }
 0x62a   : > { %v4195_v13 = vmax.f32 %v4095_v30, 0.0  ;;  %v3938_v63 = vadd.f32 %v12159_v28, %v3522_v0  ;;  %8642 = vmatmul.mubr.bf16.gmra.mrb[124].mxu0 %v4242_v38 }
 0x62b   : > { %v4098_v45 = vadd.f32 %v12225_v59, %v3941_v14 }
 0x62c   : > { %v4097_v26 = vadd.f32 %v12225_v59, %v3938_v63  ;;  %v8477_v36 = vpop.f32.mrb[36].mxu1  ;;  %v4243_v16 = vpack.c.bf16 %v4196_v27, %v4195_v13 }
 0x62d   : > { %v4198_v4 = vmax.f32 %v4098_v45, 0.0  ;;  %v3949_v3 = vadd.f32 %v8477_v36, %v12173_v8  ;;  %v3532_v57 = vpop.f32.mrb[37].mxu1  ;;  %v13872_v36 = vld [vmem:[#allocation53_spill] sm:$0xff] }
 0x62e   : > { %v4197_v62 = vmax.f32 %v4097_v26, 0.0  ;;  %v3946_v24 = vadd.f32 %v12169_v41, %v3532_v57  ;;  %8645 = vmatprep.mubr.bf16.mxu0 %v4243_v16 }
 0x62f   : > { %v4100_v22 = vadd.f32 %v12225_v59, %v3949_v3 }
 0x630   : > { %v4099_v32 = vadd.f32 %v12225_v59, %v3946_v24  ;;  %v8480_v28 = vpop.f32.mrb[38].mxu1  ;;  %v4244_v55 = vpack.c.bf16 %v4198_v4, %v4197_v62  ;;  %v13873_v24 = vld [vmem:[#allocation54_spill] sm:$0xff] }
 0x631   : > { %v4200_v11 = vmax.f32 %v4100_v22, 0.0  ;;  %v3957_v39 = vadd.f32 %v12171_v42, %v8480_v28  ;;  %v3542_v31 = vpop.f32.mrb[39].mxu1  ;;  %v13874_v28 = vld [vmem:[#allocation52_spill] sm:$0xff] }
 0x632   : > { %v4199_v20 = vmax.f32 %v4099_v32, 0.0  ;;  %v3954_v29 = vadd.f32 %v12167_v46, %v3542_v31  ;;  %8646 = vmatmul.mubr.bf16.gmra.mrb[128].mxu0 %v4244_v55 }
 0x633   : > { %v4102_v8 = vadd.f32 %v12225_v59, %v3957_v39 }
 0x634   : > { %v4101_v7 = vadd.f32 %v12225_v59, %v3954_v29  ;;  %v8483_v41 = vpop.f32.mrb[40].mxu1  ;;  %v4245_v50 = vpack.c.bf16 %v4200_v11, %v4199_v20  ;;  %v9188_v11 = vld [vmem:[%s10659_s5 + $0x38] sm:$0xff]  }
 0x635   : > { %v4202_v12 = vmax.f32 %v4102_v8, 0.0  ;;  %v3965_v58 = vadd.f32 %v8483_v41, %v12181_v48  ;;  %v3552_v18 = vpop.f32.mrb[41].mxu1 }
 0x636   : > { %v4201_v21 = vmax.f32 %v4101_v7, 0.0  ;;  %v3962_v56 = vadd.f32 %v12177_v52, %v3552_v18  ;;  %8649 = vmatprep.mubr.bf16.mxu0 %v4245_v50  ;;  %v13875_v7 = vld [vmem:[#allocation58_spill] sm:$0xff] }
 0x637   : > { %v4104_v42 = vadd.f32 %v12225_v59, %v3965_v58  ;;  %v13876_v58 = vld [vmem:[#allocation56_spill] sm:$0xff] }
 0x638   : > { %v4103_v19 = vadd.f32 %v12225_v59, %v3962_v56  ;;  %v8486_v46 = vpop.f32.mrb[42].mxu1  ;;  %v4246_v1 = vpack.c.bf16 %v4202_v12, %v4201_v21 }
 0x639   : > { %v4204_v47 = vmax.f32 %v4104_v42, 0.0  ;;  %v3973_v43 = vadd.f32 %v12179_v54, %v8486_v46  ;;  %v3562_v2 = vpop.f32.mrb[43].mxu1 }
 0x63a   : > { %v4203_v49 = vmax.f32 %v4103_v19, 0.0  ;;  %v3970_v10 = vadd.f32 %v12175_v51, %v3562_v2  ;;  %8650 = vmatmul.mubr.bf16.gmra.mrb[132].mxu0 %v4246_v1  ;;  %v13877_v1 = vld [vmem:[#allocation57_spill] sm:$0xff] }
 0x63b   : > { %v4106_v48 = vadd.f32 %v12225_v59, %v3973_v43 }
 0x63c   : > { %v4105_v40 = vadd.f32 %v12225_v59, %v3970_v10  ;;  %v8489_v52 = vpop.f32.mrb[44].mxu1  ;;  %v4247_v35 = vpack.c.bf16 %v4204_v47, %v4203_v49  ;;  %v13878_v49 = vld [vmem:[#allocation55_spill] sm:$0xff] }
 0x63d   : > { %v4206_v23 = vmax.f32 %v4106_v48, 0.0  ;;  %v3981_v44 = vadd.f32 %v8489_v52, %v12189_v61  ;;  %v3572_v37 = vpop.f32.mrb[45].mxu1 }
 0x63e   : > { %v4205_v5 = vmax.f32 %v4105_v40, 0.0  ;;  %v3978_v25 = vadd.f32 %v12185_v33, %v3572_v37  ;;  %8653 = vmatprep.mubr.bf16.mxu0 %v4247_v35 }
 0x63f   : > { %v4108_v54 = vadd.f32 %v12225_v59, %v3981_v44  ;;  %v13879_v44 = vld [vmem:[#allocation62_spill] sm:$0xff] }
 0x640   : > { %v4107_v34 = vadd.f32 %v12225_v59, %v3978_v25  ;;  %v8492_v51 = vpop.f32.mrb[46].mxu1  ;;  %v4248_v17 = vpack.c.bf16 %v4206_v23, %v4205_v5 }
 0x641   : > { %v4208_v15 = vmax.f32 %v4108_v54, 0.0  ;;  %v3989_v30 = vadd.f32 %v12187_v60, %v8492_v51  ;;  %v3582_v9 = vpop.f32.mrb[47].mxu1  ;;  %v9187_v60 = vld [vmem:[%s10659_s5 + $0x30] sm:$0xff]   ;;  %s13889_s5 = scalar_lea.vmem [#allocation17], %s10634_s12 }
 0x642   : > { %v4207_v38 = vmax.f32 %v4107_v34, 0.0  ;;  %v3986_v27 = vadd.f32 %v12183_v53, %v3582_v9  ;;  %8654 = vmatmul.mubr.bf16.gmra.mrb[136].mxu0 %v4248_v17  ;;  %8689 = vmatprep.subr.bf16.mxu1 %v9187_v60  ;;  %v13880_v54 = vld [vmem:[#allocation60_spill] sm:$0xff] }
 0x643   : > { %v4110_v61 = vadd.f32 %v12225_v59, %v3989_v30  ;;  %8690 = vmatpush3.bf16.msra.mxu1 %v9187_v60 }
 0x644   : > { %v4109_v33 = vadd.f32 %v12225_v59, %v3986_v27  ;;  %v8495_v14 = vpop.f32.mrb[48].mxu1  ;;  %v4249_v0 = vpack.c.bf16 %v4208_v15, %v4207_v38  ;;  %8691 = vmatprep.subr.bf16.mxu1 %v9188_v11  ;;  %v13881_v38 = vld [vmem:[#allocation61_spill] sm:$0xff] }
 0x645   : > { %v4210_v13 = vmax.f32 %v4110_v61, 0.0  ;;  %v3997_v63 = vadd.f32 %v8495_v14, %v12197_v6  ;;  %v3592_v45 = vpop.f32.mrb[49].mxu1  ;;  %v13882_v14 = vld [vmem:[#allocation59_spill] sm:$0xff] }
 0x646   : > { %v4209_v26 = vmax.f32 %v4109_v33, 0.0  ;;  %v3994_v16 = vadd.f32 %v13872_v36, %v3592_v45  ;;  %8657 = vmatprep.mubr.bf16.mxu0 %v4249_v0 }
 0x647   : > { %v4112_v4 = vadd.f32 %v12225_v59, %v3997_v63  ;;  %8692 = vmatpush3.bf16.msra.mxu1 %v9188_v11 }
 0x648   : > { %v4111_v53 = vadd.f32 %v12225_v59, %v3994_v16  ;;  %v8498_v3 = vpop.f32.mrb[50].mxu1  ;;  %v4250_v57 = vpack.c.bf16 %v4210_v13, %v4209_v26  ;;  %v13883_v16 = vld [vmem:[#allocation66_spill] sm:$0xff] }
 0x649   : > { %v4212_v62 = vmax.f32 %v4112_v4, 0.0  ;;  %v4005_v22 = vadd.f32 %v13873_v24, %v8498_v3  ;;  %v3602_v32 = vpop.f32.mrb[51].mxu1  ;;  %v13884_v3 = vld [vmem:[#allocation64_spill] sm:$0xff] }
 0x64a   : > { %v4211_v6 = vmax.f32 %v4111_v53, 0.0  ;;  %v4002_v55 = vadd.f32 %v13874_v28, %v3602_v32  ;;  %8658 = vmatmul.mubr.bf16.gmra.mrb[140].mxu0 %v4250_v57  ;;  %v13885_v28 = vld [vmem:[#allocation65_spill] sm:$0xff] }
 0x64b   : > { %v4114_v39 = vadd.f32 %v12225_v59, %v4005_v22 }
 0x64c   : > { %v4113_v31 = vadd.f32 %v12225_v59, %v4002_v55  ;;  %v8501_v20 = vpop.f32.mrb[52].mxu1  ;;  %v4251_v29 = vpack.c.bf16 %v4212_v62, %v4211_v6 }
 0x64d   : > { %v4214_v8 = vmax.f32 %v4114_v39, 0.0  ;;  %v4013_v41 = vadd.f32 %v8501_v20, %v13875_v7  ;;  %v3612_v50 = vpop.f32.mrb[53].mxu1 }
 0x64e   : > { %v4213_v12 = vmax.f32 %v4113_v31, 0.0  ;;  %v4010_v18 = vadd.f32 %v13876_v58, %v3612_v50  ;;  %8661 = vmatprep.mubr.bf16.mxu0 %v4251_v29  ;;  %v13886_v31 = vld [vmem:[#allocation63_spill] sm:$0xff]  ;;  %v12365_v58 = vld [vmem:[%s13887_s19] ss:$0 sm:$0xff] }
 0x64f   : > { %v4116_v21 = vadd.f32 %v12225_v59, %v4013_v41 }
 0x650   : > { %v4115_v56 = vadd.f32 %v12225_v59, %v4010_v18  ;;  %v8504_v42 = vpop.f32.mrb[54].mxu1  ;;  %v4252_v19 = vpack.c.bf16 %v4214_v8, %v4213_v12 }
 0x651   : > { %v4216_v46 = vmax.f32 %v4116_v21, 0.0  ;;  %v4021_v47 = vadd.f32 %v13877_v1, %v8504_v42  ;;  %v3622_v43 = vpop.f32.mrb[55].mxu1 }
 0x652   : > { %v4215_v2 = vmax.f32 %v4115_v56, 0.0  ;;  %v4018_v10 = vadd.f32 %v13878_v49, %v3622_v43  ;;  %8662 = vmatmul.mubr.bf16.gmra.mrb[144].mxu0 %v4252_v19 }
 0x653   : > { %v4118_v48 = vadd.f32 %v12225_v59, %v4021_v47 }
 0x654   : > { %v4117_v40 = vadd.f32 %v12225_v59, %v4018_v10  ;;  %v8507_v52 = vpop.f32.mrb[56].mxu1  ;;  %v4253_v35 = vpack.c.bf16 %v4216_v46, %v4215_v2 }
 0x655   : > { %v4218_v23 = vmax.f32 %v4118_v48, 0.0  ;;  %v4029_v37 = vadd.f32 %v8507_v52, %v13879_v44  ;;  %v3632_v5 = vpop.f32.mrb[57].mxu1 }
 0x656   : > { %v4217_v25 = vmax.f32 %v4117_v40, 0.0  ;;  %v4026_v34 = vadd.f32 %v13880_v54, %v3632_v5  ;;  %8665 = vmatprep.mubr.bf16.mxu0 %v4253_v35 }
 0x657   : > { %v4120_v51 = vadd.f32 %v12225_v59, %v4029_v37 }
 0x658   : > { %v4119_v17 = vadd.f32 %v12225_v59, %v4026_v34  ;;  %v8510_v15 = vpop.f32.mrb[58].mxu1  ;;  %v4254_v30 = vpack.c.bf16 %v4218_v23, %v4217_v25 }
 0x659   : > { %v4220_v9 = vmax.f32 %v4120_v51, 0.0  ;;  %v4037_v27 = vadd.f32 %v13881_v38, %v8510_v15  ;;  %v3642_v61 = vpop.f32.mrb[59].mxu1 }
 0x65a   : > { %v4219_v33 = vmax.f32 %v4119_v17, 0.0  ;;  %v4034_v0 = vadd.f32 %v13882_v14, %v3642_v61  ;;  %8666 = vmatmul.mubr.bf16.gmra.mrb[148].mxu0 %v4254_v30 }
 0x65b   : > { %v4122_v13 = vadd.f32 %v12225_v59, %v4037_v27 }
 0x65c   : > { %v4121_v63 = vadd.f32 %v12225_v59, %v4034_v0  ;;  %v8513_v45 = vpop.f32.mrb[60].mxu1  ;;  %v4255_v26 = vpack.c.bf16 %v4220_v9, %v4219_v33 }
 0x65d   : > { %v4222_v36 = vmax.f32 %v4122_v13, 0.0  ;;  %v4045_v60 = vadd.f32 %v8513_v45, %v13883_v16  ;;  %v3652_v4 = vpop.f32.mrb[61].mxu1 }
 0x65e   : > { %v4221_v53 = vmax.f32 %v4121_v63, 0.0  ;;  %v4042_v57 = vadd.f32 %v13884_v3, %v3652_v4  ;;  %8669 = vmatprep.mubr.bf16.mxu0 %v4255_v26 }
 0x65f   : > { %v4124_v62 = vadd.f32 %v12225_v59, %v4045_v60 }
 0x660   : > { %v4123_v24 = vadd.f32 %v12225_v59, %v4042_v57  ;;  %v8516_v22 = vpop.f32.mrb[62].mxu1  ;;  %v4256_v32 = vpack.c.bf16 %v4222_v36, %v4221_v53 }
 0x661   : > { %v4224_v6 = vmax.f32 %v4124_v62, 0.0  ;;  %v4053_v55 = vadd.f32 %v13885_v28, %v8516_v22  ;;  %v3662_v11 = vpop.f32.mrb[63].mxu1 }
 0x662   : > { %v4223_v39 = vmax.f32 %v4123_v24, 0.0  ;;  %v4050_v20 = vadd.f32 %v13886_v31, %v3662_v11  ;;  %8670 = vmatmul.mubr.bf16.gmra.mrb[152].mxu0 %v4256_v32 }
 0x663   : > { %v4126_v29 = vadd.f32 %v12225_v59, %v4053_v55 }
 0x664   : > { %v4125_v8 = vadd.f32 %v12225_v59, %v4050_v20  ;;  %v4257_v7 = vpack.c.bf16 %v4224_v6, %v4223_v39 }
 0x665   : > { %v4226_v41 = vmax.f32 %v4126_v29, 0.0 }
 0x666   : > { %v4225_v50 = vmax.f32 %v4125_v8, 0.0  ;;  %8673 = vmatprep.mubr.bf16.mxu0 %v4257_v7 }
 0x668   : > { %v4258_v12 = vpack.c.bf16 %v4226_v41, %v4225_v50 }
 0x66a   : > { %8674 = vmatmul.mubr.bf16.gmra.mrb[156].mxu0 %v4258_v12 }
 0x6c5   : > { %v8615_v18 = vpop.f32.mrb[96].mxu0 }
 0x6c6   : > { %v4356_v21 = vadd.f32 %v8615_v18, %v12365_v58  ;;  %v4347_v56 = vpop.f32.mrb[97].mxu0 }
 0x6c7   : > { %v4348_v42 = vadd.f32 %v12365_v58, %v4347_v56  ;;  %v8616_v19 = vpop.f32.mrb[98].mxu0 }
 0x6c8   : > { %v4359_v46 = vadd.f32 %v8616_v19, %v12365_v58  ;;  %v4350_v1 = vpop.f32.mrb[99].mxu0  ;;  %v4604_v47 = vmax.f32 %v4356_v21, 0.0 }
 0x6c9   : > { %v4351_v59 = vadd.f32 %v12365_v58, %v4350_v1  ;;  %v4602_v2 = vmax.f32 %v4348_v42, 0.0 }
 0x6ca   : > { %v4605_v43 = vmax.f32 %v4359_v46, 0.0 }
 0x6cb   : > { %v4603_v49 = vmax.f32 %v4351_v59, 0.0 }
 0x6cc   : > { %v4667_v10 = vpack.c.bf16 %v4605_v43, %v4604_v47 }
 0x6cd   : > { %v4666_v48 = vpack.c.bf16 %v4603_v49, %v4602_v2  ;;  %v8619_v40 = vpop.f32.mrb[100].mxu0 }
 0x6ce   : > { %v4372_v52 = vadd.f32 %v8619_v40, %v12365_v58  ;;  %v4363_v35 = vpop.f32.mrb[101].mxu0 }
 0x6cf   : > { %v4364_v23 = vadd.f32 %v12365_v58, %v4363_v35  ;;  %v8620_v44 = vpop.f32.mrb[102].mxu0  ;;  %8693 = vmatprep.mubr.bf16.mxu1 %v4666_v48 }
 0x6d0   : > { %v4375_v37 = vadd.f32 %v8620_v44, %v12365_v58  ;;  %v4366_v5 = vpop.f32.mrb[103].mxu0  ;;  %8694 = vmatmul.mubr.bf16.vlgmr.msra.gmra.mrb[64].mxu1 %v4667_v10  ;;  %v4608_v54 = vmax.f32 %v4372_v52, 0.0 }
 0x6d1   : > { %v4367_v25 = vadd.f32 %v12365_v58, %v4366_v5  ;;  %v4606_v51 = vmax.f32 %v4364_v23, 0.0 }
 0x6d2   : > { %v4609_v34 = vmax.f32 %v4375_v37, 0.0 }
 0x6d3   : > { %v4607_v17 = vmax.f32 %v4367_v25, 0.0 }
 0x6d4   : > { %v4669_v15 = vpack.c.bf16 %v4609_v34, %v4608_v54 }
 0x6d5   : > { %v4668_v30 = vpack.c.bf16 %v4607_v17, %v4606_v51  ;;  %v8623_v9 = vpop.f32.mrb[104].mxu0 }
 0x6d6   : > { %v4388_v38 = vadd.f32 %v8623_v9, %v12365_v58  ;;  %v4379_v27 = vpop.f32.mrb[105].mxu0 }
 0x6d7   : > { %v4380_v61 = vadd.f32 %v12365_v58, %v4379_v27  ;;  %v8624_v33 = vpop.f32.mrb[106].mxu0  ;;  %8697 = vmatprep.mubr.bf16.mxu1 %v4668_v30 }
 0x6d8   : > { %v4391_v14 = vadd.f32 %v8624_v33, %v12365_v58  ;;  %v4382_v0 = vpop.f32.mrb[107].mxu0  ;;  %8698 = vmatmul.mubr.bf16.gmra.mrb[68].mxu1 %v4669_v15  ;;  %v4612_v63 = vmax.f32 %v4388_v38, 0.0 }
 0x6d9   : > { %v4383_v13 = vadd.f32 %v12365_v58, %v4382_v0  ;;  %v4610_v26 = vmax.f32 %v4380_v61, 0.0 }
 0x6da   : > { %v4613_v45 = vmax.f32 %v4391_v14, 0.0 }
 0x6db   : > { %v4611_v36 = vmax.f32 %v4383_v13, 0.0 }
 0x6dc   : > { %v4671_v16 = vpack.c.bf16 %v4613_v45, %v4612_v63 }
 0x6dd   : > { %v4670_v60 = vpack.c.bf16 %v4611_v36, %v4610_v26  ;;  %v8627_v4 = vpop.f32.mrb[108].mxu0 }
 0x6de   : > { %v4404_v53 = vadd.f32 %v8627_v4, %v12365_v58  ;;  %v4395_v3 = vpop.f32.mrb[109].mxu0 }
 0x6df   : > { %v4396_v57 = vadd.f32 %v12365_v58, %v4395_v3  ;;  %v8628_v62 = vpop.f32.mrb[110].mxu0  ;;  %8701 = vmatprep.mubr.bf16.mxu1 %v4670_v60 }
 0x6e0   : > { %v4407_v24 = vadd.f32 %v8628_v62, %v12365_v58  ;;  %v4398_v22 = vpop.f32.mrb[111].mxu0  ;;  %8702 = vmatmul.mubr.bf16.gmra.mrb[72].mxu1 %v4671_v16  ;;  %v4616_v6 = vmax.f32 %v4404_v53, 0.0 }
 0x6e1   : > { %v4399_v32 = vadd.f32 %v12365_v58, %v4398_v22  ;;  %v4614_v55 = vmax.f32 %v4396_v57, 0.0 }
 0x6e2   : > { %v4617_v28 = vmax.f32 %v4407_v24, 0.0 }
 0x6e3   : > { %v4615_v11 = vmax.f32 %v4399_v32, 0.0 }
 0x6e4   : > { %v4673_v39 = vpack.c.bf16 %v4617_v28, %v4616_v6 }
 0x6e5   : > { %v4672_v31 = vpack.c.bf16 %v4615_v11, %v4614_v55  ;;  %v8631_v20 = vpop.f32.mrb[112].mxu0 }
 0x6e6   : > { %v4420_v29 = vadd.f32 %v8631_v20, %v12365_v58  ;;  %v4411_v8 = vpop.f32.mrb[113].mxu0 }
 0x6e7   : > { %v4412_v7 = vadd.f32 %v12365_v58, %v4411_v8  ;;  %v8632_v41 = vpop.f32.mrb[114].mxu0  ;;  %8705 = vmatprep.mubr.bf16.mxu1 %v4672_v31 }
 0x6e8   : > { %v4423_v50 = vadd.f32 %v8632_v41, %v12365_v58  ;;  %v4414_v12 = vpop.f32.mrb[115].mxu0  ;;  %8706 = vmatmul.mubr.bf16.gmra.mrb[76].mxu1 %v4673_v39  ;;  %v4620_v21 = vmax.f32 %v4420_v29, 0.0 }
 0x6e9   : > { %v4415_v18 = vadd.f32 %v12365_v58, %v4414_v12  ;;  %v4618_v42 = vmax.f32 %v4412_v7, 0.0 }
 0x6ea   : > { %v4621_v56 = vmax.f32 %v4423_v50, 0.0 }
 0x6eb   : > { %v4619_v19 = vmax.f32 %v4415_v18, 0.0 }
 0x6ec   : > { %v4675_v46 = vpack.c.bf16 %v4621_v56, %v4620_v21 }
 0x6ed   : > { %v4674_v1 = vpack.c.bf16 %v4619_v19, %v4618_v42  ;;  %v8635_v59 = vpop.f32.mrb[116].mxu0 }
 0x6ee   : > { %v4436_v47 = vadd.f32 %v8635_v59, %v12365_v58  ;;  %v4427_v43 = vpop.f32.mrb[117].mxu0 }
 0x6ef   : > { %v4428_v2 = vadd.f32 %v12365_v58, %v4427_v43  ;;  %v8636_v49 = vpop.f32.mrb[118].mxu0  ;;  %8709 = vmatprep.mubr.bf16.mxu1 %v4674_v1 }
 0x6f0   : > { %v4439_v10 = vadd.f32 %v8636_v49, %v12365_v58  ;;  %v4430_v48 = vpop.f32.mrb[119].mxu0  ;;  %8710 = vmatmul.mubr.bf16.gmra.mrb[80].mxu1 %v4675_v46  ;;  %v4624_v52 = vmax.f32 %v4436_v47, 0.0 }
 0x6f1   : > { %v4431_v40 = vadd.f32 %v12365_v58, %v4430_v48  ;;  %v4622_v23 = vmax.f32 %v4428_v2, 0.0 }
 0x6f2   : > { %v4625_v35 = vmax.f32 %v4439_v10, 0.0 }
 0x6f3   : > { %v4623_v44 = vmax.f32 %v4431_v40, 0.0 }
 0x6f4   : > { %v4677_v37 = vpack.c.bf16 %v4625_v35, %v4624_v52 }
 0x6f5   : > { %v4676_v5 = vpack.c.bf16 %v4623_v44, %v4622_v23  ;;  %v8639_v25 = vpop.f32.mrb[120].mxu0 }
 0x6f6   : > { %v4452_v54 = vadd.f32 %v8639_v25, %v12365_v58  ;;  %v4443_v34 = vpop.f32.mrb[121].mxu0 }
 0x6f7   : > { %v4444_v51 = vadd.f32 %v12365_v58, %v4443_v34  ;;  %v8640_v17 = vpop.f32.mrb[122].mxu0  ;;  %8713 = vmatprep.mubr.bf16.mxu1 %v4676_v5 }
 0x6f8   : > { %v4455_v15 = vadd.f32 %v8640_v17, %v12365_v58  ;;  %v4446_v30 = vpop.f32.mrb[123].mxu0  ;;  %8714 = vmatmul.mubr.bf16.gmra.mrb[84].mxu1 %v4677_v37  ;;  %v4628_v38 = vmax.f32 %v4452_v54, 0.0 }
 0x6f9   : > { %v4447_v9 = vadd.f32 %v12365_v58, %v4446_v30  ;;  %v4626_v61 = vmax.f32 %v4444_v51, 0.0 }
 0x6fa   : > { %v4629_v27 = vmax.f32 %v4455_v15, 0.0 }
 0x6fb   : > { %v4627_v33 = vmax.f32 %v4447_v9, 0.0 }
 0x6fc   : > { %v4679_v14 = vpack.c.bf16 %v4629_v27, %v4628_v38 }
 0x6fd   : > { %v4678_v0 = vpack.c.bf16 %v4627_v33, %v4626_v61  ;;  %v8643_v13 = vpop.f32.mrb[124].mxu0 }
 0x6fe   : > { %v4468_v63 = vadd.f32 %v8643_v13, %v12365_v58  ;;  %v4459_v45 = vpop.f32.mrb[125].mxu0 }
 0x6ff   : > { %v4460_v26 = vadd.f32 %v12365_v58, %v4459_v45  ;;  %v8644_v36 = vpop.f32.mrb[126].mxu0  ;;  %8717 = vmatprep.mubr.bf16.mxu1 %v4678_v0 }
 0x700   : > { %v4471_v16 = vadd.f32 %v8644_v36, %v12365_v58  ;;  %v4462_v60 = vpop.f32.mrb[127].mxu0  ;;  %8718 = vmatmul.mubr.bf16.gmra.mrb[88].mxu1 %v4679_v14  ;;  %v4632_v53 = vmax.f32 %v4468_v63, 0.0 }
 0x701   : > { %v4463_v4 = vadd.f32 %v12365_v58, %v4462_v60  ;;  %v4630_v57 = vmax.f32 %v4460_v26, 0.0 }
 0x702   : > { %v4633_v3 = vmax.f32 %v4471_v16, 0.0 }
 0x703   : > { %v4631_v62 = vmax.f32 %v4463_v4, 0.0 }
 0x704   : > { %v4681_v24 = vpack.c.bf16 %v4633_v3, %v4632_v53 }
 0x705   : > { %v4680_v22 = vpack.c.bf16 %v4631_v62, %v4630_v57  ;;  %v8647_v32 = vpop.f32.mrb[128].mxu0 }
 0x706   : > { %v4484_v6 = vadd.f32 %v8647_v32, %v12365_v58  ;;  %v4475_v28 = vpop.f32.mrb[129].mxu0 }
 0x707   : > { %v4476_v55 = vadd.f32 %v12365_v58, %v4475_v28  ;;  %v8648_v11 = vpop.f32.mrb[130].mxu0  ;;  %8721 = vmatprep.mubr.bf16.mxu1 %v4680_v22 }
 0x708   : > { %v4487_v39 = vadd.f32 %v8648_v11, %v12365_v58  ;;  %v4478_v31 = vpop.f32.mrb[131].mxu0  ;;  %8722 = vmatmul.mubr.bf16.gmra.mrb[92].mxu1 %v4681_v24  ;;  %v4636_v29 = vmax.f32 %v4484_v6, 0.0 }
 0x709   : > { %v4479_v20 = vadd.f32 %v12365_v58, %v4478_v31  ;;  %v4634_v7 = vmax.f32 %v4476_v55, 0.0 }
 0x70a   : > { %v4637_v8 = vmax.f32 %v4487_v39, 0.0 }
 0x70b   : > { %v4635_v41 = vmax.f32 %v4479_v20, 0.0 }
 0x70c   : > { %v4683_v50 = vpack.c.bf16 %v4637_v8, %v4636_v29 }
 0x70d   : > { %v4682_v12 = vpack.c.bf16 %v4635_v41, %v4634_v7  ;;  %v8651_v18 = vpop.f32.mrb[132].mxu0 }
 0x70e   : > { %v4500_v21 = vadd.f32 %v8651_v18, %v12365_v58  ;;  %v4491_v56 = vpop.f32.mrb[133].mxu0 }
 0x70f   : > { %v4492_v42 = vadd.f32 %v12365_v58, %v4491_v56  ;;  %v8652_v19 = vpop.f32.mrb[134].mxu0  ;;  %8725 = vmatprep.mubr.bf16.mxu1 %v4682_v12 }
 0x710   : > { %v4503_v46 = vadd.f32 %v8652_v19, %v12365_v58  ;;  %v4494_v1 = vpop.f32.mrb[135].mxu0  ;;  %8726 = vmatmul.mubr.bf16.gmra.mrb[96].mxu1 %v4683_v50  ;;  %v4640_v47 = vmax.f32 %v4500_v21, 0.0 }
 0x711   : > { %v4495_v59 = vadd.f32 %v12365_v58, %v4494_v1  ;;  %v4638_v2 = vmax.f32 %v4492_v42, 0.0 }
 0x712   : > { %v4641_v43 = vmax.f32 %v4503_v46, 0.0 }
 0x713   : > { %v4639_v49 = vmax.f32 %v4495_v59, 0.0 }
 0x714   : > { %v4685_v10 = vpack.c.bf16 %v4641_v43, %v4640_v47 }
 0x715   : > { %v4684_v48 = vpack.c.bf16 %v4639_v49, %v4638_v2  ;;  %v8655_v40 = vpop.f32.mrb[136].mxu0 }
 0x716   : > { %v4516_v52 = vadd.f32 %v8655_v40, %v12365_v58  ;;  %v4507_v35 = vpop.f32.mrb[137].mxu0 }
 0x717   : > { %v4508_v23 = vadd.f32 %v12365_v58, %v4507_v35  ;;  %v8656_v44 = vpop.f32.mrb[138].mxu0  ;;  %8729 = vmatprep.mubr.bf16.mxu1 %v4684_v48 }
 0x718   : > { %v4519_v37 = vadd.f32 %v8656_v44, %v12365_v58  ;;  %v4510_v5 = vpop.f32.mrb[139].mxu0  ;;  %8730 = vmatmul.mubr.bf16.gmra.mrb[100].mxu1 %v4685_v10  ;;  %v4644_v54 = vmax.f32 %v4516_v52, 0.0 }
 0x719   : > { %v4511_v25 = vadd.f32 %v12365_v58, %v4510_v5  ;;  %v4642_v51 = vmax.f32 %v4508_v23, 0.0 }
 0x71a   : > { %v4645_v34 = vmax.f32 %v4519_v37, 0.0 }
 0x71b   : > { %v4643_v17 = vmax.f32 %v4511_v25, 0.0 }
 0x71c   : > { %v4687_v15 = vpack.c.bf16 %v4645_v34, %v4644_v54 }
 0x71d   : > { %v4686_v30 = vpack.c.bf16 %v4643_v17, %v4642_v51  ;;  %v8659_v9 = vpop.f32.mrb[140].mxu0 }
 0x71e   : > { %v4532_v38 = vadd.f32 %v8659_v9, %v12365_v58  ;;  %v4523_v27 = vpop.f32.mrb[141].mxu0 }
 0x71f   : > { %v4524_v61 = vadd.f32 %v12365_v58, %v4523_v27  ;;  %v8660_v33 = vpop.f32.mrb[142].mxu0  ;;  %8733 = vmatprep.mubr.bf16.mxu1 %v4686_v30 }
 0x720   : > { %v4535_v14 = vadd.f32 %v8660_v33, %v12365_v58  ;;  %v4526_v0 = vpop.f32.mrb[143].mxu0  ;;  %8734 = vmatmul.mubr.bf16.gmra.mrb[104].mxu1 %v4687_v15  ;;  %v4648_v63 = vmax.f32 %v4532_v38, 0.0 }
 0x721   : > { %v4527_v13 = vadd.f32 %v12365_v58, %v4526_v0  ;;  %v4646_v26 = vmax.f32 %v4524_v61, 0.0 }
 0x722   : > { %v4649_v45 = vmax.f32 %v4535_v14, 0.0 }
 0x723   : > { %v4647_v36 = vmax.f32 %v4527_v13, 0.0  ;;  %v13888_v13 = vld [vmem:[#allocation44_spill] sm:$0xff] }
 0x724   : > { %v4689_v16 = vpack.c.bf16 %v4649_v45, %v4648_v63  ;;  %v12434_v63 = vld [vmem:[%s13889_s5] ss:$0 sm:$0xff] }
 0x725   : > { %v4688_v60 = vpack.c.bf16 %v4647_v36, %v4646_v26  ;;  %v8663_v4 = vpop.f32.mrb[144].mxu0 }
 0x726   : > { %v4548_v53 = vadd.f32 %v8663_v4, %v12365_v58  ;;  %v4539_v3 = vpop.f32.mrb[145].mxu0 }
 0x727   : > { %v4540_v57 = vadd.f32 %v12365_v58, %v4539_v3  ;;  %v8664_v62 = vpop.f32.mrb[146].mxu0  ;;  %8737 = vmatprep.mubr.bf16.mxu1 %v4688_v60 }
 0x728   : > { %v4551_v24 = vadd.f32 %v8664_v62, %v12365_v58  ;;  %v4542_v22 = vpop.f32.mrb[147].mxu0  ;;  %8738 = vmatmul.mubr.bf16.gmra.mrb[108].mxu1 %v4689_v16  ;;  %v4652_v6 = vmax.f32 %v4548_v53, 0.0 }
 0x729   : > { %v4543_v32 = vadd.f32 %v12365_v58, %v4542_v22  ;;  %v4650_v55 = vmax.f32 %v4540_v57, 0.0 }
 0x72a   : > { %v4653_v28 = vmax.f32 %v4551_v24, 0.0 }
 0x72b   : > { %v4651_v11 = vmax.f32 %v4543_v32, 0.0 }
 0x72c   : > { %v4691_v39 = vpack.c.bf16 %v4653_v28, %v4652_v6 }
 0x72d   : > { %v4690_v31 = vpack.c.bf16 %v4651_v11, %v4650_v55  ;;  %v8667_v20 = vpop.f32.mrb[148].mxu0 }
 0x72e   : > { %v4564_v29 = vadd.f32 %v8667_v20, %v12365_v58  ;;  %v4555_v8 = vpop.f32.mrb[149].mxu0 }
 0x72f   : > { %v4556_v7 = vadd.f32 %v12365_v58, %v4555_v8  ;;  %v8668_v41 = vpop.f32.mrb[150].mxu0  ;;  %8741 = vmatprep.mubr.bf16.mxu1 %v4690_v31 }
 0x730   : > { %v4567_v50 = vadd.f32 %v8668_v41, %v12365_v58  ;;  %v4558_v12 = vpop.f32.mrb[151].mxu0  ;;  %8742 = vmatmul.mubr.bf16.gmra.mrb[112].mxu1 %v4691_v39  ;;  %v4656_v21 = vmax.f32 %v4564_v29, 0.0 }
 0x731   : > { %v4559_v18 = vadd.f32 %v12365_v58, %v4558_v12  ;;  %v4654_v42 = vmax.f32 %v4556_v7, 0.0 }
 0x732   : > { %v4657_v56 = vmax.f32 %v4567_v50, 0.0 }
 0x733   : > { %v4655_v19 = vmax.f32 %v4559_v18, 0.0 }
 0x734   : > { %v4693_v46 = vpack.c.bf16 %v4657_v56, %v4656_v21 }
 0x735   : > { %v4692_v1 = vpack.c.bf16 %v4655_v19, %v4654_v42  ;;  %v8671_v59 = vpop.f32.mrb[152].mxu0 }
 0x736   : > { %v4580_v47 = vadd.f32 %v8671_v59, %v12365_v58  ;;  %v4571_v43 = vpop.f32.mrb[153].mxu0 }
 0x737   : > { %v4572_v2 = vadd.f32 %v12365_v58, %v4571_v43  ;;  %v8672_v49 = vpop.f32.mrb[154].mxu0  ;;  %8745 = vmatprep.mubr.bf16.mxu1 %v4692_v1 }
 0x738   : > { %v4583_v10 = vadd.f32 %v8672_v49, %v12365_v58  ;;  %v4574_v48 = vpop.f32.mrb[155].mxu0  ;;  %8746 = vmatmul.mubr.bf16.gmra.mrb[116].mxu1 %v4693_v46  ;;  %v4660_v52 = vmax.f32 %v4580_v47, 0.0 }
 0x739   : > { %v4575_v40 = vadd.f32 %v12365_v58, %v4574_v48  ;;  %v4658_v23 = vmax.f32 %v4572_v2, 0.0 }
 0x73a   : > { %v4661_v35 = vmax.f32 %v4583_v10, 0.0 }
 0x73b   : > { %v4659_v44 = vmax.f32 %v4575_v40, 0.0 }
 0x73c   : > { %v4695_v37 = vpack.c.bf16 %v4661_v35, %v4660_v52 }
 0x73d   : > { %v4694_v5 = vpack.c.bf16 %v4659_v44, %v4658_v23  ;;  %v8675_v25 = vpop.f32.mrb[156].mxu0 }
 0x73e   : > { %v4596_v54 = vadd.f32 %v8675_v25, %v12365_v58  ;;  %v4587_v34 = vpop.f32.mrb[157].mxu0 }
 0x73f   : > { %v4588_v51 = vadd.f32 %v12365_v58, %v4587_v34  ;;  %v8676_v17 = vpop.f32.mrb[158].mxu0  ;;  %8749 = vmatprep.mubr.bf16.mxu1 %v4694_v5 }
 0x740   : > { %v4599_v15 = vadd.f32 %v8676_v17, %v12365_v58  ;;  %v4590_v30 = vpop.f32.mrb[159].mxu0  ;;  %8750 = vmatmul.mubr.bf16.gmra.mrb[120].mxu1 %v4695_v37  ;;  %v4664_v38 = vmax.f32 %v4596_v54, 0.0 }
 0x741   : > { %v4591_v9 = vadd.f32 %v12365_v58, %v4590_v30  ;;  %v4662_v61 = vmax.f32 %v4588_v51, 0.0 }
 0x742   : > { %v4665_v27 = vmax.f32 %v4599_v15, 0.0 }
 0x743   : > { %v4663_v33 = vmax.f32 %v4591_v9, 0.0 }
 0x744   : > { %v4697_v14 = vpack.c.bf16 %v4665_v27, %v4664_v38 }
 0x745   : > { %v4696_v0 = vpack.c.bf16 %v4663_v33, %v4662_v61 }
 0x747   : > { %8753 = vmatprep.mubr.bf16.mxu1 %v4696_v0 }
 0x748   : > { %8754 = vmatmul.mubr.bf16.gmra.mrb[124].mxu1 %v4697_v14 }
 0x749   : > { %6543 = vmatprep.mubr.bf16.mxu1 %v13888_v13 }
 0x7a3   : > { %v8695_v45 = vpop.f32.mrb[64].mxu1 }
 0x7a4   : > { %v12437_v26 = vadd.f32 %v8695_v45, %v12434_v63  ;;  %v4786_v36 = vpop.f32.mrb[65].mxu1 }
 0x7a5   : > { %v12440_v58 = vadd.f32 %v12434_v63, %v4786_v36  ;;  %v8696_v16 = vpop.f32.mrb[66].mxu1 }
 0x7a6   : > { %5045 = vadd.xlane.f32.xlu0 %v12437_v26  ;;  %v4789_v60 = vpop.f32.mrb[67].mxu1  ;;  %v12445_v4 = vadd.f32 %v8696_v16, %v12434_v63 }
 0x7a7   : > { %5041 = vadd.xlane.f32.xlu1 %v12440_v58  ;;  %v12452_v62 = vadd.f32 %v12434_v63, %v4789_v60 }
 0x7ab   : > { %v8699_v53 = vpop.f32.mrb[68].mxu1  ;;  %5047 = vadd.xlane.f32.xlu1 %v12445_v4 }
 0x7ac   : > { %v12449_v3 = vadd.f32 %v8699_v53, %v12434_v63  ;;  %v4802_v57 = vpop.f32.mrb[69].mxu1 }
 0x7ad   : > { %v8700_v24 = vpop.f32.mrb[70].mxu1  ;;  %v12457_v32 = vadd.f32 %v12434_v63, %v4802_v57 }
 0x7ae   : > { %5053 = vadd.xlane.f32.xlu0 %v12449_v3  ;;  %v4805_v22 = vpop.f32.mrb[71].mxu1  ;;  %v12460_v6 = vadd.f32 %v8700_v24, %v12434_v63 }
 0x7af   : > { %5043 = vadd.xlane.f32.xlu1 %v12452_v62  ;;  %v12468_v39 = vadd.f32 %v12434_v63, %v4805_v22 }
 0x7b2   : > { %5049 = vadd.xlane.f32.xlu0 %v12457_v32 }
 0x7b3   : > { %v8703_v28 = vpop.f32.mrb[72].mxu1  ;;  %5055 = vadd.xlane.f32.xlu1 %v12460_v6 }
 0x7b4   : > { %v12465_v55 = vadd.f32 %v8703_v28, %v12434_v63  ;;  %v4818_v11 = vpop.f32.mrb[73].mxu1 }
 0x7b5   : > { %v8704_v31 = vpop.f32.mrb[74].mxu1  ;;  %v12473_v29 = vadd.f32 %v12434_v63, %v4818_v11 }
 0x7b6   : > { %v4821_v20 = vpop.f32.mrb[75].mxu1  ;;  %5061 = vadd.xlane.f32.xlu0 %v12465_v55  ;;  %v12476_v8 = vadd.f32 %v8704_v31, %v12434_v63 }
 0x7b7   : > { %5051 = vadd.xlane.f32.xlu1 %v12468_v39  ;;  %v12484_v12 = vadd.f32 %v12434_v63, %v4821_v20 }
 0x7ba   : > { %5057 = vadd.xlane.f32.xlu0 %v12473_v29 }
 0x7bb   : > { %v8707_v7 = vpop.f32.mrb[76].mxu1  ;;  %5063 = vadd.xlane.f32.xlu1 %v12476_v8 }
 0x7bc   : > { %v12481_v41 = vadd.f32 %v8707_v7, %v12434_v63  ;;  %v4834_v50 = vpop.f32.mrb[77].mxu1 }
 0x7bd   : > { %v8708_v18 = vpop.f32.mrb[78].mxu1  ;;  %v12489_v56 = vadd.f32 %v12434_v63, %v4834_v50 }
 0x7be   : > { %v4837_v21 = vpop.f32.mrb[79].mxu1  ;;  %5069 = vadd.xlane.f32.xlu0 %v12481_v41  ;;  %v12492_v42 = vadd.f32 %v8708_v18, %v12434_v63 }
 0x7bf   : > { %5059 = vadd.xlane.f32.xlu1 %v12484_v12  ;;  %v12500_v59 = vadd.f32 %v12434_v63, %v4837_v21 }
 0x7c2   : > { %5065 = vadd.xlane.f32.xlu0 %v12489_v56 }
 0x7c3   : > { %v8711_v19 = vpop.f32.mrb[80].mxu1  ;;  %5071 = vadd.xlane.f32.xlu1 %v12492_v42 }
 0x7c4   : > { %v12497_v46 = vadd.f32 %v8711_v19, %v12434_v63  ;;  %v4850_v1 = vpop.f32.mrb[81].mxu1 }
 0x7c5   : > { %v8712_v47 = vpop.f32.mrb[82].mxu1  ;;  %v12505_v2 = vadd.f32 %v12434_v63, %v4850_v1 }
 0x7c6   : > { %v4853_v43 = vpop.f32.mrb[83].mxu1  ;;  %5077 = vadd.xlane.f32.xlu0 %v12497_v46  ;;  %v12508_v49 = vadd.f32 %v8712_v47, %v12434_v63 }
 0x7c7   : > { %5067 = vadd.xlane.f32.xlu1 %v12500_v59  ;;  %v12513_v48 = vadd.f32 %v12434_v63, %v4853_v43 }
 0x7ca   : > { %5073 = vadd.xlane.f32.xlu0 %v12505_v2 }
 0x7cb   : > { %v8715_v10 = vpop.f32.mrb[84].mxu1  ;;  %5079 = vadd.xlane.f32.xlu1 %v12508_v49 }
 0x7cc   : > { %v4866_v40 = vpop.f32.mrb[85].mxu1  ;;  %v12520_v44 = vadd.f32 %v8715_v10, %v12434_v63 }
 0x7cd   : > { %v8716_v52 = vpop.f32.mrb[86].mxu1  ;;  %v12528_v25 = vadd.f32 %v12434_v63, %v4866_v40 }
 0x7ce   : > { %v12516_v35 = vadd.f32 %v8716_v52, %v12434_v63  ;;  %v4869_v23 = vpop.f32.mrb[87].mxu1  ;;  %5075 = vadd.xlane.f32.xlu0 %v12513_v48 }
 0x7cf   : > { %v12524_v37 = vadd.f32 %v12434_v63, %v4869_v23 }
 0x7d0   : > { %5087 = vadd.xlane.f32.xlu1 %v12516_v35 }
 0x7d2   : > { %5085 = vadd.xlane.f32.xlu0 %v12520_v44 }
 0x7d3   : > { %v8719_v5 = vpop.f32.mrb[88].mxu1 }
 0x7d4   : > { %v4882_v54 = vpop.f32.mrb[89].mxu1  ;;  %5083 = vadd.xlane.f32.xlu1 %v12524_v37  ;;  %v12536_v15 = vadd.f32 %v8719_v5, %v12434_v63 }
 0x7d5   : > { %v8720_v34 = vpop.f32.mrb[90].mxu1  ;;  %v12544_v38 = vadd.f32 %v12434_v63, %v4882_v54 }
 0x7d6   : > { %v12532_v51 = vadd.f32 %v8720_v34, %v12434_v63  ;;  %v4885_v17 = vpop.f32.mrb[91].mxu1  ;;  %5081 = vadd.xlane.f32.xlu0 %v12528_v25 }
 0x7d7   : > { %v12540_v30 = vadd.f32 %v12434_v63, %v4885_v17 }
 0x7d8   : > { %5095 = vadd.xlane.f32.xlu1 %v12532_v51 }
 0x7da   : > { %5093 = vadd.xlane.f32.xlu0 %v12536_v15 }
 0x7db   : > { %v8723_v9 = vpop.f32.mrb[92].mxu1 }
 0x7dc   : > { %v4898_v27 = vpop.f32.mrb[93].mxu1  ;;  %5091 = vadd.xlane.f32.xlu1 %v12540_v30  ;;  %v12552_v0 = vadd.f32 %v8723_v9, %v12434_v63 }
 0x7dd   : > { %v8724_v61 = vpop.f32.mrb[94].mxu1  ;;  %v12560_v36 = vadd.f32 %v12434_v63, %v4898_v27 }
 0x7de   : > { %v12548_v33 = vadd.f32 %v8724_v61, %v12434_v63  ;;  %v4901_v14 = vpop.f32.mrb[95].mxu1  ;;  %5089 = vadd.xlane.f32.xlu0 %v12544_v38 }
 0x7df   : > { %v12556_v13 = vadd.f32 %v12434_v63, %v4901_v14 }
 0x7e0   : > { %5103 = vadd.xlane.f32.xlu1 %v12548_v33 }
 0x7e2   : > { %5101 = vadd.xlane.f32.xlu0 %v12552_v0 }
 0x7e3   : > { %v8727_v45 = vpop.f32.mrb[96].mxu1 }
 0x7e4   : > { %v4914_v16 = vpop.f32.mrb[97].mxu1  ;;  %5099 = vadd.xlane.f32.xlu1 %v12556_v13  ;;  %v12568_v24 = vadd.f32 %v8727_v45, %v12434_v63 }
 0x7e5   : > { %v8728_v60 = vpop.f32.mrb[98].mxu1  ;;  %v12576_v11 = vadd.f32 %v12434_v63, %v4914_v16 }
 0x7e6   : > { %v12564_v53 = vadd.f32 %v8728_v60, %v12434_v63  ;;  %v4917_v57 = vpop.f32.mrb[99].mxu1  ;;  %5097 = vadd.xlane.f32.xlu0 %v12560_v36 }
 0x7e7   : > { %v12572_v22 = vadd.f32 %v12434_v63, %v4917_v57 }
 0x7e8   : > { %5111 = vadd.xlane.f32.xlu1 %v12564_v53 }
 0x7ea   : > { %5109 = vadd.xlane.f32.xlu0 %v12568_v24 }
 0x7eb   : > { %v8731_v28 = vpop.f32.mrb[100].mxu1 }
 0x7ec   : > { %v4930_v31 = vpop.f32.mrb[101].mxu1  ;;  %5107 = vadd.xlane.f32.xlu1 %v12572_v22  ;;  %v12584_v18 = vadd.f32 %v8731_v28, %v12434_v63 }
 0x7ed   : > { %v8732_v20 = vpop.f32.mrb[102].mxu1  ;;  %v12592_v1 = vadd.f32 %v12434_v63, %v4930_v31 }
 0x7ee   : > { %v12580_v7 = vadd.f32 %v8732_v20, %v12434_v63  ;;  %v4933_v50 = vpop.f32.mrb[103].mxu1  ;;  %5105 = vadd.xlane.f32.xlu0 %v12576_v11 }
 0x7ef   : > { %v12588_v21 = vadd.f32 %v12434_v63, %v4933_v50 }
 0x7f0   : > { %5119 = vadd.xlane.f32.xlu1 %v12580_v7 }
 0x7f2   : > { %5117 = vadd.xlane.f32.xlu0 %v12584_v18 }
 0x7f3   : > { %v8735_v19 = vpop.f32.mrb[104].mxu1 }
 0x7f4   : > { %v4946_v47 = vpop.f32.mrb[105].mxu1  ;;  %5115 = vadd.xlane.f32.xlu1 %v12588_v21  ;;  %v12600_v52 = vadd.f32 %v8735_v19, %v12434_v63 }
 0x7f5   : > { %v8736_v43 = vpop.f32.mrb[106].mxu1  ;;  %v12608_v54 = vadd.f32 %v12434_v63, %v4946_v47 }
 0x7f6   : > { %v12596_v10 = vadd.f32 %v8736_v43, %v12434_v63  ;;  %v4949_v40 = vpop.f32.mrb[107].mxu1  ;;  %5113 = vadd.xlane.f32.xlu0 %v12592_v1 }
 0x7f7   : > { %v12604_v23 = vadd.f32 %v12434_v63, %v4949_v40 }
 0x7f8   : > { %5127 = vadd.xlane.f32.xlu1 %v12596_v10 }
 0x7fa   : > { %5125 = vadd.xlane.f32.xlu0 %v12600_v52 }
 0x7fb   : > { %v8739_v5 = vpop.f32.mrb[108].mxu1 }
 0x7fc   : > { %v4962_v34 = vpop.f32.mrb[109].mxu1  ;;  %5123 = vadd.xlane.f32.xlu1 %v12604_v23  ;;  %v12616_v61 = vadd.f32 %v8739_v5, %v12434_v63 }
 0x7fd   : > { %v8740_v17 = vpop.f32.mrb[110].mxu1  ;;  %v12624_v16 = vadd.f32 %v12434_v63, %v4962_v34 }
 0x7fe   : > { %v12612_v9 = vadd.f32 %v8740_v17, %v12434_v63  ;;  %v4965_v27 = vpop.f32.mrb[111].mxu1  ;;  %5121 = vadd.xlane.f32.xlu0 %v12608_v54  ;;  %13891 = vst [vmem:[#allocation54_spill] sm:$0xff] %v12616_v61 }
 0x7ff   : > { %v12620_v14 = vadd.f32 %v12434_v63, %v4965_v27  ;;  %13893 = vst [vmem:[#allocation58_spill] sm:$0xff] %v12624_v16 }
 0x800   : > { %13890 = vst [vmem:[#allocation53_spill] sm:$0xff] %v12612_v9  ;;  %5135 = vadd.xlane.f32.xlu1 %v12612_v9 }
 0x801   : > { %13892 = vst [vmem:[#allocation52_spill] sm:$0xff] %v12620_v14 }
 0x802   : > { %5133 = vadd.xlane.f32.xlu0 %v12616_v61 }
 0x803   : > { %v8743_v45 = vpop.f32.mrb[112].mxu1 }
 0x804   : > { %v4978_v60 = vpop.f32.mrb[113].mxu1  ;;  %5131 = vadd.xlane.f32.xlu1 %v12620_v14  ;;  %v12632_v20 = vadd.f32 %v8743_v45, %v12434_v63 }
 0x805   : > { %v8744_v57 = vpop.f32.mrb[114].mxu1  ;;  %v12640_v47 = vadd.f32 %v12434_v63, %v4978_v60 }
 0x806   : > { %v12628_v28 = vadd.f32 %v8744_v57, %v12434_v63  ;;  %v4981_v31 = vpop.f32.mrb[115].mxu1  ;;  %5129 = vadd.xlane.f32.xlu0 %v12624_v16 }
 0x807   : > { %v12636_v50 = vadd.f32 %v12434_v63, %v4981_v31 }
 0x808   : > { %5143 = vadd.xlane.f32.xlu1 %v12628_v28 }
 0x80a   : > { %5141 = vadd.xlane.f32.xlu0 %v12632_v20 }
 0x80b   : > { %v8747_v19 = vpop.f32.mrb[116].mxu1 }
 0x80c   : > { %v4994_v43 = vpop.f32.mrb[117].mxu1  ;;  %5139 = vadd.xlane.f32.xlu1 %v12636_v50  ;;  %v12648_v17 = vadd.f32 %v8747_v19, %v12434_v63 }
 0x80d   : > { %v8748_v40 = vpop.f32.mrb[118].mxu1  ;;  %v12656_v60 = vadd.f32 %v12434_v63, %v4994_v43 }
 0x80e   : > { %v12644_v5 = vadd.f32 %v8748_v40, %v12434_v63  ;;  %v4997_v34 = vpop.f32.mrb[119].mxu1  ;;  %5137 = vadd.xlane.f32.xlu0 %v12640_v47 }
 0x80f   : > { %v12652_v27 = vadd.f32 %v12434_v63, %v4997_v34 }
 0x810   : > { %5151 = vadd.xlane.f32.xlu1 %v12644_v5 }
 0x812   : > { %5149 = vadd.xlane.f32.xlu0 %v12648_v17 }
 0x813   : > { %v8751_v45 = vpop.f32.mrb[120].mxu1 }
 0x814   : > { %v5010_v57 = vpop.f32.mrb[121].mxu1  ;;  %5147 = vadd.xlane.f32.xlu1 %v12652_v27  ;;  %v12664_v9 = vadd.f32 %v8751_v45, %v12434_v63 }
 0x815   : > { %v8752_v31 = vpop.f32.mrb[122].mxu1  ;;  %v12672_v61 = vadd.f32 %v12434_v63, %v5010_v57 }
 0x816   : > { %v12660_v40 = vadd.f32 %v8752_v31, %v12434_v63  ;;  %v5013_v19 = vpop.f32.mrb[123].mxu1  ;;  %5145 = vadd.xlane.f32.xlu0 %v12656_v60  ;;  %13895 = vst [vmem:[#allocation57_spill] sm:$0xff] %v12664_v9 }
 0x817   : > { %v12668_v34 = vadd.f32 %v12434_v63, %v5013_v19  ;;  %13897 = vst [vmem:[#allocation62_spill] sm:$0xff] %v12672_v61 }
 0x818   : > { %13894 = vst [vmem:[#allocation56_spill] sm:$0xff] %v12660_v40  ;;  %5159 = vadd.xlane.f32.xlu1 %v12660_v40 }
 0x819   : > { %13896 = vst [vmem:[#allocation55_spill] sm:$0xff] %v12668_v34 }
 0x81a   : > { %5157 = vadd.xlane.f32.xlu0 %v12664_v9 }
 0x81b   : > { %v8755_v43 = vpop.f32.mrb[124].mxu1 }
 0x81c   : > { %5155 = vadd.xlane.f32.xlu1 %v12668_v34  ;;  %v5026_v31 = vpop.f32.mrb[125].mxu1  ;;  %v12680_v40 = vadd.f32 %v8755_v43, %v12434_v63 }
 0x81d   : > { %v8756_v14 = vpop.f32.mrb[126].mxu1  ;;  %v12688_v57 = vadd.f32 %v12434_v63, %v5026_v31 }
 0x81e   : > { %v12676_v16 = vadd.f32 %v8756_v14, %v12434_v63  ;;  %5153 = vadd.xlane.f32.xlu0 %v12672_v61  ;;  %v5029_v45 = vpop.f32.mrb[127].mxu1  ;;  %13899 = vst [vmem:[#allocation61_spill] sm:$0xff] %v12680_v40 }
 0x81f   : > { %v12684_v19 = vadd.f32 %v12434_v63, %v5029_v45  ;;  %13901 = vst [vmem:[#allocation66_spill] sm:$0xff] %v12688_v57 }
 0x820   : > { %13898 = vst [vmem:[#allocation60_spill] sm:$0xff] %v12676_v16  ;;  %5167 = vadd.xlane.f32.xlu1 %v12676_v16 }
 0x821   : > { %13900 = vst [vmem:[#allocation59_spill] sm:$0xff] %v12684_v19 }
 0x822   : > { %5165 = vadd.xlane.f32.xlu0 %v12680_v40 }
 0x824   : > { %5163 = vadd.xlane.f32.xlu1 %v12684_v19 }
 0x826   : > { %5161 = vadd.xlane.f32.xlu0 %v12688_v57 }
 0x833   : > { %v5046_v14 = vpop.xlane.xlu0 %5045 }
 0x834   : > { %v5172_v61 = vmul.f32 0.0078125, %v5046_v14  ;;  %v5042_v34 = vpop.xlane.xlu1 %5041 }
 0x835   : > { %v5170_v9 = vmul.f32 0.0078125, %v5042_v34 }
 0x836   : > { %v12693_v43 = vsub.f32 %v12437_v26, %v5172_v61 }
 0x837   : > { %v12698_v40 = vsub.f32 %v12440_v58, %v5170_v9 }
 0x838   : > { %13902 = vst [vmem:[#allocation64_spill] sm:$0xff] %v12693_v43  ;;  %v5048_v16 = vpop.xlane.xlu1 %5047  ;;  %v5300_v45 = vmul.f32 %v12693_v43, %v12693_v43 }
 0x839   : > { %v5173_v63 = vmul.f32 0.0078125, %v5048_v16  ;;  %v5298_v34 = vmul.f32 %v12698_v40, %v12698_v40 }
 0x83a   : > { %5366 = vadd.xlane.f32.xlu0 %v5300_v45 }
 0x83b   : > { %v5054_v31 = vpop.xlane.xlu0 %5053  ;;  %v12701_v19 = vsub.f32 %v12445_v4, %v5173_v63 }
 0x83c   : > { %v5176_v57 = vmul.f32 0.0078125, %v5054_v31  ;;  %v5044_v14 = vpop.xlane.xlu1 %5043 }
 0x83d   : > { %v5171_v26 = vmul.f32 0.0078125, %v5044_v14  ;;  %v5301_v61 = vmul.f32 %v12701_v19, %v12701_v19 }
 0x83e   : > { %5362 = vadd.xlane.f32.xlu0 %v5298_v34  ;;  %v12708_v43 = vsub.f32 %v12449_v3, %v5176_v57 }
 0x83f   : > { %v5050_v58 = vpop.xlane.xlu0 %5049  ;;  %5368 = vadd.xlane.f32.xlu1 %v5301_v61  ;;  %v12711_v9 = vsub.f32 %v12452_v62, %v5171_v26 }
 0x840   : > { %v5174_v4 = vmul.f32 0.0078125, %v5050_v58  ;;  %v5056_v16 = vpop.xlane.xlu1 %5055  ;;  %v5304_v45 = vmul.f32 %v12708_v43, %v12708_v43 }
 0x841   : > { %v5177_v63 = vmul.f32 0.0078125, %v5056_v16  ;;  %v5299_v31 = vmul.f32 %v12711_v9, %v12711_v9 }
 0x842   : > { %5374 = vadd.xlane.f32.xlu0 %v5304_v45  ;;  %v12718_v14 = vsub.f32 %v12457_v32, %v5174_v4 }
 0x843   : > { %v5062_v3 = vpop.xlane.xlu0 %5061  ;;  %5364 = vadd.xlane.f32.xlu1 %v5299_v31  ;;  %v12721_v57 = vsub.f32 %v12460_v6, %v5177_v63 }
 0x844   : > { %v5180_v62 = vmul.f32 0.0078125, %v5062_v3  ;;  %v5052_v34 = vpop.xlane.xlu1 %5051  ;;  %v5302_v26 = vmul.f32 %v12718_v14, %v12718_v14 }
 0x845   : > { %v5175_v61 = vmul.f32 0.0078125, %v5052_v34  ;;  %v5305_v58 = vmul.f32 %v12721_v57, %v12721_v57 }
 0x846   : > { %5370 = vadd.xlane.f32.xlu0 %v5302_v26  ;;  %v12728_v16 = vsub.f32 %v12465_v55, %v5180_v62 }
 0x847   : > { %v5058_v32 = vpop.xlane.xlu0 %5057  ;;  %5376 = vadd.xlane.f32.xlu1 %v5305_v58  ;;  %v12731_v4 = vsub.f32 %v12468_v39, %v5175_v61 }
 0x848   : > { %v5178_v6 = vmul.f32 0.0078125, %v5058_v32  ;;  %v5064_v45 = vpop.xlane.xlu1 %5063  ;;  %v5308_v63 = vmul.f32 %v12728_v16, %v12728_v16 }
 0x849   : > { %v5181_v31 = vmul.f32 0.0078125, %v5064_v45  ;;  %v5303_v3 = vmul.f32 %v12731_v4, %v12731_v4 }
 0x84a   : > { %5382 = vadd.xlane.f32.xlu0 %v5308_v63  ;;  %v12738_v34 = vsub.f32 %v12473_v29, %v5178_v6 }
 0x84b   : > { %v12740_v55 = vpop.xlane.xlu0 %5069  ;;  %5372 = vadd.xlane.f32.xlu1 %v5303_v3  ;;  %v12743_v62 = vsub.f32 %v12476_v8, %v5181_v31 }
 0x84c   : > { %13903 = vst [vmem:[#allocation65_spill] sm:$0xff] %v12738_v34  ;;  %v5060_v39 = vpop.xlane.xlu1 %5059  ;;  %v5306_v26 = vmul.f32 %v12738_v34, %v12738_v34 }
 0x84d   : > { %13904 = vst [vmem:[#allocation63_spill] sm:$0xff] %v12743_v62  ;;  %v5179_v61 = vmul.f32 0.0078125, %v5060_v39  ;;  %v5309_v58 = vmul.f32 %v12743_v62, %v12743_v62 }
 0x84e   : > { %5378 = vadd.xlane.f32.xlu0 %v5306_v26 }
 0x84f   : > { %v5066_v32 = vpop.xlane.xlu0 %5065  ;;  %5384 = vadd.xlane.f32.xlu1 %v5309_v58  ;;  %v12750_v29 = vsub.f32 %v12484_v12, %v5179_v61 }
 0x850   : > { %v12752_v6 = vpop.xlane.xlu1 %5071 }
 0x851   : > { %13905 = vst [vmem:[#allocation44_spill] sm:$0xff] %v12750_v29  ;;  %v5307_v8 = vmul.f32 %v12750_v29, %v12750_v29 }
 0x853   : > { %v5078_v45 = vpop.xlane.xlu0 %5077  ;;  %5380 = vadd.xlane.f32.xlu1 %v5307_v8 }
 0x854   : > { %v5188_v63 = vmul.f32 0.0078125, %v5078_v45  ;;  %v5068_v31 = vpop.xlane.xlu1 %5067 }
 0x856   : > { %v12757_v3 = vsub.f32 %v12497_v46, %v5188_v63 }
 0x857   : > { %v5074_v39 = vpop.xlane.xlu0 %5073 }
 0x858   : > { %v5186_v62 = vmul.f32 0.0078125, %v5074_v39  ;;  %v5080_v26 = vpop.xlane.xlu1 %5079  ;;  %v5316_v58 = vmul.f32 %v12757_v3, %v12757_v3 }
 0x859   : > { %v5189_v12 = vmul.f32 0.0078125, %v5080_v26 }
 0x85a   : > { %5398 = vadd.xlane.f32.xlu0 %v5316_v58  ;;  %v12762_v61 = vsub.f32 %v12505_v2, %v5186_v62 }
 0x85b   : > { %v5076_v34 = vpop.xlane.xlu0 %5075  ;;  %v12765_v29 = vsub.f32 %v12508_v49, %v5189_v12 }
 0x85c   : > { %13906 = vst [vmem:[#allocation67_spill] sm:$0xff] %v12762_v61  ;;  %v5187_v8 = vmul.f32 0.0078125, %v5076_v34  ;;  %v5314_v46 = vmul.f32 %v12762_v61, %v12762_v61 }
 0x85d   : > { %13907 = vst [vmem:[#allocation68_spill] sm:$0xff] %v12765_v29  ;;  %v5088_v45 = vpop.xlane.xlu1 %5087  ;;  %v5317_v63 = vmul.f32 %v12765_v29, %v12765_v29 }
 0x85e   : > { %v5193_v39 = vmul.f32 0.0078125, %v5088_v45  ;;  %5394 = vadd.xlane.f32.xlu0 %v5314_v46  ;;  %v12772_v26 = vsub.f32 %v12513_v48, %v5187_v8 }
 0x85f   : > { %v5086_v58 = vpop.xlane.xlu0 %5085  ;;  %5400 = vadd.xlane.f32.xlu1 %v5317_v63 }
 0x860   : > { %v5192_v2 = vmul.f32 0.0078125, %v5086_v58  ;;  %v5315_v49 = vmul.f32 %v12772_v26, %v12772_v26  ;;  %v12777_v34 = vsub.f32 %v12516_v35, %v5193_v39 }
 0x861   : > { %v5084_v62 = vpop.xlane.xlu1 %5083 }
 0x862   : > { %v5191_v12 = vmul.f32 0.0078125, %v5084_v62  ;;  %v12780_v61 = vsub.f32 %v12520_v44, %v5192_v2  ;;  %v5321_v45 = vmul.f32 %v12777_v34, %v12777_v34 }
 0x863   : > { %v5082_v29 = vpop.xlane.xlu0 %5081  ;;  %5396 = vadd.xlane.f32.xlu1 %v5315_v49 }
 0x864   : > { %v5190_v46 = vmul.f32 0.0078125, %v5082_v29  ;;  %v5320_v48 = vmul.f32 %v12780_v61, %v12780_v61  ;;  %v12787_v63 = vsub.f32 %v12524_v37, %v5191_v12 }
 0x865   : > { %v5096_v8 = vpop.xlane.xlu1 %5095 }
 0x866   : > { %13908 = vst [vmem:[#allocation69_spill] sm:$0xff] %v12787_v63  ;;  %v5197_v58 = vmul.f32 0.0078125, %v5096_v8  ;;  %5406 = vadd.xlane.f32.xlu0 %v5320_v48  ;;  %v12790_v35 = vsub.f32 %v12528_v25, %v5190_v46  ;;  %v5319_v49 = vmul.f32 %v12787_v63, %v12787_v63  ;;  %v5182_v46 = vmul.f32 0.0078125, %v5066_v32 }
 0x867   : > { %v5094_v44 = vpop.xlane.xlu0 %5093  ;;  %5408 = vadd.xlane.f32.xlu1 %v5321_v45  ;;  %v5183_v45 = vmul.f32 0.0078125, %v5068_v31 }
 0x868   : > { %v5196_v39 = vmul.f32 0.0078125, %v5094_v44  ;;  %v5318_v29 = vmul.f32 %v12790_v35, %v12790_v35  ;;  %v12797_v62 = vsub.f32 %v12532_v51, %v5197_v58 }
 0x869   : > { %v5092_v2 = vpop.xlane.xlu1 %5091 }
 0x86a   : > { %v5195_v37 = vmul.f32 0.0078125, %v5092_v2  ;;  %5402 = vadd.xlane.f32.xlu0 %v5318_v29  ;;  %v12800_v12 = vsub.f32 %v12536_v15, %v5196_v39  ;;  %v5325_v63 = vmul.f32 %v12797_v62, %v12797_v62  ;;  %v12815_v39 = vsub.f32 %v12489_v56, %v5182_v46 }
 0x86b   : > { %v5090_v25 = vpop.xlane.xlu0 %5089  ;;  %5404 = vadd.xlane.f32.xlu1 %v5319_v49  ;;  %v12820_v2 = vsub.f32 %v12500_v59, %v5183_v45  ;;  %v5184_v45 = vmul.f32 0.0078125, %v12740_v55 }
 0x86c   : > { %v5194_v48 = vmul.f32 0.0078125, %v5090_v25  ;;  %v5324_v8 = vmul.f32 %v12800_v12, %v12800_v12  ;;  %v12807_v51 = vsub.f32 %v12540_v30, %v5195_v37 }
 0x86d   : > { %v5104_v44 = vpop.xlane.xlu1 %5103  ;;  %v5311_v56 = vmul.f32 %v12820_v2, %v12820_v2 }
 0x86e   : > { %5414 = vadd.xlane.f32.xlu0 %v5324_v8  ;;  %v12810_v58 = vsub.f32 %v12544_v38, %v5194_v48  ;;  %v5323_v29 = vmul.f32 %v12807_v51, %v12807_v51  ;;  %v5201_v25 = vmul.f32 0.0078125, %v5104_v44 }
 0x86f   : > { %v5102_v15 = vpop.xlane.xlu0 %5101  ;;  %5416 = vadd.xlane.f32.xlu1 %v5325_v63  ;;  %v5310_v63 = vmul.f32 %v12815_v39, %v12815_v39 }
 0x870   : > { %v5322_v32 = vmul.f32 %v12810_v58, %v12810_v58  ;;  %v5200_v38 = vmul.f32 0.0078125, %v5102_v15 }
 0x871   : > { %v5100_v31 = vpop.xlane.xlu1 %5099 }
 0x872   : > { %v5199_v30 = vmul.f32 0.0078125, %v5100_v31  ;;  %5410 = vadd.xlane.f32.xlu0 %v5322_v32  ;;  %v12836_v44 = vsub.f32 %v12552_v0, %v5200_v38  ;;  %v5185_v32 = vmul.f32 0.0078125, %v12752_v6 }
 0x873   : > { %v5098_v49 = vpop.xlane.xlu0 %5097  ;;  %5412 = vadd.xlane.f32.xlu1 %v5323_v29  ;;  %v12842_v29 = vsub.f32 %v12548_v33, %v5201_v25 }
 0x874   : > { %v5198_v37 = vmul.f32 0.0078125, %v5098_v49  ;;  %v12827_v46 = vsub.f32 %v12556_v13, %v5199_v30  ;;  %v5328_v55 = vmul.f32 %v12836_v44, %v12836_v44  ;;  %v12847_v49 = vsub.f32 %v12481_v41, %v5184_v45 }
 0x875   : > { %v5112_v48 = vpop.xlane.xlu1 %5111  ;;  %v5329_v6 = vmul.f32 %v12842_v29, %v12842_v29 }
 0x876   : > { %5386 = vadd.xlane.f32.xlu0 %v5310_v63  ;;  %v12830_v59 = vsub.f32 %v12560_v36, %v5198_v37  ;;  %v5327_v13 = vmul.f32 %v12827_v46, %v12827_v46  ;;  %v5205_v0 = vmul.f32 0.0078125, %v5112_v48  ;;  %v12852_v37 = vsub.f32 %v12492_v42, %v5185_v32 }
 0x877   : > { %v5110_v8 = vpop.xlane.xlu0 %5109  ;;  %5388 = vadd.xlane.f32.xlu1 %v5311_v56  ;;  %v5312_v25 = vmul.f32 %v12847_v49, %v12847_v49 }
 0x878   : > { %v5326_v15 = vmul.f32 %v12830_v59, %v12830_v59  ;;  %v5204_v30 = vmul.f32 0.0078125, %v5110_v8  ;;  %v5313_v48 = vmul.f32 %v12852_v37, %v12852_v37  ;;  %v12862_v45 = vsub.f32 %v12564_v53, %v5205_v0 }
 0x879   : > { %v5108_v31 = vpop.xlane.xlu1 %5107 }
 0x87a   : > { %5418 = vadd.xlane.f32.xlu0 %v5326_v15  ;;  %v12857_v56 = vsub.f32 %v12568_v24, %v5204_v30  ;;  %v5203_v41 = vmul.f32 0.0078125, %v5108_v31  ;;  %v5333_v30 = vmul.f32 %v12862_v45, %v12862_v45 }
 0x87b   : > { %v5106_v36 = vpop.xlane.xlu0 %5105  ;;  %5420 = vadd.xlane.f32.xlu1 %v5327_v13 }
 0x87c   : > { %v5202_v63 = vmul.f32 0.0078125, %v5106_v36  ;;  %v5332_v13 = vmul.f32 %v12857_v56, %v12857_v56  ;;  %v12870_v24 = vsub.f32 %v12572_v22, %v5203_v41 }
 0x87d   : > { %v5120_v38 = vpop.xlane.xlu1 %5119 }
 0x87e   : > { %5422 = vadd.xlane.f32.xlu0 %v5328_v55  ;;  %v12865_v15 = vsub.f32 %v12576_v11, %v5202_v63  ;;  %v5209_v31 = vmul.f32 0.0078125, %v5120_v38  ;;  %v5331_v38 = vmul.f32 %v12870_v24, %v12870_v24 }
 0x87f   : > { %v5118_v33 = vpop.xlane.xlu0 %5117  ;;  %5424 = vadd.xlane.f32.xlu1 %v5329_v6 }
 0x880   : > { %v5208_v32 = vmul.f32 0.0078125, %v5118_v33  ;;  %v5330_v0 = vmul.f32 %v12865_v15, %v12865_v15  ;;  %v12880_v6 = vsub.f32 %v12580_v7, %v5209_v31 }
 0x881   : > { %v5116_v8 = vpop.xlane.xlu1 %5115 }
 0x882   : > { %5390 = vadd.xlane.f32.xlu0 %v5312_v25  ;;  %v12875_v55 = vsub.f32 %v12584_v18, %v5208_v32  ;;  %v5207_v22 = vmul.f32 0.0078125, %v5116_v8  ;;  %v5337_v8 = vmul.f32 %v12880_v6, %v12880_v6 }
 0x883   : > { %v5114_v42 = vpop.xlane.xlu0 %5113  ;;  %5392 = vadd.xlane.f32.xlu1 %v5313_v48 }
 0x884   : > { %v5206_v11 = vmul.f32 0.0078125, %v5114_v42  ;;  %v5336_v41 = vmul.f32 %v12875_v55, %v12875_v55  ;;  %v12890_v48 = vsub.f32 %v12588_v21, %v5207_v22 }
 0x885   : > { %v5128_v36 = vpop.xlane.xlu1 %5127 }
 0x886   : > { %5430 = vadd.xlane.f32.xlu0 %v5332_v13  ;;  %v12885_v25 = vsub.f32 %v12592_v1, %v5206_v11  ;;  %v5213_v7 = vmul.f32 0.0078125, %v5128_v36 }
 0x887   : > { %v5126_v53 = vpop.xlane.xlu0 %5125  ;;  %5432 = vadd.xlane.f32.xlu1 %v5333_v30 }
 0x888   : > { %v5212_v18 = vmul.f32 0.0078125, %v5126_v53  ;;  %v5334_v31 = vmul.f32 %v12885_v25, %v12885_v25  ;;  %v12904_v21 = vsub.f32 %v12596_v10, %v5213_v7  ;;  %v5335_v53 = vmul.f32 %v12890_v48, %v12890_v48 }
 0x889   : > { %v5124_v33 = vpop.xlane.xlu1 %5123 }
 0x88a   : > { %5426 = vadd.xlane.f32.xlu0 %v5330_v0  ;;  %v12899_v1 = vsub.f32 %v12600_v52, %v5212_v18  ;;  %v5211_v36 = vmul.f32 0.0078125, %v5124_v33  ;;  %v5341_v33 = vmul.f32 %v12904_v21, %v12904_v21 }
 0x88b   : > { %v5122_v63 = vpop.xlane.xlu0 %5121  ;;  %5428 = vadd.xlane.f32.xlu1 %v5331_v38 }
 0x88c   : > { %v5210_v13 = vmul.f32 0.0078125, %v5122_v63  ;;  %v5340_v52 = vmul.f32 %v12899_v1, %v12899_v1  ;;  %v12916_v22 = vsub.f32 %v12604_v23, %v5211_v36 }
 0x88d   : > { %v12892_v42 = vpop.xlane.xlu1 %5135 }
 0x88e   : > { %5438 = vadd.xlane.f32.xlu0 %v5336_v41  ;;  %v12911_v0 = vsub.f32 %v12608_v54, %v5210_v13  ;;  %v5339_v23 = vmul.f32 %v12916_v22, %v12916_v22 }
 0x88f   : > { %v12896_v32 = vpop.xlane.xlu0 %5133  ;;  %5440 = vadd.xlane.f32.xlu1 %v5337_v8 }
 0x890   : > { %v5338_v41 = vmul.f32 %v12911_v0, %v12911_v0 }
 0x891   : > { %v12906_v30 = vpop.xlane.xlu1 %5131 }
 0x892   : > { %5434 = vadd.xlane.f32.xlu0 %v5334_v31 }
 0x893   : > { %v5130_v11 = vpop.xlane.xlu0 %5129  ;;  %5436 = vadd.xlane.f32.xlu1 %v5335_v53 }
 0x895   : > { %v5144_v10 = vpop.xlane.xlu1 %5143 }
 0x896   : > { %v5221_v38 = vmul.f32 0.0078125, %v5144_v10  ;;  %5446 = vadd.xlane.f32.xlu0 %v5340_v52 }
 0x897   : > { %v5142_v63 = vpop.xlane.xlu0 %5141  ;;  %5448 = vadd.xlane.f32.xlu1 %v5341_v33 }
 0x898   : > { %v5220_v18 = vmul.f32 0.0078125, %v5142_v63  ;;  %v12923_v54 = vsub.f32 %v12628_v28, %v5221_v38 }
 0x899   : > { %v5140_v7 = vpop.xlane.xlu1 %5139 }
 0x89a   : > { %13909 = vst [vmem:[#allocation70_spill] sm:$0xff] %v12923_v54  ;;  %v12928_v8 = vsub.f32 %v12632_v20, %v5220_v18  ;;  %v5219_v13 = vmul.f32 0.0078125, %v5140_v7  ;;  %5442 = vadd.xlane.f32.xlu0 %v5338_v41  ;;  %v5349_v10 = vmul.f32 %v12923_v54, %v12923_v54 }
 0x89b   : > { %v5138_v31 = vpop.xlane.xlu0 %5137  ;;  %5444 = vadd.xlane.f32.xlu1 %v5339_v23 }
 0x89c   : > { %13910 = vst [vmem:[#allocation71_spill] sm:$0xff] %v12928_v8  ;;  %v5218_v36 = vmul.f32 0.0078125, %v5138_v31  ;;  %v5348_v53 = vmul.f32 %v12928_v8, %v12928_v8  ;;  %v12933_v52 = vsub.f32 %v12636_v50, %v5219_v13 }
 0x89d   : > { %v5152_v28 = vpop.xlane.xlu1 %5151 }
 0x89e   : > { %13911 = vst [vmem:[#allocation72_spill] sm:$0xff] %v12933_v52  ;;  %v12938_v33 = vsub.f32 %v12640_v47, %v5218_v36  ;;  %v5225_v20 = vmul.f32 0.0078125, %v5152_v28  ;;  %5462 = vadd.xlane.f32.xlu0 %v5348_v53  ;;  %v5347_v7 = vmul.f32 %v12933_v52, %v12933_v52 }
 0x89f   : > { %v5150_v38 = vpop.xlane.xlu0 %5149  ;;  %5464 = vadd.xlane.f32.xlu1 %v5349_v10 }
 0x8a0   : > { %13912 = vst [vmem:[#allocation73_spill] sm:$0xff] %v12938_v33  ;;  %v5224_v63 = vmul.f32 0.0078125, %v5150_v38  ;;  %v5346_v18 = vmul.f32 %v12938_v33, %v12938_v33  ;;  %v12943_v41 = vsub.f32 %v12644_v5, %v5225_v20 }
 0x8a1   : > { %v5148_v50 = vpop.xlane.xlu1 %5147 }
 0x8a2   : > { %13913 = vst [vmem:[#allocation74_spill] sm:$0xff] %v12943_v41  ;;  %v12948_v23 = vsub.f32 %v12648_v17, %v5224_v63  ;;  %v5223_v47 = vmul.f32 0.0078125, %v5148_v50  ;;  %5458 = vadd.xlane.f32.xlu0 %v5346_v18  ;;  %v5353_v28 = vmul.f32 %v12943_v41, %v12943_v41  ;;  %v13917_v18 = vld [vmem:[#allocation56_spill] sm:$0xff] }
 0x8a3   : > { %v5146_v13 = vpop.xlane.xlu0 %5145  ;;  %5460 = vadd.xlane.f32.xlu1 %v5347_v7 }
 0x8a4   : > { %13914 = vst [vmem:[#allocation75_spill] sm:$0xff] %v12948_v23  ;;  %v5222_v31 = vmul.f32 0.0078125, %v5146_v13  ;;  %v5352_v36 = vmul.f32 %v12948_v23, %v12948_v23  ;;  %v12953_v53 = vsub.f32 %v12652_v27, %v5223_v47  ;;  %v13919_v47 = vld [vmem:[#allocation57_spill] sm:$0xff] }
 0x8a5   : > { %v5160_v5 = vpop.xlane.xlu1 %5159 }
 0x8a6   : > { %13915 = vst [vmem:[#allocation76_spill] sm:$0xff] %v12953_v53  ;;  %v12958_v10 = vsub.f32 %v12656_v60, %v5222_v31  ;;  %v5229_v17 = vmul.f32 0.0078125, %v5160_v5  ;;  %5470 = vadd.xlane.f32.xlu0 %v5352_v36  ;;  %v5351_v7 = vmul.f32 %v12953_v53, %v12953_v53  ;;  %v5214_v36 = vmul.f32 0.0078125, %v5130_v11  ;;  %v13925_v11 = vld [vmem:[#allocation58_spill] sm:$0xff] }
 0x8a7   : > { %v5158_v20 = vpop.xlane.xlu0 %5157  ;;  %5472 = vadd.xlane.f32.xlu1 %v5353_v28 }
 0x8a8   : > { %13916 = vst [vmem:[#allocation77_spill] sm:$0xff] %v12958_v10  ;;  %v5228_v38 = vmul.f32 0.0078125, %v5158_v20  ;;  %v5350_v63 = vmul.f32 %v12958_v10, %v12958_v10  ;;  %v12963_v50 = vsub.f32 %v13917_v18, %v5229_v17  ;;  %v5215_v20 = vmul.f32 0.0078125, %v12906_v30  ;;  %v13921_v17 = vld [vmem:[#allocation55_spill] sm:$0xff] }
 0x8a9   : > { %v5156_v27 = vpop.xlane.xlu1 %5155 }
 0x8aa   : > { %13918 = vst [vmem:[#allocation56_spill] sm:$0xff] %v12963_v50  ;;  %v12968_v13 = vsub.f32 %v13919_v47, %v5228_v38  ;;  %v5227_v60 = vmul.f32 0.0078125, %v5156_v27  ;;  %5466 = vadd.xlane.f32.xlu0 %v5350_v63  ;;  %v5357_v53 = vmul.f32 %v12963_v50, %v12963_v50  ;;  %v13923_v38 = vld [vmem:[#allocation62_spill] sm:$0xff]  ;;  %v6015_v63 = vld [vmem:[#allocation5 + $0x8] sm:$0xff] }
 0x8ab   : > { %v5154_v31 = vpop.xlane.xlu0 %5153  ;;  %5468 = vadd.xlane.f32.xlu1 %v5351_v7  ;;  %6142 = vmatprep.mubr.f32.mxu0 %v6015_v63  ;;  %v12982_v7 = vsub.f32 %v13925_v11, %v5214_v36  ;;  %v13929_v11 = vld [vmem:[#allocation59_spill] sm:$0xff] }
 0x8ac   : > { %13920 = vst [vmem:[#allocation57_spill] sm:$0xff] %v12968_v13  ;;  %v5226_v5 = vmul.f32 0.0078125, %v5154_v31  ;;  %v5356_v28 = vmul.f32 %v12968_v13, %v12968_v13  ;;  %v12974_v18 = vsub.f32 %v13921_v17, %v5227_v60  ;;  %v13927_v60 = vld [vmem:[#allocation52_spill] sm:$0xff] }
 0x8ad   : > { %v5168_v10 = vpop.xlane.xlu1 %5167  ;;  %13926 = vst [vmem:[#allocation58_spill] sm:$0xff] %v12982_v7  ;;  %v12987_v31 = vsub.f32 %v13927_v60, %v5215_v20  ;;  %v5342_v36 = vmul.f32 %v12982_v7, %v12982_v7  ;;  %v13931_v60 = vld [vmem:[#allocation66_spill] sm:$0xff] }
 0x8ae   : > { %13922 = vst [vmem:[#allocation55_spill] sm:$0xff] %v12974_v18  ;;  %v12979_v47 = vsub.f32 %v13923_v38, %v5226_v5  ;;  %5478 = vadd.xlane.f32.xlu0 %v5356_v28  ;;  %v5355_v50 = vmul.f32 %v12974_v18, %v12974_v18  ;;  %v5233_v63 = vmul.f32 0.0078125, %v5168_v10  ;;  %v5217_v10 = vmul.f32 0.0078125, %v12892_v42 }
 0x8af   : > { %v5166_v27 = vpop.xlane.xlu0 %5165  ;;  %5480 = vadd.xlane.f32.xlu1 %v5357_v53  ;;  %13928 = vst [vmem:[#allocation52_spill] sm:$0xff] %v12987_v31  ;;  %v5343_v20 = vmul.f32 %v12987_v31, %v12987_v31 }
 0x8b0   : > { %13924 = vst [vmem:[#allocation62_spill] sm:$0xff] %v12979_v47  ;;  %v5354_v30 = vmul.f32 %v12979_v47, %v12979_v47  ;;  %v5232_v38 = vmul.f32 0.0078125, %v5166_v27 }
 0x8b1   : > { %v5164_v17 = vpop.xlane.xlu1 %5163 }
 0x8b2   : > { %v5231_v5 = vmul.f32 0.0078125, %v5164_v17  ;;  %5474 = vadd.xlane.f32.xlu0 %v5354_v30  ;;  %v13933_v30 = vld [vmem:[#allocation61_spill] sm:$0xff] }
 0x8b3   : > { %5476 = vadd.xlane.f32.xlu1 %v5355_v50  ;;  %v5162_v28 = vpop.xlane.xlu0 %5161  ;;  %v5216_v50 = vmul.f32 0.0078125, %v12896_v32  ;;  %v13003_v27 = vsub.f32 %v13933_v30, %v5232_v38  ;;  %v13939_v38 = vld [vmem:[#allocation53_spill] sm:$0xff] }
 0x8b4   : > { %v5230_v53 = vmul.f32 0.0078125, %v5162_v28  ;;  %v12994_v13 = vsub.f32 %v13929_v11, %v5231_v5  ;;  %v13935_v5 = vld [vmem:[#allocation60_spill] sm:$0xff] }
 0x8b5   : > { %13934 = vst [vmem:[#allocation61_spill] sm:$0xff] %v13003_v27  ;;  %v13009_v28 = vsub.f32 %v13935_v5, %v5233_v63  ;;  %v5360_v32 = vmul.f32 %v13003_v27, %v13003_v27 }
 0x8b6   : > { %13930 = vst [vmem:[#allocation59_spill] sm:$0xff] %v12994_v13  ;;  %v12999_v47 = vsub.f32 %v13931_v60, %v5230_v53  ;;  %5450 = vadd.xlane.f32.xlu0 %v5342_v36  ;;  %v5359_v11 = vmul.f32 %v12994_v13, %v12994_v13  ;;  %v13937_v53 = vld [vmem:[#allocation54_spill] sm:$0xff] }
 0x8b7   : > { %5452 = vadd.xlane.f32.xlu1 %v5343_v20  ;;  %13936 = vst [vmem:[#allocation60_spill] sm:$0xff] %v13009_v28  ;;  %v13014_v36 = vsub.f32 %v13937_v53, %v5216_v50  ;;  %v13019_v20 = vsub.f32 %v13939_v38, %v5217_v10  ;;  %v5361_v42 = vmul.f32 %v13009_v28, %v13009_v28 }
 0x8b8   : > { %13932 = vst [vmem:[#allocation66_spill] sm:$0xff] %v12999_v47  ;;  %v5358_v17 = vmul.f32 %v12999_v47, %v12999_v47 }
 0x8b9   : > { %13938 = vst [vmem:[#allocation54_spill] sm:$0xff] %v13014_v36  ;;  %13940 = vst [vmem:[#allocation53_spill] sm:$0xff] %v13019_v20  ;;  %v5344_v63 = vmul.f32 %v13014_v36, %v13014_v36  ;;  %v5345_v60 = vmul.f32 %v13019_v20, %v13019_v20 }
 0x8ba   : > { %5482 = vadd.xlane.f32.xlu0 %v5358_v17 }
 0x8bb   : > { %5484 = vadd.xlane.f32.xlu1 %v5359_v11 }
 0x8be   : > { %5486 = vadd.xlane.f32.xlu0 %v5360_v32 }
 0x8bf   : > { %5488 = vadd.xlane.f32.xlu1 %v5361_v42 }
 0x8c2   : > { %5454 = vadd.xlane.f32.xlu0 %v5344_v63 }
 0x8c3   : > { %5456 = vadd.xlane.f32.xlu1 %v5345_v60 }
 0x8c7   : > { %v5367_v50 = vpop.xlane.xlu0 %5366 }
 0x8c8   : > { %v5492_v30 = vmul.f32 0.0078125, %v5367_v50 }
 0x8ca   : > { %v5556_v17 = vadd.f32 1e-05, %v5492_v30 }
 0x8cb   : > { %v5363_v5 = vpop.xlane.xlu0 %5362 }
 0x8cc   : > { %9221 = vrsqrt.f32 %v5556_v17  ;;  %v5490_v10 = vmul.f32 0.0078125, %v5363_v5  ;;  %v5369_v11 = vpop.xlane.xlu1 %5368 }
 0x8cd   : > { %v5493_v53 = vmul.f32 0.0078125, %v5369_v11 }
 0x8ce   : > { %v5554_v38 = vadd.f32 1e-05, %v5490_v10  ;;  %v13029_v10 = vld [vmem:[%s13941_s8] ss:$0 sm:$0xff] }
 0x8cf   : > { %v5557_v28 = vadd.f32 1e-05, %v5493_v53  ;;  %v5375_v32 = vpop.xlane.xlu0 %5374  ;;  %v13942_v53 = vld [vmem:[#allocation64_spill] sm:$0xff] }
 0x8d0   : > { %9223 = vrsqrt.f32 %v5554_v38  ;;  %v5496_v42 = vmul.f32 0.0078125, %v5375_v32  ;;  %v5365_v36 = vpop.xlane.xlu1 %5364 }
 0x8d1   : > { %9225 = vrsqrt.f32 %v5557_v28  ;;  %v5491_v27 = vmul.f32 0.0078125, %v5365_v36 }
 0x8d2   : > { %v5560_v20 = vadd.f32 1e-05, %v5496_v42 }
 0x8d3   : > { %v5555_v63 = vadd.f32 1e-05, %v5491_v27  ;;  %v5371_v60 = vpop.xlane.xlu0 %5370  ;;  %v13034_v27 = vld [vmem:[%s13943_s16] ss:$0 sm:$0xff] }
 0x8d4   : > { %9227 = vrsqrt.f32 %v5560_v20  ;;  %v5494_v50 = vmul.f32 0.0078125, %v5371_v60  ;;  %v5377_v30 = vpop.xlane.xlu1 %5376 }
 0x8d5   : > { %9229 = vrsqrt.f32 %v5555_v63  ;;  %v5497_v17 = vmul.f32 0.0078125, %v5377_v30 }
 0x8d6   : > { %v9222_v5 = vpop.eup %9221  ;;  %v5558_v11 = vadd.f32 1e-05, %v5494_v50 }
 0x8d7   : > { %v5684_v38 = vmul.f32 %v9222_v5, %v13942_v53  ;;  %v5561_v32 = vadd.f32 1e-05, %v5497_v17  ;;  %v5383_v13 = vpop.xlane.xlu0 %5382 }
 0x8d8   : > { %9231 = vrsqrt.f32 %v5558_v11  ;;  %v5500_v28 = vmul.f32 0.0078125, %v5383_v13  ;;  %v5373_v36 = vpop.xlane.xlu1 %5372 }
 0x8d9   : > { %9233 = vrsqrt.f32 %v5561_v32  ;;  %v5495_v20 = vmul.f32 0.0078125, %v5373_v36  ;;  %v5754_v42 = vmul.f32 %v13029_v10, %v5684_v38  ;;  %v9381_v36 = vld [vmem:[#allocation2 + $0x10] sm:$0xff] }
 0x8da   : > { %v9224_v63 = vpop.eup %9223  ;;  %v5564_v60 = vadd.f32 1e-05, %v5500_v28 }
 0x8db   : > { %v9226_v50 = vpop.eup %9225  ;;  %v5682_v30 = vmul.f32 %v9224_v63, %v12698_v40  ;;  %v5559_v47 = vadd.f32 1e-05, %v5495_v20  ;;  %v5379_v31 = vpop.xlane.xlu0 %5378  ;;  %v5824_v17 = vadd.f32 %v13034_v27, %v5754_v42 }
 0x8dc   : > { %v5685_v5 = vmul.f32 %v9226_v50, %v12701_v19  ;;  %9235 = vrsqrt.f32 %v5564_v60  ;;  %v5498_v13 = vmul.f32 0.0078125, %v5379_v31  ;;  %v5385_v11 = vpop.xlane.xlu1 %5384 }
 0x8dd   : > { %9237 = vrsqrt.f32 %v5559_v47  ;;  %v5501_v53 = vmul.f32 0.0078125, %v5385_v11  ;;  %v5752_v32 = vmul.f32 %v13029_v10, %v5682_v30  ;;  %v13041_v38 = vadd.f32 %v9381_v36, %v5824_v17  ;;  %v9382_v30 = vld [vmem:[#allocation2] sm:$0xff]  ;;  %v9383_v11 = vld [vmem:[#allocation2 + $0x18] sm:$0xff] }
 0x8de   : > { %v9228_v28 = vpop.eup %9227  ;;  %v5562_v7 = vadd.f32 1e-05, %v5498_v13  ;;  %v5755_v40 = vmul.f32 %v13029_v10, %v5685_v5 }
 0x8df   : > { %v9230_v20 = vpop.eup %9229  ;;  %v5688_v63 = vmul.f32 %v9228_v28, %v12708_v43  ;;  %v5565_v42 = vadd.f32 1e-05, %v5501_v53  ;;  %v5822_v19 = vadd.f32 %v13034_v27, %v5752_v32  ;;  %5952 = vst [vmem:[#allocation2 + $0x10] sm:$0xff] %v13041_v38 }
 0x8e0   : > { %v5683_v47 = vmul.f32 %v9230_v20, %v12711_v9  ;;  %9239 = vrsqrt.f32 %v5562_v7  ;;  %v5381_v31 = vpop.xlane.xlu1 %5380  ;;  %v5825_v60 = vadd.f32 %v13034_v27, %v5755_v40 }
 0x8e1   : > { %9241 = vrsqrt.f32 %v5565_v42  ;;  %v5499_v50 = vmul.f32 0.0078125, %v5381_v31  ;;  %v13049_v17 = vadd.f32 %v9382_v30, %v5822_v19  ;;  %v5758_v5 = vmul.f32 %v13029_v10, %v5688_v63  ;;  %v9384_v63 = vld [vmem:[#allocation2 + $0x30] sm:$0xff] }
 0x8e2   : > { %v9232_v13 = vpop.eup %9231  ;;  %v5753_v43 = vmul.f32 %v13029_v10, %v5683_v47  ;;  %v13053_v53 = vadd.f32 %v9383_v11, %v5825_v60  ;;  %v9385_v47 = vld [vmem:[#allocation2 + $0x8] sm:$0xff]  ;;  %v9386_v11 = vld [vmem:[#allocation2 + $0x20] sm:$0xff] }
 0x8e3   : > { %v9234_v32 = vpop.eup %9233  ;;  %v5686_v9 = vmul.f32 %v9232_v13, %v12718_v14  ;;  %v5563_v7 = vadd.f32 1e-05, %v5499_v50  ;;  %5950 = vst [vmem:[#allocation2] sm:$0xff] %v13049_v17  ;;  %v5828_v36 = vadd.f32 %v13034_v27, %v5758_v5 }
 0x8e4   : > { %v5689_v28 = vmul.f32 %v9234_v32, %v12721_v57  ;;  %v5823_v40 = vadd.f32 %v13034_v27, %v5753_v43  ;;  %5953 = vst [vmem:[#allocation2 + $0x18] sm:$0xff] %v13053_v53 }
 0x8e5   : > { %9243 = vrsqrt.f32 %v5563_v7  ;;  %v5756_v20 = vmul.f32 %v13029_v10, %v5686_v9  ;;  %v13062_v42 = vadd.f32 %v9384_v63, %v5828_v36  ;;  %v13944_v63 = vld [vmem:[#allocation65_spill] sm:$0xff] }
 0x8e6   : > { %v9236_v19 = vpop.eup %9235  ;;  %v13064_v14 = vadd.f32 %v9385_v47, %v5823_v40  ;;  %v5759_v31 = vmul.f32 %v13029_v10, %v5689_v28  ;;  %v9387_v28 = vld [vmem:[#allocation2 + $0x38] sm:$0xff] }
 0x8e7   : > { %v9238_v60 = vpop.eup %9237  ;;  %v5692_v50 = vmul.f32 %v9236_v19, %v12728_v16  ;;  %v5399_v57 = vpop.xlane.xlu0 %5398  ;;  %v5826_v30 = vadd.f32 %v13034_v27, %v5756_v20  ;;  %5956 = vst [vmem:[#allocation2 + $0x30] sm:$0xff] %v13062_v42 }
 0x8e8   : > { %v5687_v5 = vmul.f32 %v9238_v60, %v12731_v4  ;;  %v5508_v13 = vmul.f32 0.0078125, %v5399_v57  ;;  %5951 = vst [vmem:[#allocation2 + $0x8] sm:$0xff] %v13064_v14  ;;  %v5829_v43 = vadd.f32 %v13034_v27, %v5759_v31  ;;  %v13945_v31 = vld [vmem:[#allocation63_spill] sm:$0xff] }
 0x8e9   : > { %v13073_v32 = vadd.f32 %v9386_v11, %v5826_v30  ;;  %v5762_v9 = vmul.f32 %v13029_v10, %v5692_v50 }
 0x8ea   : > { %v9240_v7 = vpop.eup %9239  ;;  %v5572_v36 = vadd.f32 1e-05, %v5508_v13  ;;  %v5757_v16 = vmul.f32 %v13029_v10, %v5687_v5  ;;  %v13077_v40 = vadd.f32 %v9387_v28, %v5829_v43  ;;  %v9388_v43 = vld [vmem:[#allocation2 + $0x50] sm:$0xff]  ;;  %v9389_v28 = vld [vmem:[#allocation2 + $0x28] sm:$0xff] }
 0x8eb   : > { %v9242_v20 = vpop.eup %9241  ;;  %v5690_v4 = vmul.f32 %v9240_v7, %v13944_v63  ;;  %v5395_v19 = vpop.xlane.xlu0 %5394  ;;  %5954 = vst [vmem:[#allocation2 + $0x20] sm:$0xff] %v13073_v32  ;;  %v5832_v47 = vadd.f32 %v13034_v27, %v5762_v9 }
 0x8ec   : > { %v5693_v60 = vmul.f32 %v9242_v20, %v13945_v31  ;;  %9245 = vrsqrt.f32 %v5572_v36  ;;  %v5506_v57 = vmul.f32 0.0078125, %v5395_v19  ;;  %v5401_v50 = vpop.xlane.xlu1 %5400  ;;  %v5827_v30 = vadd.f32 %v13034_v27, %v5757_v16  ;;  %5957 = vst [vmem:[#allocation2 + $0x38] sm:$0xff] %v13077_v40  ;;  %v13946_v16 = vld [vmem:[#allocation44_spill] sm:$0xff] }
 0x8ed   : > { %v5509_v5 = vmul.f32 0.0078125, %v5401_v50  ;;  %v5760_v13 = vmul.f32 %v13029_v10, %v5690_v4  ;;  %v13086_v11 = vadd.f32 %v9388_v43, %v5832_v47 }
 0x8ee   : > { %v5570_v7 = vadd.f32 1e-05, %v5506_v57  ;;  %v13088_v63 = vadd.f32 %v9389_v28, %v5827_v30  ;;  %v5763_v9 = vmul.f32 %v13029_v10, %v5693_v60  ;;  %v9390_v57 = vld [vmem:[#allocation2 + $0x40] sm:$0xff] }
 0x8ef   : > { %v9244_v20 = vpop.eup %9243  ;;  %v5573_v36 = vadd.f32 1e-05, %v5509_v5  ;;  %v5830_v19 = vadd.f32 %v13034_v27, %v5760_v13  ;;  %5960 = vst [vmem:[#allocation2 + $0x50] sm:$0xff] %v13086_v11  ;;  %v9391_v5 = vld [vmem:[#allocation2 + $0x58] sm:$0xff] }
 0x8f0   : > { %v5691_v31 = vmul.f32 %v9244_v20, %v13946_v16  ;;  %9247 = vrsqrt.f32 %v5570_v7  ;;  %v5397_v50 = vpop.xlane.xlu1 %5396  ;;  %5955 = vst [vmem:[#allocation2 + $0x28] sm:$0xff] %v13088_v63  ;;  %v5833_v4 = vadd.f32 %v13034_v27, %v5763_v9 }
 0x8f1   : > { %9249 = vrsqrt.f32 %v5573_v36  ;;  %v5507_v47 = vmul.f32 0.0078125, %v5397_v50  ;;  %v13096_v30 = vadd.f32 %v9390_v57, %v5830_v19  ;;  %v9392_v50 = vld [vmem:[#allocation2 + $0x48] sm:$0xff] }
 0x8f2   : > { %v5761_v60 = vmul.f32 %v13029_v10, %v5691_v31  ;;  %v13099_v43 = vadd.f32 %v9391_v5, %v5833_v4 }
 0x8f3   : > { %v5571_v13 = vadd.f32 1e-05, %v5507_v47  ;;  %v5407_v28 = vpop.xlane.xlu0 %5406  ;;  %5958 = vst [vmem:[#allocation2 + $0x40] sm:$0xff] %v13096_v30 }
 0x8f4   : > { %v5512_v7 = vmul.f32 0.0078125, %v5407_v28  ;;  %v5409_v20 = vpop.xlane.xlu1 %5408  ;;  %v5831_v16 = vadd.f32 %v13034_v27, %v5761_v60  ;;  %5961 = vst [vmem:[#allocation2 + $0x58] sm:$0xff] %v13099_v43 }
 0x8f5   : > { %9251 = vrsqrt.f32 %v5571_v13  ;;  %v5513_v9 = vmul.f32 0.0078125, %v5409_v20 }
 0x8f6   : > { %v9246_v36 = vpop.eup %9245  ;;  %v5576_v19 = vadd.f32 1e-05, %v5512_v7  ;;  %v13104_v57 = vadd.f32 %v9392_v50, %v5831_v16  ;;  %v13947_v16 = vld [vmem:[#allocation67_spill] sm:$0xff] }
 0x8f7   : > { %v5577_v31 = vadd.f32 1e-05, %v5513_v9  ;;  %v5403_v4 = vpop.xlane.xlu0 %5402  ;;  %v5700_v47 = vmul.f32 %v9246_v36, %v12757_v3 }
 0x8f8   : > { %9253 = vrsqrt.f32 %v5576_v19  ;;  %v5510_v5 = vmul.f32 0.0078125, %v5403_v4  ;;  %v5405_v18 = vpop.xlane.xlu1 %5404  ;;  %5959 = vst [vmem:[#allocation2 + $0x48] sm:$0xff] %v13104_v57  ;;  %v13948_v19 = vld [vmem:[#allocation68_spill] sm:$0xff] }
 0x8f9   : > { %9255 = vrsqrt.f32 %v5577_v31  ;;  %v5511_v60 = vmul.f32 0.0078125, %v5405_v18  ;;  %v5770_v28 = vmul.f32 %v13029_v10, %v5700_v47  ;;  %v9393_v31 = vld [vmem:[#allocation2 + $0x90] sm:$0xff] }
 0x8fa   : > { %v9248_v13 = vpop.eup %9247  ;;  %v5574_v20 = vadd.f32 1e-05, %v5510_v5 }
 0x8fb   : > { %v9250_v41 = vpop.eup %9249  ;;  %v5575_v7 = vadd.f32 1e-05, %v5511_v60  ;;  %v5415_v23 = vpop.xlane.xlu0 %5414  ;;  %v5698_v50 = vmul.f32 %v9248_v13, %v13947_v16  ;;  %v5840_v9 = vadd.f32 %v13034_v27, %v5770_v28 }
 0x8fc   : > { %9257 = vrsqrt.f32 %v5574_v20  ;;  %v5516_v3 = vmul.f32 0.0078125, %v5415_v23  ;;  %v5417_v36 = vpop.xlane.xlu1 %5416  ;;  %v5701_v4 = vmul.f32 %v9250_v41, %v13948_v19  ;;  %v9395_v19 = vld [vmem:[#allocation2 + $0x98] sm:$0xff] }
 0x8fd   : > { %9259 = vrsqrt.f32 %v5575_v7  ;;  %v5517_v52 = vmul.f32 0.0078125, %v5417_v36  ;;  %v5768_v18 = vmul.f32 %v13029_v10, %v5698_v50  ;;  %v13113_v47 = vadd.f32 %v9393_v31, %v5840_v9  ;;  %v9394_v50 = vld [vmem:[#allocation2 + $0x80] sm:$0xff] }
 0x8fe   : > { %v5580_v5 = vadd.f32 1e-05, %v5516_v3  ;;  %v5771_v60 = vmul.f32 %v13029_v10, %v5701_v4 }
 0x8ff   : > { %v9252_v33 = vpop.eup %9251  ;;  %v5581_v54 = vadd.f32 1e-05, %v5517_v52  ;;  %v5411_v13 = vpop.xlane.xlu0 %5410  ;;  %v5838_v28 = vadd.f32 %v13034_v27, %v5768_v18  ;;  %5968 = vst [vmem:[#allocation2 + $0x90] sm:$0xff] %v13113_v47 }
 0x900   : > { %9261 = vrsqrt.f32 %v5580_v5  ;;  %v5514_v23 = vmul.f32 0.0078125, %v5411_v13  ;;  %v5413_v41 = vpop.xlane.xlu1 %5412  ;;  %v5699_v20 = vmul.f32 %v9252_v33, %v12772_v26  ;;  %v5841_v7 = vadd.f32 %v13034_v27, %v5771_v60 }
 0x901   : > { %9263 = vrsqrt.f32 %v5581_v54  ;;  %v5515_v16 = vmul.f32 0.0078125, %v5413_v41  ;;  %v5902_v9 = vadd.f32 %v9394_v50, %v5838_v28 }
 0x902   : > { %v9254_v3 = vpop.eup %9253  ;;  %v5578_v36 = vadd.f32 1e-05, %v5514_v23  ;;  %v5769_v52 = vmul.f32 %v13029_v10, %v5699_v20  ;;  %v5905_v4 = vadd.f32 %v9395_v19, %v5841_v7  ;;  %v9396_v20 = vld [vmem:[#allocation2 + $0x88] sm:$0xff] }
 0x903   : > { %v9256_v18 = vpop.eup %9255  ;;  %v5579_v31 = vadd.f32 1e-05, %v5515_v16  ;;  %v5387_v8 = vpop.xlane.xlu0 %5386  ;;  %5966 = vst [vmem:[#allocation2 + $0x80] sm:$0xff] %v5902_v9  ;;  %v5704_v5 = vmul.f32 %v9254_v3, %v12780_v61  ;;  %v8887_v16 = vpack.c.bf16 %v13064_v14, %v13049_v17 }
 0x904   : > { %9265 = vrsqrt.f32 %v5578_v36  ;;  %v5502_v26 = vmul.f32 0.0078125, %v5387_v8  ;;  %v5389_v33 = vpop.xlane.xlu1 %5388  ;;  %v5839_v54 = vadd.f32 %v13034_v27, %v5769_v52  ;;  %5969 = vst [vmem:[#allocation2 + $0x98] sm:$0xff] %v5905_v4  ;;  %v5705_v13 = vmul.f32 %v9256_v18, %v12777_v34 }
 0x905   : > { %9267 = vrsqrt.f32 %v5579_v31  ;;  %v5503_v60 = vmul.f32 0.0078125, %v5389_v33  ;;  %v5774_v28 = vmul.f32 %v13029_v10, %v5704_v5  ;;  %v13949_v31 = vld [vmem:[#allocation69_spill] sm:$0xff] }
 0x906   : > { %v9258_v23 = vpop.eup %9257  ;;  %v5566_v41 = vadd.f32 1e-05, %v5502_v26  ;;  %v5903_v7 = vadd.f32 %v9396_v20, %v5839_v54  ;;  %v5775_v36 = vmul.f32 %v13029_v10, %v5705_v13  ;;  %v9397_v13 = vld [vmem:[#allocation2 + $0xb0] sm:$0xff] }
 0x907   : > { %v9260_v61 = vpop.eup %9259  ;;  %v5567_v50 = vadd.f32 1e-05, %v5503_v60  ;;  %v5419_v8 = vpop.xlane.xlu0 %5418  ;;  %v5702_v3 = vmul.f32 %v9258_v23, %v12790_v35  ;;  %v5844_v52 = vadd.f32 %v13034_v27, %v5774_v28  ;;  %v8889_v35 = vpack.c.bf16 %v5905_v4, %v13113_v47 }
 0x908   : > { %9269 = vrsqrt.f32 %v5566_v41  ;;  %v5518_v34 = vmul.f32 0.0078125, %v5419_v8  ;;  %v5421_v19 = vpop.xlane.xlu1 %5420  ;;  %5967 = vst [vmem:[#allocation2 + $0x88] sm:$0xff] %v5903_v7  ;;  %v8885_v18 = vpack.c.bf16 %v5903_v7, %v5902_v9  ;;  %v5703_v5 = vmul.f32 %v9260_v61, %v13949_v31  ;;  %v9398_v7 = vld [vmem:[#allocation2 + $0xb8] sm:$0xff] }
 0x909   : > { %9271 = vrsqrt.f32 %v5567_v50  ;;  %v5519_v26 = vmul.f32 0.0078125, %v5421_v19  ;;  %v5772_v17 = vmul.f32 %v13029_v10, %v5702_v3  ;;  %v5845_v14 = vadd.f32 %v13034_v27, %v5775_v36 }
 0x90a   : > { %v9262_v33 = vpop.eup %9261  ;;  %v5582_v54 = vadd.f32 1e-05, %v5518_v34  ;;  %8886 = vmatprep.subr.bf16.mxu0 %v8885_v18  ;;  %v5773_v60 = vmul.f32 %v13029_v10, %v5703_v5  ;;  %v13135_v28 = vadd.f32 %v9397_v13, %v5844_v52  ;;  %v9399_v52 = vld [vmem:[#allocation2 + $0xa0] sm:$0xff]  ;;  %v9400_v18 = vld [vmem:[#allocation2 + $0xa8] sm:$0xff] }
 0x90b   : > { %v9264_v23 = vpop.eup %9263  ;;  %v5583_v9 = vadd.f32 1e-05, %v5519_v26  ;;  %8888 = vmatpush3.bf16.msra.mxu0 %v8887_v16  ;;  %v5423_v41 = vpop.xlane.xlu0 %5422  ;;  %v5842_v20 = vadd.f32 %v13034_v27, %v5772_v17  ;;  %v5909_v61 = vadd.f32 %v9398_v7, %v5845_v14  ;;  %v5708_v50 = vmul.f32 %v9262_v33, %v12800_v12 }
 0x90c   : > { %9273 = vrsqrt.f32 %v5582_v54  ;;  %v5520_v8 = vmul.f32 0.0078125, %v5423_v41  ;;  %v5425_v3 = vpop.xlane.xlu1 %5424  ;;  %8890 = vmatprep.subr.bf16.mxu0 %v8889_v35  ;;  %v5843_v47 = vadd.f32 %v13034_v27, %v5773_v60  ;;  %5972 = vst [vmem:[#allocation2 + $0xb0] sm:$0xff] %v13135_v28  ;;  %v5709_v4 = vmul.f32 %v9264_v23, %v12797_v62 }
 0x90d   : > { %9275 = vrsqrt.f32 %v5583_v9  ;;  %v5521_v36 = vmul.f32 0.0078125, %v5425_v3  ;;  %v8891_v16 = vpack.c.bf16 %v13053_v53, %v13041_v38  ;;  %v5906_v34 = vadd.f32 %v9399_v52, %v5842_v20  ;;  %5973 = vst [vmem:[#allocation2 + $0xb8] sm:$0xff] %v5909_v61  ;;  %v9401_v3 = vld [vmem:[#allocation2 + $0xd0] sm:$0xff]  ;;  %v9402_v52 = vld [vmem:[#allocation2 + $0xc0] sm:$0xff] }
 0x90e   : > { %v9266_v19 = vpop.eup %9265  ;;  %v5584_v12 = vadd.f32 1e-05, %v5520_v8  ;;  %v5907_v31 = vadd.f32 %v9400_v18, %v5843_v47  ;;  %v5778_v5 = vmul.f32 %v13029_v10, %v5708_v50  ;;  %v5779_v26 = vmul.f32 %v13029_v10, %v5709_v4 }
 0x90f   : > { %v9268_v17 = vpop.eup %9267  ;;  %v5585_v14 = vadd.f32 1e-05, %v5521_v36  ;;  %8892 = vmatpush3.bf16.msra.mxu0 %v8891_v16  ;;  %v5391_v62 = vpop.xlane.xlu0 %5390  ;;  %5970 = vst [vmem:[#allocation2 + $0xa0] sm:$0xff] %v5906_v34  ;;  %v8895_v33 = vpack.c.bf16 %v13088_v63, %v13073_v32  ;;  %v8899_v38 = vpack.c.bf16 %v13077_v40, %v13062_v42  ;;  %v5706_v53 = vmul.f32 %v9266_v19, %v12810_v58 }
 0x910   : > { %9277 = vrsqrt.f32 %v5584_v12  ;;  %v5504_v54 = vmul.f32 0.0078125, %v5391_v62  ;;  %v5393_v35 = vpop.xlane.xlu1 %5392  ;;  %5971 = vst [vmem:[#allocation2 + $0xa8] sm:$0xff] %v5907_v31  ;;  %v8893_v60 = vpack.c.bf16 %v5907_v31, %v5906_v34  ;;  %v5707_v13 = vmul.f32 %v9268_v17, %v12807_v51  ;;  %v9404_v31 = vld [vmem:[#allocation2 + $0xc8] sm:$0xff] }
 0x911   : > { %9279 = vrsqrt.f32 %v5585_v14  ;;  %v5505_v23 = vmul.f32 0.0078125, %v5393_v35  ;;  %v5776_v9 = vmul.f32 %v13029_v10, %v5706_v53  ;;  %v5848_v41 = vadd.f32 %v13034_v27, %v5778_v5 }
 0x912   : > { %v9270_v20 = vpop.eup %9269  ;;  %v5568_v32 = vadd.f32 1e-05, %v5504_v54  ;;  %8894 = vmatprep.subr.bf16.mxu0 %v8893_v60  ;;  %v8897_v42 = vpack.c.bf16 %v5909_v61, %v13135_v28  ;;  %v5777_v58 = vmul.f32 %v13029_v10, %v5707_v13  ;;  %v5849_v40 = vadd.f32 %v13034_v27, %v5779_v26 }
 0x913   : > { %v9272_v63 = vpop.eup %9271  ;;  %v5694_v7 = vmul.f32 %v9270_v20, %v12815_v39  ;;  %v5569_v50 = vadd.f32 1e-05, %v5505_v23  ;;  %8896 = vmatpush3.bf16.msra.mxu0 %v8895_v33  ;;  %v5431_v51 = vpop.xlane.xlu0 %5430  ;;  %v5846_v8 = vadd.f32 %v13034_v27, %v5776_v9  ;;  %v5912_v47 = vadd.f32 %v9401_v3, %v5848_v41  ;;  %v9403_v39 = vld [vmem:[#allocation2 + $0xd8] sm:$0xff] }
 0x914   : > { %v5695_v4 = vmul.f32 %v9272_v63, %v12820_v2  ;;  %9281 = vrsqrt.f32 %v5568_v32  ;;  %v5524_v36 = vmul.f32 0.0078125, %v5431_v51  ;;  %v5433_v16 = vpop.xlane.xlu1 %5432  ;;  %8898 = vmatprep.subr.bf16.mxu0 %v8897_v42  ;;  %v5847_v28 = vadd.f32 %v13034_v27, %v5777_v58  ;;  %v9405_v58 = vld [vmem:[#allocation2 + $0x60] sm:$0xff] }
 0x915   : > { %9283 = vrsqrt.f32 %v5569_v50  ;;  %v5525_v61 = vmul.f32 0.0078125, %v5433_v16  ;;  %v5910_v34 = vadd.f32 %v9402_v52, %v5846_v8  ;;  %v5913_v19 = vadd.f32 %v9403_v39, %v5849_v40  ;;  %5976 = vst [vmem:[#allocation2 + $0xd0] sm:$0xff] %v5912_v47  ;;  %v9406_v8 = vld [vmem:[#allocation2 + $0x68] sm:$0xff] }
 0x916   : > { %v9274_v12 = vpop.eup %9273  ;;  %v5588_v18 = vadd.f32 1e-05, %v5524_v36  ;;  %v5911_v5 = vadd.f32 %v9404_v31, %v5847_v28  ;;  %v5764_v26 = vmul.f32 %v13029_v10, %v5694_v7  ;;  %v5765_v2 = vmul.f32 %v13029_v10, %v5695_v4  ;;  %v9407_v4 = vld [vmem:[#allocation2 + $0xe0] sm:$0xff]  ;;  %v9408_v52 = vld [vmem:[#allocation2 + $0xe8] sm:$0xff] }
 0x917   : > { %v9276_v17 = vpop.eup %9275  ;;  %v5589_v14 = vadd.f32 1e-05, %v5525_v61  ;;  %8900 = vmatpush3.bf16.msra.mxu0 %v8899_v38  ;;  %v5427_v62 = vpop.xlane.xlu0 %5426  ;;  %5974 = vst [vmem:[#allocation2 + $0xc0] sm:$0xff] %v5910_v34  ;;  %v8903_v33 = vpack.c.bf16 %v13104_v57, %v13096_v30  ;;  %5977 = vst [vmem:[#allocation2 + $0xd8] sm:$0xff] %v5913_v19  ;;  %v8907_v53 = vpack.c.bf16 %v13099_v43, %v13086_v11 }
 0x918   : > { %v5710_v54 = vmul.f32 %v9274_v12, %v12830_v59  ;;  %9285 = vrsqrt.f32 %v5588_v18  ;;  %v5522_v35 = vmul.f32 0.0078125, %v5427_v62  ;;  %v5429_v60 = vpop.xlane.xlu1 %5428  ;;  %5975 = vst [vmem:[#allocation2 + $0xc8] sm:$0xff] %v5911_v5  ;;  %v8901_v13 = vpack.c.bf16 %v5911_v5, %v5910_v34 }
 0x919   : > { %v5711_v23 = vmul.f32 %v9276_v17, %v12827_v46  ;;  %9287 = vrsqrt.f32 %v5589_v14  ;;  %v5523_v38 = vmul.f32 0.0078125, %v5429_v60  ;;  %v5834_v41 = vadd.f32 %v13034_v27, %v5764_v26 }
 0x91a   : > { %v5780_v9 = vmul.f32 %v13029_v10, %v5710_v54  ;;  %v9278_v30 = vpop.eup %9277  ;;  %v5586_v57 = vadd.f32 1e-05, %v5522_v35  ;;  %8902 = vmatprep.subr.bf16.mxu0 %v8901_v13  ;;  %v8905_v20 = vpack.c.bf16 %v5913_v19, %v5912_v47  ;;  %v5835_v59 = vadd.f32 %v13034_v27, %v5765_v2 }
 0x91b   : > { %v5781_v11 = vmul.f32 %v13029_v10, %v5711_v23  ;;  %v9280_v43 = vpop.eup %9279  ;;  %v5587_v32 = vadd.f32 1e-05, %v5523_v38  ;;  %8904 = vmatpush3.bf16.msra.mxu0 %v8903_v33  ;;  %v5439_v42 = vpop.xlane.xlu0 %5438  ;;  %v5898_v40 = vadd.f32 %v9405_v58, %v5834_v41  ;;  %v5712_v63 = vmul.f32 %v9278_v30, %v12836_v44  ;;  %v9409_v38 = vld [vmem:[#allocation2 + $0xf0] sm:$0xff]  ;;  %v9410_v41 = vld [vmem:[#allocation2 + $0xf8] sm:$0xff] }
 0x91c   : > { %v5850_v46 = vadd.f32 %v13034_v27, %v5780_v9  ;;  %9289 = vrsqrt.f32 %v5586_v57  ;;  %v5528_v7 = vmul.f32 0.0078125, %v5439_v42  ;;  %v5441_v50 = vpop.xlane.xlu1 %5440  ;;  %8906 = vmatprep.subr.bf16.mxu0 %v8905_v20  ;;  %v5899_v3 = vadd.f32 %v9406_v8, %v5835_v59  ;;  %v9411_v58 = vld [vmem:[#allocation2 + $0x70] sm:$0xff] }
 0x91d   : > { %v5851_v51 = vadd.f32 %v13034_v27, %v5781_v11  ;;  %9291 = vrsqrt.f32 %v5587_v32  ;;  %v5529_v47 = vmul.f32 0.0078125, %v5441_v50  ;;  %5962 = vst [vmem:[#allocation2 + $0x60] sm:$0xff] %v5898_v40  ;;  %v5713_v16 = vmul.f32 %v9280_v43, %v12842_v29 }
 0x91e   : > { %v5914_v36 = vadd.f32 %v9407_v4, %v5850_v46  ;;  %v9282_v28 = vpop.eup %9281  ;;  %v5592_v61 = vadd.f32 1e-05, %v5528_v7  ;;  %5963 = vst [vmem:[#allocation2 + $0x68] sm:$0xff] %v5899_v3  ;;  %v5782_v44 = vmul.f32 %v13029_v10, %v5712_v63  ;;  %v8911_v31 = vpack.c.bf16 %v5899_v3, %v5898_v40  ;;  %v9412_v3 = vld [vmem:[#allocation2 + $0x78] sm:$0xff] }
 0x91f   : > { %v5915_v34 = vadd.f32 %v9408_v52, %v5851_v51  ;;  %v9284_v39 = vpop.eup %9283  ;;  %v5696_v19 = vmul.f32 %v9282_v28, %v12847_v49  ;;  %v5593_v12 = vadd.f32 1e-05, %v5529_v47  ;;  %8908 = vmatpush3.bf16.msra.mxu0 %v8907_v53  ;;  %v5435_v18 = vpop.xlane.xlu0 %5434  ;;  %v5783_v5 = vmul.f32 %v13029_v10, %v5713_v16 }
 0x920   : > { %5978 = vst [vmem:[#allocation2 + $0xe0] sm:$0xff] %v5914_v36  ;;  %v5697_v26 = vmul.f32 %v9284_v39, %v12852_v37  ;;  %9293 = vrsqrt.f32 %v5592_v61  ;;  %v5526_v29 = vmul.f32 0.0078125, %v5435_v18  ;;  %v5437_v2 = vpop.xlane.xlu1 %5436  ;;  %v5852_v62 = vadd.f32 %v13034_v27, %v5782_v44 }
 0x921   : > { %5979 = vst [vmem:[#allocation2 + $0xe8] sm:$0xff] %v5915_v34  ;;  %v8909_v17 = vpack.c.bf16 %v5915_v34, %v5914_v36  ;;  %9295 = vrsqrt.f32 %v5593_v12  ;;  %v5527_v14 = vmul.f32 0.0078125, %v5437_v2  ;;  %v5853_v49 = vadd.f32 %v13034_v27, %v5783_v5  ;;  %v9413_v12 = vld [vmem:[#allocation2 + $0x110] sm:$0xff] }
 0x922   : > { %v9286_v33 = vpop.eup %9285  ;;  %v5590_v53 = vadd.f32 1e-05, %v5526_v29  ;;  %v5766_v54 = vmul.f32 %v13029_v10, %v5696_v19  ;;  %v5767_v35 = vmul.f32 %v13029_v10, %v5697_v26  ;;  %v5916_v9 = vadd.f32 %v9409_v38, %v5852_v62  ;;  %v6014_v29 = vld [vmem:[#allocation5] sm:$0xff] }
 0x923   : > { %8910 = vmatprep.subr.bf16.mxu0 %v8909_v17  ;;  %v9288_v60 = vpop.eup %9287  ;;  %v5716_v37 = vmul.f32 %v9286_v33, %v12857_v56  ;;  %v5591_v13 = vadd.f32 1e-05, %v5527_v14  ;;  %v5447_v23 = vpop.xlane.xlu0 %5446  ;;  %v5917_v30 = vadd.f32 %v9410_v41, %v5853_v49  ;;  %v6019_v49 = vld [vmem:[#allocation5 + $0x28] sm:$0xff] }
 0x924   : > { %8912 = vmatpush3.bf16.msra.mxu0 %v8911_v31  ;;  %v5717_v57 = vmul.f32 %v9288_v60, %v12862_v45  ;;  %9297 = vrsqrt.f32 %v5590_v53  ;;  %v5532_v20 = vmul.f32 0.0078125, %v5447_v23  ;;  %v5449_v11 = vpop.xlane.xlu1 %5448  ;;  %v5836_v59 = vadd.f32 %v13034_v27, %v5766_v54  ;;  %5980 = vst [vmem:[#allocation2 + $0xf0] sm:$0xff] %v5916_v9  ;;  %v9414_v54 = vld [vmem:[#allocation2 + $0x100] sm:$0xff] }
 0x925   : > { %9299 = vrsqrt.f32 %v5591_v13  ;;  %v5533_v43 = vmul.f32 0.0078125, %v5449_v11  ;;  %5981 = vst [vmem:[#allocation2 + $0xf8] sm:$0xff] %v5917_v30  ;;  %v8913_v32 = vpack.c.bf16 %v5917_v30, %v5916_v9  ;;  %v5837_v56 = vadd.f32 %v13034_v27, %v5767_v35  ;;  %v9415_v35 = vld [vmem:[#allocation2 + $0x118] sm:$0xff]  ;;  %v6018_v11 = vld [vmem:[#allocation5 + $0x20] sm:$0xff] }
 0x926   : > { %v9290_v42 = vpop.eup %9289  ;;  %v5596_v46 = vadd.f32 1e-05, %v5532_v20  ;;  %v5900_v40 = vadd.f32 %v9411_v58, %v5836_v59  ;;  %v5786_v63 = vmul.f32 %v13029_v10, %v5716_v37  ;;  %v5787_v45 = vmul.f32 %v13029_v10, %v5717_v57 }
 0x927   : > { %v9292_v7 = vpop.eup %9291  ;;  %v5714_v50 = vmul.f32 %v9290_v42, %v12865_v15  ;;  %v5597_v51 = vadd.f32 1e-05, %v5533_v43  ;;  %8914 = vmatprep.subr.bf16.mxu0 %v8913_v32  ;;  %v5443_v8 = vpop.xlane.xlu0 %5442  ;;  %v5901_v47 = vadd.f32 %v9412_v3, %v5837_v56  ;;  %v6023_v56 = vld [vmem:[#allocation5 + $0x48] sm:$0xff] }
 0x928   : > { %v5715_v4 = vmul.f32 %v9292_v7, %v12870_v24  ;;  %9301 = vrsqrt.f32 %v5596_v46  ;;  %v5530_v36 = vmul.f32 0.0078125, %v5443_v8  ;;  %v5445_v16 = vpop.xlane.xlu1 %5444  ;;  %5964 = vst [vmem:[#allocation2 + $0x70] sm:$0xff] %v5900_v40  ;;  %v5856_v28 = vadd.f32 %v13034_v27, %v5786_v63  ;;  %v6022_v8 = vld [vmem:[#allocation5 + $0x40] sm:$0xff] }
 0x929   : > { %9303 = vrsqrt.f32 %v5597_v51  ;;  %v5531_v61 = vmul.f32 0.0078125, %v5445_v16  ;;  %5965 = vst [vmem:[#allocation2 + $0x78] sm:$0xff] %v5901_v47  ;;  %v8915_v52 = vpack.c.bf16 %v5901_v47, %v5900_v40  ;;  %v5784_v34 = vmul.f32 %v13029_v10, %v5714_v50  ;;  %v9417_v47 = vld [vmem:[#allocation2 + $0x130] sm:$0xff] }
 0x92a   : > { %v9294_v15 = vpop.eup %9293  ;;  %v5594_v44 = vadd.f32 1e-05, %v5530_v36  ;;  %v5785_v39 = vmul.f32 %v13029_v10, %v5715_v4  ;;  %v5857_v19 = vadd.f32 %v13034_v27, %v5787_v45  ;;  %v13197_v24 = vadd.f32 %v9413_v12, %v5856_v28 }
 0x92b   : > { %v9296_v18 = vpop.eup %9295  ;;  %v5720_v31 = vmul.f32 %v9294_v15, %v12875_v55  ;;  %v5595_v5 = vadd.f32 1e-05, %v5531_v61  ;;  %8916 = vmatpush3.bf16.msra.mxu0 %v8915_v52  ;;  %v5463_v26 = vpop.xlane.xlu0 %5462  ;;  %v5854_v2 = vadd.f32 %v13034_v27, %v5784_v34  ;;  %v6027_v61 = vld [vmem:[#allocation5 + $0x68] sm:$0xff] }
 0x92c   : > { %v5721_v17 = vmul.f32 %v9296_v18, %v12880_v6  ;;  %9305 = vrsqrt.f32 %v5594_v44  ;;  %v5540_v14 = vmul.f32 0.0078125, %v5463_v26  ;;  %v5465_v62 = vpop.xlane.xlu1 %5464  ;;  %v5855_v33 = vadd.f32 %v13034_v27, %v5785_v39  ;;  %5984 = vst [vmem:[#allocation2 + $0x110] sm:$0xff] %v13197_v24  ;;  %v9416_v6 = vld [vmem:[#allocation2 + $0x108] sm:$0xff]  ;;  %v9419_v44 = vld [vmem:[#allocation2 + $0x138] sm:$0xff] }
 0x92d   : > { %9307 = vrsqrt.f32 %v5595_v5  ;;  %v5541_v53 = vmul.f32 0.0078125, %v5465_v62  ;;  %v13204_v55 = vadd.f32 %v9414_v54, %v5854_v2  ;;  %v13206_v60 = vadd.f32 %v9415_v35, %v5857_v19 }
 0x92e   : > { %v9298_v37 = vpop.eup %9297  ;;  %v5604_v13 = vadd.f32 1e-05, %v5540_v14  ;;  %6143 = vmatmul.mubr.f32.vlgmr.msra.gmra.mrb[160].mxu0 %v6014_v29  ;;  %v13208_v23 = vadd.f32 %v9416_v6, %v5855_v33  ;;  %v5790_v38 = vmul.f32 %v13029_v10, %v5720_v31  ;;  %v5791_v9 = vmul.f32 %v13029_v10, %v5721_v17  ;;  %v6026_v14 = vld [vmem:[#allocation5 + $0x60] sm:$0xff] }
 0x92f   : > { %v9300_v41 = vpop.eup %9299  ;;  %v5718_v30 = vmul.f32 %v9298_v37, %v12885_v25  ;;  %v5605_v57 = vadd.f32 1e-05, %v5541_v53  ;;  %v5459_v20 = vpop.xlane.xlu0 %5458  ;;  %6147 = vmatprep.mubr.f32.mxu0 %v6019_v49  ;;  %5982 = vst [vmem:[#allocation2 + $0x100] sm:$0xff] %v13204_v55  ;;  %5985 = vst [vmem:[#allocation2 + $0x118] sm:$0xff] %v13206_v60  ;;  %v6031_v53 = vld [vmem:[#allocation5 + $0x88] sm:$0xff] }
 0x930   : > { %v5719_v59 = vmul.f32 %v9300_v41, %v12890_v48  ;;  %9309 = vrsqrt.f32 %v5604_v13  ;;  %v5538_v43 = vmul.f32 0.0078125, %v5459_v20  ;;  %v5461_v32 = vpop.xlane.xlu1 %5460  ;;  %5983 = vst [vmem:[#allocation2 + $0x108] sm:$0xff] %v13208_v23  ;;  %v5860_v46 = vadd.f32 %v13034_v27, %v5790_v38 }
 0x931   : > { %9311 = vrsqrt.f32 %v5605_v57  ;;  %v5539_v42 = vmul.f32 0.0078125, %v5461_v32  ;;  %v5788_v25 = vmul.f32 %v13029_v10, %v5718_v30  ;;  %v5861_v45 = vadd.f32 %v13034_v27, %v5791_v9  ;;  %v6030_v30 = vld [vmem:[#allocation5 + $0x80] sm:$0xff]  ;;  %v13950_v57 = vld [vmem:[#allocation71_spill] sm:$0xff] }
 0x932   : > { %v9302_v58 = vpop.eup %9301  ;;  %v5602_v40 = vadd.f32 1e-05, %v5538_v43  ;;  %6148 = vmatmul.mubr.f32.gmra.mrb[162].mxu0 %v6018_v11  ;;  %v5789_v63 = vmul.f32 %v13029_v10, %v5719_v59  ;;  %v13223_v4 = vadd.f32 %v9417_v47, %v5860_v46  ;;  %v9421_v59 = vld [vmem:[#allocation2 + $0x150] sm:$0xff]  ;;  %v9424_v47 = vld [vmem:[#allocation2 + $0x158] sm:$0xff] }
 0x933   : > { %v9304_v48 = vpop.eup %9303  ;;  %v5724_v7 = vmul.f32 %v9302_v58, %v12899_v1  ;;  %v5603_v50 = vadd.f32 1e-05, %v5539_v42  ;;  %v5471_v51 = vpop.xlane.xlu0 %5470  ;;  %6152 = vmatprep.mubr.f32.mxu0 %v6023_v56  ;;  %v5858_v3 = vadd.f32 %v13034_v27, %v5788_v25  ;;  %v9418_v1 = vld [vmem:[#allocation2 + $0x120] sm:$0xff]  ;;  %v13229_v39 = vadd.f32 %v9419_v44, %v5861_v45  ;;  %v6035_v42 = vld [vmem:[#allocation5 + $0xa8] sm:$0xff] }
 0x934   : > { %v5725_v36 = vmul.f32 %v9304_v48, %v12904_v21  ;;  %9313 = vrsqrt.f32 %v5602_v40  ;;  %v5544_v16 = vmul.f32 0.0078125, %v5471_v51  ;;  %v5473_v28 = vpop.xlane.xlu1 %5472  ;;  %v5859_v52 = vadd.f32 %v13034_v27, %v5789_v63  ;;  %5988 = vst [vmem:[#allocation2 + $0x130] sm:$0xff] %v13223_v4  ;;  %v9420_v21 = vld [vmem:[#allocation2 + $0x128] sm:$0xff]  ;;  %v13951_v25 = vld [vmem:[#allocation70_spill] sm:$0xff] }
 0x935   : > { %9315 = vrsqrt.f32 %v5603_v50  ;;  %v5545_v34 = vmul.f32 0.0078125, %v5473_v28  ;;  %v13227_v15 = vadd.f32 %v9418_v1, %v5858_v3  ;;  %v5794_v31 = vmul.f32 %v13029_v10, %v5724_v7  ;;  %5989 = vst [vmem:[#allocation2 + $0x138] sm:$0xff] %v13229_v39  ;;  %v9422_v45 = vld [vmem:[#allocation2 + $0x140] sm:$0xff] }
 0x936   : > { %v9306_v19 = vpop.eup %9305  ;;  %v5608_v12 = vadd.f32 1e-05, %v5544_v16  ;;  %6153 = vmatmul.mubr.f32.gmra.mrb[164].mxu0 %v6022_v8  ;;  %v13232_v18 = vadd.f32 %v9420_v21, %v5859_v52  ;;  %v5795_v5 = vmul.f32 %v13029_v10, %v5725_v36  ;;  %v9423_v8 = vld [vmem:[#allocation2 + $0x148] sm:$0xff]  ;;  %v6034_v52 = vld [vmem:[#allocation5 + $0xa0] sm:$0xff]  ;;  %v13953_v21 = vld [vmem:[#allocation72_spill] sm:$0xff] }
 0x937   : > { %v9308_v26 = vpop.eup %9307  ;;  %v5722_v29 = vmul.f32 %v9306_v19, %v12911_v0  ;;  %v5609_v2 = vadd.f32 1e-05, %v5545_v34  ;;  %v5467_v17 = vpop.xlane.xlu0 %5466  ;;  %6157 = vmatprep.mubr.f32.mxu0 %v6027_v61  ;;  %5986 = vst [vmem:[#allocation2 + $0x120] sm:$0xff] %v13227_v15  ;;  %v5864_v35 = vadd.f32 %v13034_v27, %v5794_v31  ;;  %v13952_v34 = vld [vmem:[#allocation73_spill] sm:$0xff] }
 0x938   : > { %v5723_v62 = vmul.f32 %v9308_v26, %v12916_v22  ;;  %9317 = vrsqrt.f32 %v5608_v12  ;;  %v5542_v49 = vmul.f32 0.0078125, %v5467_v17  ;;  %v5469_v33 = vpop.xlane.xlu1 %5468  ;;  %5987 = vst [vmem:[#allocation2 + $0x128] sm:$0xff] %v13232_v18  ;;  %v5865_v38 = vadd.f32 %v13034_v27, %v5795_v5  ;;  %v6039_v12 = vld [vmem:[#allocation5 + $0xc8] sm:$0xff]  ;;  %v13266_v5 = vld [vmem:[%s13954_s25] ss:$0 sm:$0xff]  ;;  %v9427_v17 = vld [vmem:[#allocation2 + $0x190] sm:$0xff] }
 0x939   : > { %9319 = vrsqrt.f32 %v5609_v2  ;;  %v5543_v54 = vmul.f32 0.0078125, %v5469_v33  ;;  %v5792_v0 = vmul.f32 %v13029_v10, %v5722_v29  ;;  %v13247_v43 = vadd.f32 %v9421_v59, %v5864_v35 }
 0x93a   : > { %v9310_v37 = vpop.eup %9309  ;;  %v5606_v13 = vadd.f32 1e-05, %v5542_v49  ;;  %6158 = vmatmul.mubr.f32.gmra.mrb[166].mxu0 %v6026_v14  ;;  %v5793_v6 = vmul.f32 %v13029_v10, %v5723_v62  ;;  %v13258_v36 = vadd.f32 %v9424_v47, %v5865_v38  ;;  %v13956_v38 = vld [vmem:[#allocation75_spill] sm:$0xff]  ;;  %v13958_v47 = vld [vmem:[#allocation77_spill] sm:$0xff] }
 0x93b   : > { %v9312_v22 = vpop.eup %9311  ;;  %v5607_v9 = vadd.f32 1e-05, %v5543_v54  ;;  %v5479_v41 = vpop.xlane.xlu0 %5478  ;;  %6162 = vmatprep.mubr.f32.mxu0 %v6031_v53  ;;  %v5732_v20 = vmul.f32 %v9310_v37, %v13950_v57  ;;  %v5862_v11 = vadd.f32 %v13034_v27, %v5792_v0  ;;  %5992 = vst [vmem:[#allocation2 + $0x150] sm:$0xff] %v13247_v43  ;;  %v9428_v53 = vld [vmem:[#allocation2 + $0x198] sm:$0xff] }
 0x93c   : > { %9321 = vrsqrt.f32 %v5606_v13  ;;  %v5548_v32 = vmul.f32 0.0078125, %v5479_v41  ;;  %v5481_v56 = vpop.xlane.xlu1 %5480  ;;  %v5733_v46 = vmul.f32 %v9312_v22, %v13951_v25  ;;  %v5863_v58 = vadd.f32 %v13034_v27, %v5793_v6  ;;  %5993 = vst [vmem:[#allocation2 + $0x158] sm:$0xff] %v13258_v36  ;;  %v6038_v13 = vld [vmem:[#allocation5 + $0xc0] sm:$0xff] }
 0x93d   : > { %9323 = vrsqrt.f32 %v5607_v9  ;;  %v5549_v40 = vmul.f32 0.0078125, %v5481_v56  ;;  %v5802_v63 = vmul.f32 %v13029_v10, %v5732_v20  ;;  %v13252_v48 = vadd.f32 %v9422_v45, %v5862_v11  ;;  %v9429_v11 = vld [vmem:[#allocation2 + $0x180] sm:$0xff] }
 0x93e   : > { %v9314_v7 = vpop.eup %9313  ;;  %v5612_v50 = vadd.f32 1e-05, %v5548_v32  ;;  %6163 = vmatmul.mubr.f32.gmra.mrb[168].mxu0 %v6030_v30  ;;  %v5803_v51 = vmul.f32 %v13029_v10, %v5733_v46  ;;  %v13256_v3 = vadd.f32 %v9423_v8, %v5863_v58  ;;  %v6043_v30 = vld [vmem:[#allocation5 + $0xe8] sm:$0xff]  ;;  %v13957_v32 = vld [vmem:[#allocation74_spill] sm:$0xff]  ;;  %v8919_v8 = vpack.c.bf16 %v13208_v23, %v13204_v55 }
 0x93f   : > { %v9316_v16 = vpop.eup %9315  ;;  %v5613_v28 = vadd.f32 1e-05, %v5549_v40  ;;  %v5475_v61 = vpop.xlane.xlu0 %5474  ;;  %6167 = vmatprep.mubr.f32.mxu0 %v6035_v42  ;;  %v5730_v1 = vmul.f32 %v9314_v7, %v13952_v34  ;;  %v5872_v44 = vadd.f32 %v13034_v27, %v5802_v63  ;;  %5990 = vst [vmem:[#allocation2 + $0x140] sm:$0xff] %v13252_v48  ;;  %v13273_v27 = vld [vmem:[%s13955_s29] ss:$0 sm:$0xff]  ;;  %v9430_v46 = vld [vmem:[#allocation2 + $0x188] sm:$0xff]  ;;  %v8923_v40 = vpack.c.bf16 %v13206_v60, %v13197_v24 }
 0x940   : > { %9325 = vrsqrt.f32 %v5612_v50  ;;  %v5546_v10 = vmul.f32 0.0078125, %v5475_v61  ;;  %v5477_v19 = vpop.xlane.xlu1 %5476  ;;  %v5731_v31 = vmul.f32 %v9316_v16, %v13953_v21  ;;  %v5873_v26 = vadd.f32 %v13266_v5, %v5803_v51  ;;  %5991 = vst [vmem:[#allocation2 + $0x148] sm:$0xff] %v13256_v3  ;;  %v6042_v51 = vld [vmem:[#allocation5 + $0xe0] sm:$0xff]  ;;  %v6047_v60 = vld [vmem:[#allocation5 + $0x108] sm:$0xff]  ;;  %v13959_v34 = vld [vmem:[#allocation76_spill] sm:$0xff] }
 0x941   : > { %9327 = vrsqrt.f32 %v5613_v28  ;;  %v5547_v29 = vmul.f32 0.0078125, %v5477_v19  ;;  %v5800_v2 = vmul.f32 %v13273_v27, %v5730_v1  ;;  %v13276_v14 = vadd.f32 %v9427_v17, %v5872_v44  ;;  %v6046_v17 = vld [vmem:[#allocation5 + $0x100] sm:$0xff] }
 0x942   : > { %v9318_v62 = vpop.eup %9317  ;;  %v5610_v49 = vadd.f32 1e-05, %v5546_v10  ;;  %6168 = vmatmul.mubr.f32.gmra.mrb[170].mxu0 %v6034_v52  ;;  %v5801_v33 = vmul.f32 %v13273_v27, %v5731_v31  ;;  %v13279_v54 = vadd.f32 %v9428_v53, %v5873_v26  ;;  %v13960_v53 = vld [vmem:[#allocation57_spill] sm:$0xff] }
 0x943   : > { %v9320_v0 = vpop.eup %9319  ;;  %v5611_v35 = vadd.f32 1e-05, %v5547_v29  ;;  %v5451_v37 = vpop.xlane.xlu0 %5450  ;;  %6172 = vmatprep.mubr.f32.mxu0 %v6039_v12  ;;  %v5870_v6 = vadd.f32 %v13266_v5, %v5800_v2  ;;  %6000 = vst [vmem:[#allocation2 + $0x190] sm:$0xff] %v13276_v14  ;;  %v5736_v22 = vmul.f32 %v9318_v62, %v13956_v38 }
 0x944   : > { %9329 = vrsqrt.f32 %v5610_v49  ;;  %v5534_v9 = vmul.f32 0.0078125, %v5451_v37  ;;  %v5453_v41 = vpop.xlane.xlu1 %5452  ;;  %v5871_v57 = vadd.f32 %v13266_v5, %v5801_v33  ;;  %6001 = vst [vmem:[#allocation2 + $0x198] sm:$0xff] %v13279_v54  ;;  %v5737_v56 = vmul.f32 %v9320_v0, %v13957_v32  ;;  %v9431_v49 = vld [vmem:[#allocation2 + $0x1b0] sm:$0xff] }
 0x945   : > { %9331 = vrsqrt.f32 %v5611_v35  ;;  %v5535_v20 = vmul.f32 0.0078125, %v5453_v41  ;;  %v5934_v59 = vadd.f32 %v9429_v11, %v5870_v6  ;;  %v5806_v63 = vmul.f32 %v13273_v27, %v5736_v22  ;;  %v9433_v22 = vld [vmem:[#allocation2 + $0x1a0] sm:$0xff]  ;;  %v13961_v41 = vld [vmem:[#allocation56_spill] sm:$0xff]  ;;  %v9434_v11 = vld [vmem:[#allocation2 + $0x1a8] sm:$0xff] }
 0x946   : > { %v9322_v42 = vpop.eup %9321  ;;  %v5598_v25 = vadd.f32 1e-05, %v5534_v9  ;;  %6173 = vmatmul.mubr.f32.gmra.mrb[172].mxu0 %v6038_v13  ;;  %v5935_v58 = vadd.f32 %v9430_v46, %v5871_v57  ;;  %v5807_v28 = vmul.f32 %v13273_v27, %v5737_v56  ;;  %v8921_v23 = vpack.c.bf16 %v13279_v54, %v13276_v14  ;;  %v6051_v14 = vld [vmem:[#allocation5 + $0x128] sm:$0xff]  ;;  %v9432_v13 = vld [vmem:[#allocation2 + $0x1b8] sm:$0xff]  ;;  %v6050_v46 = vld [vmem:[#allocation5 + $0x120] sm:$0xff] }
 0x947   : > { %v9324_v45 = vpop.eup %9323  ;;  %v5599_v7 = vadd.f32 1e-05, %v5535_v20  ;;  %v5483_v50 = vpop.xlane.xlu0 %5482  ;;  %6177 = vmatprep.mubr.f32.mxu0 %v6043_v30  ;;  %5998 = vst [vmem:[#allocation2 + $0x180] sm:$0xff] %v5934_v59  ;;  %v5734_v16 = vmul.f32 %v9322_v42, %v13958_v47  ;;  %v5876_v19 = vadd.f32 %v13266_v5, %v5806_v63  ;;  %v13962_v63 = vld [vmem:[#allocation62_spill] sm:$0xff]  ;;  %v6055_v47 = vld [vmem:[#allocation5 + $0x148] sm:$0xff] }
 0x948   : > { %9333 = vrsqrt.f32 %v5598_v25  ;;  %v5550_v61 = vmul.f32 0.0078125, %v5483_v50  ;;  %v5485_v52 = vpop.xlane.xlu1 %5484  ;;  %5999 = vst [vmem:[#allocation2 + $0x188] sm:$0xff] %v5935_v58  ;;  %v8917_v24 = vpack.c.bf16 %v5935_v58, %v5934_v59  ;;  %v5735_v1 = vmul.f32 %v9324_v45, %v13959_v34 }
 0x949   : > { %9335 = vrsqrt.f32 %v5599_v7  ;;  %v5551_v44 = vmul.f32 0.0078125, %v5485_v52  ;;  %v5804_v10 = vmul.f32 %v13273_v27, %v5734_v16  ;;  %v5877_v31 = vadd.f32 %v13266_v5, %v5807_v28  ;;  %v13963_v16 = vld [vmem:[#allocation55_spill] sm:$0xff] }
 0x94a   : > { %v9326_v12 = vpop.eup %9325  ;;  %v5614_v55 = vadd.f32 1e-05, %v5550_v61  ;;  %6178 = vmatmul.mubr.f32.gmra.mrb[174].mxu0 %v6042_v51  ;;  %8918 = vmatprep.subr.bf16.mxu0 %v8917_v24  ;;  %v5805_v21 = vmul.f32 %v13273_v27, %v5735_v1  ;;  %v5940_v33 = vadd.f32 %v9431_v49, %v5876_v19  ;;  %v8927_v58 = vpack.c.bf16 %v13232_v18, %v13227_v15 }
 0x94b   : > { %v9328_v26 = vpop.eup %9327  ;;  %v5615_v29 = vadd.f32 1e-05, %v5551_v44  ;;  %8920 = vmatpush3.bf16.msra.mxu0 %v8919_v8  ;;  %v5487_v2 = vpop.xlane.xlu0 %5486  ;;  %6182 = vmatprep.mubr.f32.mxu0 %v6047_v60  ;;  %v5874_v62 = vadd.f32 %v13266_v5, %v5804_v10  ;;  %v5740_v0 = vmul.f32 %v9326_v12, %v13960_v53  ;;  %v5941_v6 = vadd.f32 %v9432_v13, %v5877_v31  ;;  %v13964_v44 = vld [vmem:[#allocation58_spill] sm:$0xff]  ;;  %v13965_v31 = vld [vmem:[#allocation52_spill] sm:$0xff] }
 0x94c   : > { %9337 = vrsqrt.f32 %v5614_v55  ;;  %v5552_v35 = vmul.f32 0.0078125, %v5487_v2  ;;  %v5489_v37 = vpop.xlane.xlu1 %5488  ;;  %8922 = vmatprep.subr.bf16.mxu0 %v8921_v23  ;;  %v5875_v54 = vadd.f32 %v13266_v5, %v5805_v21  ;;  %6004 = vst [vmem:[#allocation2 + $0x1b0] sm:$0xff] %v5940_v33  ;;  %v5741_v30 = vmul.f32 %v9328_v26, %v13961_v41  ;;  %v6054_v12 = vld [vmem:[#allocation5 + $0x140] sm:$0xff]  ;;  %v9435_v23 = vld [vmem:[#allocation2 + $0x1d0] sm:$0xff]  ;;  %v13967_v41 = vld [vmem:[#allocation59_spill] sm:$0xff] }
 0x94d   : > { %9339 = vrsqrt.f32 %v5615_v29  ;;  %v5553_v38 = vmul.f32 0.0078125, %v5489_v37  ;;  %v5938_v9 = vadd.f32 %v9433_v22, %v5874_v62  ;;  %6005 = vst [vmem:[#allocation2 + $0x1b8] sm:$0xff] %v5941_v6  ;;  %v5810_v32 = vmul.f32 %v13273_v27, %v5740_v0  ;;  %v6059_v29 = vld [vmem:[#allocation5 + $0x168] sm:$0xff] }
 0x94e   : > { %v9330_v57 = vpop.eup %9329  ;;  %v5616_v20 = vadd.f32 1e-05, %v5552_v35  ;;  %6183 = vmatmul.mubr.f32.gmra.mrb[176].mxu0 %v6046_v17  ;;  %v5939_v59 = vadd.f32 %v9434_v11, %v5875_v54  ;;  %v5811_v7 = vmul.f32 %v13273_v27, %v5741_v30  ;;  %v8929_v18 = vpack.c.bf16 %v5941_v6, %v5940_v33  ;;  %v9436_v17 = vld [vmem:[#allocation2 + $0x1d8] sm:$0xff]  ;;  %v9437_v33 = vld [vmem:[#allocation2 + $0x1c0] sm:$0xff]  ;;  %v9438_v37 = vld [vmem:[#allocation2 + $0x1c8] sm:$0xff] }
 0x94f   : > { %v9332_v56 = vpop.eup %9331  ;;  %v5617_v42 = vadd.f32 1e-05, %v5553_v38  ;;  %8924 = vmatpush3.bf16.msra.mxu0 %v8923_v40  ;;  %v5455_v25 = vpop.xlane.xlu0 %5454  ;;  %6187 = vmatprep.mubr.f32.mxu0 %v6051_v14  ;;  %6002 = vst [vmem:[#allocation2 + $0x1a0] sm:$0xff] %v5938_v9  ;;  %v5738_v45 = vmul.f32 %v9330_v57, %v13962_v63  ;;  %v5880_v52 = vadd.f32 %v13266_v5, %v5810_v32  ;;  %v6058_v6 = vld [vmem:[#allocation5 + $0x160] sm:$0xff] }
 0x950   : > { %9341 = vrsqrt.f32 %v5616_v20  ;;  %v5536_v50 = vmul.f32 0.0078125, %v5455_v25  ;;  %v5457_v51 = vpop.xlane.xlu1 %5456  ;;  %6003 = vst [vmem:[#allocation2 + $0x1a8] sm:$0xff] %v5939_v59  ;;  %v8925_v8 = vpack.c.bf16 %v5939_v59, %v5938_v9  ;;  %v5739_v28 = vmul.f32 %v9332_v56, %v13963_v16  ;;  %v13966_v38 = vld [vmem:[#allocation66_spill] sm:$0xff]  ;;  %v6063_v9 = vld [vmem:[#allocation5 + $0x188] sm:$0xff] }
 0x951   : > { %9343 = vrsqrt.f32 %v5617_v42  ;;  %v5537_v40 = vmul.f32 0.0078125, %v5457_v51  ;;  %v5808_v61 = vmul.f32 %v13273_v27, %v5738_v45  ;;  %v5881_v34 = vadd.f32 %v13266_v5, %v5811_v7  ;;  %v9439_v59 = vld [vmem:[#allocation2 + $0x160] sm:$0xff] }
 0x952   : > { %v9334_v24 = vpop.eup %9333  ;;  %v5600_v15 = vadd.f32 1e-05, %v5536_v50  ;;  %6188 = vmatmul.mubr.f32.gmra.mrb[178].mxu0 %v6050_v46  ;;  %8926 = vmatprep.subr.bf16.mxu0 %v8925_v8  ;;  %v5809_v60 = vmul.f32 %v13273_v27, %v5739_v28  ;;  %v5944_v21 = vadd.f32 %v9435_v23, %v5880_v52  ;;  %v8931_v49 = vpack.c.bf16 %v13229_v39, %v13223_v4  ;;  %v9440_v46 = vld [vmem:[#allocation2 + $0x168] sm:$0xff]  ;;  %v6062_v45 = vld [vmem:[#allocation5 + $0x180] sm:$0xff]  ;;  %v13969_v8 = vld [vmem:[#allocation60_spill] sm:$0xff] }
 0x953   : > { %v9336_v1 = vpop.eup %9335  ;;  %v5726_v10 = vmul.f32 %v9334_v24, %v13964_v44  ;;  %v5601_v19 = vadd.f32 1e-05, %v5537_v40  ;;  %8928 = vmatpush3.bf16.msra.mxu0 %v8927_v58  ;;  %6192 = vmatprep.mubr.f32.mxu0 %v6055_v47  ;;  %v5878_v55 = vadd.f32 %v13266_v5, %v5808_v61  ;;  %v5945_v62 = vadd.f32 %v9436_v17, %v5881_v34  ;;  %v6067_v50 = vld [vmem:[#allocation5 + $0x1a8] sm:$0xff]  ;;  %v9441_v28 = vld [vmem:[#allocation2 + $0x1e0] sm:$0xff] }
 0x954   : > { %v5727_v26 = vmul.f32 %v9336_v1, %v13965_v31  ;;  %9345 = vrsqrt.f32 %v5600_v15  ;;  %8930 = vmatprep.subr.bf16.mxu0 %v8929_v18  ;;  %v5879_v2 = vadd.f32 %v13266_v5, %v5809_v60  ;;  %6008 = vst [vmem:[#allocation2 + $0x1d0] sm:$0xff] %v5944_v21  ;;  %v8935_v20 = vpack.c.bf16 %v13256_v3, %v13252_v48  ;;  %v13968_v48 = vld [vmem:[#allocation61_spill] sm:$0xff]  ;;  %v9442_v24 = vld [vmem:[#allocation2 + $0x1e8] sm:$0xff]  ;;  %v13970_v34 = vld [vmem:[#allocation54_spill] sm:$0xff] }
 0x955   : > { %9347 = vrsqrt.f32 %v5601_v19  ;;  %v5942_v53 = vadd.f32 %v9437_v33, %v5878_v55  ;;  %v5796_v0 = vmul.f32 %v13273_v27, %v5726_v10  ;;  %6009 = vst [vmem:[#allocation2 + $0x1d8] sm:$0xff] %v5945_v62  ;;  %v8937_v42 = vpack.c.bf16 %v5945_v62, %v5944_v21  ;;  %v6066_v44 = vld [vmem:[#allocation5 + $0x1a0] sm:$0xff]  ;;  %v9443_v21 = vld [vmem:[#allocation2 + $0x1f0] sm:$0xff] }
 0x956   : > { %v9338_v35 = vpop.eup %9337  ;;  %6193 = vmatmul.mubr.f32.gmra.mrb[180].mxu0 %v6054_v12  ;;  %v5943_v14 = vadd.f32 %v9438_v37, %v5879_v2  ;;  %v5797_v54 = vmul.f32 %v13273_v27, %v5727_v26  ;;  %v8939_v16 = vpack.c.bf16 %v13258_v36, %v13247_v43  ;;  %v13971_v43 = vld [vmem:[#allocation53_spill] sm:$0xff]  ;;  %v6071_v12 = vld [vmem:[#allocation5 + $0x1c8] sm:$0xff]  ;;  %v6070_v62 = vld [vmem:[#allocation5 + $0x1c0] sm:$0xff] }
 0x957   : > { %v9340_v13 = vpop.eup %9339  ;;  %8932 = vmatpush3.bf16.msra.mxu0 %v8931_v49  ;;  %6197 = vmatprep.mubr.f32.mxu0 %v6059_v29  ;;  %6006 = vst [vmem:[#allocation2 + $0x1c0] sm:$0xff] %v5942_v53  ;;  %v5742_v22 = vmul.f32 %v9338_v35, %v13966_v38  ;;  %v5866_v4 = vadd.f32 %v13266_v5, %v5796_v0  ;;  %v9444_v29 = vld [vmem:[#allocation2 + $0x1f8] sm:$0xff]  ;;  %v9445_v35 = vld [vmem:[#allocation2 + $0x170] sm:$0xff] }
 0x958   : > { %6007 = vst [vmem:[#allocation2 + $0x1c8] sm:$0xff] %v5943_v14  ;;  %v8933_v39 = vpack.c.bf16 %v5943_v14, %v5942_v53  ;;  %v5743_v30 = vmul.f32 %v9340_v13, %v13967_v41  ;;  %v5867_v57 = vadd.f32 %v13266_v5, %v5797_v54  ;;  %v6075_v53 = vld [vmem:[#allocation5 + $0x1e8] sm:$0xff]  ;;  %v9446_v14 = vld [vmem:[#allocation2 + $0x178] sm:$0xff]  ;;  %v6074_v13 = vld [vmem:[#allocation5 + $0x1e0] sm:$0xff] }
 0x959   : > { %v5812_v11 = vmul.f32 %v13273_v27, %v5742_v22  ;;  %v5930_v32 = vadd.f32 %v9439_v59, %v5866_v4  ;;  %v6016_v38 = vld [vmem:[#allocation5 + $0x10] sm:$0xff]  ;;  %v6021_v22 = vld [vmem:[#allocation5 + $0x38] sm:$0xff] }
 0x95a   : > { %v9342_v56 = vpop.eup %9341  ;;  %6198 = vmatmul.mubr.f32.gmra.mrb[182].mxu0 %v6058_v6  ;;  %8934 = vmatprep.subr.bf16.mxu0 %v8933_v39  ;;  %v5813_v25 = vmul.f32 %v13273_v27, %v5743_v30  ;;  %v5931_v58 = vadd.f32 %v9440_v46, %v5867_v57  ;;  %v6017_v6 = vld [vmem:[#allocation5 + $0x18] sm:$0xff]  ;;  %v6024_v39 = vld [vmem:[#allocation5 + $0x50] sm:$0xff] }
 0x95b   : > { %v9344_v63 = vpop.eup %9343  ;;  %8936 = vmatpush3.bf16.msra.mxu0 %v8935_v20  ;;  %6202 = vmatprep.mubr.f32.mxu0 %v6063_v9  ;;  %v5882_v7 = vadd.f32 %v13266_v5, %v5812_v11  ;;  %5994 = vst [vmem:[#allocation2 + $0x160] sm:$0xff] %v5930_v32  ;;  %v5744_v3 = vmul.f32 %v9342_v56, %v13968_v48  ;;  %v6025_v4 = vld [vmem:[#allocation5 + $0x58] sm:$0xff]  ;;  %v6028_v41 = vld [vmem:[#allocation5 + $0x70] sm:$0xff] }
 0x95c   : > { %8938 = vmatprep.subr.bf16.mxu0 %v8937_v42  ;;  %v5883_v51 = vadd.f32 %v13266_v5, %v5813_v25  ;;  %5995 = vst [vmem:[#allocation2 + $0x168] sm:$0xff] %v5931_v58  ;;  %v5745_v47 = vmul.f32 %v9344_v63, %v13969_v8  ;;  %v8943_v23 = vpack.c.bf16 %v5931_v58, %v5930_v32  ;;  %v6029_v9 = vld [vmem:[#allocation5 + $0x78] sm:$0xff]  ;;  %v6032_v57 = vld [vmem:[#allocation5 + $0x90] sm:$0xff] }
 0x95d   : > { %v5946_v40 = vadd.f32 %v9441_v28, %v5882_v7  ;;  %v5814_v61 = vmul.f32 %v13273_v27, %v5744_v3  ;;  %v6033_v30 = vld [vmem:[#allocation5 + $0x98] sm:$0xff]  ;;  %v6036_v11 = vld [vmem:[#allocation5 + $0xb0] sm:$0xff] }
 0x95e   : > { %v9346_v52 = vpop.eup %9345  ;;  %6203 = vmatmul.mubr.f32.gmra.mrb[184].mxu0 %v6062_v45  ;;  %v5947_v15 = vadd.f32 %v9442_v24, %v5883_v51  ;;  %v5815_v18 = vmul.f32 %v13273_v27, %v5745_v47  ;;  %v6037_v20 = vld [vmem:[#allocation5 + $0xb8] sm:$0xff]  ;;  %v6040_v32 = vld [vmem:[#allocation5 + $0xd0] sm:$0xff] }
 0x95f   : > { %v9348_v60 = vpop.eup %9347  ;;  %v5728_v1 = vmul.f32 %v9346_v52, %v13970_v34  ;;  %8940 = vmatpush3.bf16.msra.mxu0 %v8939_v16  ;;  %6207 = vmatprep.mubr.f32.mxu0 %v6067_v50  ;;  %6010 = vst [vmem:[#allocation2 + $0x1e0] sm:$0xff] %v5946_v40  ;;  %v5884_v10 = vadd.f32 %v13266_v5, %v5814_v61  ;;  %v6041_v59 = vld [vmem:[#allocation5 + $0xd8] sm:$0xff]  ;;  %v6044_v42 = vld [vmem:[#allocation5 + $0xf0] sm:$0xff] }
 0x960   : > { %v5729_v36 = vmul.f32 %v9348_v60, %v13971_v43  ;;  %6011 = vst [vmem:[#allocation2 + $0x1e8] sm:$0xff] %v5947_v15  ;;  %v8941_v19 = vpack.c.bf16 %v5947_v15, %v5946_v40  ;;  %v5885_v55 = vadd.f32 %v13266_v5, %v5815_v18  ;;  %v6045_v56 = vld [vmem:[#allocation5 + $0xf8] sm:$0xff]  ;;  %v6048_v46 = vld [vmem:[#allocation5 + $0x110] sm:$0xff] }
 0x961   : > { %v5948_v31 = vadd.f32 %v9443_v21, %v5884_v10  ;;  %v5798_v26 = vmul.f32 %v13273_v27, %v5728_v1  ;;  %v6049_v25 = vld [vmem:[#allocation5 + $0x118] sm:$0xff]  ;;  %v6052_v63 = vld [vmem:[#allocation5 + $0x130] sm:$0xff]  ;;  %v9195_v1 = vld [vmem:[%s10675_s24 + $0x58] sm:$0xff]  }
 0x962   : > { %6208 = vmatmul.mubr.f32.gmra.mrb[186].mxu0 %v6066_v44  ;;  %8942 = vmatprep.subr.bf16.mxu0 %v8941_v19  ;;  %v5949_v2 = vadd.f32 %v9444_v29, %v5885_v55  ;;  %v5799_v17 = vmul.f32 %v13273_v27, %v5729_v36  ;;  %v6053_v58 = vld [vmem:[#allocation5 + $0x138] sm:$0xff]  ;;  %v9189_v45 = vld [vmem:[%s10675_s24 + $0x40] sm:$0xff]   ;;  %v9196_v44 = vld [vmem:[%s10675_s24 + $0x18] sm:$0xff]  }
 0x963   : > { %8944 = vmatpush3.bf16.msra.mxu0 %v8943_v23  ;;  %6212 = vmatprep.mubr.f32.mxu0 %v6071_v12  ;;  %6012 = vst [vmem:[#allocation2 + $0x1f0] sm:$0xff] %v5948_v31  ;;  %v5868_v49 = vadd.f32 %v13266_v5, %v5798_v26  ;;  %v6057_v7 = vld [vmem:[#allocation5 + $0x158] sm:$0xff]  ;;  %v9190_v48 = vld [vmem:[%s10675_s24] sm:$0xff]   ;;  %v9203_v23 = vld [vmem:[%s10675_s24 + $0x78] sm:$0xff]  }
 0x964   : > { %6013 = vst [vmem:[#allocation2 + $0x1f8] sm:$0xff] %v5949_v2  ;;  %v8945_v33 = vpack.c.bf16 %v5949_v2, %v5948_v31  ;;  %v5869_v0 = vadd.f32 %v13266_v5, %v5799_v17  ;;  %v6020_v5 = vld [vmem:[#allocation5 + $0x30] sm:$0xff]  ;;  %8165 = vmatprep.subr.bf16.mxu1 %v9189_v45  ;;  %v6061_v50 = vld [vmem:[#allocation5 + $0x178] sm:$0xff]  ;;  %v9204_v21 = vld [vmem:[%s10675_s24 + $0x38] sm:$0xff]  }
 0x965   : > { %v5932_v37 = vadd.f32 %v9445_v35, %v5868_v49  ;;  %v6056_v3 = vld [vmem:[#allocation5 + $0x150] sm:$0xff]  ;;  %8166 = vmatpush3.bf16.msra.mxu1 %v9190_v48  ;;  %v6065_v8 = vld [vmem:[#allocation5 + $0x198] sm:$0xff]  ;;  %v9205_v17 = vld [vmem:[%s10711_s27] sm:$0xff]  }
 0x966   : > { %6213 = vmatmul.mubr.f32.gmra.mrb[188].mxu0 %v6070_v62  ;;  %8946 = vmatprep.subr.bf16.mxu0 %v8945_v33  ;;  %v5933_v54 = vadd.f32 %v9446_v14, %v5869_v0  ;;  %v6060_v51 = vld [vmem:[#allocation5 + $0x170] sm:$0xff]  ;;  %v6069_v16 = vld [vmem:[#allocation5 + $0x1b8] sm:$0xff]  ;;  %v9206_v62 = vld [vmem:[%s10711_s27 + $0x8] sm:$0xff]  }
 0x967   : > { %6217 = vmatprep.mubr.f32.mxu0 %v6075_v53  ;;  %5996 = vst [vmem:[#allocation2 + $0x170] sm:$0xff] %v5932_v37  ;;  %v6064_v47 = vld [vmem:[#allocation5 + $0x190] sm:$0xff]  ;;  %v6073_v52 = vld [vmem:[#allocation5 + $0x1d8] sm:$0xff] }
 0x968   : > { %5997 = vst [vmem:[#allocation2 + $0x178] sm:$0xff] %v5933_v54  ;;  %v8947_v27 = vpack.c.bf16 %v5933_v54, %v5932_v37  ;;  %v9191_v28 = vld [vmem:[%s10675_s24 + $0x48] sm:$0xff]   ;;  %v9193_v18 = vld [vmem:[%s10675_s24 + $0x50] sm:$0xff]   ;;  %v9197_v10 = vld [vmem:[%s10675_s24 + $0x60] sm:$0xff]  }
 0x969   : > { %v6068_v40 = vld [vmem:[#allocation5 + $0x1b0] sm:$0xff]  ;;  %8167 = vmatprep.subr.bf16.mxu1 %v9191_v28  ;;  %v6077_v15 = vld [vmem:[#allocation5 + $0x1f8] sm:$0xff] }
 0x96a   : > { %6218 = vmatmul.mubr.f32.gmra.mrb[190].mxu0 %v6074_v13  ;;  %v9192_v61 = vld [vmem:[%s10675_s24 + $0x8] sm:$0xff]   ;;  %v9194_v34 = vld [vmem:[%s10675_s24 + $0x10] sm:$0xff]   ;;  %v9198_v43 = vld [vmem:[%s10675_s24 + $0x20] sm:$0xff]  }
 0x96b   : > { %8948 = vmatpush3.bf16.msra.mxu0 %v8947_v27  ;;  %6287 = vmatprep.mubr.f32.mxu0 %v6017_v6  ;;  %v6072_v24 = vld [vmem:[#allocation5 + $0x1d0] sm:$0xff]  ;;  %v9201_v12 = vld [vmem:[%s10675_s24 + $0x70] sm:$0xff]  }
 0x96c   : > { %8168 = vmatpush3.bf16.msra.mxu1 %v9192_v61  ;;  %v6076_v60 = vld [vmem:[#allocation5 + $0x1f0] sm:$0xff]  ;;  %v9202_v55 = vld [vmem:[%s10675_s24 + $0x30] sm:$0xff]   ;;  %8757 = vmatprep.subr.bf16.mxu0 %v9205_v17 }
 0x96d   : > { %8169 = vmatprep.subr.bf16.mxu1 %v9193_v18  ;;  %v9199_v36 = vld [vmem:[%s10675_s24 + $0x68] sm:$0xff]  }
 0x96e   : > { %6288 = vmatmul.mubr.f32.vlgmr.msra.gmra.mrb[192].mxu0 %v6016_v38  ;;  %v9200_v19 = vld [vmem:[%s10675_s24 + $0x28] sm:$0xff]   ;;  %s13979_s24 = scalar_lea.vmem [#allocation23], %s10634_s12 }
 0x96f   : > { %6292 = vmatprep.mubr.f32.mxu0 %v6021_v22  ;;  %8758 = vmatpush3.bf16.msra.mxu0 %v9205_v17  ;;  %v9207_v0 = vld [vmem:[%s10711_s27 + $0x10] sm:$0xff]   ;;  %v9208_v54 = vld [vmem:[%s10711_s27 + $0x18] sm:$0xff]  }
 0x970   : > { %8170 = vmatpush3.bf16.msra.mxu1 %v9194_v34  ;;  %8759 = vmatprep.subr.bf16.mxu0 %v9206_v62  ;;  %v13972_v17 = vld [vmem:[#allocation45_spill] sm:$0xff] }
 0x971   : > { %8171 = vmatprep.subr.bf16.mxu1 %v9195_v1 }
 0x972   : > { %6293 = vmatmul.mubr.f32.gmra.mrb[194].mxu0 %v6020_v5 }
 0x973   : > { %6297 = vmatprep.mubr.f32.mxu0 %v6025_v4  ;;  %8760 = vmatpush3.bf16.msra.mxu0 %v9206_v62 }
 0x974   : > { %8172 = vmatpush3.bf16.msra.mxu1 %v9196_v44  ;;  %8761 = vmatprep.subr.bf16.mxu0 %v9207_v0 }
 0x975   : > { %8173 = vmatprep.subr.bf16.mxu1 %v9197_v10 }
 0x976   : > { %6298 = vmatmul.mubr.f32.gmra.mrb[196].mxu0 %v6024_v39 }
 0x977   : > { %6302 = vmatprep.mubr.f32.mxu0 %v6029_v9  ;;  %8762 = vmatpush3.bf16.msra.mxu0 %v9207_v0 }
 0x978   : > { %8174 = vmatpush3.bf16.msra.mxu1 %v9198_v43  ;;  %8763 = vmatprep.subr.bf16.mxu0 %v9208_v54 }
 0x979   : > { %8175 = vmatprep.subr.bf16.mxu1 %v9199_v36 }
 0x97a   : > { %6303 = vmatmul.mubr.f32.gmra.mrb[198].mxu0 %v6028_v41 }
 0x97b   : > { %6307 = vmatprep.mubr.f32.mxu0 %v6033_v30  ;;  %8764 = vmatpush3.bf16.msra.mxu0 %v9208_v54 }
 0x97c   : > { %8176 = vmatpush3.bf16.msra.mxu1 %v9200_v19 }
 0x97d   : > { %8177 = vmatprep.subr.bf16.mxu1 %v9201_v12 }
 0x97e   : > { %6308 = vmatmul.mubr.f32.gmra.mrb[200].mxu0 %v6032_v57 }
 0x97f   : > { %6312 = vmatprep.mubr.f32.mxu0 %v6037_v20 }
 0x980   : > { %8178 = vmatpush3.bf16.msra.mxu1 %v9202_v55 }
 0x981   : > { %8179 = vmatprep.subr.bf16.mxu1 %v9203_v23 }
 0x982   : > { %6313 = vmatmul.mubr.f32.gmra.mrb[202].mxu0 %v6036_v11 }
 0x983   : > { %6317 = vmatprep.mubr.f32.mxu0 %v6041_v59 }
 0x984   : > { %8180 = vmatpush3.bf16.msra.mxu1 %v9204_v21 }
 0x986   : > { %6318 = vmatmul.mubr.f32.gmra.mrb[204].mxu0 %v6040_v32 }
 0x987   : > { %6322 = vmatprep.mubr.f32.mxu0 %v6045_v56 }
 0x98a   : > { %6323 = vmatmul.mubr.f32.gmra.mrb[206].mxu0 %v6044_v42 }
 0x98b   : > { %6327 = vmatprep.mubr.f32.mxu0 %v6049_v25 }
 0x98e   : > { %6328 = vmatmul.mubr.f32.gmra.mrb[208].mxu0 %v6048_v46 }
 0x98f   : > { %6332 = vmatprep.mubr.f32.mxu0 %v6053_v58 }
 0x992   : > { %6333 = vmatmul.mubr.f32.gmra.mrb[210].mxu0 %v6052_v63 }
 0x993   : > { %6337 = vmatprep.mubr.f32.mxu0 %v6057_v7 }
 0x996   : > { %6338 = vmatmul.mubr.f32.gmra.mrb[212].mxu0 %v6056_v3 }
 0x997   : > { %6342 = vmatprep.mubr.f32.mxu0 %v6061_v50 }
 0x99a   : > { %6343 = vmatmul.mubr.f32.gmra.mrb[214].mxu0 %v6060_v51 }
 0x99b   : > { %6347 = vmatprep.mubr.f32.mxu0 %v6065_v8 }
 0x99e   : > { %6348 = vmatmul.mubr.f32.gmra.mrb[216].mxu0 %v6064_v47 }
 0x99f   : > { %6352 = vmatprep.mubr.f32.mxu0 %v6069_v16 }
 0x9a2   : > { %6353 = vmatmul.mubr.f32.gmra.mrb[218].mxu0 %v6068_v40 }
 0x9a3   : > { %6357 = vmatprep.mubr.f32.mxu0 %v6073_v52 }
 0x9a6   : > { %6358 = vmatmul.mubr.f32.gmra.mrb[220].mxu0 %v6072_v24 }
 0x9a7   : > { %6362 = vmatprep.mubr.f32.mxu0 %v6077_v15 }
 0x9aa   : > { %6363 = vmatmul.mubr.f32.gmra.mrb[222].mxu0 %v6076_v60 }
 0xa01   : > { %v8037_v31 = vpop.f32.mrb[160].mxu0 }
 0xa02   : > { %v8038_v26 = vpop.f32.mrb[161].mxu0 }
 0xa03   : > { %v8039_v29 = vadd.f32 %v8038_v26, %v8037_v31 }
 0xa05   : > { %v8040_v2 = vpop.f32.mrb[162].mxu0 }
 0xa06   : > { %v8041_v49 = vpop.f32.mrb[163].mxu0 }
 0xa07   : > { %v8042_v33 = vadd.f32 %v8041_v49, %v8040_v2 }
 0xa09   : > { %v8043_v53 = vpop.f32.mrb[164].mxu0 }
 0xa0a   : > { %v8044_v35 = vpop.f32.mrb[165].mxu0 }
 0xa0b   : > { %v8045_v37 = vadd.f32 %v8044_v35, %v8043_v53 }
 0xa0d   : > { %v8046_v14 = vpop.f32.mrb[166].mxu0 }
 0xa0e   : > { %v8047_v13 = vpop.f32.mrb[167].mxu0 }
 0xa0f   : > { %v8048_v27 = vadd.f32 %v8047_v13, %v8046_v14  ;;  %v13973_v13 = vld [vmem:[#allocation46_spill] sm:$0xff] }
 0xa11   : > { %v8049_v6 = vpop.f32.mrb[168].mxu0 }
 0xa12   : > { %v8050_v38 = vpop.f32.mrb[169].mxu0 }
 0xa13   : > { %v8051_v22 = vadd.f32 %v8050_v38, %v8049_v6 }
 0xa15   : > { %v8052_v5 = vpop.f32.mrb[170].mxu0 }
 0xa16   : > { %v8053_v4 = vpop.f32.mrb[171].mxu0 }
 0xa17   : > { %v8054_v39 = vadd.f32 %v8053_v4, %v8052_v5 }
 0xa19   : > { %v8055_v9 = vpop.f32.mrb[172].mxu0 }
 0xa1a   : > { %v8056_v41 = vpop.f32.mrb[173].mxu0 }
 0xa1b   : > { %v8057_v30 = vadd.f32 %v8056_v41, %v8055_v9 }
 0xa1d   : > { %v8058_v57 = vpop.f32.mrb[174].mxu0 }
 0xa1e   : > { %v8059_v20 = vpop.f32.mrb[175].mxu0 }
 0xa1f   : > { %v13367_v11 = vadd.f32 %v8059_v20, %v8058_v57  ;;  %v13974_v20 = vld [vmem:[#allocation47_spill] sm:$0xff] }
 0xa21   : > { %v8061_v59 = vpop.f32.mrb[176].mxu0 }
 0xa22   : > { %v8062_v32 = vpop.f32.mrb[177].mxu0 }
 0xa23   : > { %v13369_v56 = vadd.f32 %v8062_v32, %v8061_v59 }
 0xa25   : > { %v8064_v42 = vpop.f32.mrb[178].mxu0 }
 0xa26   : > { %v8065_v25 = vpop.f32.mrb[179].mxu0 }
 0xa27   : > { %v13371_v46 = vadd.f32 %v8065_v25, %v8064_v42 }
 0xa29   : > { %v8067_v58 = vpop.f32.mrb[180].mxu0 }
 0xa2a   : > { %v8068_v63 = vpop.f32.mrb[181].mxu0 }
 0xa2b   : > { %v13373_v45 = vadd.f32 %v8068_v63, %v8067_v58 }
 0xa2d   : > { %v8070_v7 = vpop.f32.mrb[182].mxu0 }
 0xa2e   : > { %v8071_v48 = vpop.f32.mrb[183].mxu0 }
 0xa2f   : > { %v13375_v3 = vadd.f32 %v8071_v48, %v8070_v7  ;;  %v13975_v48 = vld [vmem:[#allocation48_spill] sm:$0xff] }
 0xa31   : > { %v8073_v50 = vpop.f32.mrb[184].mxu0 }
 0xa32   : > { %v8074_v51 = vpop.f32.mrb[185].mxu0 }
 0xa33   : > { %v13377_v8 = vadd.f32 %v8074_v51, %v8073_v50 }
 0xa35   : > { %v8076_v47 = vpop.f32.mrb[186].mxu0 }
 0xa36   : > { %v8077_v16 = vpop.f32.mrb[187].mxu0 }
 0xa37   : > { %v13379_v28 = vadd.f32 %v8077_v16, %v8076_v47 }
 0xa39   : > { %v8079_v40 = vpop.f32.mrb[188].mxu0 }
 0xa3a   : > { %v8080_v61 = vpop.f32.mrb[189].mxu0 }
 0xa3b   : > { %v13381_v52 = vadd.f32 %v8080_v61, %v8079_v40 }
 0xa3d   : > { %v8082_v24 = vpop.f32.mrb[190].mxu0 }
 0xa3e   : > { %v8083_v15 = vpop.f32.mrb[191].mxu0 }
 0xa3f   : > { %v13383_v18 = vadd.f32 %v8083_v15, %v8082_v24  ;;  %v13976_v15 = vld [vmem:[#allocation49_spill] sm:$0xff] }
 0xa41   : > { %v8117_v60 = vpop.f32.mrb[192].mxu0 }
 0xa42   : > { %v8118_v34 = vpop.f32.mrb[193].mxu0 }
 0xa43   : > { %v8119_v1 = vadd.f32 %v8118_v34, %v8117_v60 }
 0xa45   : > { %v6290_v44 = vadd.f32 %v8119_v1, %v8039_v29  ;;  %v8120_v10 = vpop.f32.mrb[194].mxu0 }
 0xa46   : > { %v8121_v43 = vpop.f32.mrb[195].mxu0 }
 0xa47   : > { %v8122_v36 = vadd.f32 %v8121_v43, %v8120_v10 }
 0xa49   : > { %v6295_v19 = vadd.f32 %v8122_v36, %v8042_v33  ;;  %v8123_v12 = vpop.f32.mrb[196].mxu0 }
 0xa4a   : > { %v8124_v55 = vpop.f32.mrb[197].mxu0 }
 0xa4b   : > { %v6368_v23 = vpack.c.bf16 %v6295_v19, %v6290_v44  ;;  %v8125_v21 = vadd.f32 %v8124_v55, %v8123_v12  ;;  %v13977_v19 = vld [vmem:[#allocation50_spill] sm:$0xff] }
 0xa4d   : > { %v6300_v31 = vadd.f32 %v8125_v21, %v8045_v37  ;;  %v8126_v26 = vpop.f32.mrb[198].mxu0  ;;  %6544 = vmatmul.mubr.bf16.vlgmr.msra.gmra.mrb[128].mxu1 %v6368_v23 }
 0xa4e   : > { %v8127_v2 = vpop.f32.mrb[199].mxu0  ;;  %6551 = vmatprep.mubr.bf16.mxu1 %v13972_v17 }
 0xa4f   : > { %v8128_v62 = vadd.f32 %v8127_v2, %v8126_v26  ;;  %v13978_v2 = vld [vmem:[#allocation51_spill] sm:$0xff] }
 0xa51   : > { %v6305_v49 = vadd.f32 %v8128_v62, %v8048_v27  ;;  %v8129_v53 = vpop.f32.mrb[200].mxu0 }
 0xa52   : > { %v8130_v0 = vpop.f32.mrb[201].mxu0 }
 0xa53   : > { %v8131_v35 = vadd.f32 %v8130_v0, %v8129_v53  ;;  %v6369_v29 = vpack.c.bf16 %v6305_v49, %v6300_v31  ;;  %v9209_v49 = vld [vmem:[%s10711_s27 + $0x20] sm:$0xff]   ;;  %v9210_v53 = vld [vmem:[%s10711_s27 + $0x28] sm:$0xff]   ;;  %v9212_v0 = vld [vmem:[%s10711_s27 + $0x38] sm:$0xff]  }
 0xa54   : > { %8765 = vmatprep.subr.bf16.mxu0 %v9209_v49 }
 0xa55   : > { %v6310_v14 = vadd.f32 %v8131_v35, %v8051_v22  ;;  %v8132_v54 = vpop.f32.mrb[202].mxu0  ;;  %6552 = vmatmul.mubr.bf16.gmra.mrb[132].mxu1 %v6369_v29  ;;  %8766 = vmatpush3.bf16.msra.mxu0 %v9209_v49  ;;  %v9214_v35 = vld [vmem:[%s10689_s26 + $0x8] sm:$0xff]   ;;  %v9215_v29 = vld [vmem:[%s10689_s26 + $0x10] sm:$0xff]  }
 0xa56   : > { %v8133_v33 = vpop.f32.mrb[203].mxu0  ;;  %6559 = vmatprep.mubr.bf16.mxu1 %v13973_v13  ;;  %8767 = vmatprep.subr.bf16.mxu0 %v9210_v53 }
 0xa57   : > { %v8134_v6 = vadd.f32 %v8133_v33, %v8132_v54  ;;  %v9217_v54 = vld [vmem:[%s10689_s26 + $0x20] sm:$0xff]   ;;  %v9218_v33 = vld [vmem:[%s10689_s26 + $0x28] sm:$0xff]  }
 0xa59   : > { %v6315_v38 = vadd.f32 %v8134_v6, %v8054_v39  ;;  %v8135_v37 = vpop.f32.mrb[204].mxu0  ;;  %8768 = vmatpush3.bf16.msra.mxu0 %v9210_v53  ;;  %v13413_v6 = vld [vmem:[%s13979_s24] ss:$0 sm:$0xff] }
 0xa5a   : > { %v8136_v5 = vpop.f32.mrb[205].mxu0 }
 0xa5b   : > { %v8137_v4 = vadd.f32 %v8136_v5, %v8135_v37  ;;  %v6370_v9 = vpack.c.bf16 %v6315_v38, %v6310_v14  ;;  %v9216_v14 = vld [vmem:[%s10689_s26 + $0x18] sm:$0xff]  }
 0xa5d   : > { %v6320_v41 = vadd.f32 %v8137_v4, %v8057_v30  ;;  %v8138_v57 = vpop.f32.mrb[206].mxu0  ;;  %6560 = vmatmul.mubr.bf16.gmra.mrb[136].mxu1 %v6370_v9 }
 0xa5e   : > { %v8139_v27 = vpop.f32.mrb[207].mxu0  ;;  %6567 = vmatprep.mubr.bf16.mxu1 %v13974_v20 }
 0xa5f   : > { %v8140_v59 = vadd.f32 %v8139_v27, %v8138_v57 }
 0xa61   : > { %v6325_v22 = vadd.f32 %v8140_v59, %v13367_v11  ;;  %v8141_v32 = vpop.f32.mrb[208].mxu0 }
 0xa62   : > { %v8142_v42 = vpop.f32.mrb[209].mxu0 }
 0xa63   : > { %v8143_v25 = vadd.f32 %v8142_v42, %v8141_v32  ;;  %v6371_v58 = vpack.c.bf16 %v6325_v22, %v6320_v41 }
 0xa65   : > { %v6330_v63 = vadd.f32 %v8143_v25, %v13369_v56  ;;  %v8144_v39 = vpop.f32.mrb[210].mxu0  ;;  %6568 = vmatmul.mubr.bf16.gmra.mrb[140].mxu1 %v6371_v58 }
 0xa66   : > { %v8145_v7 = vpop.f32.mrb[211].mxu0  ;;  %6575 = vmatprep.mubr.bf16.mxu1 %v13975_v48 }
 0xa67   : > { %v8146_v30 = vadd.f32 %v8145_v7, %v8144_v39 }
 0xa69   : > { %v6335_v50 = vadd.f32 %v8146_v30, %v13371_v46  ;;  %v8147_v51 = vpop.f32.mrb[212].mxu0 }
 0xa6a   : > { %v8148_v47 = vpop.f32.mrb[213].mxu0 }
 0xa6b   : > { %v8149_v16 = vadd.f32 %v8148_v47, %v8147_v51  ;;  %v6372_v40 = vpack.c.bf16 %v6335_v50, %v6330_v63 }
 0xa6d   : > { %v6340_v11 = vadd.f32 %v8149_v16, %v13373_v45  ;;  %v8150_v61 = vpop.f32.mrb[214].mxu0  ;;  %6576 = vmatmul.mubr.bf16.gmra.mrb[144].mxu1 %v6372_v40 }
 0xa6e   : > { %v8151_v24 = vpop.f32.mrb[215].mxu0  ;;  %6583 = vmatprep.mubr.bf16.mxu1 %v13976_v15 }
 0xa6f   : > { %v8152_v56 = vadd.f32 %v8151_v24, %v8150_v61 }
 0xa71   : > { %v6345_v60 = vadd.f32 %v8152_v56, %v13375_v3  ;;  %v8153_v34 = vpop.f32.mrb[216].mxu0 }
 0xa72   : > { %v8154_v1 = vpop.f32.mrb[217].mxu0 }
 0xa73   : > { %v8155_v44 = vadd.f32 %v8154_v1, %v8153_v34  ;;  %v6373_v10 = vpack.c.bf16 %v6345_v60, %v6340_v11 }
 0xa75   : > { %v6350_v46 = vadd.f32 %v8155_v44, %v13377_v8  ;;  %v8156_v43 = vpop.f32.mrb[218].mxu0  ;;  %6584 = vmatmul.mubr.bf16.gmra.mrb[148].mxu1 %v6373_v10 }
 0xa76   : > { %v8157_v36 = vpop.f32.mrb[219].mxu0  ;;  %6591 = vmatprep.mubr.bf16.mxu1 %v13977_v19 }
 0xa77   : > { %v8158_v45 = vadd.f32 %v8157_v36, %v8156_v43 }
 0xa79   : > { %v6355_v12 = vadd.f32 %v8158_v45, %v13379_v28  ;;  %v8159_v55 = vpop.f32.mrb[220].mxu0 }
 0xa7a   : > { %v8160_v23 = vpop.f32.mrb[221].mxu0 }
 0xa7b   : > { %v8161_v21 = vadd.f32 %v8160_v23, %v8159_v55  ;;  %v6374_v3 = vpack.c.bf16 %v6355_v12, %v6350_v46 }
 0xa7d   : > { %v6360_v31 = vadd.f32 %v8161_v21, %v13381_v52  ;;  %v8162_v26 = vpop.f32.mrb[222].mxu0  ;;  %6592 = vmatmul.mubr.bf16.gmra.mrb[152].mxu1 %v6374_v3  ;;  %v9211_v52 = vld [vmem:[%s10711_s27 + $0x30] sm:$0xff]   ;;  %s13980_s27 = scalar_lea.vmem [#allocation24], %s10634_s12 }
 0xa7e   : > { %v8163_v8 = vpop.f32.mrb[223].mxu0  ;;  %6599 = vmatprep.mubr.bf16.mxu1 %v13978_v2  ;;  %8769 = vmatprep.subr.bf16.mxu0 %v9211_v52 }
 0xa7f   : > { %v8164_v17 = vadd.f32 %v8163_v8, %v8162_v26  ;;  %8770 = vmatpush3.bf16.msra.mxu0 %v9211_v52 }
 0xa80   : > { %8771 = vmatprep.subr.bf16.mxu0 %v9212_v0 }
 0xa81   : > { %v6365_v62 = vadd.f32 %v8164_v17, %v13383_v18  ;;  %v9213_v18 = vld [vmem:[%s10689_s26] sm:$0xff]  }
 0xa82   : > { %8789 = vmatprep.subr.bf16.mxu1 %v9213_v18 }
 0xa83   : > { %v6375_v28 = vpack.c.bf16 %v6365_v62, %v6360_v31  ;;  %8772 = vmatpush3.bf16.msra.mxu0 %v9212_v0  ;;  %8790 = vmatpush3.bf16.msra.mxu1 %v9213_v18 }
 0xa84   : > { %8791 = vmatprep.subr.bf16.mxu1 %v9214_v35 }
 0xa85   : > { %6600 = vmatmul.mubr.bf16.gmra.mrb[156].mxu1 %v6375_v28 }
 0xa87   : > { %8792 = vmatpush3.bf16.msra.mxu1 %v9214_v35 }
 0xa88   : > { %8793 = vmatprep.subr.bf16.mxu1 %v9215_v29 }
 0xa8b   : > { %8794 = vmatpush3.bf16.msra.mxu1 %v9215_v29 }
 0xa8c   : > { %8795 = vmatprep.subr.bf16.mxu1 %v9216_v14 }
 0xa8f   : > { %8796 = vmatpush3.bf16.msra.mxu1 %v9216_v14 }
 0xa90   : > { %8797 = vmatprep.subr.bf16.mxu1 %v9217_v54 }
 0xa93   : > { %8798 = vmatpush3.bf16.msra.mxu1 %v9217_v54 }
 0xa94   : > { %8799 = vmatprep.subr.bf16.mxu1 %v9218_v33 }
 0xa97   : > { %8800 = vmatpush3.bf16.msra.mxu1 %v9218_v33 }
 0xb20   : > { %v8181_v13 = vpop.f32.mrb[128].mxu1 }
 0xb21   : > { %v8182_v38 = vpop.f32.mrb[129].mxu1 }
 0xb22   : > { %v8183_v37 = vadd.f32 %v8182_v38, %v8181_v13  ;;  %v8184_v5 = vpop.f32.mrb[130].mxu1 }
 0xb23   : > { %v8185_v4 = vpop.f32.mrb[131].mxu1 }
 0xb24   : > { %v6546_v9 = vadd.f32 %v8183_v37, %v13413_v6  ;;  %v8186_v41 = vadd.f32 %v8185_v4, %v8184_v5 }
 0xb26   : > { %v6549_v57 = vadd.f32 %v8186_v41, %v13413_v6  ;;  %v6644_v27 = vmax.f32 %v6546_v9, 0.0 }
 0xb28   : > { %v6645_v20 = vmax.f32 %v6549_v57, 0.0  ;;  %v8187_v59 = vpop.f32.mrb[132].mxu1 }
 0xb29   : > { %v8188_v22 = vpop.f32.mrb[133].mxu1 }
 0xb2a   : > { %v8189_v32 = vadd.f32 %v8188_v22, %v8187_v59  ;;  %v8190_v42 = vpop.f32.mrb[134].mxu1  ;;  %v6660_v25 = vpack.c.bf16 %v6645_v20, %v6644_v27 }
 0xb2b   : > { %v8191_v58 = vpop.f32.mrb[135].mxu1 }
 0xb2c   : > { %v6554_v63 = vadd.f32 %v8189_v32, %v13413_v6  ;;  %v8192_v39 = vadd.f32 %v8191_v58, %v8190_v42  ;;  %8773 = vmatprep.mubr.bf16.mxu0 %v6660_v25 }
 0xb2e   : > { %v6557_v7 = vadd.f32 %v8192_v39, %v13413_v6  ;;  %v6646_v48 = vmax.f32 %v6554_v63, 0.0 }
 0xb30   : > { %v6647_v30 = vmax.f32 %v6557_v7, 0.0  ;;  %v8193_v50 = vpop.f32.mrb[136].mxu1 }
 0xb31   : > { %v8194_v51 = vpop.f32.mrb[137].mxu1 }
 0xb32   : > { %v6661_v47 = vpack.c.bf16 %v6647_v30, %v6646_v48  ;;  %v8195_v16 = vadd.f32 %v8194_v51, %v8193_v50  ;;  %v8196_v40 = vpop.f32.mrb[138].mxu1 }
 0xb33   : > { %v8197_v11 = vpop.f32.mrb[139].mxu1 }
 0xb34   : > { %8774 = vmatmul.mubr.bf16.vlgmr.msra.gmra.mrb[224].mxu0 %v6661_v47  ;;  %v6562_v61 = vadd.f32 %v8195_v16, %v13413_v6  ;;  %v8198_v24 = vadd.f32 %v8197_v11, %v8196_v40  ;;  %v9219_v40 = vld [vmem:[%s10689_s26 + $0x30] sm:$0xff]   ;;  %v9220_v11 = vld [vmem:[%s10689_s26 + $0x38] sm:$0xff]   ;;  %s13981_s26 = scalar_lea.vmem [#allocation27], %s10634_s12 }
 0xb35   : > { %8801 = vmatprep.subr.bf16.mxu1 %v9219_v40 }
 0xb36   : > { %v6565_v15 = vadd.f32 %v8198_v24, %v13413_v6  ;;  %v6648_v56 = vmax.f32 %v6562_v61, 0.0  ;;  %8802 = vmatpush3.bf16.msra.mxu1 %v9219_v40  ;;  %v7694_v61 = vld [vmem:[%s13980_s27] ss:$0 sm:$0xff] }
 0xb37   : > { %8803 = vmatprep.subr.bf16.mxu1 %v9220_v11 }
 0xb38   : > { %v6649_v60 = vmax.f32 %v6565_v15, 0.0  ;;  %v8199_v34 = vpop.f32.mrb[140].mxu1 }
 0xb39   : > { %v8200_v1 = vpop.f32.mrb[141].mxu1 }
 0xb3a   : > { %v8201_v44 = vadd.f32 %v8200_v1, %v8199_v34  ;;  %v8202_v10 = vpop.f32.mrb[142].mxu1  ;;  %v6662_v46 = vpack.c.bf16 %v6649_v60, %v6648_v56  ;;  %8804 = vmatpush3.bf16.msra.mxu1 %v9220_v11 }
 0xb3b   : > { %v8203_v43 = vpop.f32.mrb[143].mxu1 }
 0xb3c   : > { %v6570_v36 = vadd.f32 %v8201_v44, %v13413_v6  ;;  %v8204_v19 = vadd.f32 %v8203_v43, %v8202_v10  ;;  %8777 = vmatprep.mubr.bf16.mxu0 %v6662_v46 }
 0xb3e   : > { %v6573_v45 = vadd.f32 %v8204_v19, %v13413_v6  ;;  %v6650_v12 = vmax.f32 %v6570_v36, 0.0 }
 0xb40   : > { %v6651_v55 = vmax.f32 %v6573_v45, 0.0  ;;  %v8205_v23 = vpop.f32.mrb[144].mxu1 }
 0xb41   : > { %v8206_v21 = vpop.f32.mrb[145].mxu1 }
 0xb42   : > { %v6663_v3 = vpack.c.bf16 %v6651_v55, %v6650_v12  ;;  %v8207_v31 = vadd.f32 %v8206_v21, %v8205_v23  ;;  %v8208_v26 = vpop.f32.mrb[146].mxu1 }
 0xb43   : > { %v8209_v8 = vpop.f32.mrb[147].mxu1 }
 0xb44   : > { %8778 = vmatmul.mubr.bf16.gmra.mrb[228].mxu0 %v6663_v3  ;;  %v6578_v2 = vadd.f32 %v8207_v31, %v13413_v6  ;;  %v8210_v17 = vadd.f32 %v8209_v8, %v8208_v26 }
 0xb46   : > { %v6581_v62 = vadd.f32 %v8210_v17, %v13413_v6  ;;  %v6652_v28 = vmax.f32 %v6578_v2, 0.0 }
 0xb48   : > { %v6653_v49 = vmax.f32 %v6581_v62, 0.0  ;;  %v8211_v53 = vpop.f32.mrb[148].mxu1 }
 0xb49   : > { %v8212_v52 = vpop.f32.mrb[149].mxu1 }
 0xb4a   : > { %v8213_v0 = vadd.f32 %v8212_v52, %v8211_v53  ;;  %v8214_v18 = vpop.f32.mrb[150].mxu1  ;;  %v6664_v35 = vpack.c.bf16 %v6653_v49, %v6652_v28 }
 0xb4b   : > { %v8215_v29 = vpop.f32.mrb[151].mxu1 }
 0xb4c   : > { %v6586_v14 = vadd.f32 %v8213_v0, %v13413_v6  ;;  %v8216_v54 = vadd.f32 %v8215_v29, %v8214_v18  ;;  %8781 = vmatprep.mubr.bf16.mxu0 %v6664_v35 }
 0xb4e   : > { %v6589_v33 = vadd.f32 %v8216_v54, %v13413_v6  ;;  %v6654_v13 = vmax.f32 %v6586_v14, 0.0 }
 0xb50   : > { %v6655_v38 = vmax.f32 %v6589_v33, 0.0  ;;  %v8217_v37 = vpop.f32.mrb[152].mxu1 }
 0xb51   : > { %v8218_v5 = vpop.f32.mrb[153].mxu1 }
 0xb52   : > { %v6665_v4 = vpack.c.bf16 %v6655_v38, %v6654_v13  ;;  %v8219_v9 = vadd.f32 %v8218_v5, %v8217_v37  ;;  %v8220_v41 = vpop.f32.mrb[154].mxu1 }
 0xb53   : > { %v8221_v57 = vpop.f32.mrb[155].mxu1 }
 0xb54   : > { %8782 = vmatmul.mubr.bf16.gmra.mrb[232].mxu0 %v6665_v4  ;;  %v6594_v27 = vadd.f32 %v8219_v9, %v13413_v6  ;;  %v8222_v20 = vadd.f32 %v8221_v57, %v8220_v41 }
 0xb56   : > { %v6597_v59 = vadd.f32 %v8222_v20, %v13413_v6  ;;  %v6656_v22 = vmax.f32 %v6594_v27, 0.0 }
 0xb58   : > { %v6657_v32 = vmax.f32 %v6597_v59, 0.0  ;;  %v8223_v42 = vpop.f32.mrb[156].mxu1 }
 0xb59   : > { %v8224_v25 = vpop.f32.mrb[157].mxu1 }
 0xb5a   : > { %v8225_v58 = vadd.f32 %v8224_v25, %v8223_v42  ;;  %v8226_v63 = vpop.f32.mrb[158].mxu1  ;;  %v6666_v39 = vpack.c.bf16 %v6657_v32, %v6656_v22 }
 0xb5b   : > { %v8227_v7 = vpop.f32.mrb[159].mxu1 }
 0xb5c   : > { %v6602_v48 = vadd.f32 %v8225_v58, %v13413_v6  ;;  %v8228_v30 = vadd.f32 %v8227_v7, %v8226_v63  ;;  %8785 = vmatprep.mubr.bf16.mxu0 %v6666_v39 }
 0xb5e   : > { %v6605_v50 = vadd.f32 %v8228_v30, %v13413_v6  ;;  %v6658_v51 = vmax.f32 %v6602_v48, 0.0  ;;  %v7703_v30 = vld [vmem:[%s13981_s26] ss:$0 sm:$0xff] }
 0xb60   : > { %v6659_v47 = vmax.f32 %v6605_v50, 0.0 }
 0xb62   : > { %v6667_v16 = vpack.c.bf16 %v6659_v47, %v6658_v51 }
 0xb64   : > { %8786 = vmatmul.mubr.bf16.gmra.mrb[236].mxu0 %v6667_v16 }
 0xc07   : > { %v8775_v24 = vpop.f32.mrb[224].mxu0 }
 0xc08   : > { %v6765_v15 = vadd.f32 %v8775_v24, %v7694_v61  ;;  %v6756_v56 = vpop.f32.mrb[225].mxu0 }
 0xc09   : > { %v6757_v60 = vadd.f32 %v7694_v61, %v6756_v56  ;;  %v8776_v34 = vpop.f32.mrb[226].mxu0 }
 0xc0a   : > { %v6768_v1 = vadd.f32 %v8776_v34, %v7694_v61  ;;  %v6759_v44 = vpop.f32.mrb[227].mxu0  ;;  %v6821_v10 = vmax.f32 %v6765_v15, 0.0 }
 0xc0b   : > { %v6760_v6 = vadd.f32 %v7694_v61, %v6759_v44  ;;  %v6819_v43 = vmax.f32 %v6757_v60, 0.0 }
 0xc0c   : > { %v6822_v46 = vmax.f32 %v6768_v1, 0.0 }
 0xc0d   : > { %v6820_v36 = vmax.f32 %v6760_v6, 0.0 }
 0xc0e   : > { %v6836_v19 = vpack.c.bf16 %v6822_v46, %v6821_v10 }
 0xc0f   : > { %v6835_v45 = vpack.c.bf16 %v6820_v36, %v6819_v43 }
 0xc11   : > { %8805 = vmatprep.mubr.bf16.mxu1 %v6835_v45 }
 0xc12   : > { %8806 = vmatmul.mubr.bf16.vlgmr.msra.gmra.mrb[160].mxu1 %v6836_v19 }
 0xc17   : > { %v8779_v12 = vpop.f32.mrb[228].mxu0 }
 0xc18   : > { %v6781_v55 = vadd.f32 %v8779_v12, %v7694_v61  ;;  %v6772_v23 = vpop.f32.mrb[229].mxu0 }
 0xc19   : > { %v6773_v21 = vadd.f32 %v7694_v61, %v6772_v23  ;;  %v8780_v3 = vpop.f32.mrb[230].mxu0 }
 0xc1a   : > { %v6784_v31 = vadd.f32 %v8780_v3, %v7694_v61  ;;  %v6775_v26 = vpop.f32.mrb[231].mxu0  ;;  %v6825_v2 = vmax.f32 %v6781_v55, 0.0 }
 0xc1b   : > { %v6776_v8 = vadd.f32 %v7694_v61, %v6775_v26  ;;  %v6823_v62 = vmax.f32 %v6773_v21, 0.0 }
 0xc1c   : > { %v6826_v17 = vmax.f32 %v6784_v31, 0.0 }
 0xc1d   : > { %v6824_v28 = vmax.f32 %v6776_v8, 0.0 }
 0xc1e   : > { %v6838_v49 = vpack.c.bf16 %v6826_v17, %v6825_v2 }
 0xc1f   : > { %v6837_v53 = vpack.c.bf16 %v6824_v28, %v6823_v62 }
 0xc21   : > { %8809 = vmatprep.mubr.bf16.mxu1 %v6837_v53 }
 0xc22   : > { %8810 = vmatmul.mubr.bf16.gmra.mrb[164].mxu1 %v6838_v49 }
 0xc27   : > { %v8783_v52 = vpop.f32.mrb[232].mxu0 }
 0xc28   : > { %v6797_v0 = vadd.f32 %v8783_v52, %v7694_v61  ;;  %v6788_v18 = vpop.f32.mrb[233].mxu0 }
 0xc29   : > { %v6789_v35 = vadd.f32 %v7694_v61, %v6788_v18  ;;  %v8784_v29 = vpop.f32.mrb[234].mxu0 }
 0xc2a   : > { %v6800_v14 = vadd.f32 %v8784_v29, %v7694_v61  ;;  %v6791_v54 = vpop.f32.mrb[235].mxu0  ;;  %v6829_v13 = vmax.f32 %v6797_v0, 0.0 }
 0xc2b   : > { %v6792_v33 = vadd.f32 %v7694_v61, %v6791_v54  ;;  %v6827_v37 = vmax.f32 %v6789_v35, 0.0 }
 0xc2c   : > { %v6830_v38 = vmax.f32 %v6800_v14, 0.0 }
 0xc2d   : > { %v6828_v5 = vmax.f32 %v6792_v33, 0.0 }
 0xc2e   : > { %v6840_v4 = vpack.c.bf16 %v6830_v38, %v6829_v13 }
 0xc2f   : > { %v6839_v9 = vpack.c.bf16 %v6828_v5, %v6827_v37 }
 0xc31   : > { %8813 = vmatprep.mubr.bf16.mxu1 %v6839_v9 }
 0xc32   : > { %8814 = vmatmul.mubr.bf16.gmra.mrb[168].mxu1 %v6840_v4 }
 0xc37   : > { %v8787_v41 = vpop.f32.mrb[236].mxu0 }
 0xc38   : > { %v6813_v57 = vadd.f32 %v8787_v41, %v7694_v61  ;;  %v6804_v27 = vpop.f32.mrb[237].mxu0 }
 0xc39   : > { %v6805_v20 = vadd.f32 %v7694_v61, %v6804_v27  ;;  %v8788_v59 = vpop.f32.mrb[238].mxu0 }
 0xc3a   : > { %v6816_v22 = vadd.f32 %v8788_v59, %v7694_v61  ;;  %v6807_v32 = vpop.f32.mrb[239].mxu0  ;;  %v6833_v25 = vmax.f32 %v6813_v57, 0.0 }
 0xc3b   : > { %v6808_v42 = vadd.f32 %v7694_v61, %v6807_v32  ;;  %v6831_v63 = vmax.f32 %v6805_v20, 0.0 }
 0xc3c   : > { %v6834_v58 = vmax.f32 %v6816_v22, 0.0 }
 0xc3d   : > { %v6832_v39 = vmax.f32 %v6808_v42, 0.0 }
 0xc3e   : > { %v6842_v7 = vpack.c.bf16 %v6834_v58, %v6833_v25 }
 0xc3f   : > { %v6841_v48 = vpack.c.bf16 %v6832_v39, %v6831_v63 }
 0xc41   : > { %8817 = vmatprep.mubr.bf16.mxu1 %v6841_v48 }
 0xc42   : > { %8818 = vmatmul.mubr.bf16.gmra.mrb[172].mxu1 %v6842_v7 }
 0xce5   : > { %v8807_v50 = vpop.f32.mrb[160].mxu1 }
 0xce6   : > { %v6940_v51 = vadd.f32 %v8807_v50, %v7703_v30  ;;  %v6931_v47 = vpop.f32.mrb[161].mxu1 }
 0xce7   : > { %v8808_v16 = vpop.f32.mrb[162].mxu1  ;;  %v6932_v24 = vadd.f32 %v7703_v30, %v6931_v47 }
 0xce8   : > { %v6943_v40 = vadd.f32 %v8808_v16, %v7703_v30  ;;  %6998 = vadd.xlane.f32.xlu0 %v6940_v51  ;;  %v6934_v11 = vpop.f32.mrb[163].mxu1 }
 0xce9   : > { %v6935_v61 = vadd.f32 %v7703_v30, %v6934_v11 }
 0xcea   : > { %7000 = vadd.xlane.f32.xlu1 %v6943_v40 }
 0xcec   : > { %6994 = vadd.xlane.f32.xlu0 %v6932_v24 }
 0xcee   : > { %6996 = vadd.xlane.f32.xlu1 %v6935_v61 }
 0xcf5   : > { %v8811_v15 = vpop.f32.mrb[164].mxu1 }
 0xcf6   : > { %v6956_v56 = vadd.f32 %v8811_v15, %v7703_v30  ;;  %v6947_v60 = vpop.f32.mrb[165].mxu1 }
 0xcf7   : > { %v8812_v34 = vpop.f32.mrb[166].mxu1  ;;  %v6948_v6 = vadd.f32 %v7703_v30, %v6947_v60 }
 0xcf8   : > { %v6959_v1 = vadd.f32 %v8812_v34, %v7703_v30  ;;  %7006 = vadd.xlane.f32.xlu0 %v6956_v56  ;;  %v6950_v44 = vpop.f32.mrb[167].mxu1 }
 0xcf9   : > { %v6951_v10 = vadd.f32 %v7703_v30, %v6950_v44 }
 0xcfa   : > { %7008 = vadd.xlane.f32.xlu1 %v6959_v1 }
 0xcfc   : > { %7002 = vadd.xlane.f32.xlu0 %v6948_v6 }
 0xcfe   : > { %7004 = vadd.xlane.f32.xlu1 %v6951_v10 }
 0xd05   : > { %v8815_v46 = vpop.f32.mrb[168].mxu1 }
 0xd06   : > { %v13437_v43 = vadd.f32 %v8815_v46, %v7703_v30  ;;  %v6963_v36 = vpop.f32.mrb[169].mxu1 }
 0xd07   : > { %v8816_v19 = vpop.f32.mrb[170].mxu1  ;;  %v13442_v55 = vadd.f32 %v7703_v30, %v6963_v36 }
 0xd08   : > { %v13439_v45 = vadd.f32 %v8816_v19, %v7703_v30  ;;  %7014 = vadd.xlane.f32.xlu0 %v13437_v43  ;;  %v6966_v12 = vpop.f32.mrb[171].mxu1 }
 0xd09   : > { %v13445_v23 = vadd.f32 %v7703_v30, %v6966_v12 }
 0xd0a   : > { %7016 = vadd.xlane.f32.xlu1 %v13439_v45 }
 0xd0c   : > { %7010 = vadd.xlane.f32.xlu0 %v13442_v55 }
 0xd0e   : > { %7012 = vadd.xlane.f32.xlu1 %v13445_v23 }
 0xd15   : > { %v8819_v21 = vpop.f32.mrb[172].mxu1 }
 0xd16   : > { %v6979_v3 = vpop.f32.mrb[173].mxu1  ;;  %v13454_v17 = vadd.f32 %v8819_v21, %v7703_v30 }
 0xd17   : > { %v13449_v31 = vadd.f32 %v7703_v30, %v6979_v3  ;;  %v8820_v26 = vpop.f32.mrb[174].mxu1 }
 0xd18   : > { %v6982_v8 = vpop.f32.mrb[175].mxu1  ;;  %v13457_v62 = vadd.f32 %v8820_v26, %v7703_v30 }
 0xd19   : > { %v13451_v2 = vadd.f32 %v7703_v30, %v6982_v8  ;;  %7018 = vadd.xlane.f32.xlu0 %v13449_v31 }
 0xd1b   : > { %7020 = vadd.xlane.f32.xlu1 %v13451_v2 }
 0xd1d   : > { %7022 = vadd.xlane.f32.xlu0 %v13454_v17 }
 0xd1f   : > { %7024 = vadd.xlane.f32.xlu1 %v13457_v62 }
 0xd75   : > { %v6999_v28 = vpop.xlane.xlu0 %6998 }
 0xd76   : > { %v7028_v49 = vmul.f32 0.0078125, %v6999_v28 }
 0xd77   : > { %v7001_v53 = vpop.xlane.xlu1 %7000 }
 0xd78   : > { %v13461_v52 = vsub.f32 %v6940_v51, %v7028_v49  ;;  %v7029_v0 = vmul.f32 0.0078125, %v7001_v53 }
 0xd79   : > { %v6995_v18 = vpop.xlane.xlu0 %6994 }
 0xd7a   : > { %v13463_v35 = vsub.f32 %v6943_v40, %v7029_v0  ;;  %v7026_v29 = vmul.f32 0.0078125, %v6995_v18  ;;  %v7060_v14 = vmul.f32 %v13461_v52, %v13461_v52 }
 0xd7b   : > { %v6997_v54 = vpop.xlane.xlu1 %6996 }
 0xd7c   : > { %v13467_v33 = vsub.f32 %v6932_v24, %v7026_v29  ;;  %v7027_v13 = vmul.f32 0.0078125, %v6997_v54  ;;  %7078 = vadd.xlane.f32.xlu0 %v7060_v14  ;;  %v7061_v38 = vmul.f32 %v13463_v35, %v13463_v35 }
 0xd7e   : > { %v13471_v37 = vsub.f32 %v6935_v61, %v7027_v13  ;;  %7080 = vadd.xlane.f32.xlu1 %v7061_v38  ;;  %v7058_v5 = vmul.f32 %v13467_v33, %v13467_v33 }
 0xd80   : > { %7074 = vadd.xlane.f32.xlu0 %v7058_v5  ;;  %v7059_v4 = vmul.f32 %v13471_v37, %v13471_v37 }
 0xd82   : > { %7076 = vadd.xlane.f32.xlu1 %v7059_v4 }
 0xd85   : > { %v7007_v9 = vpop.xlane.xlu0 %7006 }
 0xd86   : > { %v7032_v41 = vmul.f32 0.0078125, %v7007_v9 }
 0xd87   : > { %v7009_v57 = vpop.xlane.xlu1 %7008 }
 0xd88   : > { %v13477_v27 = vsub.f32 %v6956_v56, %v7032_v41  ;;  %v7033_v20 = vmul.f32 0.0078125, %v7009_v57  ;;  %v13538_v41 = vld [vmem:[%s1183_s0] ss:$0 sm:$0xff] }
 0xd89   : > { %v7003_v59 = vpop.xlane.xlu0 %7002 }
 0xd8a   : > { %v13479_v22 = vsub.f32 %v6959_v1, %v7033_v20  ;;  %v7030_v32 = vmul.f32 0.0078125, %v7003_v59  ;;  %v7064_v42 = vmul.f32 %v13477_v27, %v13477_v27 }
 0xd8b   : > { %v7005_v25 = vpop.xlane.xlu1 %7004 }
 0xd8c   : > { %v13483_v58 = vsub.f32 %v6948_v6, %v7030_v32  ;;  %v7031_v63 = vmul.f32 0.0078125, %v7005_v25  ;;  %7086 = vadd.xlane.f32.xlu0 %v7064_v42  ;;  %v7065_v39 = vmul.f32 %v13479_v22, %v13479_v22  ;;  %v13546_v32 = vld [vmem:[%s1186_s9] ss:$0 sm:$0xff]  ;;  %s9996_s9 = smov [#allocation29]  }
 0xd8d   : > { %s7252_s0 = sshll.u32 %s9996_s9, 4  ;;  %s7253_s0 = int_to_ptr.vmem [resolvable:$true] %s7252_s0 }
 0xd8e   : > { %v13487_v7 = vsub.f32 %v6951_v10, %v7031_v63  ;;  %7088 = vadd.xlane.f32.xlu1 %v7065_v39  ;;  %v7062_v48 = vmul.f32 %v13483_v58, %v13483_v58  ;;  %s9881_s1 = scalar_lea.vmem %s7253_s0, 2048  ;;  %p9888_p3 = scmp.lt.s32.totalorder %s7253_s0, %s7253_s0 }
 0xd8f   : > { %p9882_p10 = scmp.ne.s32.totalorder %s7253_s0, %s9881_s1  ;;  %p9889_p8 = scmp.lt.s32.totalorder %s9881_s1, %s9881_s1 }
 0xd90   : > { %7082 = vadd.xlane.f32.xlu0 %v7062_v48  ;;  %v7063_v30 = vmul.f32 %v13487_v7, %v13487_v7 }
 0xd91   : > { %p9883_p6 = pnand %p9882_p10, %p9094_p7  ;;  %p9890_p9 = por %p9889_p8, %p9888_p3 }
 0xd92   : > { %7084 = vadd.xlane.f32.xlu1 %v7063_v30 }
 0xd93   : > { %p9884_p2 = pneg %p9883_p6 }
 0xd95   : > { %v7015_v50 = vpop.xlane.xlu0 %7014  ;;  %p9891_p13 = pnand %p9890_p9, %p9884_p2 }
 0xd96   : > { %v7036_v51 = vmul.f32 0.0078125, %v7015_v50 }
 0xd97   : > { %v7017_v47 = vpop.xlane.xlu1 %7016 }
 0xd98   : > { %v13494_v16 = vsub.f32 %v13437_v43, %v7036_v51  ;;  %v7037_v40 = vmul.f32 0.0078125, %v7017_v47 }
 0xd99   : > { %v7011_v11 = vpop.xlane.xlu0 %7010 }
 0xd9a   : > { %v13497_v24 = vsub.f32 %v13439_v45, %v7037_v40  ;;  %v7034_v61 = vmul.f32 0.0078125, %v7011_v11  ;;  %v7068_v15 = vmul.f32 %v13494_v16, %v13494_v16 }
 0xd9b   : > { %v7013_v56 = vpop.xlane.xlu1 %7012 }
 0xd9c   : > { %v13502_v60 = vsub.f32 %v13442_v55, %v7034_v61  ;;  %v7035_v34 = vmul.f32 0.0078125, %v7013_v56  ;;  %7094 = vadd.xlane.f32.xlu0 %v7068_v15  ;;  %v7069_v1 = vmul.f32 %v13497_v24, %v13497_v24  ;;  %v9447_v56 = vld [vmem:[#allocation29 + $0x10] sm:$0xff] }
 0xd9e   : > { %v13507_v44 = vsub.f32 %v13445_v23, %v7035_v34  ;;  %7096 = vadd.xlane.f32.xlu1 %v7069_v1  ;;  %v7066_v6 = vmul.f32 %v13502_v60, %v13502_v60 }
 0xda0   : > { %7090 = vadd.xlane.f32.xlu0 %v7066_v6  ;;  %v7067_v10 = vmul.f32 %v13507_v44, %v13507_v44 }
 0xda2   : > { %7092 = vadd.xlane.f32.xlu1 %v7067_v10 }
 0xda6   : > { %v7019_v46 = vpop.xlane.xlu0 %7018 }
 0xda7   : > { %v7038_v43 = vmul.f32 0.0078125, %v7019_v46 }
 0xda8   : > { %v7021_v36 = vpop.xlane.xlu1 %7020 }
 0xda9   : > { %v13514_v19 = vsub.f32 %v13449_v31, %v7038_v43  ;;  %v7039_v45 = vmul.f32 0.0078125, %v7021_v36  ;;  %v9448_v36 = vld [vmem:[#allocation29 + $0x18] sm:$0xff] }
 0xdaa   : > { %v7023_v12 = vpop.xlane.xlu0 %7022 }
 0xdab   : > { %v13517_v55 = vsub.f32 %v13451_v2, %v7039_v45  ;;  %v7040_v23 = vmul.f32 0.0078125, %v7023_v12  ;;  %v7070_v21 = vmul.f32 %v13514_v19, %v13514_v19 }
 0xdac   : > { %v7025_v3 = vpop.xlane.xlu1 %7024 }
 0xdad   : > { %v13522_v26 = vsub.f32 %v13454_v17, %v7040_v23  ;;  %v7041_v8 = vmul.f32 0.0078125, %v7025_v3  ;;  %7098 = vadd.xlane.f32.xlu0 %v7070_v21  ;;  %v7071_v28 = vmul.f32 %v13517_v55, %v13517_v55  ;;  %v9449_v21 = vld [vmem:[#allocation29] sm:$0xff] }
 0xdaf   : > { %v13527_v31 = vsub.f32 %v13457_v62, %v7041_v8  ;;  %7100 = vadd.xlane.f32.xlu1 %v7071_v28  ;;  %v7072_v2 = vmul.f32 %v13522_v26, %v13522_v26 }
 0xdb1   : > { %7102 = vadd.xlane.f32.xlu0 %v7072_v2  ;;  %v7073_v49 = vmul.f32 %v13527_v31, %v13527_v31 }
 0xdb3   : > { %7104 = vadd.xlane.f32.xlu1 %v7073_v49 }
 0xe09   : > { %v7079_v53 = vpop.xlane.xlu0 %7078 }
 0xe0a   : > { %v7108_v17 = vmul.f32 0.0078125, %v7079_v53 }
 0xe0b   : > { %v7081_v0 = vpop.xlane.xlu1 %7080 }
 0xe0c   : > { %v7124_v18 = vadd.f32 1e-05, %v7108_v17  ;;  %v7109_v29 = vmul.f32 0.0078125, %v7081_v0 }
 0xe0d   : > { %v7075_v14 = vpop.xlane.xlu0 %7074 }
 0xe0e   : > { %9349 = vrsqrt.f32 %v7124_v18  ;;  %v7125_v62 = vadd.f32 1e-05, %v7109_v29  ;;  %v7106_v54 = vmul.f32 0.0078125, %v7075_v14 }
 0xe0f   : > { %v7077_v13 = vpop.xlane.xlu1 %7076 }
 0xe10   : > { %9351 = vrsqrt.f32 %v7125_v62  ;;  %v7122_v38 = vadd.f32 1e-05, %v7106_v54  ;;  %v7107_v5 = vmul.f32 0.0078125, %v7077_v13 }
 0xe12   : > { %9353 = vrsqrt.f32 %v7122_v38  ;;  %v7123_v4 = vadd.f32 1e-05, %v7107_v5 }
 0xe14   : > { %9355 = vrsqrt.f32 %v7123_v4 }
 0xe18   : > { %v9350_v9 = vpop.eup %9349 }
 0xe19   : > { %v7156_v57 = vmul.f32 %v9350_v9, %v13461_v52  ;;  %v7087_v20 = vpop.xlane.xlu0 %7086 }
 0xe1a   : > { %v9352_v59 = vpop.eup %9351  ;;  %v7112_v42 = vmul.f32 0.0078125, %v7087_v20 }
 0xe1b   : > { %v7178_v25 = vmul.f32 %v13538_v41, %v7156_v57  ;;  %v7157_v63 = vmul.f32 %v9352_v59, %v13463_v35  ;;  %v7089_v39 = vpop.xlane.xlu1 %7088  ;;  %v9451_v59 = vld [vmem:[#allocation29 + $0x30] sm:$0xff] }
 0xe1c   : > { %v9354_v48 = vpop.eup %9353  ;;  %v7128_v30 = vadd.f32 1e-05, %v7112_v42  ;;  %v7113_v50 = vmul.f32 0.0078125, %v7089_v39 }
 0xe1d   : > { %v7200_v51 = vadd.f32 %v13546_v32, %v7178_v25  ;;  %v7179_v52 = vmul.f32 %v13538_v41, %v7157_v63  ;;  %v7154_v47 = vmul.f32 %v9354_v48, %v13467_v33  ;;  %v7083_v40 = vpop.xlane.xlu0 %7082 }
 0xe1e   : > { %v9356_v11 = vpop.eup %9355  ;;  %9357 = vrsqrt.f32 %v7128_v30  ;;  %v7129_v61 = vadd.f32 1e-05, %v7113_v50  ;;  %v7110_v15 = vmul.f32 0.0078125, %v7083_v40  ;;  %v9452_v50 = vld [vmem:[#allocation29 + $0x38] sm:$0xff]  ;;  %v9453_v40 = vld [vmem:[#allocation29 + $0x20] sm:$0xff] }
 0xe1f   : > { %v7216_v34 = vadd.f32 %v9447_v56, %v7200_v51  ;;  %v7201_v1 = vadd.f32 %v13546_v32, %v7179_v52  ;;  %v7176_v35 = vmul.f32 %v13538_v41, %v7154_v47  ;;  %v7155_v6 = vmul.f32 %v9356_v11, %v13471_v37  ;;  %v7085_v10 = vpop.xlane.xlu1 %7084  ;;  %v9450_v37 = vld [vmem:[#allocation29 + $0x8] sm:$0xff] }
 0xe20   : > { %9359 = vrsqrt.f32 %v7129_v61  ;;  %v7126_v46 = vadd.f32 1e-05, %v7110_v15  ;;  %v7111_v43 = vmul.f32 0.0078125, %v7085_v10 }
 0xe21   : > { %7232 = vst [vmem:[#allocation29 + $0x10] sm:$0xff] %v7216_v34  ;;  %v7217_v33 = vadd.f32 %v9448_v36, %v7201_v1  ;;  %v7198_v45 = vadd.f32 %v13546_v32, %v7176_v35  ;;  %v7177_v12 = vmul.f32 %v13538_v41, %v7155_v6 }
 0xe22   : > { %9361 = vrsqrt.f32 %v7126_v46  ;;  %v7127_v23 = vadd.f32 1e-05, %v7111_v43 }
 0xe23   : > { %7233 = vst [vmem:[#allocation29 + $0x18] sm:$0xff] %v7217_v33  ;;  %v7214_v3 = vadd.f32 %v9449_v21, %v7198_v45  ;;  %v7199_v8 = vadd.f32 %v13546_v32, %v7177_v12 }
 0xe24   : > { %9363 = vrsqrt.f32 %v7127_v23 }
 0xe25   : > { %7230 = vst [vmem:[#allocation29] sm:$0xff] %v7214_v3  ;;  %v7215_v28 = vadd.f32 %v9450_v37, %v7199_v8 }
 0xe27   : > { %7231 = vst [vmem:[#allocation29 + $0x8] sm:$0xff] %v7215_v28 }
 0xe28   : > { %v9358_v2 = vpop.eup %9357 }
 0xe29   : > { %v7160_v49 = vmul.f32 %v9358_v2, %v13477_v27  ;;  %v7095_v53 = vpop.xlane.xlu0 %7094 }
 0xe2a   : > { %v9360_v17 = vpop.eup %9359  ;;  %v7116_v0 = vmul.f32 0.0078125, %v7095_v53 }
 0xe2b   : > { %v7182_v18 = vmul.f32 %v13538_v41, %v7160_v49  ;;  %v7161_v29 = vmul.f32 %v9360_v17, %v13479_v22  ;;  %v7097_v14 = vpop.xlane.xlu1 %7096 }
 0xe2c   : > { %v9362_v62 = vpop.eup %9361  ;;  %v7132_v54 = vadd.f32 1e-05, %v7116_v0  ;;  %v7117_v13 = vmul.f32 0.0078125, %v7097_v14  ;;  %v9456_v0 = vld [vmem:[#allocation29 + $0x58] sm:$0xff] }
 0xe2d   : > { %v7204_v38 = vadd.f32 %v13546_v32, %v7182_v18  ;;  %v7183_v5 = vmul.f32 %v13538_v41, %v7161_v29  ;;  %v7158_v4 = vmul.f32 %v9362_v62, %v13483_v58  ;;  %v7091_v9 = vpop.xlane.xlu0 %7090 }
 0xe2e   : > { %v9364_v57 = vpop.eup %9363  ;;  %9365 = vrsqrt.f32 %v7132_v54  ;;  %v7133_v27 = vadd.f32 1e-05, %v7117_v13  ;;  %v7114_v20 = vmul.f32 0.0078125, %v7091_v9  ;;  %v9457_v54 = vld [vmem:[#allocation29 + $0x40] sm:$0xff] }
 0xe2f   : > { %v7220_v42 = vadd.f32 %v9451_v59, %v7204_v38  ;;  %v7205_v25 = vadd.f32 %v13546_v32, %v7183_v5  ;;  %v7180_v22 = vmul.f32 %v13538_v41, %v7158_v4  ;;  %v7159_v63 = vmul.f32 %v9364_v57, %v13487_v7  ;;  %v7093_v39 = vpop.xlane.xlu1 %7092  ;;  %v9454_v7 = vld [vmem:[#allocation29 + $0x28] sm:$0xff] }
 0xe30   : > { %9367 = vrsqrt.f32 %v7133_v27  ;;  %v7130_v48 = vadd.f32 1e-05, %v7114_v20  ;;  %v7115_v30 = vmul.f32 0.0078125, %v7093_v39  ;;  %v9458_v5 = vld [vmem:[#allocation29 + $0x48] sm:$0xff] }
 0xe31   : > { %7236 = vst [vmem:[#allocation29 + $0x30] sm:$0xff] %v7220_v42  ;;  %v7221_v58 = vadd.f32 %v9452_v50, %v7205_v25  ;;  %v7202_v51 = vadd.f32 %v13546_v32, %v7180_v22  ;;  %v7181_v52 = vmul.f32 %v13538_v41, %v7159_v63 }
 0xe32   : > { %9369 = vrsqrt.f32 %v7130_v48  ;;  %v7131_v47 = vadd.f32 1e-05, %v7115_v30  ;;  %v9459_v30 = vld [vmem:[#allocation29 + $0x60] sm:$0xff] }
 0xe33   : > { %7237 = vst [vmem:[#allocation29 + $0x38] sm:$0xff] %v7221_v58  ;;  %v7218_v11 = vadd.f32 %v9453_v40, %v7202_v51  ;;  %v7203_v61 = vadd.f32 %v13546_v32, %v7181_v52 }
 0xe34   : > { %9371 = vrsqrt.f32 %v7131_v47 }
 0xe35   : > { %7234 = vst [vmem:[#allocation29 + $0x20] sm:$0xff] %v7218_v11  ;;  %v7219_v15 = vadd.f32 %v9454_v7, %v7203_v61  ;;  %v9462_v11 = vld [vmem:[#allocation29 + $0x78] sm:$0xff] }
 0xe37   : > { %7235 = vst [vmem:[#allocation29 + $0x28] sm:$0xff] %v7219_v15 }
 0xe38   : > { %v9366_v56 = vpop.eup %9365 }
 0xe39   : > { %v7164_v34 = vmul.f32 %v9366_v56, %v13494_v16  ;;  %v9455_v16 = vld [vmem:[#allocation29 + $0x50] sm:$0xff] }
 0xe3a   : > { %v9368_v1 = vpop.eup %9367  ;;  %v7099_v35 = vpop.xlane.xlu0 %7098 }
 0xe3b   : > { %v7186_v6 = vmul.f32 %v13538_v41, %v7164_v34  ;;  %v7165_v10 = vmul.f32 %v9368_v1, %v13497_v24  ;;  %v7118_v46 = vmul.f32 0.0078125, %v7099_v35 }
 0xe3c   : > { %v9370_v43 = vpop.eup %9369  ;;  %v7101_v36 = vpop.xlane.xlu1 %7100 }
 0xe3d   : > { %v7208_v33 = vadd.f32 %v13546_v32, %v7186_v6  ;;  %v7187_v45 = vmul.f32 %v13538_v41, %v7165_v10  ;;  %v7162_v12 = vmul.f32 %v9370_v43, %v13502_v60  ;;  %v7134_v23 = vadd.f32 1e-05, %v7118_v46 }
 0xe3e   : > { %v9372_v21 = vpop.eup %9371  ;;  %v7119_v3 = vmul.f32 0.0078125, %v7101_v36  ;;  %v7103_v8 = vpop.xlane.xlu0 %7102 }
 0xe3f   : > { %v7224_v37 = vadd.f32 %v9455_v16, %v7208_v33  ;;  %v7209_v28 = vadd.f32 %v13546_v32, %v7187_v45  ;;  %v7184_v2 = vmul.f32 %v13538_v41, %v7162_v12  ;;  %v7163_v24 = vmul.f32 %v9372_v21, %v13507_v44 }
 0xe40   : > { %9373 = vrsqrt.f32 %v7134_v23  ;;  %v7135_v49 = vadd.f32 1e-05, %v7119_v3  ;;  %v7120_v53 = vmul.f32 0.0078125, %v7103_v8  ;;  %v7105_v17 = vpop.xlane.xlu1 %7104 }
 0xe41   : > { %7240 = vst [vmem:[#allocation29 + $0x50] sm:$0xff] %v7224_v37  ;;  %v7225_v18 = vadd.f32 %v9456_v0, %v7209_v28  ;;  %v7206_v60 = vadd.f32 %v13546_v32, %v7184_v2  ;;  %v7185_v29 = vmul.f32 %v13538_v41, %v7163_v24  ;;  %v7121_v14 = vmul.f32 0.0078125, %v7105_v17 }
 0xe42   : > { %9375 = vrsqrt.f32 %v7135_v49  ;;  %v7136_v62 = vadd.f32 1e-05, %v7120_v53 }
 0xe43   : > { %7241 = vst [vmem:[#allocation29 + $0x58] sm:$0xff] %v7225_v18  ;;  %v7222_v13 = vadd.f32 %v9457_v54, %v7206_v60  ;;  %v7207_v38 = vadd.f32 %v13546_v32, %v7185_v29  ;;  %v7137_v44 = vadd.f32 1e-05, %v7121_v14 }
 0xe44   : > { %9377 = vrsqrt.f32 %v7136_v62 }
 0xe45   : > { %7238 = vst [vmem:[#allocation29 + $0x40] sm:$0xff] %v7222_v13  ;;  %v7223_v4 = vadd.f32 %v9458_v5, %v7207_v38  ;;  %9379 = vrsqrt.f32 %v7137_v44 }
 0xe47   : > { %7239 = vst [vmem:[#allocation29 + $0x48] sm:$0xff] %v7223_v4 }
 0xe4a   : > { %v9374_v9 = vpop.eup %9373 }
 0xe4b   : > { %v7166_v57 = vmul.f32 %v9374_v9, %v13514_v19 }
 0xe4c   : > { %v9376_v27 = vpop.eup %9375 }
 0xe4d   : > { %v7188_v20 = vmul.f32 %v13538_v41, %v7166_v57  ;;  %v7167_v59 = vmul.f32 %v9376_v27, %v13517_v55  ;;  %v9460_v55 = vld [vmem:[#allocation29 + $0x68] sm:$0xff] }
 0xe4e   : > { %v9378_v42 = vpop.eup %9377 }
 0xe4f   : > { %v9380_v25 = vpop.eup %9379  ;;  %v7210_v22 = vadd.f32 %v13546_v32, %v7188_v20  ;;  %v7189_v63 = vmul.f32 %v13538_v41, %v7167_v59  ;;  %v7168_v39 = vmul.f32 %v9378_v42, %v13522_v26 }
 0xe50   : > { %v7169_v48 = vmul.f32 %v9380_v25, %v13527_v31  ;;  %v9461_v31 = vld [vmem:[#allocation29 + $0x70] sm:$0xff] }
 0xe51   : > { %v7226_v50 = vadd.f32 %v9459_v30, %v7210_v22  ;;  %v7211_v19 = vadd.f32 %v13546_v32, %v7189_v63  ;;  %v7190_v58 = vmul.f32 %v13538_v41, %v7168_v39 }
 0xe52   : > { %v7191_v51 = vmul.f32 %v13538_v41, %v7169_v48 }
 0xe53   : > { %7242 = vst [vmem:[#allocation29 + $0x60] sm:$0xff] %v7226_v50  ;;  %v7227_v52 = vadd.f32 %v9460_v55, %v7211_v19  ;;  %v7212_v47 = vadd.f32 %v13546_v32, %v7190_v58 }
 0xe54   : > { %v7213_v26 = vadd.f32 %v13546_v32, %v7191_v51 }
 0xe55   : > { %7243 = vst [vmem:[#allocation29 + $0x68] sm:$0xff] %v7227_v52  ;;  %v7228_v40 = vadd.f32 %v9461_v31, %v7212_v47 }
 0xe56   : > { %v7229_v61 = vadd.f32 %v9462_v11, %v7213_v26 }
 0xe57   : > { %7244 = vst [vmem:[#allocation29 + $0x70] sm:$0xff] %v7228_v40 }
 0xe58   : > { %7245 = vst [vmem:[#allocation29 + $0x78] sm:$0xff] %v7229_v61 }
 0xe59   : > { %9894 = shalt.err (!%p9891_p13)
}
 0xe5a   : > { %s13984_s17 = sld [smem:[#allocation98_spill]] }
 0xe60   : > { %s9895_s30 = scalar_lea.hbm %s13984_s17, 2048 }
 0xe61   : > { %p9896_p5 = scmp.ne.s32.totalorder %s13984_s17, %s9895_s30  ;;  %p9901_p12 = scmp.lt.u32.totalorder %s9895_s30, %s13984_s17 }
 0xe63   : > { %p9897_p11 = pnand %p9896_p5, %p9094_p7 }
 0xe65   : > { %p9898_p0 = pneg %p9897_p11 }
 0xe67   : > { %p9903_p1 = pnand %p9901_p12, %p9898_p0 }
 0xe69   : > { %9906 = shalt.err (!%p9903_p1)
}
 0xe6a   : > { %s9997_s16 = smov 128   ;;  %s9998_s25 = smov 8  }
 0xe6b   : > { %9044 = dma.vmem_to_hbm [thread:$0]  (%p9094_p7), %s7253_s0, 2048, %s13984_s17, [#allocation8], %s9997_s16, %s9997_s16, %s9998_s25  }
 0xe6c   : > { %9956 = dma.done.wait (%p9094_p7), [#allocation8], 2048  }
 0xe6d   : > { %9958 = vsyncadd (%p9094_p7), [#allocation8], 4294965248 }
 0xe6e PF: > { %s13985_s30 = sld [smem:[#allocation41_spill]]  ;;  %s13986_s3 = sld [smem:[#allocation39_spill]] }
 0xe6f   : > { %s13987_s28 = sld [smem:[#allocation40_spill]]  ;;  %s13988_s29 = sld [smem:[#allocation42_spill]] }
 0xe74   : > { %p52_p4 = scmp.ge.s32.totalorder %s13985_s30, 5  }
 0xe76   :  { %54 = sbr.rel (!%p52_p4) target bundleno = 39 (0x27), region = 310 }
 0xe7d   :  { %7268 = vsyncpa [#allocation7], 1 }
 0xe7e   :  { %7270 = vsyncpa [#allocation7 + $0x1], 1 }
 0xe7f   :  { %7271 = vsyncpa [#allocation10], 1 }
 0xe80   :  { %7273 = vsyncpa [#allocation10 + $0x1], 1 }
 0xe81   :  { %7274 = vsyncpa [#allocation13], 1 }
 0xe82   :  { %7276 = vsyncpa [#allocation13 + $0x1], 1 }
 0xe83   :  { %7277 = vsyncpa [#allocation16], 1 }
 0xe84   :  { %7279 = vsyncpa [#allocation16 + $0x1], 1 }
 0xe85   :  { %7280 = vsyncpa [#allocation19], 1 }
 0xe86   :  { %7282 = vsyncpa [#allocation19 + $0x1], 1 }
 0xe87   :  { %7283 = vsyncpa [#allocation22], 1 }
 0xe88   :  { %7285 = vsyncpa [#allocation22 + $0x1], 1 }
 0xe89   :  { %7286 = vsyncpa [#allocation25], 1 }
 0xe8a   :  { %7288 = vsyncpa [#allocation25 + $0x1], 1 }
 0xe8b   :  { %7289 = vsyncpa [#allocation28], 1 }
 0xe8c   :  { %7291 = vsyncpa [#allocation28 + $0x1], 1 }
 0xe8d   :  { %7292 = vsyncpa [#allocation8], 1 }
 0xe8e   :  { %7294 = vsyncpa [#allocation8 + $0x1], 1 }

</bundles_post_ra>
